<compile_context>
chip_gen: v5e
topology: v5e:2x2
jax: 0.10.0
libtpu: 0.0.40
codegen_flags: <defaults>
</compile_context>

<pallas_src>
import functools

import numpy as np
import jax
import jax.numpy as jnp
from jax.experimental import pallas as pl
from jax.experimental.pallas import tpu as pltpu


# ------------------------------- helpers ----------------------------------- #

def _round_up(v, m):
    return ((v + m - 1) // m) * m


_WEIGHT_KEYS = ("w1m", "b1m", "w2m", "b2m", "w3m", "b3m", "wh1", "bh1", "wh2", "bh2")

_COMPILER_PARAMS = pltpu.CompilerParams(
    dimension_semantics=("parallel",),
    vmem_limit_bytes=48 * 1024 * 1024,   # ~20 MiB used at tb=128; headroom on v7x (64 MiB)
)


# ----------------------------- Pallas kernel -------------------------------- #

def _dpdn_kernel(xs_ref, w1_ref, b1_ref, w2_ref, b2_ref, w3_ref, b3_ref,
                 wh1_ref, bh1_ref, wh2_ref, bh2_ref, o_ref,
                 *, h1o, w1o, h2o, w2o, h3o, w3o):
    """Entire DPDN forward for one batch tile.

    xs_ref: [hu, wu, tb, 16*C]  space-to-batch conv1 input (hu=h1o+1, wu=w1o+1), bf16.
    """
    f32 = jnp.float32
    bf16 = jnp.bfloat16
    tb = o_ref.shape[0]

    # ---- conv1: 8x8 stride 4 == 2x2 stride-1 window over the s2b cell grid ---- #
    w1 = w1_ref[...]
    b1 = b1_ref[...]
    y1 = []                                     # y1[oh] : [w1o, tb, 32] bf16
    for oh in range(h1o):
        r0 = xs_ref[oh]                         # [wu, tb, 16C]
        r1 = xs_ref[oh + 1]
        # slab order (qi, qj) = (0,0),(0,1),(1,0),(1,1) matches w1m row order.
        slabs = [r0[0:w1o], r0[1:w1o + 1], r1[0:w1o], r1[1:w1o + 1]]
        prow = jnp.concatenate(slabs, axis=-1)                     # [w1o, tb, 64C]
        prow = prow.reshape(w1o * tb, prow.shape[-1])              # layout-preserving (tb%16==0)
        hrow = jnp.dot(prow, w1, preferred_element_type=f32) + b1  # [w1o*tb, 32] f32
        y1.append(jnp.maximum(hrow, 0.0).astype(bf16).reshape(w1o, tb, 32))

    # ---- conv2: 4x4 stride 2 ---- #
    p2 = []
    for oh2 in range(h2o):
        for ow2 in range(w2o):
            pieces = [y1[2 * oh2 + i][2 * ow2 + j]
                      for i in range(4) for j in range(4)]         # 16 x [tb, 32]
            p2.append(jnp.concatenate(pieces, axis=-1))            # [tb, 512]
    p2 = jnp.concatenate(p2, axis=0)                               # [h2o*w2o*tb, 512]
    y2 = jnp.dot(p2, w2_ref[...], preferred_element_type=f32) + b2_ref[...]
    y2 = jnp.maximum(y2, 0.0).astype(bf16)                         # [h2o*w2o*tb, 64]

    # ---- conv3: 3x3 stride 1 ---- #
    p3 = []
    for oh3 in range(h3o):
        for ow3 in range(w3o):
            pieces = [y2[((oh3 + i) * w2o + (ow3 + j)) * tb:
                         ((oh3 + i) * w2o + (ow3 + j) + 1) * tb, :]
                      for i in range(3) for j in range(3)]         # 9 x [tb, 64]
            p3.append(jnp.concatenate(pieces, axis=-1))            # [tb, 576]
    p3 = jnp.concatenate(p3, axis=0)                               # [h3o*w3o*tb, 576]
    y3 = jnp.dot(p3, w3_ref[...], preferred_element_type=f32) + b3_ref[...]
    y3 = jnp.maximum(y3, 0.0).astype(bf16)                         # [h3o*w3o*tb, 64]

    # ---- flatten in (h, w, c) order + fused dueling NoisyLinear head ---- #
    feats = jnp.concatenate(
        [y3[p * tb:(p + 1) * tb, :] for p in range(h3o * w3o)], axis=-1)   # [tb, 64*h3o*w3o]

    h1 = jnp.dot(feats, wh1_ref[...], preferred_element_type=f32) + bh1_ref[...]
    h1 = jnp.maximum(h1, 0.0).astype(bf16)                         # [tb, 1024]

    out2 = jnp.dot(h1, wh2_ref[...], preferred_element_type=f32) + bh2_ref[...]  # [tb, 1+A]
    value = out2[:, 0:1]
    adv = out2[:, 1:]
    o_ref[...] = value + adv - jnp.mean(adv, axis=-1, keepdims=True)


# --------------------------- parameter setup -------------------------------- #

def _conv_params(key, c_out, c_in, k):
    k1, k2 = jax.random.split(key)
    bound = 1.0 / np.sqrt(c_in * k * k)
    w = jax.random.uniform(k1, (c_out, c_in, k, k), jnp.float32, -bound, bound)
    b = jax.random.uniform(k2, (c_out,), jnp.float32, -bound, bound)
    return w, b


def _noisy_linear_params(key, fan_in, fan_out, sigma0):
    """Effective (mu + sigma*eps) weights of a factorized NoisyLinear layer.
    Returns W [fan_in, fan_out], b [fan_out]."""
    k1, k2, k3, k4 = jax.random.split(key, 4)
    bound = 1.0 / np.sqrt(fan_in)
    w_mu = jax.random.uniform(k1, (fan_out, fan_in), jnp.float32, -bound, bound)
    b_mu = jax.random.uniform(k2, (fan_out,), jnp.float32, -bound, bound)
    sig = sigma0 / np.sqrt(fan_in)

    def f(v):
        return jnp.sign(v) * jnp.sqrt(jnp.abs(v))

    eps_in = f(jax.random.normal(k3, (fan_in,), jnp.float32))
    eps_out = f(jax.random.normal(k4, (fan_out,), jnp.float32))
    w = w_mu + sig * jnp.outer(eps_out, eps_in)   # [out, in]
    b = b_mu + sig * eps_out                      # [out]
    return w.T, b


def _conv1_s2b_mat(w):
    """conv1 weight [32, C, 8, 8] -> [(qi,qj,ri,rj,ci), 32] matching the in-kernel
    space-to-batch patch lane order (cells concatenated in (qi,qj) order)."""
    co, ci, _, _ = w.shape
    w6 = w.reshape(co, ci, 2, 4, 2, 4)                 # (co, ci, qi, ri, qj, rj)
    w6 = jnp.transpose(w6, (2, 4, 3, 5, 1, 0))          # (qi, qj, ri, rj, ci, co)
    return w6.reshape(64 * ci, co).astype(jnp.bfloat16)


def _conv_mat(w):
    """PyTorch conv weight [Cout, Cin, kh, kw] -> [(kh,kw,Cin), Cout] (channels-last patches)."""
    c_out, c_in, kh, kw = w.shape
    return jnp.transpose(w, (2, 3, 1, 0)).reshape(kh * kw * c_in, c_out).astype(jnp.bfloat16)


def _reorder_rows_chw_to_hwc(w, c, h, wd):
    """Head layer-1 weight rows: PyTorch NCHW-flatten order (c,h,w) -> (h,w,c)."""
    out = w.shape[1]
    return w.reshape(c, h, wd, out).transpose(1, 2, 0, 3).reshape(c * h * wd, out)


def init_dpdn_params(key, state_shape, num_actions, sigma0):
    channel, height, width = state_shape
    assert height % 4 == 0 and width % 4 == 0, "space-to-batch conv1 needs H,W % 4 == 0"
    h1 = (height - 8) // 4 + 1; w1 = (width - 8) // 4 + 1
    h2 = (h1 - 4) // 2 + 1;     w2 = (w1 - 4) // 2 + 1
    h3 = h2 - 2;                w3 = w2 - 2
    flat = 64 * h3 * w3

    keys = jax.random.split(key, 7)
    c1w, c1b = _conv_params(keys[0], 32, channel, 8)
    c2w, c2b = _conv_params(keys[1], 64, 32, 4)
    c3w, c3b = _conv_params(keys[2], 64, 64, 3)
    wv1, bv1 = _noisy_linear_params(keys[3], flat, 512, sigma0)
    wv2, bv2 = _noisy_linear_params(keys[4], 512, 1, sigma0)
    wa1, ba1 = _noisy_linear_params(keys[5], flat, 512, sigma0)
    wa2, ba2 = _noisy_linear_params(keys[6], 512, num_actions, sigma0)

    # head layer 1: reorder rows to (h,w,c) flatten order, concat value|advantage
    wv1 = _reorder_rows_chw_to_hwc(wv1, 64, h3, w3)
    wa1 = _reorder_rows_chw_to_hwc(wa1, 64, h3, w3)
    wh1 = jnp.concatenate([wv1, wa1], axis=1).astype(jnp.bfloat16)          # [flat, 1024]
    bh1 = jnp.concatenate([bv1, ba1], axis=0).reshape(1, 1024)              # f32

    # head layer 2: block-diagonal [1024, 1+A]: col 0 = value, cols 1.. = advantage
    A = num_actions
    w2blk = jnp.zeros((1024, 1 + A), jnp.float32)
    w2blk = w2blk.at[:512, 0:1].set(wv2).at[512:, 1:].set(wa2)
    bh2 = jnp.concatenate([bv2, ba2], axis=0).reshape(1, 1 + A)             # f32

    return dict(
        w1m=_conv1_s2b_mat(c1w), b1m=c1b.reshape(1, -1),
        w2m=_conv_mat(c2w),      b2m=c2b.reshape(1, -1),
        w3m=_conv_mat(c3w),      b3m=c3b.reshape(1, -1),
        wh1=wh1, bh1=bh1,
        wh2=w2blk.astype(jnp.bfloat16), bh2=bh2,
    )


# ------------------------------ forward pass -------------------------------- #

def dpdn_forward(params, x):
    """x: [B, C, H, W] f32 (NCHW, PyTorch convention) -> Q-values [B, A] f32."""
    B, C, H, W = x.shape
    assert H % 4 == 0 and W % 4 == 0, "space-to-batch conv1 needs H,W % 4 == 0"
    hu, wu = H // 4, W // 4
    h1o, w1o = hu - 1, wu - 1                 # conv1 output spatial
    h2o, w2o = (h1o - 4) // 2 + 1, (w1o - 4) // 2 + 1
    h3o, w3o = h2o - 2, w2o - 2
    A = params["bh2"].shape[1] - 1

    # batch tile; only the compact raw input is padded (and only if B isn't tile-aligned)
    tb = 128 if B >= 128 else _round_up(B, 16)
    B_pad = _round_up(B, tb)
    if B_pad != B:
        x = jnp.pad(x, ((0, B_pad - B), (0, 0), (0, 0), (0, 0)))

    # space-to-batch conv1 layout, position-major, bf16:
    #   xs[u, v, b, ri*4C + rj*C + ci] = x[b, ci, 4u+ri, 4v+rj]
    xs = (x.reshape(B_pad, C, hu, 4, wu, 4)
            .transpose(2, 4, 0, 3, 5, 1)
            .reshape(hu, wu, B_pad, 16 * C)
            .astype(jnp.bfloat16))

    kernel = functools.partial(_dpdn_kernel, h1o=h1o, w1o=w1o,
                               h2o=h2o, w2o=w2o, h3o=h3o, w3o=w3o)
    grid = (B_pad // tb,)
    in_specs = [pl.BlockSpec((hu, wu, tb, 16 * C), lambda i: (0, 0, i, 0))]
    in_specs += [pl.BlockSpec(params[k].shape, lambda i: (0, 0)) for k in _WEIGHT_KEYS]

    q = pl.pallas_call(
        kernel,
        out_shape=jax.ShapeDtypeStruct((B_pad, A), jnp.float32),
        grid_spec=pltpu.PrefetchScalarGridSpec(
            num_scalar_prefetch=0,
            grid=grid,
            in_specs=in_specs,
            out_specs=pl.BlockSpec((tb, A), lambda i: (i, 0))),
        compiler_params=_COMPILER_PARAMS,
    )(xs, *[params[k] for k in _WEIGHT_KEYS])

    return q[:B] if B_pad != B else q


if __name__ == "__main__":
    # 44x44 input -> conv tower -> 2x2x64 = 256 features -> dueling head (6 actions).
    state_shape = (4, 44, 44)
    num_actions = 6
    sigma0 = 0.5
    batch = 2

    key = jax.random.PRNGKey(0)
    k_params, k_input = jax.random.split(key)
    params = init_dpdn_params(k_params, state_shape, num_actions, sigma0)
    x = jax.random.normal(k_input, (batch,) + state_shape, jnp.float32)

    q = jax.jit(dpdn_forward)(params, x)
    q = jax.block_until_ready(q)

    assert q.shape == (batch, num_actions), q.shape
    assert bool(jnp.all(jnp.isfinite(q)))
    print("KERNEL_OK")
</pallas_src>

<mosaic_0001>
module attributes {stable_mosaic.version = 11 : i64} {
  func.func @_dpdn_kernel(%arg0: i32, %arg1: memref<11x11x16x64xbf16, #tpu.memory_space<vmem>>, %arg2: memref<256x32xbf16, #tpu.memory_space<vmem>>, %arg3: memref<1x32xf32, #tpu.memory_space<vmem>>, %arg4: memref<512x64xbf16, #tpu.memory_space<vmem>>, %arg5: memref<1x64xf32, #tpu.memory_space<vmem>>, %arg6: memref<576x64xbf16, #tpu.memory_space<vmem>>, %arg7: memref<1x64xf32, #tpu.memory_space<vmem>>, %arg8: memref<256x1024xbf16, #tpu.memory_space<vmem>>, %arg9: memref<1x1024xf32, #tpu.memory_space<vmem>>, %arg10: memref<1024x7xbf16, #tpu.memory_space<vmem>>, %arg11: memref<1x7xf32, #tpu.memory_space<vmem>>, %arg12: memref<16x6xf32, #tpu.memory_space<vmem>>) attributes {dimension_semantics = [#tpu.dimension_semantics<parallel>], iteration_bounds = array<i64: 1>, scalar_prefetch = 0 : i64, scratch_operands = 0 : i64, tpu.core_type = #tpu.core_type<tc>, window_params = [{transform_indices = @transform_0, window_bounds = array<i64: 11, 11, 16, 64>}, {pipeline_mode = #tpu.pipeline_mode<synchronous>, transform_indices = @transform_1, window_bounds = array<i64: 256, 32>}, {pipeline_mode = #tpu.pipeline_mode<synchronous>, transform_indices = @transform_2, window_bounds = array<i64: 1, 32>}, {pipeline_mode = #tpu.pipeline_mode<synchronous>, transform_indices = @transform_3, window_bounds = array<i64: 512, 64>}, {pipeline_mode = #tpu.pipeline_mode<synchronous>, transform_indices = @transform_4, window_bounds = array<i64: 1, 64>}, {pipeline_mode = #tpu.pipeline_mode<synchronous>, transform_indices = @transform_5, window_bounds = array<i64: 576, 64>}, {pipeline_mode = #tpu.pipeline_mode<synchronous>, transform_indices = @transform_6, window_bounds = array<i64: 1, 64>}, {pipeline_mode = #tpu.pipeline_mode<synchronous>, transform_indices = @transform_7, window_bounds = array<i64: 256, 1024>}, {pipeline_mode = #tpu.pipeline_mode<synchronous>, transform_indices = @transform_8, window_bounds = array<i64: 1, 1024>}, {pipeline_mode = #tpu.pipeline_mode<synchronous>, transform_indices = @transform_9, window_bounds = array<i64: 1024, 7>}, {pipeline_mode = #tpu.pipeline_mode<synchronous>, transform_indices = @transform_10, window_bounds = array<i64: 1, 7>}, {transform_indices = @transform_11, window_bounds = array<i64: 16, 6>}]} {
    %c0 = arith.constant 0 : index
    %c0_0 = arith.constant 0 : index
    %0 = vector.load %arg2[%c0, %c0_0] : memref<256x32xbf16, #tpu.memory_space<vmem>>, vector<256x32xbf16>
    %c0_1 = arith.constant 0 : index
    %c0_2 = arith.constant 0 : index
    %1 = vector.load %arg3[%c0_1, %c0_2] : memref<1x32xf32, #tpu.memory_space<vmem>>, vector<1x32xf32>
    %c0_3 = arith.constant 0 : index
    %c0_4 = arith.constant 0 : index
    %c0_5 = arith.constant 0 : index
    %c0_6 = arith.constant 0 : index
    %2 = vector.load %arg1[%c0_3, %c0_4, %c0_5, %c0_6] : memref<11x11x16x64xbf16, #tpu.memory_space<vmem>>, vector<1x11x16x64xbf16>
    %3 = vector.shape_cast %2 : vector<1x11x16x64xbf16> to vector<11x16x64xbf16>
    %c1 = arith.constant 1 : index
    %c0_7 = arith.constant 0 : index
    %c0_8 = arith.constant 0 : index
    %c0_9 = arith.constant 0 : index
    %4 = vector.load %arg1[%c1, %c0_7, %c0_8, %c0_9] : memref<11x11x16x64xbf16, #tpu.memory_space<vmem>>, vector<1x11x16x64xbf16>
    %5 = vector.shape_cast %4 : vector<1x11x16x64xbf16> to vector<11x16x64xbf16>
    %6 = vector.extract_strided_slice %3 {offsets = [0, 0, 0], sizes = [10, 16, 64], strides = [1, 1, 1]} : vector<11x16x64xbf16> to vector<10x16x64xbf16>
    %7 = vector.extract_strided_slice %3 {offsets = [1, 0, 0], sizes = [10, 16, 64], strides = [1, 1, 1]} : vector<11x16x64xbf16> to vector<10x16x64xbf16>
    %8 = vector.extract_strided_slice %5 {offsets = [0, 0, 0], sizes = [10, 16, 64], strides = [1, 1, 1]} : vector<11x16x64xbf16> to vector<10x16x64xbf16>
    %9 = vector.extract_strided_slice %5 {offsets = [1, 0, 0], sizes = [10, 16, 64], strides = [1, 1, 1]} : vector<11x16x64xbf16> to vector<10x16x64xbf16>
    %10 = tpu.concatenate %6, %7, %8, %9 in 2 : vector<10x16x64xbf16>, vector<10x16x64xbf16>, vector<10x16x64xbf16>, vector<10x16x64xbf16> -> vector<10x16x256xbf16>
    %11 = vector.shape_cast %10 : vector<10x16x256xbf16> to vector<160x256xbf16>
    %cst = arith.constant dense<0.000000e+00> : vector<160x32xf32>
    %12 = tpu.matmul %11, %0, %cst {dimension_numbers = #tpu.dot_dimension_numbers<[1], [0], [0], [1], [0, 0, 1, 1], [], []>} : vector<160x256xbf16>, vector<256x32xbf16>, vector<160x32xf32> -> vector<160x32xf32>
    %13 = vector.broadcast %1 : vector<1x32xf32> to vector<160x32xf32>
    %14 = arith.addf %12, %13 : vector<160x32xf32>
    %cst_10 = arith.constant 0.000000e+00 : f32
    %15 = vector.broadcast %cst_10 : f32 to vector<160x32xf32>
    %16 = arith.maximumf %14, %15 : vector<160x32xf32>
    %17 = arith.truncf %16 : vector<160x32xf32> to vector<160x32xbf16>
    %18 = vector.shape_cast %17 : vector<160x32xbf16> to vector<10x16x32xbf16>
    %c1_11 = arith.constant 1 : index
    %c0_12 = arith.constant 0 : index
    %c0_13 = arith.constant 0 : index
    %c0_14 = arith.constant 0 : index
    %19 = vector.load %arg1[%c1_11, %c0_12, %c0_13, %c0_14] : memref<11x11x16x64xbf16, #tpu.memory_space<vmem>>, vector<1x11x16x64xbf16>
    %20 = vector.shape_cast %19 : vector<1x11x16x64xbf16> to vector<11x16x64xbf16>
    %c2 = arith.constant 2 : index
    %c0_15 = arith.constant 0 : index
    %c0_16 = arith.constant 0 : index
    %c0_17 = arith.constant 0 : index
    %21 = vector.load %arg1[%c2, %c0_15, %c0_16, %c0_17] : memref<11x11x16x64xbf16, #tpu.memory_space<vmem>>, vector<1x11x16x64xbf16>
    %22 = vector.shape_cast %21 : vector<1x11x16x64xbf16> to vector<11x16x64xbf16>
    %23 = vector.extract_strided_slice %20 {offsets = [0, 0, 0], sizes = [10, 16, 64], strides = [1, 1, 1]} : vector<11x16x64xbf16> to vector<10x16x64xbf16>
    %24 = vector.extract_strided_slice %20 {offsets = [1, 0, 0], sizes = [10, 16, 64], strides = [1, 1, 1]} : vector<11x16x64xbf16> to vector<10x16x64xbf16>
    %25 = vector.extract_strided_slice %22 {offsets = [0, 0, 0], sizes = [10, 16, 64], strides = [1, 1, 1]} : vector<11x16x64xbf16> to vector<10x16x64xbf16>
    %26 = vector.extract_strided_slice %22 {offsets = [1, 0, 0], sizes = [10, 16, 64], strides = [1, 1, 1]} : vector<11x16x64xbf16> to vector<10x16x64xbf16>
    %27 = tpu.concatenate %23, %24, %25, %26 in 2 : vector<10x16x64xbf16>, vector<10x16x64xbf16>, vector<10x16x64xbf16>, vector<10x16x64xbf16> -> vector<10x16x256xbf16>
    %28 = vector.shape_cast %27 : vector<10x16x256xbf16> to vector<160x256xbf16>
    %cst_18 = arith.constant dense<0.000000e+00> : vector<160x32xf32>
    %29 = tpu.matmul %28, %0, %cst_18 {dimension_numbers = #tpu.dot_dimension_numbers<[1], [0], [0], [1], [0, 0, 1, 1], [], []>} : vector<160x256xbf16>, vector<256x32xbf16>, vector<160x32xf32> -> vector<160x32xf32>
    %30 = vector.broadcast %1 : vector<1x32xf32> to vector<160x32xf32>
    %31 = arith.addf %29, %30 : vector<160x32xf32>
    %cst_19 = arith.constant 0.000000e+00 : f32
    %32 = vector.broadcast %cst_19 : f32 to vector<160x32xf32>
    %33 = arith.maximumf %31, %32 : vector<160x32xf32>
    %34 = arith.truncf %33 : vector<160x32xf32> to vector<160x32xbf16>
    %35 = vector.shape_cast %34 : vector<160x32xbf16> to vector<10x16x32xbf16>
    %c2_20 = arith.constant 2 : index
    %c0_21 = arith.constant 0 : index
    %c0_22 = arith.constant 0 : index
    %c0_23 = arith.constant 0 : index
    %36 = vector.load %arg1[%c2_20, %c0_21, %c0_22, %c0_23] : memref<11x11x16x64xbf16, #tpu.memory_space<vmem>>, vector<1x11x16x64xbf16>
    %37 = vector.shape_cast %36 : vector<1x11x16x64xbf16> to vector<11x16x64xbf16>
    %c3 = arith.constant 3 : index
    %c0_24 = arith.constant 0 : index
    %c0_25 = arith.constant 0 : index
    %c0_26 = arith.constant 0 : index
    %38 = vector.load %arg1[%c3, %c0_24, %c0_25, %c0_26] : memref<11x11x16x64xbf16, #tpu.memory_space<vmem>>, vector<1x11x16x64xbf16>
    %39 = vector.shape_cast %38 : vector<1x11x16x64xbf16> to vector<11x16x64xbf16>
    %40 = vector.extract_strided_slice %37 {offsets = [0, 0, 0], sizes = [10, 16, 64], strides = [1, 1, 1]} : vector<11x16x64xbf16> to vector<10x16x64xbf16>
    %41 = vector.extract_strided_slice %37 {offsets = [1, 0, 0], sizes = [10, 16, 64], strides = [1, 1, 1]} : vector<11x16x64xbf16> to vector<10x16x64xbf16>
    %42 = vector.extract_strided_slice %39 {offsets = [0, 0, 0], sizes = [10, 16, 64], strides = [1, 1, 1]} : vector<11x16x64xbf16> to vector<10x16x64xbf16>
    %43 = vector.extract_strided_slice %39 {offsets = [1, 0, 0], sizes = [10, 16, 64], strides = [1, 1, 1]} : vector<11x16x64xbf16> to vector<10x16x64xbf16>
    %44 = tpu.concatenate %40, %41, %42, %43 in 2 : vector<10x16x64xbf16>, vector<10x16x64xbf16>, vector<10x16x64xbf16>, vector<10x16x64xbf16> -> vector<10x16x256xbf16>
    %45 = vector.shape_cast %44 : vector<10x16x256xbf16> to vector<160x256xbf16>
    %cst_27 = arith.constant dense<0.000000e+00> : vector<160x32xf32>
    %46 = tpu.matmul %45, %0, %cst_27 {dimension_numbers = #tpu.dot_dimension_numbers<[1], [0], [0], [1], [0, 0, 1, 1], [], []>} : vector<160x256xbf16>, vector<256x32xbf16>, vector<160x32xf32> -> vector<160x32xf32>
    %47 = vector.broadcast %1 : vector<1x32xf32> to vector<160x32xf32>
    %48 = arith.addf %46, %47 : vector<160x32xf32>
    %cst_28 = arith.constant 0.000000e+00 : f32
    %49 = vector.broadcast %cst_28 : f32 to vector<160x32xf32>
    %50 = arith.maximumf %48, %49 : vector<160x32xf32>
    %51 = arith.truncf %50 : vector<160x32xf32> to vector<160x32xbf16>
    %52 = vector.shape_cast %51 : vector<160x32xbf16> to vector<10x16x32xbf16>
    %c3_29 = arith.constant 3 : index
    %c0_30 = arith.constant 0 : index
    %c0_31 = arith.constant 0 : index
    %c0_32 = arith.constant 0 : index
    %53 = vector.load %arg1[%c3_29, %c0_30, %c0_31, %c0_32] : memref<11x11x16x64xbf16, #tpu.memory_space<vmem>>, vector<1x11x16x64xbf16>
    %54 = vector.shape_cast %53 : vector<1x11x16x64xbf16> to vector<11x16x64xbf16>
    %c4 = arith.constant 4 : index
    %c0_33 = arith.constant 0 : index
    %c0_34 = arith.constant 0 : index
    %c0_35 = arith.constant 0 : index
    %55 = vector.load %arg1[%c4, %c0_33, %c0_34, %c0_35] : memref<11x11x16x64xbf16, #tpu.memory_space<vmem>>, vector<1x11x16x64xbf16>
    %56 = vector.shape_cast %55 : vector<1x11x16x64xbf16> to vector<11x16x64xbf16>
    %57 = vector.extract_strided_slice %54 {offsets = [0, 0, 0], sizes = [10, 16, 64], strides = [1, 1, 1]} : vector<11x16x64xbf16> to vector<10x16x64xbf16>
    %58 = vector.extract_strided_slice %54 {offsets = [1, 0, 0], sizes = [10, 16, 64], strides = [1, 1, 1]} : vector<11x16x64xbf16> to vector<10x16x64xbf16>
    %59 = vector.extract_strided_slice %56 {offsets = [0, 0, 0], sizes = [10, 16, 64], strides = [1, 1, 1]} : vector<11x16x64xbf16> to vector<10x16x64xbf16>
    %60 = vector.extract_strided_slice %56 {offsets = [1, 0, 0], sizes = [10, 16, 64], strides = [1, 1, 1]} : vector<11x16x64xbf16> to vector<10x16x64xbf16>
    %61 = tpu.concatenate %57, %58, %59, %60 in 2 : vector<10x16x64xbf16>, vector<10x16x64xbf16>, vector<10x16x64xbf16>, vector<10x16x64xbf16> -> vector<10x16x256xbf16>
    %62 = vector.shape_cast %61 : vector<10x16x256xbf16> to vector<160x256xbf16>
    %cst_36 = arith.constant dense<0.000000e+00> : vector<160x32xf32>
    %63 = tpu.matmul %62, %0, %cst_36 {dimension_numbers = #tpu.dot_dimension_numbers<[1], [0], [0], [1], [0, 0, 1, 1], [], []>} : vector<160x256xbf16>, vector<256x32xbf16>, vector<160x32xf32> -> vector<160x32xf32>
    %64 = vector.broadcast %1 : vector<1x32xf32> to vector<160x32xf32>
    %65 = arith.addf %63, %64 : vector<160x32xf32>
    %cst_37 = arith.constant 0.000000e+00 : f32
    %66 = vector.broadcast %cst_37 : f32 to vector<160x32xf32>
    %67 = arith.maximumf %65, %66 : vector<160x32xf32>
    %68 = arith.truncf %67 : vector<160x32xf32> to vector<160x32xbf16>
    %69 = vector.shape_cast %68 : vector<160x32xbf16> to vector<10x16x32xbf16>
    %c4_38 = arith.constant 4 : index
    %c0_39 = arith.constant 0 : index
    %c0_40 = arith.constant 0 : index
    %c0_41 = arith.constant 0 : index
    %70 = vector.load %arg1[%c4_38, %c0_39, %c0_40, %c0_41] : memref<11x11x16x64xbf16, #tpu.memory_space<vmem>>, vector<1x11x16x64xbf16>
    %71 = vector.shape_cast %70 : vector<1x11x16x64xbf16> to vector<11x16x64xbf16>
    %c5 = arith.constant 5 : index
    %c0_42 = arith.constant 0 : index
    %c0_43 = arith.constant 0 : index
    %c0_44 = arith.constant 0 : index
    %72 = vector.load %arg1[%c5, %c0_42, %c0_43, %c0_44] : memref<11x11x16x64xbf16, #tpu.memory_space<vmem>>, vector<1x11x16x64xbf16>
    %73 = vector.shape_cast %72 : vector<1x11x16x64xbf16> to vector<11x16x64xbf16>
    %74 = vector.extract_strided_slice %71 {offsets = [0, 0, 0], sizes = [10, 16, 64], strides = [1, 1, 1]} : vector<11x16x64xbf16> to vector<10x16x64xbf16>
    %75 = vector.extract_strided_slice %71 {offsets = [1, 0, 0], sizes = [10, 16, 64], strides = [1, 1, 1]} : vector<11x16x64xbf16> to vector<10x16x64xbf16>
    %76 = vector.extract_strided_slice %73 {offsets = [0, 0, 0], sizes = [10, 16, 64], strides = [1, 1, 1]} : vector<11x16x64xbf16> to vector<10x16x64xbf16>
    %77 = vector.extract_strided_slice %73 {offsets = [1, 0, 0], sizes = [10, 16, 64], strides = [1, 1, 1]} : vector<11x16x64xbf16> to vector<10x16x64xbf16>
    %78 = tpu.concatenate %74, %75, %76, %77 in 2 : vector<10x16x64xbf16>, vector<10x16x64xbf16>, vector<10x16x64xbf16>, vector<10x16x64xbf16> -> vector<10x16x256xbf16>
    %79 = vector.shape_cast %78 : vector<10x16x256xbf16> to vector<160x256xbf16>
    %cst_45 = arith.constant dense<0.000000e+00> : vector<160x32xf32>
    %80 = tpu.matmul %79, %0, %cst_45 {dimension_numbers = #tpu.dot_dimension_numbers<[1], [0], [0], [1], [0, 0, 1, 1], [], []>} : vector<160x256xbf16>, vector<256x32xbf16>, vector<160x32xf32> -> vector<160x32xf32>
    %81 = vector.broadcast %1 : vector<1x32xf32> to vector<160x32xf32>
    %82 = arith.addf %80, %81 : vector<160x32xf32>
    %cst_46 = arith.constant 0.000000e+00 : f32
    %83 = vector.broadcast %cst_46 : f32 to vector<160x32xf32>
    %84 = arith.maximumf %82, %83 : vector<160x32xf32>
    %85 = arith.truncf %84 : vector<160x32xf32> to vector<160x32xbf16>
    %86 = vector.shape_cast %85 : vector<160x32xbf16> to vector<10x16x32xbf16>
    %c5_47 = arith.constant 5 : index
    %c0_48 = arith.constant 0 : index
    %c0_49 = arith.constant 0 : index
    %c0_50 = arith.constant 0 : index
    %87 = vector.load %arg1[%c5_47, %c0_48, %c0_49, %c0_50] : memref<11x11x16x64xbf16, #tpu.memory_space<vmem>>, vector<1x11x16x64xbf16>
    %88 = vector.shape_cast %87 : vector<1x11x16x64xbf16> to vector<11x16x64xbf16>
    %c6 = arith.constant 6 : index
    %c0_51 = arith.constant 0 : index
    %c0_52 = arith.constant 0 : index
    %c0_53 = arith.constant 0 : index
    %89 = vector.load %arg1[%c6, %c0_51, %c0_52, %c0_53] : memref<11x11x16x64xbf16, #tpu.memory_space<vmem>>, vector<1x11x16x64xbf16>
    %90 = vector.shape_cast %89 : vector<1x11x16x64xbf16> to vector<11x16x64xbf16>
    %91 = vector.extract_strided_slice %88 {offsets = [0, 0, 0], sizes = [10, 16, 64], strides = [1, 1, 1]} : vector<11x16x64xbf16> to vector<10x16x64xbf16>
    %92 = vector.extract_strided_slice %88 {offsets = [1, 0, 0], sizes = [10, 16, 64], strides = [1, 1, 1]} : vector<11x16x64xbf16> to vector<10x16x64xbf16>
    %93 = vector.extract_strided_slice %90 {offsets = [0, 0, 0], sizes = [10, 16, 64], strides = [1, 1, 1]} : vector<11x16x64xbf16> to vector<10x16x64xbf16>
    %94 = vector.extract_strided_slice %90 {offsets = [1, 0, 0], sizes = [10, 16, 64], strides = [1, 1, 1]} : vector<11x16x64xbf16> to vector<10x16x64xbf16>
    %95 = tpu.concatenate %91, %92, %93, %94 in 2 : vector<10x16x64xbf16>, vector<10x16x64xbf16>, vector<10x16x64xbf16>, vector<10x16x64xbf16> -> vector<10x16x256xbf16>
    %96 = vector.shape_cast %95 : vector<10x16x256xbf16> to vector<160x256xbf16>
    %cst_54 = arith.constant dense<0.000000e+00> : vector<160x32xf32>
    %97 = tpu.matmul %96, %0, %cst_54 {dimension_numbers = #tpu.dot_dimension_numbers<[1], [0], [0], [1], [0, 0, 1, 1], [], []>} : vector<160x256xbf16>, vector<256x32xbf16>, vector<160x32xf32> -> vector<160x32xf32>
    %98 = vector.broadcast %1 : vector<1x32xf32> to vector<160x32xf32>
    %99 = arith.addf %97, %98 : vector<160x32xf32>
    %cst_55 = arith.constant 0.000000e+00 : f32
    %100 = vector.broadcast %cst_55 : f32 to vector<160x32xf32>
    %101 = arith.maximumf %99, %100 : vector<160x32xf32>
    %102 = arith.truncf %101 : vector<160x32xf32> to vector<160x32xbf16>
    %103 = vector.shape_cast %102 : vector<160x32xbf16> to vector<10x16x32xbf16>
    %c6_56 = arith.constant 6 : index
    %c0_57 = arith.constant 0 : index
    %c0_58 = arith.constant 0 : index
    %c0_59 = arith.constant 0 : index
    %104 = vector.load %arg1[%c6_56, %c0_57, %c0_58, %c0_59] : memref<11x11x16x64xbf16, #tpu.memory_space<vmem>>, vector<1x11x16x64xbf16>
    %105 = vector.shape_cast %104 : vector<1x11x16x64xbf16> to vector<11x16x64xbf16>
    %c7 = arith.constant 7 : index
    %c0_60 = arith.constant 0 : index
    %c0_61 = arith.constant 0 : index
    %c0_62 = arith.constant 0 : index
    %106 = vector.load %arg1[%c7, %c0_60, %c0_61, %c0_62] : memref<11x11x16x64xbf16, #tpu.memory_space<vmem>>, vector<1x11x16x64xbf16>
    %107 = vector.shape_cast %106 : vector<1x11x16x64xbf16> to vector<11x16x64xbf16>
    %108 = vector.extract_strided_slice %105 {offsets = [0, 0, 0], sizes = [10, 16, 64], strides = [1, 1, 1]} : vector<11x16x64xbf16> to vector<10x16x64xbf16>
    %109 = vector.extract_strided_slice %105 {offsets = [1, 0, 0], sizes = [10, 16, 64], strides = [1, 1, 1]} : vector<11x16x64xbf16> to vector<10x16x64xbf16>
    %110 = vector.extract_strided_slice %107 {offsets = [0, 0, 0], sizes = [10, 16, 64], strides = [1, 1, 1]} : vector<11x16x64xbf16> to vector<10x16x64xbf16>
    %111 = vector.extract_strided_slice %107 {offsets = [1, 0, 0], sizes = [10, 16, 64], strides = [1, 1, 1]} : vector<11x16x64xbf16> to vector<10x16x64xbf16>
    %112 = tpu.concatenate %108, %109, %110, %111 in 2 : vector<10x16x64xbf16>, vector<10x16x64xbf16>, vector<10x16x64xbf16>, vector<10x16x64xbf16> -> vector<10x16x256xbf16>
    %113 = vector.shape_cast %112 : vector<10x16x256xbf16> to vector<160x256xbf16>
    %cst_63 = arith.constant dense<0.000000e+00> : vector<160x32xf32>
    %114 = tpu.matmul %113, %0, %cst_63 {dimension_numbers = #tpu.dot_dimension_numbers<[1], [0], [0], [1], [0, 0, 1, 1], [], []>} : vector<160x256xbf16>, vector<256x32xbf16>, vector<160x32xf32> -> vector<160x32xf32>
    %115 = vector.broadcast %1 : vector<1x32xf32> to vector<160x32xf32>
    %116 = arith.addf %114, %115 : vector<160x32xf32>
    %cst_64 = arith.constant 0.000000e+00 : f32
    %117 = vector.broadcast %cst_64 : f32 to vector<160x32xf32>
    %118 = arith.maximumf %116, %117 : vector<160x32xf32>
    %119 = arith.truncf %118 : vector<160x32xf32> to vector<160x32xbf16>
    %120 = vector.shape_cast %119 : vector<160x32xbf16> to vector<10x16x32xbf16>
    %c7_65 = arith.constant 7 : index
    %c0_66 = arith.constant 0 : index
    %c0_67 = arith.constant 0 : index
    %c0_68 = arith.constant 0 : index
    %121 = vector.load %arg1[%c7_65, %c0_66, %c0_67, %c0_68] : memref<11x11x16x64xbf16, #tpu.memory_space<vmem>>, vector<1x11x16x64xbf16>
    %122 = vector.shape_cast %121 : vector<1x11x16x64xbf16> to vector<11x16x64xbf16>
    %c8 = arith.constant 8 : index
    %c0_69 = arith.constant 0 : index
    %c0_70 = arith.constant 0 : index
    %c0_71 = arith.constant 0 : index
    %123 = vector.load %arg1[%c8, %c0_69, %c0_70, %c0_71] : memref<11x11x16x64xbf16, #tpu.memory_space<vmem>>, vector<1x11x16x64xbf16>
    %124 = vector.shape_cast %123 : vector<1x11x16x64xbf16> to vector<11x16x64xbf16>
    %125 = vector.extract_strided_slice %122 {offsets = [0, 0, 0], sizes = [10, 16, 64], strides = [1, 1, 1]} : vector<11x16x64xbf16> to vector<10x16x64xbf16>
    %126 = vector.extract_strided_slice %122 {offsets = [1, 0, 0], sizes = [10, 16, 64], strides = [1, 1, 1]} : vector<11x16x64xbf16> to vector<10x16x64xbf16>
    %127 = vector.extract_strided_slice %124 {offsets = [0, 0, 0], sizes = [10, 16, 64], strides = [1, 1, 1]} : vector<11x16x64xbf16> to vector<10x16x64xbf16>
    %128 = vector.extract_strided_slice %124 {offsets = [1, 0, 0], sizes = [10, 16, 64], strides = [1, 1, 1]} : vector<11x16x64xbf16> to vector<10x16x64xbf16>
    %129 = tpu.concatenate %125, %126, %127, %128 in 2 : vector<10x16x64xbf16>, vector<10x16x64xbf16>, vector<10x16x64xbf16>, vector<10x16x64xbf16> -> vector<10x16x256xbf16>
    %130 = vector.shape_cast %129 : vector<10x16x256xbf16> to vector<160x256xbf16>
    %cst_72 = arith.constant dense<0.000000e+00> : vector<160x32xf32>
    %131 = tpu.matmul %130, %0, %cst_72 {dimension_numbers = #tpu.dot_dimension_numbers<[1], [0], [0], [1], [0, 0, 1, 1], [], []>} : vector<160x256xbf16>, vector<256x32xbf16>, vector<160x32xf32> -> vector<160x32xf32>
    %132 = vector.broadcast %1 : vector<1x32xf32> to vector<160x32xf32>
    %133 = arith.addf %131, %132 : vector<160x32xf32>
    %cst_73 = arith.constant 0.000000e+00 : f32
    %134 = vector.broadcast %cst_73 : f32 to vector<160x32xf32>
    %135 = arith.maximumf %133, %134 : vector<160x32xf32>
    %136 = arith.truncf %135 : vector<160x32xf32> to vector<160x32xbf16>
    %137 = vector.shape_cast %136 : vector<160x32xbf16> to vector<10x16x32xbf16>
    %c8_74 = arith.constant 8 : index
    %c0_75 = arith.constant 0 : index
    %c0_76 = arith.constant 0 : index
    %c0_77 = arith.constant 0 : index
    %138 = vector.load %arg1[%c8_74, %c0_75, %c0_76, %c0_77] : memref<11x11x16x64xbf16, #tpu.memory_space<vmem>>, vector<1x11x16x64xbf16>
    %139 = vector.shape_cast %138 : vector<1x11x16x64xbf16> to vector<11x16x64xbf16>
    %c9 = arith.constant 9 : index
    %c0_78 = arith.constant 0 : index
    %c0_79 = arith.constant 0 : index
    %c0_80 = arith.constant 0 : index
    %140 = vector.load %arg1[%c9, %c0_78, %c0_79, %c0_80] : memref<11x11x16x64xbf16, #tpu.memory_space<vmem>>, vector<1x11x16x64xbf16>
    %141 = vector.shape_cast %140 : vector<1x11x16x64xbf16> to vector<11x16x64xbf16>
    %142 = vector.extract_strided_slice %139 {offsets = [0, 0, 0], sizes = [10, 16, 64], strides = [1, 1, 1]} : vector<11x16x64xbf16> to vector<10x16x64xbf16>
    %143 = vector.extract_strided_slice %139 {offsets = [1, 0, 0], sizes = [10, 16, 64], strides = [1, 1, 1]} : vector<11x16x64xbf16> to vector<10x16x64xbf16>
    %144 = vector.extract_strided_slice %141 {offsets = [0, 0, 0], sizes = [10, 16, 64], strides = [1, 1, 1]} : vector<11x16x64xbf16> to vector<10x16x64xbf16>
    %145 = vector.extract_strided_slice %141 {offsets = [1, 0, 0], sizes = [10, 16, 64], strides = [1, 1, 1]} : vector<11x16x64xbf16> to vector<10x16x64xbf16>
    %146 = tpu.concatenate %142, %143, %144, %145 in 2 : vector<10x16x64xbf16>, vector<10x16x64xbf16>, vector<10x16x64xbf16>, vector<10x16x64xbf16> -> vector<10x16x256xbf16>
    %147 = vector.shape_cast %146 : vector<10x16x256xbf16> to vector<160x256xbf16>
    %cst_81 = arith.constant dense<0.000000e+00> : vector<160x32xf32>
    %148 = tpu.matmul %147, %0, %cst_81 {dimension_numbers = #tpu.dot_dimension_numbers<[1], [0], [0], [1], [0, 0, 1, 1], [], []>} : vector<160x256xbf16>, vector<256x32xbf16>, vector<160x32xf32> -> vector<160x32xf32>
    %149 = vector.broadcast %1 : vector<1x32xf32> to vector<160x32xf32>
    %150 = arith.addf %148, %149 : vector<160x32xf32>
    %cst_82 = arith.constant 0.000000e+00 : f32
    %151 = vector.broadcast %cst_82 : f32 to vector<160x32xf32>
    %152 = arith.maximumf %150, %151 : vector<160x32xf32>
    %153 = arith.truncf %152 : vector<160x32xf32> to vector<160x32xbf16>
    %154 = vector.shape_cast %153 : vector<160x32xbf16> to vector<10x16x32xbf16>
    %c9_83 = arith.constant 9 : index
    %c0_84 = arith.constant 0 : index
    %c0_85 = arith.constant 0 : index
    %c0_86 = arith.constant 0 : index
    %155 = vector.load %arg1[%c9_83, %c0_84, %c0_85, %c0_86] : memref<11x11x16x64xbf16, #tpu.memory_space<vmem>>, vector<1x11x16x64xbf16>
    %156 = vector.shape_cast %155 : vector<1x11x16x64xbf16> to vector<11x16x64xbf16>
    %c10 = arith.constant 10 : index
    %c0_87 = arith.constant 0 : index
    %c0_88 = arith.constant 0 : index
    %c0_89 = arith.constant 0 : index
    %157 = vector.load %arg1[%c10, %c0_87, %c0_88, %c0_89] : memref<11x11x16x64xbf16, #tpu.memory_space<vmem>>, vector<1x11x16x64xbf16>
    %158 = vector.shape_cast %157 : vector<1x11x16x64xbf16> to vector<11x16x64xbf16>
    %159 = vector.extract_strided_slice %156 {offsets = [0, 0, 0], sizes = [10, 16, 64], strides = [1, 1, 1]} : vector<11x16x64xbf16> to vector<10x16x64xbf16>
    %160 = vector.extract_strided_slice %156 {offsets = [1, 0, 0], sizes = [10, 16, 64], strides = [1, 1, 1]} : vector<11x16x64xbf16> to vector<10x16x64xbf16>
    %161 = vector.extract_strided_slice %158 {offsets = [0, 0, 0], sizes = [10, 16, 64], strides = [1, 1, 1]} : vector<11x16x64xbf16> to vector<10x16x64xbf16>
    %162 = vector.extract_strided_slice %158 {offsets = [1, 0, 0], sizes = [10, 16, 64], strides = [1, 1, 1]} : vector<11x16x64xbf16> to vector<10x16x64xbf16>
    %163 = tpu.concatenate %159, %160, %161, %162 in 2 : vector<10x16x64xbf16>, vector<10x16x64xbf16>, vector<10x16x64xbf16>, vector<10x16x64xbf16> -> vector<10x16x256xbf16>
    %164 = vector.shape_cast %163 : vector<10x16x256xbf16> to vector<160x256xbf16>
    %cst_90 = arith.constant dense<0.000000e+00> : vector<160x32xf32>
    %165 = tpu.matmul %164, %0, %cst_90 {dimension_numbers = #tpu.dot_dimension_numbers<[1], [0], [0], [1], [0, 0, 1, 1], [], []>} : vector<160x256xbf16>, vector<256x32xbf16>, vector<160x32xf32> -> vector<160x32xf32>
    %166 = vector.broadcast %1 : vector<1x32xf32> to vector<160x32xf32>
    %167 = arith.addf %165, %166 : vector<160x32xf32>
    %cst_91 = arith.constant 0.000000e+00 : f32
    %168 = vector.broadcast %cst_91 : f32 to vector<160x32xf32>
    %169 = arith.maximumf %167, %168 : vector<160x32xf32>
    %170 = arith.truncf %169 : vector<160x32xf32> to vector<160x32xbf16>
    %171 = vector.shape_cast %170 : vector<160x32xbf16> to vector<10x16x32xbf16>
    %172 = vector.extract_strided_slice %18 {offsets = [0, 0, 0], sizes = [1, 16, 32], strides = [1, 1, 1]} : vector<10x16x32xbf16> to vector<1x16x32xbf16>
    %173 = vector.shape_cast %172 : vector<1x16x32xbf16> to vector<16x32xbf16>
    %174 = vector.extract_strided_slice %18 {offsets = [1, 0, 0], sizes = [1, 16, 32], strides = [1, 1, 1]} : vector<10x16x32xbf16> to vector<1x16x32xbf16>
    %175 = vector.shape_cast %174 : vector<1x16x32xbf16> to vector<16x32xbf16>
    %176 = vector.extract_strided_slice %18 {offsets = [2, 0, 0], sizes = [1, 16, 32], strides = [1, 1, 1]} : vector<10x16x32xbf16> to vector<1x16x32xbf16>
    %177 = vector.shape_cast %176 : vector<1x16x32xbf16> to vector<16x32xbf16>
    %178 = vector.extract_strided_slice %18 {offsets = [3, 0, 0], sizes = [1, 16, 32], strides = [1, 1, 1]} : vector<10x16x32xbf16> to vector<1x16x32xbf16>
    %179 = vector.shape_cast %178 : vector<1x16x32xbf16> to vector<16x32xbf16>
    %180 = vector.extract_strided_slice %35 {offsets = [0, 0, 0], sizes = [1, 16, 32], strides = [1, 1, 1]} : vector<10x16x32xbf16> to vector<1x16x32xbf16>
    %181 = vector.shape_cast %180 : vector<1x16x32xbf16> to vector<16x32xbf16>
    %182 = vector.extract_strided_slice %35 {offsets = [1, 0, 0], sizes = [1, 16, 32], strides = [1, 1, 1]} : vector<10x16x32xbf16> to vector<1x16x32xbf16>
    %183 = vector.shape_cast %182 : vector<1x16x32xbf16> to vector<16x32xbf16>
    %184 = vector.extract_strided_slice %35 {offsets = [2, 0, 0], sizes = [1, 16, 32], strides = [1, 1, 1]} : vector<10x16x32xbf16> to vector<1x16x32xbf16>
    %185 = vector.shape_cast %184 : vector<1x16x32xbf16> to vector<16x32xbf16>
    %186 = vector.extract_strided_slice %35 {offsets = [3, 0, 0], sizes = [1, 16, 32], strides = [1, 1, 1]} : vector<10x16x32xbf16> to vector<1x16x32xbf16>
    %187 = vector.shape_cast %186 : vector<1x16x32xbf16> to vector<16x32xbf16>
    %188 = vector.extract_strided_slice %52 {offsets = [0, 0, 0], sizes = [1, 16, 32], strides = [1, 1, 1]} : vector<10x16x32xbf16> to vector<1x16x32xbf16>
    %189 = vector.shape_cast %188 : vector<1x16x32xbf16> to vector<16x32xbf16>
    %190 = vector.extract_strided_slice %52 {offsets = [1, 0, 0], sizes = [1, 16, 32], strides = [1, 1, 1]} : vector<10x16x32xbf16> to vector<1x16x32xbf16>
    %191 = vector.shape_cast %190 : vector<1x16x32xbf16> to vector<16x32xbf16>
    %192 = vector.extract_strided_slice %52 {offsets = [2, 0, 0], sizes = [1, 16, 32], strides = [1, 1, 1]} : vector<10x16x32xbf16> to vector<1x16x32xbf16>
    %193 = vector.shape_cast %192 : vector<1x16x32xbf16> to vector<16x32xbf16>
    %194 = vector.extract_strided_slice %52 {offsets = [3, 0, 0], sizes = [1, 16, 32], strides = [1, 1, 1]} : vector<10x16x32xbf16> to vector<1x16x32xbf16>
    %195 = vector.shape_cast %194 : vector<1x16x32xbf16> to vector<16x32xbf16>
    %196 = vector.extract_strided_slice %69 {offsets = [0, 0, 0], sizes = [1, 16, 32], strides = [1, 1, 1]} : vector<10x16x32xbf16> to vector<1x16x32xbf16>
    %197 = vector.shape_cast %196 : vector<1x16x32xbf16> to vector<16x32xbf16>
    %198 = vector.extract_strided_slice %69 {offsets = [1, 0, 0], sizes = [1, 16, 32], strides = [1, 1, 1]} : vector<10x16x32xbf16> to vector<1x16x32xbf16>
    %199 = vector.shape_cast %198 : vector<1x16x32xbf16> to vector<16x32xbf16>
    %200 = vector.extract_strided_slice %69 {offsets = [2, 0, 0], sizes = [1, 16, 32], strides = [1, 1, 1]} : vector<10x16x32xbf16> to vector<1x16x32xbf16>
    %201 = vector.shape_cast %200 : vector<1x16x32xbf16> to vector<16x32xbf16>
    %202 = vector.extract_strided_slice %69 {offsets = [3, 0, 0], sizes = [1, 16, 32], strides = [1, 1, 1]} : vector<10x16x32xbf16> to vector<1x16x32xbf16>
    %203 = vector.shape_cast %202 : vector<1x16x32xbf16> to vector<16x32xbf16>
    %204 = tpu.concatenate %173, %175, %177, %179, %181, %183, %185, %187, %189, %191, %193, %195, %197, %199, %201, %203 in 1 : vector<16x32xbf16>, vector<16x32xbf16>, vector<16x32xbf16>, vector<16x32xbf16>, vector<16x32xbf16>, vector<16x32xbf16>, vector<16x32xbf16>, vector<16x32xbf16>, vector<16x32xbf16>, vector<16x32xbf16>, vector<16x32xbf16>, vector<16x32xbf16>, vector<16x32xbf16>, vector<16x32xbf16>, vector<16x32xbf16>, vector<16x32xbf16> -> vector<16x512xbf16>
    %205 = vector.extract_strided_slice %18 {offsets = [2, 0, 0], sizes = [1, 16, 32], strides = [1, 1, 1]} : vector<10x16x32xbf16> to vector<1x16x32xbf16>
    %206 = vector.shape_cast %205 : vector<1x16x32xbf16> to vector<16x32xbf16>
    %207 = vector.extract_strided_slice %18 {offsets = [3, 0, 0], sizes = [1, 16, 32], strides = [1, 1, 1]} : vector<10x16x32xbf16> to vector<1x16x32xbf16>
    %208 = vector.shape_cast %207 : vector<1x16x32xbf16> to vector<16x32xbf16>
    %209 = vector.extract_strided_slice %18 {offsets = [4, 0, 0], sizes = [1, 16, 32], strides = [1, 1, 1]} : vector<10x16x32xbf16> to vector<1x16x32xbf16>
    %210 = vector.shape_cast %209 : vector<1x16x32xbf16> to vector<16x32xbf16>
    %211 = vector.extract_strided_slice %18 {offsets = [5, 0, 0], sizes = [1, 16, 32], strides = [1, 1, 1]} : vector<10x16x32xbf16> to vector<1x16x32xbf16>
    %212 = vector.shape_cast %211 : vector<1x16x32xbf16> to vector<16x32xbf16>
    %213 = vector.extract_strided_slice %35 {offsets = [2, 0, 0], sizes = [1, 16, 32], strides = [1, 1, 1]} : vector<10x16x32xbf16> to vector<1x16x32xbf16>
    %214 = vector.shape_cast %213 : vector<1x16x32xbf16> to vector<16x32xbf16>
    %215 = vector.extract_strided_slice %35 {offsets = [3, 0, 0], sizes = [1, 16, 32], strides = [1, 1, 1]} : vector<10x16x32xbf16> to vector<1x16x32xbf16>
    %216 = vector.shape_cast %215 : vector<1x16x32xbf16> to vector<16x32xbf16>
    %217 = vector.extract_strided_slice %35 {offsets = [4, 0, 0], sizes = [1, 16, 32], strides = [1, 1, 1]} : vector<10x16x32xbf16> to vector<1x16x32xbf16>
    %218 = vector.shape_cast %217 : vector<1x16x32xbf16> to vector<16x32xbf16>
    %219 = vector.extract_strided_slice %35 {offsets = [5, 0, 0], sizes = [1, 16, 32], strides = [1, 1, 1]} : vector<10x16x32xbf16> to vector<1x16x32xbf16>
    %220 = vector.shape_cast %219 : vector<1x16x32xbf16> to vector<16x32xbf16>
    %221 = vector.extract_strided_slice %52 {offsets = [2, 0, 0], sizes = [1, 16, 32], strides = [1, 1, 1]} : vector<10x16x32xbf16> to vector<1x16x32xbf16>
    %222 = vector.shape_cast %221 : vector<1x16x32xbf16> to vector<16x32xbf16>
    %223 = vector.extract_strided_slice %52 {offsets = [3, 0, 0], sizes = [1, 16, 32], strides = [1, 1, 1]} : vector<10x16x32xbf16> to vector<1x16x32xbf16>
    %224 = vector.shape_cast %223 : vector<1x16x32xbf16> to vector<16x32xbf16>
    %225 = vector.extract_strided_slice %52 {offsets = [4, 0, 0], sizes = [1, 16, 32], strides = [1, 1, 1]} : vector<10x16x32xbf16> to vector<1x16x32xbf16>
    %226 = vector.shape_cast %225 : vector<1x16x32xbf16> to vector<16x32xbf16>
    %227 = vector.extract_strided_slice %52 {offsets = [5, 0, 0], sizes = [1, 16, 32], strides = [1, 1, 1]} : vector<10x16x32xbf16> to vector<1x16x32xbf16>
    %228 = vector.shape_cast %227 : vector<1x16x32xbf16> to vector<16x32xbf16>
    %229 = vector.extract_strided_slice %69 {offsets = [2, 0, 0], sizes = [1, 16, 32], strides = [1, 1, 1]} : vector<10x16x32xbf16> to vector<1x16x32xbf16>
    %230 = vector.shape_cast %229 : vector<1x16x32xbf16> to vector<16x32xbf16>
    %231 = vector.extract_strided_slice %69 {offsets = [3, 0, 0], sizes = [1, 16, 32], strides = [1, 1, 1]} : vector<10x16x32xbf16> to vector<1x16x32xbf16>
    %232 = vector.shape_cast %231 : vector<1x16x32xbf16> to vector<16x32xbf16>
    %233 = vector.extract_strided_slice %69 {offsets = [4, 0, 0], sizes = [1, 16, 32], strides = [1, 1, 1]} : vector<10x16x32xbf16> to vector<1x16x32xbf16>
    %234 = vector.shape_cast %233 : vector<1x16x32xbf16> to vector<16x32xbf16>
    %235 = vector.extract_strided_slice %69 {offsets = [5, 0, 0], sizes = [1, 16, 32], strides = [1, 1, 1]} : vector<10x16x32xbf16> to vector<1x16x32xbf16>
    %236 = vector.shape_cast %235 : vector<1x16x32xbf16> to vector<16x32xbf16>
    %237 = tpu.concatenate %206, %208, %210, %212, %214, %216, %218, %220, %222, %224, %226, %228, %230, %232, %234, %236 in 1 : vector<16x32xbf16>, vector<16x32xbf16>, vector<16x32xbf16>, vector<16x32xbf16>, vector<16x32xbf16>, vector<16x32xbf16>, vector<16x32xbf16>, vector<16x32xbf16>, vector<16x32xbf16>, vector<16x32xbf16>, vector<16x32xbf16>, vector<16x32xbf16>, vector<16x32xbf16>, vector<16x32xbf16>, vector<16x32xbf16>, vector<16x32xbf16> -> vector<16x512xbf16>
    %238 = vector.extract_strided_slice %18 {offsets = [4, 0, 0], sizes = [1, 16, 32], strides = [1, 1, 1]} : vector<10x16x32xbf16> to vector<1x16x32xbf16>
    %239 = vector.shape_cast %238 : vector<1x16x32xbf16> to vector<16x32xbf16>
    %240 = vector.extract_strided_slice %18 {offsets = [5, 0, 0], sizes = [1, 16, 32], strides = [1, 1, 1]} : vector<10x16x32xbf16> to vector<1x16x32xbf16>
    %241 = vector.shape_cast %240 : vector<1x16x32xbf16> to vector<16x32xbf16>
    %242 = vector.extract_strided_slice %18 {offsets = [6, 0, 0], sizes = [1, 16, 32], strides = [1, 1, 1]} : vector<10x16x32xbf16> to vector<1x16x32xbf16>
    %243 = vector.shape_cast %242 : vector<1x16x32xbf16> to vector<16x32xbf16>
    %244 = vector.extract_strided_slice %18 {offsets = [7, 0, 0], sizes = [1, 16, 32], strides = [1, 1, 1]} : vector<10x16x32xbf16> to vector<1x16x32xbf16>
    %245 = vector.shape_cast %244 : vector<1x16x32xbf16> to vector<16x32xbf16>
    %246 = vector.extract_strided_slice %35 {offsets = [4, 0, 0], sizes = [1, 16, 32], strides = [1, 1, 1]} : vector<10x16x32xbf16> to vector<1x16x32xbf16>
    %247 = vector.shape_cast %246 : vector<1x16x32xbf16> to vector<16x32xbf16>
    %248 = vector.extract_strided_slice %35 {offsets = [5, 0, 0], sizes = [1, 16, 32], strides = [1, 1, 1]} : vector<10x16x32xbf16> to vector<1x16x32xbf16>
    %249 = vector.shape_cast %248 : vector<1x16x32xbf16> to vector<16x32xbf16>
    %250 = vector.extract_strided_slice %35 {offsets = [6, 0, 0], sizes = [1, 16, 32], strides = [1, 1, 1]} : vector<10x16x32xbf16> to vector<1x16x32xbf16>
    %251 = vector.shape_cast %250 : vector<1x16x32xbf16> to vector<16x32xbf16>
    %252 = vector.extract_strided_slice %35 {offsets = [7, 0, 0], sizes = [1, 16, 32], strides = [1, 1, 1]} : vector<10x16x32xbf16> to vector<1x16x32xbf16>
    %253 = vector.shape_cast %252 : vector<1x16x32xbf16> to vector<16x32xbf16>
    %254 = vector.extract_strided_slice %52 {offsets = [4, 0, 0], sizes = [1, 16, 32], strides = [1, 1, 1]} : vector<10x16x32xbf16> to vector<1x16x32xbf16>
    %255 = vector.shape_cast %254 : vector<1x16x32xbf16> to vector<16x32xbf16>
    %256 = vector.extract_strided_slice %52 {offsets = [5, 0, 0], sizes = [1, 16, 32], strides = [1, 1, 1]} : vector<10x16x32xbf16> to vector<1x16x32xbf16>
    %257 = vector.shape_cast %256 : vector<1x16x32xbf16> to vector<16x32xbf16>
    %258 = vector.extract_strided_slice %52 {offsets = [6, 0, 0], sizes = [1, 16, 32], strides = [1, 1, 1]} : vector<10x16x32xbf16> to vector<1x16x32xbf16>
    %259 = vector.shape_cast %258 : vector<1x16x32xbf16> to vector<16x32xbf16>
    %260 = vector.extract_strided_slice %52 {offsets = [7, 0, 0], sizes = [1, 16, 32], strides = [1, 1, 1]} : vector<10x16x32xbf16> to vector<1x16x32xbf16>
    %261 = vector.shape_cast %260 : vector<1x16x32xbf16> to vector<16x32xbf16>
    %262 = vector.extract_strided_slice %69 {offsets = [4, 0, 0], sizes = [1, 16, 32], strides = [1, 1, 1]} : vector<10x16x32xbf16> to vector<1x16x32xbf16>
    %263 = vector.shape_cast %262 : vector<1x16x32xbf16> to vector<16x32xbf16>
    %264 = vector.extract_strided_slice %69 {offsets = [5, 0, 0], sizes = [1, 16, 32], strides = [1, 1, 1]} : vector<10x16x32xbf16> to vector<1x16x32xbf16>
    %265 = vector.shape_cast %264 : vector<1x16x32xbf16> to vector<16x32xbf16>
    %266 = vector.extract_strided_slice %69 {offsets = [6, 0, 0], sizes = [1, 16, 32], strides = [1, 1, 1]} : vector<10x16x32xbf16> to vector<1x16x32xbf16>
    %267 = vector.shape_cast %266 : vector<1x16x32xbf16> to vector<16x32xbf16>
    %268 = vector.extract_strided_slice %69 {offsets = [7, 0, 0], sizes = [1, 16, 32], strides = [1, 1, 1]} : vector<10x16x32xbf16> to vector<1x16x32xbf16>
    %269 = vector.shape_cast %268 : vector<1x16x32xbf16> to vector<16x32xbf16>
    %270 = tpu.concatenate %239, %241, %243, %245, %247, %249, %251, %253, %255, %257, %259, %261, %263, %265, %267, %269 in 1 : vector<16x32xbf16>, vector<16x32xbf16>, vector<16x32xbf16>, vector<16x32xbf16>, vector<16x32xbf16>, vector<16x32xbf16>, vector<16x32xbf16>, vector<16x32xbf16>, vector<16x32xbf16>, vector<16x32xbf16>, vector<16x32xbf16>, vector<16x32xbf16>, vector<16x32xbf16>, vector<16x32xbf16>, vector<16x32xbf16>, vector<16x32xbf16> -> vector<16x512xbf16>
    %271 = vector.extract_strided_slice %18 {offsets = [6, 0, 0], sizes = [1, 16, 32], strides = [1, 1, 1]} : vector<10x16x32xbf16> to vector<1x16x32xbf16>
    %272 = vector.shape_cast %271 : vector<1x16x32xbf16> to vector<16x32xbf16>
    %273 = vector.extract_strided_slice %18 {offsets = [7, 0, 0], sizes = [1, 16, 32], strides = [1, 1, 1]} : vector<10x16x32xbf16> to vector<1x16x32xbf16>
    %274 = vector.shape_cast %273 : vector<1x16x32xbf16> to vector<16x32xbf16>
    %275 = vector.extract_strided_slice %18 {offsets = [8, 0, 0], sizes = [1, 16, 32], strides = [1, 1, 1]} : vector<10x16x32xbf16> to vector<1x16x32xbf16>
    %276 = vector.shape_cast %275 : vector<1x16x32xbf16> to vector<16x32xbf16>
    %277 = vector.extract_strided_slice %18 {offsets = [9, 0, 0], sizes = [1, 16, 32], strides = [1, 1, 1]} : vector<10x16x32xbf16> to vector<1x16x32xbf16>
    %278 = vector.shape_cast %277 : vector<1x16x32xbf16> to vector<16x32xbf16>
    %279 = vector.extract_strided_slice %35 {offsets = [6, 0, 0], sizes = [1, 16, 32], strides = [1, 1, 1]} : vector<10x16x32xbf16> to vector<1x16x32xbf16>
    %280 = vector.shape_cast %279 : vector<1x16x32xbf16> to vector<16x32xbf16>
    %281 = vector.extract_strided_slice %35 {offsets = [7, 0, 0], sizes = [1, 16, 32], strides = [1, 1, 1]} : vector<10x16x32xbf16> to vector<1x16x32xbf16>
    %282 = vector.shape_cast %281 : vector<1x16x32xbf16> to vector<16x32xbf16>
    %283 = vector.extract_strided_slice %35 {offsets = [8, 0, 0], sizes = [1, 16, 32], strides = [1, 1, 1]} : vector<10x16x32xbf16> to vector<1x16x32xbf16>
    %284 = vector.shape_cast %283 : vector<1x16x32xbf16> to vector<16x32xbf16>
    %285 = vector.extract_strided_slice %35 {offsets = [9, 0, 0], sizes = [1, 16, 32], strides = [1, 1, 1]} : vector<10x16x32xbf16> to vector<1x16x32xbf16>
    %286 = vector.shape_cast %285 : vector<1x16x32xbf16> to vector<16x32xbf16>
    %287 = vector.extract_strided_slice %52 {offsets = [6, 0, 0], sizes = [1, 16, 32], strides = [1, 1, 1]} : vector<10x16x32xbf16> to vector<1x16x32xbf16>
    %288 = vector.shape_cast %287 : vector<1x16x32xbf16> to vector<16x32xbf16>
    %289 = vector.extract_strided_slice %52 {offsets = [7, 0, 0], sizes = [1, 16, 32], strides = [1, 1, 1]} : vector<10x16x32xbf16> to vector<1x16x32xbf16>
    %290 = vector.shape_cast %289 : vector<1x16x32xbf16> to vector<16x32xbf16>
    %291 = vector.extract_strided_slice %52 {offsets = [8, 0, 0], sizes = [1, 16, 32], strides = [1, 1, 1]} : vector<10x16x32xbf16> to vector<1x16x32xbf16>
    %292 = vector.shape_cast %291 : vector<1x16x32xbf16> to vector<16x32xbf16>
    %293 = vector.extract_strided_slice %52 {offsets = [9, 0, 0], sizes = [1, 16, 32], strides = [1, 1, 1]} : vector<10x16x32xbf16> to vector<1x16x32xbf16>
    %294 = vector.shape_cast %293 : vector<1x16x32xbf16> to vector<16x32xbf16>
    %295 = vector.extract_strided_slice %69 {offsets = [6, 0, 0], sizes = [1, 16, 32], strides = [1, 1, 1]} : vector<10x16x32xbf16> to vector<1x16x32xbf16>
    %296 = vector.shape_cast %295 : vector<1x16x32xbf16> to vector<16x32xbf16>
    %297 = vector.extract_strided_slice %69 {offsets = [7, 0, 0], sizes = [1, 16, 32], strides = [1, 1, 1]} : vector<10x16x32xbf16> to vector<1x16x32xbf16>
    %298 = vector.shape_cast %297 : vector<1x16x32xbf16> to vector<16x32xbf16>
    %299 = vector.extract_strided_slice %69 {offsets = [8, 0, 0], sizes = [1, 16, 32], strides = [1, 1, 1]} : vector<10x16x32xbf16> to vector<1x16x32xbf16>
    %300 = vector.shape_cast %299 : vector<1x16x32xbf16> to vector<16x32xbf16>
    %301 = vector.extract_strided_slice %69 {offsets = [9, 0, 0], sizes = [1, 16, 32], strides = [1, 1, 1]} : vector<10x16x32xbf16> to vector<1x16x32xbf16>
    %302 = vector.shape_cast %301 : vector<1x16x32xbf16> to vector<16x32xbf16>
    %303 = tpu.concatenate %272, %274, %276, %278, %280, %282, %284, %286, %288, %290, %292, %294, %296, %298, %300, %302 in 1 : vector<16x32xbf16>, vector<16x32xbf16>, vector<16x32xbf16>, vector<16x32xbf16>, vector<16x32xbf16>, vector<16x32xbf16>, vector<16x32xbf16>, vector<16x32xbf16>, vector<16x32xbf16>, vector<16x32xbf16>, vector<16x32xbf16>, vector<16x32xbf16>, vector<16x32xbf16>, vector<16x32xbf16>, vector<16x32xbf16>, vector<16x32xbf16> -> vector<16x512xbf16>
    %304 = vector.extract_strided_slice %52 {offsets = [0, 0, 0], sizes = [1, 16, 32], strides = [1, 1, 1]} : vector<10x16x32xbf16> to vector<1x16x32xbf16>
    %305 = vector.shape_cast %304 : vector<1x16x32xbf16> to vector<16x32xbf16>
    %306 = vector.extract_strided_slice %52 {offsets = [1, 0, 0], sizes = [1, 16, 32], strides = [1, 1, 1]} : vector<10x16x32xbf16> to vector<1x16x32xbf16>
    %307 = vector.shape_cast %306 : vector<1x16x32xbf16> to vector<16x32xbf16>
    %308 = vector.extract_strided_slice %52 {offsets = [2, 0, 0], sizes = [1, 16, 32], strides = [1, 1, 1]} : vector<10x16x32xbf16> to vector<1x16x32xbf16>
    %309 = vector.shape_cast %308 : vector<1x16x32xbf16> to vector<16x32xbf16>
    %310 = vector.extract_strided_slice %52 {offsets = [3, 0, 0], sizes = [1, 16, 32], strides = [1, 1, 1]} : vector<10x16x32xbf16> to vector<1x16x32xbf16>
    %311 = vector.shape_cast %310 : vector<1x16x32xbf16> to vector<16x32xbf16>
    %312 = vector.extract_strided_slice %69 {offsets = [0, 0, 0], sizes = [1, 16, 32], strides = [1, 1, 1]} : vector<10x16x32xbf16> to vector<1x16x32xbf16>
    %313 = vector.shape_cast %312 : vector<1x16x32xbf16> to vector<16x32xbf16>
    %314 = vector.extract_strided_slice %69 {offsets = [1, 0, 0], sizes = [1, 16, 32], strides = [1, 1, 1]} : vector<10x16x32xbf16> to vector<1x16x32xbf16>
    %315 = vector.shape_cast %314 : vector<1x16x32xbf16> to vector<16x32xbf16>
    %316 = vector.extract_strided_slice %69 {offsets = [2, 0, 0], sizes = [1, 16, 32], strides = [1, 1, 1]} : vector<10x16x32xbf16> to vector<1x16x32xbf16>
    %317 = vector.shape_cast %316 : vector<1x16x32xbf16> to vector<16x32xbf16>
    %318 = vector.extract_strided_slice %69 {offsets = [3, 0, 0], sizes = [1, 16, 32], strides = [1, 1, 1]} : vector<10x16x32xbf16> to vector<1x16x32xbf16>
    %319 = vector.shape_cast %318 : vector<1x16x32xbf16> to vector<16x32xbf16>
    %320 = vector.extract_strided_slice %86 {offsets = [0, 0, 0], sizes = [1, 16, 32], strides = [1, 1, 1]} : vector<10x16x32xbf16> to vector<1x16x32xbf16>
    %321 = vector.shape_cast %320 : vector<1x16x32xbf16> to vector<16x32xbf16>
    %322 = vector.extract_strided_slice %86 {offsets = [1, 0, 0], sizes = [1, 16, 32], strides = [1, 1, 1]} : vector<10x16x32xbf16> to vector<1x16x32xbf16>
    %323 = vector.shape_cast %322 : vector<1x16x32xbf16> to vector<16x32xbf16>
    %324 = vector.extract_strided_slice %86 {offsets = [2, 0, 0], sizes = [1, 16, 32], strides = [1, 1, 1]} : vector<10x16x32xbf16> to vector<1x16x32xbf16>
    %325 = vector.shape_cast %324 : vector<1x16x32xbf16> to vector<16x32xbf16>
    %326 = vector.extract_strided_slice %86 {offsets = [3, 0, 0], sizes = [1, 16, 32], strides = [1, 1, 1]} : vector<10x16x32xbf16> to vector<1x16x32xbf16>
    %327 = vector.shape_cast %326 : vector<1x16x32xbf16> to vector<16x32xbf16>
    %328 = vector.extract_strided_slice %103 {offsets = [0, 0, 0], sizes = [1, 16, 32], strides = [1, 1, 1]} : vector<10x16x32xbf16> to vector<1x16x32xbf16>
    %329 = vector.shape_cast %328 : vector<1x16x32xbf16> to vector<16x32xbf16>
    %330 = vector.extract_strided_slice %103 {offsets = [1, 0, 0], sizes = [1, 16, 32], strides = [1, 1, 1]} : vector<10x16x32xbf16> to vector<1x16x32xbf16>
    %331 = vector.shape_cast %330 : vector<1x16x32xbf16> to vector<16x32xbf16>
    %332 = vector.extract_strided_slice %103 {offsets = [2, 0, 0], sizes = [1, 16, 32], strides = [1, 1, 1]} : vector<10x16x32xbf16> to vector<1x16x32xbf16>
    %333 = vector.shape_cast %332 : vector<1x16x32xbf16> to vector<16x32xbf16>
    %334 = vector.extract_strided_slice %103 {offsets = [3, 0, 0], sizes = [1, 16, 32], strides = [1, 1, 1]} : vector<10x16x32xbf16> to vector<1x16x32xbf16>
    %335 = vector.shape_cast %334 : vector<1x16x32xbf16> to vector<16x32xbf16>
    %336 = tpu.concatenate %305, %307, %309, %311, %313, %315, %317, %319, %321, %323, %325, %327, %329, %331, %333, %335 in 1 : vector<16x32xbf16>, vector<16x32xbf16>, vector<16x32xbf16>, vector<16x32xbf16>, vector<16x32xbf16>, vector<16x32xbf16>, vector<16x32xbf16>, vector<16x32xbf16>, vector<16x32xbf16>, vector<16x32xbf16>, vector<16x32xbf16>, vector<16x32xbf16>, vector<16x32xbf16>, vector<16x32xbf16>, vector<16x32xbf16>, vector<16x32xbf16> -> vector<16x512xbf16>
    %337 = vector.extract_strided_slice %52 {offsets = [2, 0, 0], sizes = [1, 16, 32], strides = [1, 1, 1]} : vector<10x16x32xbf16> to vector<1x16x32xbf16>
    %338 = vector.shape_cast %337 : vector<1x16x32xbf16> to vector<16x32xbf16>
    %339 = vector.extract_strided_slice %52 {offsets = [3, 0, 0], sizes = [1, 16, 32], strides = [1, 1, 1]} : vector<10x16x32xbf16> to vector<1x16x32xbf16>
    %340 = vector.shape_cast %339 : vector<1x16x32xbf16> to vector<16x32xbf16>
    %341 = vector.extract_strided_slice %52 {offsets = [4, 0, 0], sizes = [1, 16, 32], strides = [1, 1, 1]} : vector<10x16x32xbf16> to vector<1x16x32xbf16>
    %342 = vector.shape_cast %341 : vector<1x16x32xbf16> to vector<16x32xbf16>
    %343 = vector.extract_strided_slice %52 {offsets = [5, 0, 0], sizes = [1, 16, 32], strides = [1, 1, 1]} : vector<10x16x32xbf16> to vector<1x16x32xbf16>
    %344 = vector.shape_cast %343 : vector<1x16x32xbf16> to vector<16x32xbf16>
    %345 = vector.extract_strided_slice %69 {offsets = [2, 0, 0], sizes = [1, 16, 32], strides = [1, 1, 1]} : vector<10x16x32xbf16> to vector<1x16x32xbf16>
    %346 = vector.shape_cast %345 : vector<1x16x32xbf16> to vector<16x32xbf16>
    %347 = vector.extract_strided_slice %69 {offsets = [3, 0, 0], sizes = [1, 16, 32], strides = [1, 1, 1]} : vector<10x16x32xbf16> to vector<1x16x32xbf16>
    %348 = vector.shape_cast %347 : vector<1x16x32xbf16> to vector<16x32xbf16>
    %349 = vector.extract_strided_slice %69 {offsets = [4, 0, 0], sizes = [1, 16, 32], strides = [1, 1, 1]} : vector<10x16x32xbf16> to vector<1x16x32xbf16>
    %350 = vector.shape_cast %349 : vector<1x16x32xbf16> to vector<16x32xbf16>
    %351 = vector.extract_strided_slice %69 {offsets = [5, 0, 0], sizes = [1, 16, 32], strides = [1, 1, 1]} : vector<10x16x32xbf16> to vector<1x16x32xbf16>
    %352 = vector.shape_cast %351 : vector<1x16x32xbf16> to vector<16x32xbf16>
    %353 = vector.extract_strided_slice %86 {offsets = [2, 0, 0], sizes = [1, 16, 32], strides = [1, 1, 1]} : vector<10x16x32xbf16> to vector<1x16x32xbf16>
    %354 = vector.shape_cast %353 : vector<1x16x32xbf16> to vector<16x32xbf16>
    %355 = vector.extract_strided_slice %86 {offsets = [3, 0, 0], sizes = [1, 16, 32], strides = [1, 1, 1]} : vector<10x16x32xbf16> to vector<1x16x32xbf16>
    %356 = vector.shape_cast %355 : vector<1x16x32xbf16> to vector<16x32xbf16>
    %357 = vector.extract_strided_slice %86 {offsets = [4, 0, 0], sizes = [1, 16, 32], strides = [1, 1, 1]} : vector<10x16x32xbf16> to vector<1x16x32xbf16>
    %358 = vector.shape_cast %357 : vector<1x16x32xbf16> to vector<16x32xbf16>
    %359 = vector.extract_strided_slice %86 {offsets = [5, 0, 0], sizes = [1, 16, 32], strides = [1, 1, 1]} : vector<10x16x32xbf16> to vector<1x16x32xbf16>
    %360 = vector.shape_cast %359 : vector<1x16x32xbf16> to vector<16x32xbf16>
    %361 = vector.extract_strided_slice %103 {offsets = [2, 0, 0], sizes = [1, 16, 32], strides = [1, 1, 1]} : vector<10x16x32xbf16> to vector<1x16x32xbf16>
    %362 = vector.shape_cast %361 : vector<1x16x32xbf16> to vector<16x32xbf16>
    %363 = vector.extract_strided_slice %103 {offsets = [3, 0, 0], sizes = [1, 16, 32], strides = [1, 1, 1]} : vector<10x16x32xbf16> to vector<1x16x32xbf16>
    %364 = vector.shape_cast %363 : vector<1x16x32xbf16> to vector<16x32xbf16>
    %365 = vector.extract_strided_slice %103 {offsets = [4, 0, 0], sizes = [1, 16, 32], strides = [1, 1, 1]} : vector<10x16x32xbf16> to vector<1x16x32xbf16>
    %366 = vector.shape_cast %365 : vector<1x16x32xbf16> to vector<16x32xbf16>
    %367 = vector.extract_strided_slice %103 {offsets = [5, 0, 0], sizes = [1, 16, 32], strides = [1, 1, 1]} : vector<10x16x32xbf16> to vector<1x16x32xbf16>
    %368 = vector.shape_cast %367 : vector<1x16x32xbf16> to vector<16x32xbf16>
    %369 = tpu.concatenate %338, %340, %342, %344, %346, %348, %350, %352, %354, %356, %358, %360, %362, %364, %366, %368 in 1 : vector<16x32xbf16>, vector<16x32xbf16>, vector<16x32xbf16>, vector<16x32xbf16>, vector<16x32xbf16>, vector<16x32xbf16>, vector<16x32xbf16>, vector<16x32xbf16>, vector<16x32xbf16>, vector<16x32xbf16>, vector<16x32xbf16>, vector<16x32xbf16>, vector<16x32xbf16>, vector<16x32xbf16>, vector<16x32xbf16>, vector<16x32xbf16> -> vector<16x512xbf16>
    %370 = vector.extract_strided_slice %52 {offsets = [4, 0, 0], sizes = [1, 16, 32], strides = [1, 1, 1]} : vector<10x16x32xbf16> to vector<1x16x32xbf16>
    %371 = vector.shape_cast %370 : vector<1x16x32xbf16> to vector<16x32xbf16>
    %372 = vector.extract_strided_slice %52 {offsets = [5, 0, 0], sizes = [1, 16, 32], strides = [1, 1, 1]} : vector<10x16x32xbf16> to vector<1x16x32xbf16>
    %373 = vector.shape_cast %372 : vector<1x16x32xbf16> to vector<16x32xbf16>
    %374 = vector.extract_strided_slice %52 {offsets = [6, 0, 0], sizes = [1, 16, 32], strides = [1, 1, 1]} : vector<10x16x32xbf16> to vector<1x16x32xbf16>
    %375 = vector.shape_cast %374 : vector<1x16x32xbf16> to vector<16x32xbf16>
    %376 = vector.extract_strided_slice %52 {offsets = [7, 0, 0], sizes = [1, 16, 32], strides = [1, 1, 1]} : vector<10x16x32xbf16> to vector<1x16x32xbf16>
    %377 = vector.shape_cast %376 : vector<1x16x32xbf16> to vector<16x32xbf16>
    %378 = vector.extract_strided_slice %69 {offsets = [4, 0, 0], sizes = [1, 16, 32], strides = [1, 1, 1]} : vector<10x16x32xbf16> to vector<1x16x32xbf16>
    %379 = vector.shape_cast %378 : vector<1x16x32xbf16> to vector<16x32xbf16>
    %380 = vector.extract_strided_slice %69 {offsets = [5, 0, 0], sizes = [1, 16, 32], strides = [1, 1, 1]} : vector<10x16x32xbf16> to vector<1x16x32xbf16>
    %381 = vector.shape_cast %380 : vector<1x16x32xbf16> to vector<16x32xbf16>
    %382 = vector.extract_strided_slice %69 {offsets = [6, 0, 0], sizes = [1, 16, 32], strides = [1, 1, 1]} : vector<10x16x32xbf16> to vector<1x16x32xbf16>
    %383 = vector.shape_cast %382 : vector<1x16x32xbf16> to vector<16x32xbf16>
    %384 = vector.extract_strided_slice %69 {offsets = [7, 0, 0], sizes = [1, 16, 32], strides = [1, 1, 1]} : vector<10x16x32xbf16> to vector<1x16x32xbf16>
    %385 = vector.shape_cast %384 : vector<1x16x32xbf16> to vector<16x32xbf16>
    %386 = vector.extract_strided_slice %86 {offsets = [4, 0, 0], sizes = [1, 16, 32], strides = [1, 1, 1]} : vector<10x16x32xbf16> to vector<1x16x32xbf16>
    %387 = vector.shape_cast %386 : vector<1x16x32xbf16> to vector<16x32xbf16>
    %388 = vector.extract_strided_slice %86 {offsets = [5, 0, 0], sizes = [1, 16, 32], strides = [1, 1, 1]} : vector<10x16x32xbf16> to vector<1x16x32xbf16>
    %389 = vector.shape_cast %388 : vector<1x16x32xbf16> to vector<16x32xbf16>
    %390 = vector.extract_strided_slice %86 {offsets = [6, 0, 0], sizes = [1, 16, 32], strides = [1, 1, 1]} : vector<10x16x32xbf16> to vector<1x16x32xbf16>
    %391 = vector.shape_cast %390 : vector<1x16x32xbf16> to vector<16x32xbf16>
    %392 = vector.extract_strided_slice %86 {offsets = [7, 0, 0], sizes = [1, 16, 32], strides = [1, 1, 1]} : vector<10x16x32xbf16> to vector<1x16x32xbf16>
    %393 = vector.shape_cast %392 : vector<1x16x32xbf16> to vector<16x32xbf16>
    %394 = vector.extract_strided_slice %103 {offsets = [4, 0, 0], sizes = [1, 16, 32], strides = [1, 1, 1]} : vector<10x16x32xbf16> to vector<1x16x32xbf16>
    %395 = vector.shape_cast %394 : vector<1x16x32xbf16> to vector<16x32xbf16>
    %396 = vector.extract_strided_slice %103 {offsets = [5, 0, 0], sizes = [1, 16, 32], strides = [1, 1, 1]} : vector<10x16x32xbf16> to vector<1x16x32xbf16>
    %397 = vector.shape_cast %396 : vector<1x16x32xbf16> to vector<16x32xbf16>
    %398 = vector.extract_strided_slice %103 {offsets = [6, 0, 0], sizes = [1, 16, 32], strides = [1, 1, 1]} : vector<10x16x32xbf16> to vector<1x16x32xbf16>
    %399 = vector.shape_cast %398 : vector<1x16x32xbf16> to vector<16x32xbf16>
    %400 = vector.extract_strided_slice %103 {offsets = [7, 0, 0], sizes = [1, 16, 32], strides = [1, 1, 1]} : vector<10x16x32xbf16> to vector<1x16x32xbf16>
    %401 = vector.shape_cast %400 : vector<1x16x32xbf16> to vector<16x32xbf16>
    %402 = tpu.concatenate %371, %373, %375, %377, %379, %381, %383, %385, %387, %389, %391, %393, %395, %397, %399, %401 in 1 : vector<16x32xbf16>, vector<16x32xbf16>, vector<16x32xbf16>, vector<16x32xbf16>, vector<16x32xbf16>, vector<16x32xbf16>, vector<16x32xbf16>, vector<16x32xbf16>, vector<16x32xbf16>, vector<16x32xbf16>, vector<16x32xbf16>, vector<16x32xbf16>, vector<16x32xbf16>, vector<16x32xbf16>, vector<16x32xbf16>, vector<16x32xbf16> -> vector<16x512xbf16>
    %403 = vector.extract_strided_slice %52 {offsets = [6, 0, 0], sizes = [1, 16, 32], strides = [1, 1, 1]} : vector<10x16x32xbf16> to vector<1x16x32xbf16>
    %404 = vector.shape_cast %403 : vector<1x16x32xbf16> to vector<16x32xbf16>
    %405 = vector.extract_strided_slice %52 {offsets = [7, 0, 0], sizes = [1, 16, 32], strides = [1, 1, 1]} : vector<10x16x32xbf16> to vector<1x16x32xbf16>
    %406 = vector.shape_cast %405 : vector<1x16x32xbf16> to vector<16x32xbf16>
    %407 = vector.extract_strided_slice %52 {offsets = [8, 0, 0], sizes = [1, 16, 32], strides = [1, 1, 1]} : vector<10x16x32xbf16> to vector<1x16x32xbf16>
    %408 = vector.shape_cast %407 : vector<1x16x32xbf16> to vector<16x32xbf16>
    %409 = vector.extract_strided_slice %52 {offsets = [9, 0, 0], sizes = [1, 16, 32], strides = [1, 1, 1]} : vector<10x16x32xbf16> to vector<1x16x32xbf16>
    %410 = vector.shape_cast %409 : vector<1x16x32xbf16> to vector<16x32xbf16>
    %411 = vector.extract_strided_slice %69 {offsets = [6, 0, 0], sizes = [1, 16, 32], strides = [1, 1, 1]} : vector<10x16x32xbf16> to vector<1x16x32xbf16>
    %412 = vector.shape_cast %411 : vector<1x16x32xbf16> to vector<16x32xbf16>
    %413 = vector.extract_strided_slice %69 {offsets = [7, 0, 0], sizes = [1, 16, 32], strides = [1, 1, 1]} : vector<10x16x32xbf16> to vector<1x16x32xbf16>
    %414 = vector.shape_cast %413 : vector<1x16x32xbf16> to vector<16x32xbf16>
    %415 = vector.extract_strided_slice %69 {offsets = [8, 0, 0], sizes = [1, 16, 32], strides = [1, 1, 1]} : vector<10x16x32xbf16> to vector<1x16x32xbf16>
    %416 = vector.shape_cast %415 : vector<1x16x32xbf16> to vector<16x32xbf16>
    %417 = vector.extract_strided_slice %69 {offsets = [9, 0, 0], sizes = [1, 16, 32], strides = [1, 1, 1]} : vector<10x16x32xbf16> to vector<1x16x32xbf16>
    %418 = vector.shape_cast %417 : vector<1x16x32xbf16> to vector<16x32xbf16>
    %419 = vector.extract_strided_slice %86 {offsets = [6, 0, 0], sizes = [1, 16, 32], strides = [1, 1, 1]} : vector<10x16x32xbf16> to vector<1x16x32xbf16>
    %420 = vector.shape_cast %419 : vector<1x16x32xbf16> to vector<16x32xbf16>
    %421 = vector.extract_strided_slice %86 {offsets = [7, 0, 0], sizes = [1, 16, 32], strides = [1, 1, 1]} : vector<10x16x32xbf16> to vector<1x16x32xbf16>
    %422 = vector.shape_cast %421 : vector<1x16x32xbf16> to vector<16x32xbf16>
    %423 = vector.extract_strided_slice %86 {offsets = [8, 0, 0], sizes = [1, 16, 32], strides = [1, 1, 1]} : vector<10x16x32xbf16> to vector<1x16x32xbf16>
    %424 = vector.shape_cast %423 : vector<1x16x32xbf16> to vector<16x32xbf16>
    %425 = vector.extract_strided_slice %86 {offsets = [9, 0, 0], sizes = [1, 16, 32], strides = [1, 1, 1]} : vector<10x16x32xbf16> to vector<1x16x32xbf16>
    %426 = vector.shape_cast %425 : vector<1x16x32xbf16> to vector<16x32xbf16>
    %427 = vector.extract_strided_slice %103 {offsets = [6, 0, 0], sizes = [1, 16, 32], strides = [1, 1, 1]} : vector<10x16x32xbf16> to vector<1x16x32xbf16>
    %428 = vector.shape_cast %427 : vector<1x16x32xbf16> to vector<16x32xbf16>
    %429 = vector.extract_strided_slice %103 {offsets = [7, 0, 0], sizes = [1, 16, 32], strides = [1, 1, 1]} : vector<10x16x32xbf16> to vector<1x16x32xbf16>
    %430 = vector.shape_cast %429 : vector<1x16x32xbf16> to vector<16x32xbf16>
    %431 = vector.extract_strided_slice %103 {offsets = [8, 0, 0], sizes = [1, 16, 32], strides = [1, 1, 1]} : vector<10x16x32xbf16> to vector<1x16x32xbf16>
    %432 = vector.shape_cast %431 : vector<1x16x32xbf16> to vector<16x32xbf16>
    %433 = vector.extract_strided_slice %103 {offsets = [9, 0, 0], sizes = [1, 16, 32], strides = [1, 1, 1]} : vector<10x16x32xbf16> to vector<1x16x32xbf16>
    %434 = vector.shape_cast %433 : vector<1x16x32xbf16> to vector<16x32xbf16>
    %435 = tpu.concatenate %404, %406, %408, %410, %412, %414, %416, %418, %420, %422, %424, %426, %428, %430, %432, %434 in 1 : vector<16x32xbf16>, vector<16x32xbf16>, vector<16x32xbf16>, vector<16x32xbf16>, vector<16x32xbf16>, vector<16x32xbf16>, vector<16x32xbf16>, vector<16x32xbf16>, vector<16x32xbf16>, vector<16x32xbf16>, vector<16x32xbf16>, vector<16x32xbf16>, vector<16x32xbf16>, vector<16x32xbf16>, vector<16x32xbf16>, vector<16x32xbf16> -> vector<16x512xbf16>
    %436 = vector.extract_strided_slice %86 {offsets = [0, 0, 0], sizes = [1, 16, 32], strides = [1, 1, 1]} : vector<10x16x32xbf16> to vector<1x16x32xbf16>
    %437 = vector.shape_cast %436 : vector<1x16x32xbf16> to vector<16x32xbf16>
    %438 = vector.extract_strided_slice %86 {offsets = [1, 0, 0], sizes = [1, 16, 32], strides = [1, 1, 1]} : vector<10x16x32xbf16> to vector<1x16x32xbf16>
    %439 = vector.shape_cast %438 : vector<1x16x32xbf16> to vector<16x32xbf16>
    %440 = vector.extract_strided_slice %86 {offsets = [2, 0, 0], sizes = [1, 16, 32], strides = [1, 1, 1]} : vector<10x16x32xbf16> to vector<1x16x32xbf16>
    %441 = vector.shape_cast %440 : vector<1x16x32xbf16> to vector<16x32xbf16>
    %442 = vector.extract_strided_slice %86 {offsets = [3, 0, 0], sizes = [1, 16, 32], strides = [1, 1, 1]} : vector<10x16x32xbf16> to vector<1x16x32xbf16>
    %443 = vector.shape_cast %442 : vector<1x16x32xbf16> to vector<16x32xbf16>
    %444 = vector.extract_strided_slice %103 {offsets = [0, 0, 0], sizes = [1, 16, 32], strides = [1, 1, 1]} : vector<10x16x32xbf16> to vector<1x16x32xbf16>
    %445 = vector.shape_cast %444 : vector<1x16x32xbf16> to vector<16x32xbf16>
    %446 = vector.extract_strided_slice %103 {offsets = [1, 0, 0], sizes = [1, 16, 32], strides = [1, 1, 1]} : vector<10x16x32xbf16> to vector<1x16x32xbf16>
    %447 = vector.shape_cast %446 : vector<1x16x32xbf16> to vector<16x32xbf16>
    %448 = vector.extract_strided_slice %103 {offsets = [2, 0, 0], sizes = [1, 16, 32], strides = [1, 1, 1]} : vector<10x16x32xbf16> to vector<1x16x32xbf16>
    %449 = vector.shape_cast %448 : vector<1x16x32xbf16> to vector<16x32xbf16>
    %450 = vector.extract_strided_slice %103 {offsets = [3, 0, 0], sizes = [1, 16, 32], strides = [1, 1, 1]} : vector<10x16x32xbf16> to vector<1x16x32xbf16>
    %451 = vector.shape_cast %450 : vector<1x16x32xbf16> to vector<16x32xbf16>
    %452 = vector.extract_strided_slice %120 {offsets = [0, 0, 0], sizes = [1, 16, 32], strides = [1, 1, 1]} : vector<10x16x32xbf16> to vector<1x16x32xbf16>
    %453 = vector.shape_cast %452 : vector<1x16x32xbf16> to vector<16x32xbf16>
    %454 = vector.extract_strided_slice %120 {offsets = [1, 0, 0], sizes = [1, 16, 32], strides = [1, 1, 1]} : vector<10x16x32xbf16> to vector<1x16x32xbf16>
    %455 = vector.shape_cast %454 : vector<1x16x32xbf16> to vector<16x32xbf16>
    %456 = vector.extract_strided_slice %120 {offsets = [2, 0, 0], sizes = [1, 16, 32], strides = [1, 1, 1]} : vector<10x16x32xbf16> to vector<1x16x32xbf16>
    %457 = vector.shape_cast %456 : vector<1x16x32xbf16> to vector<16x32xbf16>
    %458 = vector.extract_strided_slice %120 {offsets = [3, 0, 0], sizes = [1, 16, 32], strides = [1, 1, 1]} : vector<10x16x32xbf16> to vector<1x16x32xbf16>
    %459 = vector.shape_cast %458 : vector<1x16x32xbf16> to vector<16x32xbf16>
    %460 = vector.extract_strided_slice %137 {offsets = [0, 0, 0], sizes = [1, 16, 32], strides = [1, 1, 1]} : vector<10x16x32xbf16> to vector<1x16x32xbf16>
    %461 = vector.shape_cast %460 : vector<1x16x32xbf16> to vector<16x32xbf16>
    %462 = vector.extract_strided_slice %137 {offsets = [1, 0, 0], sizes = [1, 16, 32], strides = [1, 1, 1]} : vector<10x16x32xbf16> to vector<1x16x32xbf16>
    %463 = vector.shape_cast %462 : vector<1x16x32xbf16> to vector<16x32xbf16>
    %464 = vector.extract_strided_slice %137 {offsets = [2, 0, 0], sizes = [1, 16, 32], strides = [1, 1, 1]} : vector<10x16x32xbf16> to vector<1x16x32xbf16>
    %465 = vector.shape_cast %464 : vector<1x16x32xbf16> to vector<16x32xbf16>
    %466 = vector.extract_strided_slice %137 {offsets = [3, 0, 0], sizes = [1, 16, 32], strides = [1, 1, 1]} : vector<10x16x32xbf16> to vector<1x16x32xbf16>
    %467 = vector.shape_cast %466 : vector<1x16x32xbf16> to vector<16x32xbf16>
    %468 = tpu.concatenate %437, %439, %441, %443, %445, %447, %449, %451, %453, %455, %457, %459, %461, %463, %465, %467 in 1 : vector<16x32xbf16>, vector<16x32xbf16>, vector<16x32xbf16>, vector<16x32xbf16>, vector<16x32xbf16>, vector<16x32xbf16>, vector<16x32xbf16>, vector<16x32xbf16>, vector<16x32xbf16>, vector<16x32xbf16>, vector<16x32xbf16>, vector<16x32xbf16>, vector<16x32xbf16>, vector<16x32xbf16>, vector<16x32xbf16>, vector<16x32xbf16> -> vector<16x512xbf16>
    %469 = vector.extract_strided_slice %86 {offsets = [2, 0, 0], sizes = [1, 16, 32], strides = [1, 1, 1]} : vector<10x16x32xbf16> to vector<1x16x32xbf16>
    %470 = vector.shape_cast %469 : vector<1x16x32xbf16> to vector<16x32xbf16>
    %471 = vector.extract_strided_slice %86 {offsets = [3, 0, 0], sizes = [1, 16, 32], strides = [1, 1, 1]} : vector<10x16x32xbf16> to vector<1x16x32xbf16>
    %472 = vector.shape_cast %471 : vector<1x16x32xbf16> to vector<16x32xbf16>
    %473 = vector.extract_strided_slice %86 {offsets = [4, 0, 0], sizes = [1, 16, 32], strides = [1, 1, 1]} : vector<10x16x32xbf16> to vector<1x16x32xbf16>
    %474 = vector.shape_cast %473 : vector<1x16x32xbf16> to vector<16x32xbf16>
    %475 = vector.extract_strided_slice %86 {offsets = [5, 0, 0], sizes = [1, 16, 32], strides = [1, 1, 1]} : vector<10x16x32xbf16> to vector<1x16x32xbf16>
    %476 = vector.shape_cast %475 : vector<1x16x32xbf16> to vector<16x32xbf16>
    %477 = vector.extract_strided_slice %103 {offsets = [2, 0, 0], sizes = [1, 16, 32], strides = [1, 1, 1]} : vector<10x16x32xbf16> to vector<1x16x32xbf16>
    %478 = vector.shape_cast %477 : vector<1x16x32xbf16> to vector<16x32xbf16>
    %479 = vector.extract_strided_slice %103 {offsets = [3, 0, 0], sizes = [1, 16, 32], strides = [1, 1, 1]} : vector<10x16x32xbf16> to vector<1x16x32xbf16>
    %480 = vector.shape_cast %479 : vector<1x16x32xbf16> to vector<16x32xbf16>
    %481 = vector.extract_strided_slice %103 {offsets = [4, 0, 0], sizes = [1, 16, 32], strides = [1, 1, 1]} : vector<10x16x32xbf16> to vector<1x16x32xbf16>
    %482 = vector.shape_cast %481 : vector<1x16x32xbf16> to vector<16x32xbf16>
    %483 = vector.extract_strided_slice %103 {offsets = [5, 0, 0], sizes = [1, 16, 32], strides = [1, 1, 1]} : vector<10x16x32xbf16> to vector<1x16x32xbf16>
    %484 = vector.shape_cast %483 : vector<1x16x32xbf16> to vector<16x32xbf16>
    %485 = vector.extract_strided_slice %120 {offsets = [2, 0, 0], sizes = [1, 16, 32], strides = [1, 1, 1]} : vector<10x16x32xbf16> to vector<1x16x32xbf16>
    %486 = vector.shape_cast %485 : vector<1x16x32xbf16> to vector<16x32xbf16>
    %487 = vector.extract_strided_slice %120 {offsets = [3, 0, 0], sizes = [1, 16, 32], strides = [1, 1, 1]} : vector<10x16x32xbf16> to vector<1x16x32xbf16>
    %488 = vector.shape_cast %487 : vector<1x16x32xbf16> to vector<16x32xbf16>
    %489 = vector.extract_strided_slice %120 {offsets = [4, 0, 0], sizes = [1, 16, 32], strides = [1, 1, 1]} : vector<10x16x32xbf16> to vector<1x16x32xbf16>
    %490 = vector.shape_cast %489 : vector<1x16x32xbf16> to vector<16x32xbf16>
    %491 = vector.extract_strided_slice %120 {offsets = [5, 0, 0], sizes = [1, 16, 32], strides = [1, 1, 1]} : vector<10x16x32xbf16> to vector<1x16x32xbf16>
    %492 = vector.shape_cast %491 : vector<1x16x32xbf16> to vector<16x32xbf16>
    %493 = vector.extract_strided_slice %137 {offsets = [2, 0, 0], sizes = [1, 16, 32], strides = [1, 1, 1]} : vector<10x16x32xbf16> to vector<1x16x32xbf16>
    %494 = vector.shape_cast %493 : vector<1x16x32xbf16> to vector<16x32xbf16>
    %495 = vector.extract_strided_slice %137 {offsets = [3, 0, 0], sizes = [1, 16, 32], strides = [1, 1, 1]} : vector<10x16x32xbf16> to vector<1x16x32xbf16>
    %496 = vector.shape_cast %495 : vector<1x16x32xbf16> to vector<16x32xbf16>
    %497 = vector.extract_strided_slice %137 {offsets = [4, 0, 0], sizes = [1, 16, 32], strides = [1, 1, 1]} : vector<10x16x32xbf16> to vector<1x16x32xbf16>
    %498 = vector.shape_cast %497 : vector<1x16x32xbf16> to vector<16x32xbf16>
    %499 = vector.extract_strided_slice %137 {offsets = [5, 0, 0], sizes = [1, 16, 32], strides = [1, 1, 1]} : vector<10x16x32xbf16> to vector<1x16x32xbf16>
    %500 = vector.shape_cast %499 : vector<1x16x32xbf16> to vector<16x32xbf16>
    %501 = tpu.concatenate %470, %472, %474, %476, %478, %480, %482, %484, %486, %488, %490, %492, %494, %496, %498, %500 in 1 : vector<16x32xbf16>, vector<16x32xbf16>, vector<16x32xbf16>, vector<16x32xbf16>, vector<16x32xbf16>, vector<16x32xbf16>, vector<16x32xbf16>, vector<16x32xbf16>, vector<16x32xbf16>, vector<16x32xbf16>, vector<16x32xbf16>, vector<16x32xbf16>, vector<16x32xbf16>, vector<16x32xbf16>, vector<16x32xbf16>, vector<16x32xbf16> -> vector<16x512xbf16>
    %502 = vector.extract_strided_slice %86 {offsets = [4, 0, 0], sizes = [1, 16, 32], strides = [1, 1, 1]} : vector<10x16x32xbf16> to vector<1x16x32xbf16>
    %503 = vector.shape_cast %502 : vector<1x16x32xbf16> to vector<16x32xbf16>
    %504 = vector.extract_strided_slice %86 {offsets = [5, 0, 0], sizes = [1, 16, 32], strides = [1, 1, 1]} : vector<10x16x32xbf16> to vector<1x16x32xbf16>
    %505 = vector.shape_cast %504 : vector<1x16x32xbf16> to vector<16x32xbf16>
    %506 = vector.extract_strided_slice %86 {offsets = [6, 0, 0], sizes = [1, 16, 32], strides = [1, 1, 1]} : vector<10x16x32xbf16> to vector<1x16x32xbf16>
    %507 = vector.shape_cast %506 : vector<1x16x32xbf16> to vector<16x32xbf16>
    %508 = vector.extract_strided_slice %86 {offsets = [7, 0, 0], sizes = [1, 16, 32], strides = [1, 1, 1]} : vector<10x16x32xbf16> to vector<1x16x32xbf16>
    %509 = vector.shape_cast %508 : vector<1x16x32xbf16> to vector<16x32xbf16>
    %510 = vector.extract_strided_slice %103 {offsets = [4, 0, 0], sizes = [1, 16, 32], strides = [1, 1, 1]} : vector<10x16x32xbf16> to vector<1x16x32xbf16>
    %511 = vector.shape_cast %510 : vector<1x16x32xbf16> to vector<16x32xbf16>
    %512 = vector.extract_strided_slice %103 {offsets = [5, 0, 0], sizes = [1, 16, 32], strides = [1, 1, 1]} : vector<10x16x32xbf16> to vector<1x16x32xbf16>
    %513 = vector.shape_cast %512 : vector<1x16x32xbf16> to vector<16x32xbf16>
    %514 = vector.extract_strided_slice %103 {offsets = [6, 0, 0], sizes = [1, 16, 32], strides = [1, 1, 1]} : vector<10x16x32xbf16> to vector<1x16x32xbf16>
    %515 = vector.shape_cast %514 : vector<1x16x32xbf16> to vector<16x32xbf16>
    %516 = vector.extract_strided_slice %103 {offsets = [7, 0, 0], sizes = [1, 16, 32], strides = [1, 1, 1]} : vector<10x16x32xbf16> to vector<1x16x32xbf16>
    %517 = vector.shape_cast %516 : vector<1x16x32xbf16> to vector<16x32xbf16>
    %518 = vector.extract_strided_slice %120 {offsets = [4, 0, 0], sizes = [1, 16, 32], strides = [1, 1, 1]} : vector<10x16x32xbf16> to vector<1x16x32xbf16>
    %519 = vector.shape_cast %518 : vector<1x16x32xbf16> to vector<16x32xbf16>
    %520 = vector.extract_strided_slice %120 {offsets = [5, 0, 0], sizes = [1, 16, 32], strides = [1, 1, 1]} : vector<10x16x32xbf16> to vector<1x16x32xbf16>
    %521 = vector.shape_cast %520 : vector<1x16x32xbf16> to vector<16x32xbf16>
    %522 = vector.extract_strided_slice %120 {offsets = [6, 0, 0], sizes = [1, 16, 32], strides = [1, 1, 1]} : vector<10x16x32xbf16> to vector<1x16x32xbf16>
    %523 = vector.shape_cast %522 : vector<1x16x32xbf16> to vector<16x32xbf16>
    %524 = vector.extract_strided_slice %120 {offsets = [7, 0, 0], sizes = [1, 16, 32], strides = [1, 1, 1]} : vector<10x16x32xbf16> to vector<1x16x32xbf16>
    %525 = vector.shape_cast %524 : vector<1x16x32xbf16> to vector<16x32xbf16>
    %526 = vector.extract_strided_slice %137 {offsets = [4, 0, 0], sizes = [1, 16, 32], strides = [1, 1, 1]} : vector<10x16x32xbf16> to vector<1x16x32xbf16>
    %527 = vector.shape_cast %526 : vector<1x16x32xbf16> to vector<16x32xbf16>
    %528 = vector.extract_strided_slice %137 {offsets = [5, 0, 0], sizes = [1, 16, 32], strides = [1, 1, 1]} : vector<10x16x32xbf16> to vector<1x16x32xbf16>
    %529 = vector.shape_cast %528 : vector<1x16x32xbf16> to vector<16x32xbf16>
    %530 = vector.extract_strided_slice %137 {offsets = [6, 0, 0], sizes = [1, 16, 32], strides = [1, 1, 1]} : vector<10x16x32xbf16> to vector<1x16x32xbf16>
    %531 = vector.shape_cast %530 : vector<1x16x32xbf16> to vector<16x32xbf16>
    %532 = vector.extract_strided_slice %137 {offsets = [7, 0, 0], sizes = [1, 16, 32], strides = [1, 1, 1]} : vector<10x16x32xbf16> to vector<1x16x32xbf16>
    %533 = vector.shape_cast %532 : vector<1x16x32xbf16> to vector<16x32xbf16>
    %534 = tpu.concatenate %503, %505, %507, %509, %511, %513, %515, %517, %519, %521, %523, %525, %527, %529, %531, %533 in 1 : vector<16x32xbf16>, vector<16x32xbf16>, vector<16x32xbf16>, vector<16x32xbf16>, vector<16x32xbf16>, vector<16x32xbf16>, vector<16x32xbf16>, vector<16x32xbf16>, vector<16x32xbf16>, vector<16x32xbf16>, vector<16x32xbf16>, vector<16x32xbf16>, vector<16x32xbf16>, vector<16x32xbf16>, vector<16x32xbf16>, vector<16x32xbf16> -> vector<16x512xbf16>
    %535 = vector.extract_strided_slice %86 {offsets = [6, 0, 0], sizes = [1, 16, 32], strides = [1, 1, 1]} : vector<10x16x32xbf16> to vector<1x16x32xbf16>
    %536 = vector.shape_cast %535 : vector<1x16x32xbf16> to vector<16x32xbf16>
    %537 = vector.extract_strided_slice %86 {offsets = [7, 0, 0], sizes = [1, 16, 32], strides = [1, 1, 1]} : vector<10x16x32xbf16> to vector<1x16x32xbf16>
    %538 = vector.shape_cast %537 : vector<1x16x32xbf16> to vector<16x32xbf16>
    %539 = vector.extract_strided_slice %86 {offsets = [8, 0, 0], sizes = [1, 16, 32], strides = [1, 1, 1]} : vector<10x16x32xbf16> to vector<1x16x32xbf16>
    %540 = vector.shape_cast %539 : vector<1x16x32xbf16> to vector<16x32xbf16>
    %541 = vector.extract_strided_slice %86 {offsets = [9, 0, 0], sizes = [1, 16, 32], strides = [1, 1, 1]} : vector<10x16x32xbf16> to vector<1x16x32xbf16>
    %542 = vector.shape_cast %541 : vector<1x16x32xbf16> to vector<16x32xbf16>
    %543 = vector.extract_strided_slice %103 {offsets = [6, 0, 0], sizes = [1, 16, 32], strides = [1, 1, 1]} : vector<10x16x32xbf16> to vector<1x16x32xbf16>
    %544 = vector.shape_cast %543 : vector<1x16x32xbf16> to vector<16x32xbf16>
    %545 = vector.extract_strided_slice %103 {offsets = [7, 0, 0], sizes = [1, 16, 32], strides = [1, 1, 1]} : vector<10x16x32xbf16> to vector<1x16x32xbf16>
    %546 = vector.shape_cast %545 : vector<1x16x32xbf16> to vector<16x32xbf16>
    %547 = vector.extract_strided_slice %103 {offsets = [8, 0, 0], sizes = [1, 16, 32], strides = [1, 1, 1]} : vector<10x16x32xbf16> to vector<1x16x32xbf16>
    %548 = vector.shape_cast %547 : vector<1x16x32xbf16> to vector<16x32xbf16>
    %549 = vector.extract_strided_slice %103 {offsets = [9, 0, 0], sizes = [1, 16, 32], strides = [1, 1, 1]} : vector<10x16x32xbf16> to vector<1x16x32xbf16>
    %550 = vector.shape_cast %549 : vector<1x16x32xbf16> to vector<16x32xbf16>
    %551 = vector.extract_strided_slice %120 {offsets = [6, 0, 0], sizes = [1, 16, 32], strides = [1, 1, 1]} : vector<10x16x32xbf16> to vector<1x16x32xbf16>
    %552 = vector.shape_cast %551 : vector<1x16x32xbf16> to vector<16x32xbf16>
    %553 = vector.extract_strided_slice %120 {offsets = [7, 0, 0], sizes = [1, 16, 32], strides = [1, 1, 1]} : vector<10x16x32xbf16> to vector<1x16x32xbf16>
    %554 = vector.shape_cast %553 : vector<1x16x32xbf16> to vector<16x32xbf16>
    %555 = vector.extract_strided_slice %120 {offsets = [8, 0, 0], sizes = [1, 16, 32], strides = [1, 1, 1]} : vector<10x16x32xbf16> to vector<1x16x32xbf16>
    %556 = vector.shape_cast %555 : vector<1x16x32xbf16> to vector<16x32xbf16>
    %557 = vector.extract_strided_slice %120 {offsets = [9, 0, 0], sizes = [1, 16, 32], strides = [1, 1, 1]} : vector<10x16x32xbf16> to vector<1x16x32xbf16>
    %558 = vector.shape_cast %557 : vector<1x16x32xbf16> to vector<16x32xbf16>
    %559 = vector.extract_strided_slice %137 {offsets = [6, 0, 0], sizes = [1, 16, 32], strides = [1, 1, 1]} : vector<10x16x32xbf16> to vector<1x16x32xbf16>
    %560 = vector.shape_cast %559 : vector<1x16x32xbf16> to vector<16x32xbf16>
    %561 = vector.extract_strided_slice %137 {offsets = [7, 0, 0], sizes = [1, 16, 32], strides = [1, 1, 1]} : vector<10x16x32xbf16> to vector<1x16x32xbf16>
    %562 = vector.shape_cast %561 : vector<1x16x32xbf16> to vector<16x32xbf16>
    %563 = vector.extract_strided_slice %137 {offsets = [8, 0, 0], sizes = [1, 16, 32], strides = [1, 1, 1]} : vector<10x16x32xbf16> to vector<1x16x32xbf16>
    %564 = vector.shape_cast %563 : vector<1x16x32xbf16> to vector<16x32xbf16>
    %565 = vector.extract_strided_slice %137 {offsets = [9, 0, 0], sizes = [1, 16, 32], strides = [1, 1, 1]} : vector<10x16x32xbf16> to vector<1x16x32xbf16>
    %566 = vector.shape_cast %565 : vector<1x16x32xbf16> to vector<16x32xbf16>
    %567 = tpu.concatenate %536, %538, %540, %542, %544, %546, %548, %550, %552, %554, %556, %558, %560, %562, %564, %566 in 1 : vector<16x32xbf16>, vector<16x32xbf16>, vector<16x32xbf16>, vector<16x32xbf16>, vector<16x32xbf16>, vector<16x32xbf16>, vector<16x32xbf16>, vector<16x32xbf16>, vector<16x32xbf16>, vector<16x32xbf16>, vector<16x32xbf16>, vector<16x32xbf16>, vector<16x32xbf16>, vector<16x32xbf16>, vector<16x32xbf16>, vector<16x32xbf16> -> vector<16x512xbf16>
    %568 = vector.extract_strided_slice %120 {offsets = [0, 0, 0], sizes = [1, 16, 32], strides = [1, 1, 1]} : vector<10x16x32xbf16> to vector<1x16x32xbf16>
    %569 = vector.shape_cast %568 : vector<1x16x32xbf16> to vector<16x32xbf16>
    %570 = vector.extract_strided_slice %120 {offsets = [1, 0, 0], sizes = [1, 16, 32], strides = [1, 1, 1]} : vector<10x16x32xbf16> to vector<1x16x32xbf16>
    %571 = vector.shape_cast %570 : vector<1x16x32xbf16> to vector<16x32xbf16>
    %572 = vector.extract_strided_slice %120 {offsets = [2, 0, 0], sizes = [1, 16, 32], strides = [1, 1, 1]} : vector<10x16x32xbf16> to vector<1x16x32xbf16>
    %573 = vector.shape_cast %572 : vector<1x16x32xbf16> to vector<16x32xbf16>
    %574 = vector.extract_strided_slice %120 {offsets = [3, 0, 0], sizes = [1, 16, 32], strides = [1, 1, 1]} : vector<10x16x32xbf16> to vector<1x16x32xbf16>
    %575 = vector.shape_cast %574 : vector<1x16x32xbf16> to vector<16x32xbf16>
    %576 = vector.extract_strided_slice %137 {offsets = [0, 0, 0], sizes = [1, 16, 32], strides = [1, 1, 1]} : vector<10x16x32xbf16> to vector<1x16x32xbf16>
    %577 = vector.shape_cast %576 : vector<1x16x32xbf16> to vector<16x32xbf16>
    %578 = vector.extract_strided_slice %137 {offsets = [1, 0, 0], sizes = [1, 16, 32], strides = [1, 1, 1]} : vector<10x16x32xbf16> to vector<1x16x32xbf16>
    %579 = vector.shape_cast %578 : vector<1x16x32xbf16> to vector<16x32xbf16>
    %580 = vector.extract_strided_slice %137 {offsets = [2, 0, 0], sizes = [1, 16, 32], strides = [1, 1, 1]} : vector<10x16x32xbf16> to vector<1x16x32xbf16>
    %581 = vector.shape_cast %580 : vector<1x16x32xbf16> to vector<16x32xbf16>
    %582 = vector.extract_strided_slice %137 {offsets = [3, 0, 0], sizes = [1, 16, 32], strides = [1, 1, 1]} : vector<10x16x32xbf16> to vector<1x16x32xbf16>
    %583 = vector.shape_cast %582 : vector<1x16x32xbf16> to vector<16x32xbf16>
    %584 = vector.extract_strided_slice %154 {offsets = [0, 0, 0], sizes = [1, 16, 32], strides = [1, 1, 1]} : vector<10x16x32xbf16> to vector<1x16x32xbf16>
    %585 = vector.shape_cast %584 : vector<1x16x32xbf16> to vector<16x32xbf16>
    %586 = vector.extract_strided_slice %154 {offsets = [1, 0, 0], sizes = [1, 16, 32], strides = [1, 1, 1]} : vector<10x16x32xbf16> to vector<1x16x32xbf16>
    %587 = vector.shape_cast %586 : vector<1x16x32xbf16> to vector<16x32xbf16>
    %588 = vector.extract_strided_slice %154 {offsets = [2, 0, 0], sizes = [1, 16, 32], strides = [1, 1, 1]} : vector<10x16x32xbf16> to vector<1x16x32xbf16>
    %589 = vector.shape_cast %588 : vector<1x16x32xbf16> to vector<16x32xbf16>
    %590 = vector.extract_strided_slice %154 {offsets = [3, 0, 0], sizes = [1, 16, 32], strides = [1, 1, 1]} : vector<10x16x32xbf16> to vector<1x16x32xbf16>
    %591 = vector.shape_cast %590 : vector<1x16x32xbf16> to vector<16x32xbf16>
    %592 = vector.extract_strided_slice %171 {offsets = [0, 0, 0], sizes = [1, 16, 32], strides = [1, 1, 1]} : vector<10x16x32xbf16> to vector<1x16x32xbf16>
    %593 = vector.shape_cast %592 : vector<1x16x32xbf16> to vector<16x32xbf16>
    %594 = vector.extract_strided_slice %171 {offsets = [1, 0, 0], sizes = [1, 16, 32], strides = [1, 1, 1]} : vector<10x16x32xbf16> to vector<1x16x32xbf16>
    %595 = vector.shape_cast %594 : vector<1x16x32xbf16> to vector<16x32xbf16>
    %596 = vector.extract_strided_slice %171 {offsets = [2, 0, 0], sizes = [1, 16, 32], strides = [1, 1, 1]} : vector<10x16x32xbf16> to vector<1x16x32xbf16>
    %597 = vector.shape_cast %596 : vector<1x16x32xbf16> to vector<16x32xbf16>
    %598 = vector.extract_strided_slice %171 {offsets = [3, 0, 0], sizes = [1, 16, 32], strides = [1, 1, 1]} : vector<10x16x32xbf16> to vector<1x16x32xbf16>
    %599 = vector.shape_cast %598 : vector<1x16x32xbf16> to vector<16x32xbf16>
    %600 = tpu.concatenate %569, %571, %573, %575, %577, %579, %581, %583, %585, %587, %589, %591, %593, %595, %597, %599 in 1 : vector<16x32xbf16>, vector<16x32xbf16>, vector<16x32xbf16>, vector<16x32xbf16>, vector<16x32xbf16>, vector<16x32xbf16>, vector<16x32xbf16>, vector<16x32xbf16>, vector<16x32xbf16>, vector<16x32xbf16>, vector<16x32xbf16>, vector<16x32xbf16>, vector<16x32xbf16>, vector<16x32xbf16>, vector<16x32xbf16>, vector<16x32xbf16> -> vector<16x512xbf16>
    %601 = vector.extract_strided_slice %120 {offsets = [2, 0, 0], sizes = [1, 16, 32], strides = [1, 1, 1]} : vector<10x16x32xbf16> to vector<1x16x32xbf16>
    %602 = vector.shape_cast %601 : vector<1x16x32xbf16> to vector<16x32xbf16>
    %603 = vector.extract_strided_slice %120 {offsets = [3, 0, 0], sizes = [1, 16, 32], strides = [1, 1, 1]} : vector<10x16x32xbf16> to vector<1x16x32xbf16>
    %604 = vector.shape_cast %603 : vector<1x16x32xbf16> to vector<16x32xbf16>
    %605 = vector.extract_strided_slice %120 {offsets = [4, 0, 0], sizes = [1, 16, 32], strides = [1, 1, 1]} : vector<10x16x32xbf16> to vector<1x16x32xbf16>
    %606 = vector.shape_cast %605 : vector<1x16x32xbf16> to vector<16x32xbf16>
    %607 = vector.extract_strided_slice %120 {offsets = [5, 0, 0], sizes = [1, 16, 32], strides = [1, 1, 1]} : vector<10x16x32xbf16> to vector<1x16x32xbf16>
    %608 = vector.shape_cast %607 : vector<1x16x32xbf16> to vector<16x32xbf16>
    %609 = vector.extract_strided_slice %137 {offsets = [2, 0, 0], sizes = [1, 16, 32], strides = [1, 1, 1]} : vector<10x16x32xbf16> to vector<1x16x32xbf16>
    %610 = vector.shape_cast %609 : vector<1x16x32xbf16> to vector<16x32xbf16>
    %611 = vector.extract_strided_slice %137 {offsets = [3, 0, 0], sizes = [1, 16, 32], strides = [1, 1, 1]} : vector<10x16x32xbf16> to vector<1x16x32xbf16>
    %612 = vector.shape_cast %611 : vector<1x16x32xbf16> to vector<16x32xbf16>
    %613 = vector.extract_strided_slice %137 {offsets = [4, 0, 0], sizes = [1, 16, 32], strides = [1, 1, 1]} : vector<10x16x32xbf16> to vector<1x16x32xbf16>
    %614 = vector.shape_cast %613 : vector<1x16x32xbf16> to vector<16x32xbf16>
    %615 = vector.extract_strided_slice %137 {offsets = [5, 0, 0], sizes = [1, 16, 32], strides = [1, 1, 1]} : vector<10x16x32xbf16> to vector<1x16x32xbf16>
    %616 = vector.shape_cast %615 : vector<1x16x32xbf16> to vector<16x32xbf16>
    %617 = vector.extract_strided_slice %154 {offsets = [2, 0, 0], sizes = [1, 16, 32], strides = [1, 1, 1]} : vector<10x16x32xbf16> to vector<1x16x32xbf16>
    %618 = vector.shape_cast %617 : vector<1x16x32xbf16> to vector<16x32xbf16>
    %619 = vector.extract_strided_slice %154 {offsets = [3, 0, 0], sizes = [1, 16, 32], strides = [1, 1, 1]} : vector<10x16x32xbf16> to vector<1x16x32xbf16>
    %620 = vector.shape_cast %619 : vector<1x16x32xbf16> to vector<16x32xbf16>
    %621 = vector.extract_strided_slice %154 {offsets = [4, 0, 0], sizes = [1, 16, 32], strides = [1, 1, 1]} : vector<10x16x32xbf16> to vector<1x16x32xbf16>
    %622 = vector.shape_cast %621 : vector<1x16x32xbf16> to vector<16x32xbf16>
    %623 = vector.extract_strided_slice %154 {offsets = [5, 0, 0], sizes = [1, 16, 32], strides = [1, 1, 1]} : vector<10x16x32xbf16> to vector<1x16x32xbf16>
    %624 = vector.shape_cast %623 : vector<1x16x32xbf16> to vector<16x32xbf16>
    %625 = vector.extract_strided_slice %171 {offsets = [2, 0, 0], sizes = [1, 16, 32], strides = [1, 1, 1]} : vector<10x16x32xbf16> to vector<1x16x32xbf16>
    %626 = vector.shape_cast %625 : vector<1x16x32xbf16> to vector<16x32xbf16>
    %627 = vector.extract_strided_slice %171 {offsets = [3, 0, 0], sizes = [1, 16, 32], strides = [1, 1, 1]} : vector<10x16x32xbf16> to vector<1x16x32xbf16>
    %628 = vector.shape_cast %627 : vector<1x16x32xbf16> to vector<16x32xbf16>
    %629 = vector.extract_strided_slice %171 {offsets = [4, 0, 0], sizes = [1, 16, 32], strides = [1, 1, 1]} : vector<10x16x32xbf16> to vector<1x16x32xbf16>
    %630 = vector.shape_cast %629 : vector<1x16x32xbf16> to vector<16x32xbf16>
    %631 = vector.extract_strided_slice %171 {offsets = [5, 0, 0], sizes = [1, 16, 32], strides = [1, 1, 1]} : vector<10x16x32xbf16> to vector<1x16x32xbf16>
    %632 = vector.shape_cast %631 : vector<1x16x32xbf16> to vector<16x32xbf16>
    %633 = tpu.concatenate %602, %604, %606, %608, %610, %612, %614, %616, %618, %620, %622, %624, %626, %628, %630, %632 in 1 : vector<16x32xbf16>, vector<16x32xbf16>, vector<16x32xbf16>, vector<16x32xbf16>, vector<16x32xbf16>, vector<16x32xbf16>, vector<16x32xbf16>, vector<16x32xbf16>, vector<16x32xbf16>, vector<16x32xbf16>, vector<16x32xbf16>, vector<16x32xbf16>, vector<16x32xbf16>, vector<16x32xbf16>, vector<16x32xbf16>, vector<16x32xbf16> -> vector<16x512xbf16>
    %634 = vector.extract_strided_slice %120 {offsets = [4, 0, 0], sizes = [1, 16, 32], strides = [1, 1, 1]} : vector<10x16x32xbf16> to vector<1x16x32xbf16>
    %635 = vector.shape_cast %634 : vector<1x16x32xbf16> to vector<16x32xbf16>
    %636 = vector.extract_strided_slice %120 {offsets = [5, 0, 0], sizes = [1, 16, 32], strides = [1, 1, 1]} : vector<10x16x32xbf16> to vector<1x16x32xbf16>
    %637 = vector.shape_cast %636 : vector<1x16x32xbf16> to vector<16x32xbf16>
    %638 = vector.extract_strided_slice %120 {offsets = [6, 0, 0], sizes = [1, 16, 32], strides = [1, 1, 1]} : vector<10x16x32xbf16> to vector<1x16x32xbf16>
    %639 = vector.shape_cast %638 : vector<1x16x32xbf16> to vector<16x32xbf16>
    %640 = vector.extract_strided_slice %120 {offsets = [7, 0, 0], sizes = [1, 16, 32], strides = [1, 1, 1]} : vector<10x16x32xbf16> to vector<1x16x32xbf16>
    %641 = vector.shape_cast %640 : vector<1x16x32xbf16> to vector<16x32xbf16>
    %642 = vector.extract_strided_slice %137 {offsets = [4, 0, 0], sizes = [1, 16, 32], strides = [1, 1, 1]} : vector<10x16x32xbf16> to vector<1x16x32xbf16>
    %643 = vector.shape_cast %642 : vector<1x16x32xbf16> to vector<16x32xbf16>
    %644 = vector.extract_strided_slice %137 {offsets = [5, 0, 0], sizes = [1, 16, 32], strides = [1, 1, 1]} : vector<10x16x32xbf16> to vector<1x16x32xbf16>
    %645 = vector.shape_cast %644 : vector<1x16x32xbf16> to vector<16x32xbf16>
    %646 = vector.extract_strided_slice %137 {offsets = [6, 0, 0], sizes = [1, 16, 32], strides = [1, 1, 1]} : vector<10x16x32xbf16> to vector<1x16x32xbf16>
    %647 = vector.shape_cast %646 : vector<1x16x32xbf16> to vector<16x32xbf16>
    %648 = vector.extract_strided_slice %137 {offsets = [7, 0, 0], sizes = [1, 16, 32], strides = [1, 1, 1]} : vector<10x16x32xbf16> to vector<1x16x32xbf16>
    %649 = vector.shape_cast %648 : vector<1x16x32xbf16> to vector<16x32xbf16>
    %650 = vector.extract_strided_slice %154 {offsets = [4, 0, 0], sizes = [1, 16, 32], strides = [1, 1, 1]} : vector<10x16x32xbf16> to vector<1x16x32xbf16>
    %651 = vector.shape_cast %650 : vector<1x16x32xbf16> to vector<16x32xbf16>
    %652 = vector.extract_strided_slice %154 {offsets = [5, 0, 0], sizes = [1, 16, 32], strides = [1, 1, 1]} : vector<10x16x32xbf16> to vector<1x16x32xbf16>
    %653 = vector.shape_cast %652 : vector<1x16x32xbf16> to vector<16x32xbf16>
    %654 = vector.extract_strided_slice %154 {offsets = [6, 0, 0], sizes = [1, 16, 32], strides = [1, 1, 1]} : vector<10x16x32xbf16> to vector<1x16x32xbf16>
    %655 = vector.shape_cast %654 : vector<1x16x32xbf16> to vector<16x32xbf16>
    %656 = vector.extract_strided_slice %154 {offsets = [7, 0, 0], sizes = [1, 16, 32], strides = [1, 1, 1]} : vector<10x16x32xbf16> to vector<1x16x32xbf16>
    %657 = vector.shape_cast %656 : vector<1x16x32xbf16> to vector<16x32xbf16>
    %658 = vector.extract_strided_slice %171 {offsets = [4, 0, 0], sizes = [1, 16, 32], strides = [1, 1, 1]} : vector<10x16x32xbf16> to vector<1x16x32xbf16>
    %659 = vector.shape_cast %658 : vector<1x16x32xbf16> to vector<16x32xbf16>
    %660 = vector.extract_strided_slice %171 {offsets = [5, 0, 0], sizes = [1, 16, 32], strides = [1, 1, 1]} : vector<10x16x32xbf16> to vector<1x16x32xbf16>
    %661 = vector.shape_cast %660 : vector<1x16x32xbf16> to vector<16x32xbf16>
    %662 = vector.extract_strided_slice %171 {offsets = [6, 0, 0], sizes = [1, 16, 32], strides = [1, 1, 1]} : vector<10x16x32xbf16> to vector<1x16x32xbf16>
    %663 = vector.shape_cast %662 : vector<1x16x32xbf16> to vector<16x32xbf16>
    %664 = vector.extract_strided_slice %171 {offsets = [7, 0, 0], sizes = [1, 16, 32], strides = [1, 1, 1]} : vector<10x16x32xbf16> to vector<1x16x32xbf16>
    %665 = vector.shape_cast %664 : vector<1x16x32xbf16> to vector<16x32xbf16>
    %666 = tpu.concatenate %635, %637, %639, %641, %643, %645, %647, %649, %651, %653, %655, %657, %659, %661, %663, %665 in 1 : vector<16x32xbf16>, vector<16x32xbf16>, vector<16x32xbf16>, vector<16x32xbf16>, vector<16x32xbf16>, vector<16x32xbf16>, vector<16x32xbf16>, vector<16x32xbf16>, vector<16x32xbf16>, vector<16x32xbf16>, vector<16x32xbf16>, vector<16x32xbf16>, vector<16x32xbf16>, vector<16x32xbf16>, vector<16x32xbf16>, vector<16x32xbf16> -> vector<16x512xbf16>
    %667 = vector.extract_strided_slice %120 {offsets = [6, 0, 0], sizes = [1, 16, 32], strides = [1, 1, 1]} : vector<10x16x32xbf16> to vector<1x16x32xbf16>
    %668 = vector.shape_cast %667 : vector<1x16x32xbf16> to vector<16x32xbf16>
    %669 = vector.extract_strided_slice %120 {offsets = [7, 0, 0], sizes = [1, 16, 32], strides = [1, 1, 1]} : vector<10x16x32xbf16> to vector<1x16x32xbf16>
    %670 = vector.shape_cast %669 : vector<1x16x32xbf16> to vector<16x32xbf16>
    %671 = vector.extract_strided_slice %120 {offsets = [8, 0, 0], sizes = [1, 16, 32], strides = [1, 1, 1]} : vector<10x16x32xbf16> to vector<1x16x32xbf16>
    %672 = vector.shape_cast %671 : vector<1x16x32xbf16> to vector<16x32xbf16>
    %673 = vector.extract_strided_slice %120 {offsets = [9, 0, 0], sizes = [1, 16, 32], strides = [1, 1, 1]} : vector<10x16x32xbf16> to vector<1x16x32xbf16>
    %674 = vector.shape_cast %673 : vector<1x16x32xbf16> to vector<16x32xbf16>
    %675 = vector.extract_strided_slice %137 {offsets = [6, 0, 0], sizes = [1, 16, 32], strides = [1, 1, 1]} : vector<10x16x32xbf16> to vector<1x16x32xbf16>
    %676 = vector.shape_cast %675 : vector<1x16x32xbf16> to vector<16x32xbf16>
    %677 = vector.extract_strided_slice %137 {offsets = [7, 0, 0], sizes = [1, 16, 32], strides = [1, 1, 1]} : vector<10x16x32xbf16> to vector<1x16x32xbf16>
    %678 = vector.shape_cast %677 : vector<1x16x32xbf16> to vector<16x32xbf16>
    %679 = vector.extract_strided_slice %137 {offsets = [8, 0, 0], sizes = [1, 16, 32], strides = [1, 1, 1]} : vector<10x16x32xbf16> to vector<1x16x32xbf16>
    %680 = vector.shape_cast %679 : vector<1x16x32xbf16> to vector<16x32xbf16>
    %681 = vector.extract_strided_slice %137 {offsets = [9, 0, 0], sizes = [1, 16, 32], strides = [1, 1, 1]} : vector<10x16x32xbf16> to vector<1x16x32xbf16>
    %682 = vector.shape_cast %681 : vector<1x16x32xbf16> to vector<16x32xbf16>
    %683 = vector.extract_strided_slice %154 {offsets = [6, 0, 0], sizes = [1, 16, 32], strides = [1, 1, 1]} : vector<10x16x32xbf16> to vector<1x16x32xbf16>
    %684 = vector.shape_cast %683 : vector<1x16x32xbf16> to vector<16x32xbf16>
    %685 = vector.extract_strided_slice %154 {offsets = [7, 0, 0], sizes = [1, 16, 32], strides = [1, 1, 1]} : vector<10x16x32xbf16> to vector<1x16x32xbf16>
    %686 = vector.shape_cast %685 : vector<1x16x32xbf16> to vector<16x32xbf16>
    %687 = vector.extract_strided_slice %154 {offsets = [8, 0, 0], sizes = [1, 16, 32], strides = [1, 1, 1]} : vector<10x16x32xbf16> to vector<1x16x32xbf16>
    %688 = vector.shape_cast %687 : vector<1x16x32xbf16> to vector<16x32xbf16>
    %689 = vector.extract_strided_slice %154 {offsets = [9, 0, 0], sizes = [1, 16, 32], strides = [1, 1, 1]} : vector<10x16x32xbf16> to vector<1x16x32xbf16>
    %690 = vector.shape_cast %689 : vector<1x16x32xbf16> to vector<16x32xbf16>
    %691 = vector.extract_strided_slice %171 {offsets = [6, 0, 0], sizes = [1, 16, 32], strides = [1, 1, 1]} : vector<10x16x32xbf16> to vector<1x16x32xbf16>
    %692 = vector.shape_cast %691 : vector<1x16x32xbf16> to vector<16x32xbf16>
    %693 = vector.extract_strided_slice %171 {offsets = [7, 0, 0], sizes = [1, 16, 32], strides = [1, 1, 1]} : vector<10x16x32xbf16> to vector<1x16x32xbf16>
    %694 = vector.shape_cast %693 : vector<1x16x32xbf16> to vector<16x32xbf16>
    %695 = vector.extract_strided_slice %171 {offsets = [8, 0, 0], sizes = [1, 16, 32], strides = [1, 1, 1]} : vector<10x16x32xbf16> to vector<1x16x32xbf16>
    %696 = vector.shape_cast %695 : vector<1x16x32xbf16> to vector<16x32xbf16>
    %697 = vector.extract_strided_slice %171 {offsets = [9, 0, 0], sizes = [1, 16, 32], strides = [1, 1, 1]} : vector<10x16x32xbf16> to vector<1x16x32xbf16>
    %698 = vector.shape_cast %697 : vector<1x16x32xbf16> to vector<16x32xbf16>
    %699 = tpu.concatenate %668, %670, %672, %674, %676, %678, %680, %682, %684, %686, %688, %690, %692, %694, %696, %698 in 1 : vector<16x32xbf16>, vector<16x32xbf16>, vector<16x32xbf16>, vector<16x32xbf16>, vector<16x32xbf16>, vector<16x32xbf16>, vector<16x32xbf16>, vector<16x32xbf16>, vector<16x32xbf16>, vector<16x32xbf16>, vector<16x32xbf16>, vector<16x32xbf16>, vector<16x32xbf16>, vector<16x32xbf16>, vector<16x32xbf16>, vector<16x32xbf16> -> vector<16x512xbf16>
    %700 = tpu.concatenate %204, %237, %270, %303, %336, %369, %402, %435, %468, %501, %534, %567, %600, %633, %666, %699 in 0 : vector<16x512xbf16>, vector<16x512xbf16>, vector<16x512xbf16>, vector<16x512xbf16>, vector<16x512xbf16>, vector<16x512xbf16>, vector<16x512xbf16>, vector<16x512xbf16>, vector<16x512xbf16>, vector<16x512xbf16>, vector<16x512xbf16>, vector<16x512xbf16>, vector<16x512xbf16>, vector<16x512xbf16>, vector<16x512xbf16>, vector<16x512xbf16> -> vector<256x512xbf16>
    %c0_92 = arith.constant 0 : index
    %c0_93 = arith.constant 0 : index
    %701 = vector.load %arg4[%c0_92, %c0_93] : memref<512x64xbf16, #tpu.memory_space<vmem>>, vector<512x64xbf16>
    %cst_94 = arith.constant dense<0.000000e+00> : vector<256x64xf32>
    %702 = tpu.matmul %700, %701, %cst_94 {dimension_numbers = #tpu.dot_dimension_numbers<[1], [0], [0], [1], [0, 0, 1, 1], [], []>} : vector<256x512xbf16>, vector<512x64xbf16>, vector<256x64xf32> -> vector<256x64xf32>
    %c0_95 = arith.constant 0 : index
    %c0_96 = arith.constant 0 : index
    %703 = vector.load %arg5[%c0_95, %c0_96] : memref<1x64xf32, #tpu.memory_space<vmem>>, vector<1x64xf32>
    %704 = vector.broadcast %703 : vector<1x64xf32> to vector<256x64xf32>
    %705 = arith.addf %702, %704 : vector<256x64xf32>
    %cst_97 = arith.constant 0.000000e+00 : f32
    %706 = vector.broadcast %cst_97 : f32 to vector<256x64xf32>
    %707 = arith.maximumf %705, %706 : vector<256x64xf32>
    %708 = arith.truncf %707 : vector<256x64xf32> to vector<256x64xbf16>
    %709 = vector.extract_strided_slice %708 {offsets = [0, 0], sizes = [16, 64], strides = [1, 1]} : vector<256x64xbf16> to vector<16x64xbf16>
    %710 = vector.extract_strided_slice %708 {offsets = [16, 0], sizes = [16, 64], strides = [1, 1]} : vector<256x64xbf16> to vector<16x64xbf16>
    %711 = vector.extract_strided_slice %708 {offsets = [32, 0], sizes = [16, 64], strides = [1, 1]} : vector<256x64xbf16> to vector<16x64xbf16>
    %712 = vector.extract_strided_slice %708 {offsets = [64, 0], sizes = [16, 64], strides = [1, 1]} : vector<256x64xbf16> to vector<16x64xbf16>
    %713 = vector.extract_strided_slice %708 {offsets = [80, 0], sizes = [16, 64], strides = [1, 1]} : vector<256x64xbf16> to vector<16x64xbf16>
    %714 = vector.extract_strided_slice %708 {offsets = [96, 0], sizes = [16, 64], strides = [1, 1]} : vector<256x64xbf16> to vector<16x64xbf16>
    %715 = vector.extract_strided_slice %708 {offsets = [128, 0], sizes = [16, 64], strides = [1, 1]} : vector<256x64xbf16> to vector<16x64xbf16>
    %716 = vector.extract_strided_slice %708 {offsets = [144, 0], sizes = [16, 64], strides = [1, 1]} : vector<256x64xbf16> to vector<16x64xbf16>
    %717 = vector.extract_strided_slice %708 {offsets = [160, 0], sizes = [16, 64], strides = [1, 1]} : vector<256x64xbf16> to vector<16x64xbf16>
    %718 = tpu.concatenate %709, %710, %711, %712, %713, %714, %715, %716, %717 in 1 : vector<16x64xbf16>, vector<16x64xbf16>, vector<16x64xbf16>, vector<16x64xbf16>, vector<16x64xbf16>, vector<16x64xbf16>, vector<16x64xbf16>, vector<16x64xbf16>, vector<16x64xbf16> -> vector<16x576xbf16>
    %719 = vector.extract_strided_slice %708 {offsets = [16, 0], sizes = [16, 64], strides = [1, 1]} : vector<256x64xbf16> to vector<16x64xbf16>
    %720 = vector.extract_strided_slice %708 {offsets = [32, 0], sizes = [16, 64], strides = [1, 1]} : vector<256x64xbf16> to vector<16x64xbf16>
    %721 = vector.extract_strided_slice %708 {offsets = [48, 0], sizes = [16, 64], strides = [1, 1]} : vector<256x64xbf16> to vector<16x64xbf16>
    %722 = vector.extract_strided_slice %708 {offsets = [80, 0], sizes = [16, 64], strides = [1, 1]} : vector<256x64xbf16> to vector<16x64xbf16>
    %723 = vector.extract_strided_slice %708 {offsets = [96, 0], sizes = [16, 64], strides = [1, 1]} : vector<256x64xbf16> to vector<16x64xbf16>
    %724 = vector.extract_strided_slice %708 {offsets = [112, 0], sizes = [16, 64], strides = [1, 1]} : vector<256x64xbf16> to vector<16x64xbf16>
    %725 = vector.extract_strided_slice %708 {offsets = [144, 0], sizes = [16, 64], strides = [1, 1]} : vector<256x64xbf16> to vector<16x64xbf16>
    %726 = vector.extract_strided_slice %708 {offsets = [160, 0], sizes = [16, 64], strides = [1, 1]} : vector<256x64xbf16> to vector<16x64xbf16>
    %727 = vector.extract_strided_slice %708 {offsets = [176, 0], sizes = [16, 64], strides = [1, 1]} : vector<256x64xbf16> to vector<16x64xbf16>
    %728 = tpu.concatenate %719, %720, %721, %722, %723, %724, %725, %726, %727 in 1 : vector<16x64xbf16>, vector<16x64xbf16>, vector<16x64xbf16>, vector<16x64xbf16>, vector<16x64xbf16>, vector<16x64xbf16>, vector<16x64xbf16>, vector<16x64xbf16>, vector<16x64xbf16> -> vector<16x576xbf16>
    %729 = vector.extract_strided_slice %708 {offsets = [64, 0], sizes = [16, 64], strides = [1, 1]} : vector<256x64xbf16> to vector<16x64xbf16>
    %730 = vector.extract_strided_slice %708 {offsets = [80, 0], sizes = [16, 64], strides = [1, 1]} : vector<256x64xbf16> to vector<16x64xbf16>
    %731 = vector.extract_strided_slice %708 {offsets = [96, 0], sizes = [16, 64], strides = [1, 1]} : vector<256x64xbf16> to vector<16x64xbf16>
    %732 = vector.extract_strided_slice %708 {offsets = [128, 0], sizes = [16, 64], strides = [1, 1]} : vector<256x64xbf16> to vector<16x64xbf16>
    %733 = vector.extract_strided_slice %708 {offsets = [144, 0], sizes = [16, 64], strides = [1, 1]} : vector<256x64xbf16> to vector<16x64xbf16>
    %734 = vector.extract_strided_slice %708 {offsets = [160, 0], sizes = [16, 64], strides = [1, 1]} : vector<256x64xbf16> to vector<16x64xbf16>
    %735 = vector.extract_strided_slice %708 {offsets = [192, 0], sizes = [16, 64], strides = [1, 1]} : vector<256x64xbf16> to vector<16x64xbf16>
    %736 = vector.extract_strided_slice %708 {offsets = [208, 0], sizes = [16, 64], strides = [1, 1]} : vector<256x64xbf16> to vector<16x64xbf16>
    %737 = vector.extract_strided_slice %708 {offsets = [224, 0], sizes = [16, 64], strides = [1, 1]} : vector<256x64xbf16> to vector<16x64xbf16>
    %738 = tpu.concatenate %729, %730, %731, %732, %733, %734, %735, %736, %737 in 1 : vector<16x64xbf16>, vector<16x64xbf16>, vector<16x64xbf16>, vector<16x64xbf16>, vector<16x64xbf16>, vector<16x64xbf16>, vector<16x64xbf16>, vector<16x64xbf16>, vector<16x64xbf16> -> vector<16x576xbf16>
    %739 = vector.extract_strided_slice %708 {offsets = [80, 0], sizes = [16, 64], strides = [1, 1]} : vector<256x64xbf16> to vector<16x64xbf16>
    %740 = vector.extract_strided_slice %708 {offsets = [96, 0], sizes = [16, 64], strides = [1, 1]} : vector<256x64xbf16> to vector<16x64xbf16>
    %741 = vector.extract_strided_slice %708 {offsets = [112, 0], sizes = [16, 64], strides = [1, 1]} : vector<256x64xbf16> to vector<16x64xbf16>
    %742 = vector.extract_strided_slice %708 {offsets = [144, 0], sizes = [16, 64], strides = [1, 1]} : vector<256x64xbf16> to vector<16x64xbf16>
    %743 = vector.extract_strided_slice %708 {offsets = [160, 0], sizes = [16, 64], strides = [1, 1]} : vector<256x64xbf16> to vector<16x64xbf16>
    %744 = vector.extract_strided_slice %708 {offsets = [176, 0], sizes = [16, 64], strides = [1, 1]} : vector<256x64xbf16> to vector<16x64xbf16>
    %745 = vector.extract_strided_slice %708 {offsets = [208, 0], sizes = [16, 64], strides = [1, 1]} : vector<256x64xbf16> to vector<16x64xbf16>
    %746 = vector.extract_strided_slice %708 {offsets = [224, 0], sizes = [16, 64], strides = [1, 1]} : vector<256x64xbf16> to vector<16x64xbf16>
    %747 = vector.extract_strided_slice %708 {offsets = [240, 0], sizes = [16, 64], strides = [1, 1]} : vector<256x64xbf16> to vector<16x64xbf16>
    %748 = tpu.concatenate %739, %740, %741, %742, %743, %744, %745, %746, %747 in 1 : vector<16x64xbf16>, vector<16x64xbf16>, vector<16x64xbf16>, vector<16x64xbf16>, vector<16x64xbf16>, vector<16x64xbf16>, vector<16x64xbf16>, vector<16x64xbf16>, vector<16x64xbf16> -> vector<16x576xbf16>
    %749 = tpu.concatenate %718, %728, %738, %748 in 0 : vector<16x576xbf16>, vector<16x576xbf16>, vector<16x576xbf16>, vector<16x576xbf16> -> vector<64x576xbf16>
    %c0_98 = arith.constant 0 : index
    %c0_99 = arith.constant 0 : index
    %750 = vector.load %arg6[%c0_98, %c0_99] : memref<576x64xbf16, #tpu.memory_space<vmem>>, vector<576x64xbf16>
    %cst_100 = arith.constant dense<0.000000e+00> : vector<64x64xf32>
    %751 = tpu.matmul %749, %750, %cst_100 {dimension_numbers = #tpu.dot_dimension_numbers<[1], [0], [0], [1], [0, 0, 1, 1], [], []>} : vector<64x576xbf16>, vector<576x64xbf16>, vector<64x64xf32> -> vector<64x64xf32>
    %c0_101 = arith.constant 0 : index
    %c0_102 = arith.constant 0 : index
    %752 = vector.load %arg7[%c0_101, %c0_102] : memref<1x64xf32, #tpu.memory_space<vmem>>, vector<1x64xf32>
    %753 = vector.broadcast %752 : vector<1x64xf32> to vector<64x64xf32>
    %754 = arith.addf %751, %753 : vector<64x64xf32>
    %cst_103 = arith.constant 0.000000e+00 : f32
    %755 = vector.broadcast %cst_103 : f32 to vector<64x64xf32>
    %756 = arith.maximumf %754, %755 : vector<64x64xf32>
    %757 = arith.truncf %756 : vector<64x64xf32> to vector<64x64xbf16>
    %758 = vector.extract_strided_slice %757 {offsets = [0, 0], sizes = [16, 64], strides = [1, 1]} : vector<64x64xbf16> to vector<16x64xbf16>
    %759 = vector.extract_strided_slice %757 {offsets = [16, 0], sizes = [16, 64], strides = [1, 1]} : vector<64x64xbf16> to vector<16x64xbf16>
    %760 = vector.extract_strided_slice %757 {offsets = [32, 0], sizes = [16, 64], strides = [1, 1]} : vector<64x64xbf16> to vector<16x64xbf16>
    %761 = vector.extract_strided_slice %757 {offsets = [48, 0], sizes = [16, 64], strides = [1, 1]} : vector<64x64xbf16> to vector<16x64xbf16>
    %762 = tpu.concatenate %758, %759, %760, %761 in 1 : vector<16x64xbf16>, vector<16x64xbf16>, vector<16x64xbf16>, vector<16x64xbf16> -> vector<16x256xbf16>
    %c0_104 = arith.constant 0 : index
    %c0_105 = arith.constant 0 : index
    %763 = vector.load %arg8[%c0_104, %c0_105] : memref<256x1024xbf16, #tpu.memory_space<vmem>>, vector<256x1024xbf16>
    %cst_106 = arith.constant dense<0.000000e+00> : vector<16x1024xf32>
    %764 = tpu.matmul %762, %763, %cst_106 {dimension_numbers = #tpu.dot_dimension_numbers<[1], [0], [0], [1], [0, 0, 1, 1], [], []>} : vector<16x256xbf16>, vector<256x1024xbf16>, vector<16x1024xf32> -> vector<16x1024xf32>
    %c0_107 = arith.constant 0 : index
    %c0_108 = arith.constant 0 : index
    %765 = vector.load %arg9[%c0_107, %c0_108] : memref<1x1024xf32, #tpu.memory_space<vmem>>, vector<1x1024xf32>
    %766 = vector.broadcast %765 : vector<1x1024xf32> to vector<16x1024xf32>
    %767 = arith.addf %764, %766 : vector<16x1024xf32>
    %cst_109 = arith.constant 0.000000e+00 : f32
    %768 = vector.broadcast %cst_109 : f32 to vector<16x1024xf32>
    %769 = arith.maximumf %767, %768 : vector<16x1024xf32>
    %770 = arith.truncf %769 : vector<16x1024xf32> to vector<16x1024xbf16>
    %c0_110 = arith.constant 0 : index
    %c0_111 = arith.constant 0 : index
    %771 = vector.load %arg10[%c0_110, %c0_111] : memref<1024x7xbf16, #tpu.memory_space<vmem>>, vector<1024x7xbf16>
    %cst_112 = arith.constant dense<0.000000e+00> : vector<16x7xf32>
    %772 = tpu.matmul %770, %771, %cst_112 {dimension_numbers = #tpu.dot_dimension_numbers<[1], [0], [0], [1], [0, 0, 1, 1], [], []>} : vector<16x1024xbf16>, vector<1024x7xbf16>, vector<16x7xf32> -> vector<16x7xf32>
    %c0_113 = arith.constant 0 : index
    %c0_114 = arith.constant 0 : index
    %773 = vector.load %arg11[%c0_113, %c0_114] : memref<1x7xf32, #tpu.memory_space<vmem>>, vector<1x7xf32>
    %774 = vector.broadcast %773 : vector<1x7xf32> to vector<16x7xf32>
    %775 = arith.addf %772, %774 : vector<16x7xf32>
    %776 = vector.extract_strided_slice %775 {offsets = [0, 0], sizes = [16, 1], strides = [1, 1]} : vector<16x7xf32> to vector<16x1xf32>
    %777 = vector.extract_strided_slice %775 {offsets = [0, 1], sizes = [16, 6], strides = [1, 1]} : vector<16x7xf32> to vector<16x6xf32>
    %778 = vector.broadcast %776 : vector<16x1xf32> to vector<16x6xf32>
    %779 = arith.addf %778, %777 : vector<16x6xf32>
    %cst_115 = arith.constant dense<0.000000e+00> : vector<16xf32>
    %780 = vector.multi_reduction <add>, %777, %cst_115 [1] : vector<16x6xf32> to vector<16xf32>
    %781 = vector.shape_cast %780 : vector<16xf32> to vector<16x1xf32>
    %cst_116 = arith.constant 6.000000e+00 : f32
    %782 = vector.broadcast %cst_116 : f32 to vector<16x1xf32>
    %783 = arith.divf %781, %782 : vector<16x1xf32>
    %784 = vector.broadcast %783 : vector<16x1xf32> to vector<16x6xf32>
    %785 = arith.subf %779, %784 : vector<16x6xf32>
    %c0_117 = arith.constant 0 : index
    %c0_118 = arith.constant 0 : index
    %786 = vector.load %arg12[%c0_117, %c0_118] : memref<16x6xf32, #tpu.memory_space<vmem>>, vector<16x6xf32>
    tpu.vector_store %arg12[%c0_117, %c0_118], %785 {strides = array<i32>} : memref<16x6xf32, #tpu.memory_space<vmem>>, vector<16x6xf32>,
    return
  }
  func.func @transform_0(%arg0: i32) -> (i32, i32, i32, i32) {
    %c0_i32 = arith.constant 0 : i32
    %c0_i32_0 = arith.constant 0 : i32
    %c0_i32_1 = arith.constant 0 : i32
    %c0_i32_2 = arith.constant 0 : i32
    return %c0_i32, %c0_i32_0, %arg0, %c0_i32_1 : i32, i32, i32, i32
  }
  func.func @transform_1(%arg0: i32) -> (i32, i32) {
    %c0_i32 = arith.constant 0 : i32
    %c0_i32_0 = arith.constant 0 : i32
    %c0_i32_1 = arith.constant 0 : i32
    return %c0_i32, %c0_i32_0 : i32, i32
  }
  func.func @transform_2(%arg0: i32) -> (i32, i32) {
    %c0_i32 = arith.constant 0 : i32
    %c0_i32_0 = arith.constant 0 : i32
    %c0_i32_1 = arith.constant 0 : i32
    return %c0_i32, %c0_i32_0 : i32, i32
  }
  func.func @transform_3(%arg0: i32) -> (i32, i32) {
    %c0_i32 = arith.constant 0 : i32
    %c0_i32_0 = arith.constant 0 : i32
    %c0_i32_1 = arith.constant 0 : i32
    return %c0_i32, %c0_i32_0 : i32, i32
  }
  func.func @transform_4(%arg0: i32) -> (i32, i32) {
    %c0_i32 = arith.constant 0 : i32
    %c0_i32_0 = arith.constant 0 : i32
    %c0_i32_1 = arith.constant 0 : i32
    return %c0_i32, %c0_i32_0 : i32, i32
  }
  func.func @transform_5(%arg0: i32) -> (i32, i32) {
    %c0_i32 = arith.constant 0 : i32
    %c0_i32_0 = arith.constant 0 : i32
    %c0_i32_1 = arith.constant 0 : i32
    return %c0_i32, %c0_i32_0 : i32, i32
  }
  func.func @transform_6(%arg0: i32) -> (i32, i32) {
    %c0_i32 = arith.constant 0 : i32
    %c0_i32_0 = arith.constant 0 : i32
    %c0_i32_1 = arith.constant 0 : i32
    return %c0_i32, %c0_i32_0 : i32, i32
  }
  func.func @transform_7(%arg0: i32) -> (i32, i32) {
    %c0_i32 = arith.constant 0 : i32
    %c0_i32_0 = arith.constant 0 : i32
    %c0_i32_1 = arith.constant 0 : i32
    return %c0_i32, %c0_i32_0 : i32, i32
  }
  func.func @transform_8(%arg0: i32) -> (i32, i32) {
    %c0_i32 = arith.constant 0 : i32
    %c0_i32_0 = arith.constant 0 : i32
    %c0_i32_1 = arith.constant 0 : i32
    return %c0_i32, %c0_i32_0 : i32, i32
  }
  func.func @transform_9(%arg0: i32) -> (i32, i32) {
    %c0_i32 = arith.constant 0 : i32
    %c0_i32_0 = arith.constant 0 : i32
    %c0_i32_1 = arith.constant 0 : i32
    return %c0_i32, %c0_i32_0 : i32, i32
  }
  func.func @transform_10(%arg0: i32) -> (i32, i32) {
    %c0_i32 = arith.constant 0 : i32
    %c0_i32_0 = arith.constant 0 : i32
    %c0_i32_1 = arith.constant 0 : i32
    return %c0_i32, %c0_i32_0 : i32, i32
  }
  func.func @transform_11(%arg0: i32) -> (i32, i32) {
    %c0_i32 = arith.constant 0 : i32
    %c0_i32_0 = arith.constant 0 : i32
    return %arg0, %c0_i32 : i32, i32
  }
}

</mosaic_0001>

<bundles_post_ra>
// kernel: dpdn_forward.1
= control target key start
LH: loop header
LB: loop body
LE: loop exit
PB: predicated region body
PF: predicated region fallthrough
CT: control target
= control target key end

     0   :  { %s9685_s21 = smov 64   ;;  %vm267_vm0 = vcmask 523264   ;;  %s9686_s19 = smov 32   ;;  %vm3373_vm1 = vcmask 261120   ;;  %vm3379_vm2 = vcmask 785408   ;;  %vm7344_vm3 = vcmask 48128   ;;  %s13677_s0 = inlined_call_operand.vmem [shape: bf16[11,11,16,64], index: 0, kind: input, shape index: {}]   ;;  %s13678_s1 = inlined_call_operand.vmem [shape: bf16[256,32], index: 1, kind: input, shape index: {}]   ;;  %s13679_s2 = inlined_call_operand.vmem [shape: f32[1,32], index: 2, kind: input, shape index: {}]   ;;  %s13680_s3 = inlined_call_operand.vmem [shape: bf16[512,64], index: 3, kind: input, shape index: {}]   ;;  %s13681_s4 = inlined_call_operand.vmem [shape: f32[1,64], index: 4, kind: input, shape index: {}]   ;;  %s13682_s5 = inlined_call_operand.vmem [shape: bf16[576,64], index: 5, kind: input, shape index: {}]   ;;  %s13683_s6 = inlined_call_operand.vmem [shape: f32[1,64], index: 6, kind: input, shape index: {}]   ;;  %s13684_s7 = inlined_call_operand.vmem [shape: bf16[256,1024], index: 7, kind: input, shape index: {}]   ;;  %s13685_s9 = inlined_call_operand.vmem [shape: bf16[1024,7], index: 9, kind: input, shape index: {}]   ;;  %s13686_s8 = inlined_call_operand.vmem [shape: f32[1,1024], index: 8, kind: input, shape index: {}]   ;;  %s13687_s10 = inlined_call_operand.vmem [shape: f32[1,7], index: 10, kind: input, shape index: {}]   ;;  %s13688_s11 = inlined_call_operand.vmem [shape: f32[16,6], index: 11, kind: output, shape index: {}]  }
   0x1   :  { %v9754_v0 = vld [vmem:[%s13677_s0 + $0xb8] sm:$0xff]  ;;  %v9759_v1 = vld [vmem:[%s13677_s0 + $0x60] sm:$0xff]  ;;  %v9768_v2 = vld [vmem:[%s13677_s0 + $0x10] sm:$0xff]  ;;  %s9687_s12 = smov 96  }
   0x2   :  { %683 = vrot.lane.b32.xlu1 %v9754_v0, %s9685_s21  ;;  %247 = vrot.lane.b32.xlu0 %v9759_v1, %s9685_s21  ;;  %v9775_v3 = vld [vmem:[%s13677_s0 + $0x68] sm:$0xff]  ;;  %v9785_v5 = vld [vmem:[%s13677_s0 + $0xc0] sm:$0xff] }
   0x3   :  { %174 = vrot.lane.b32.xlu2 %v9768_v2, %s9685_s21  ;;  %v9780_v4 = vld [vmem:[%s13677_s0 + $0x8] sm:$0xff]  ;;  %v9796_v6 = vld [vmem:[%s13677_s0 + $0x18] sm:$0xff]  ;;  %v9801_v7 = vld [vmem:[%s13677_s0 + $0x70] sm:$0xff] }
   0x4   :  { %v9810_v8 = vld [vmem:[%s13677_s0 + $0x20] sm:$0xff]  ;;  %v9815_v9 = vld [vmem:[%s13677_s0 + $0x78] sm:$0xff]  ;;  %v9820_v10 = vld [vmem:[%s13677_s0 + $0xc8] sm:$0xff] }
   0x5   :  { %v9831_v11 = vld [vmem:[%s13677_s0 + $0x28] sm:$0xff]  ;;  %v9836_v12 = vld [vmem:[%s13677_s0 + $0x80] sm:$0xff]  ;;  %v9845_v13 = vld [vmem:[%s13677_s0 + $0x30] sm:$0xff] }
   0x6   :  { %v9850_v14 = vld [vmem:[%s13677_s0 + $0x88] sm:$0xff]  ;;  %v9855_v15 = vld [vmem:[%s13677_s0 + $0xd0] sm:$0xff]  ;;  %v9866_v16 = vld [vmem:[%s13677_s0 + $0x38] sm:$0xff] }
   0x7   :  { %v9871_v17 = vld [vmem:[%s13677_s0 + $0x90] sm:$0xff]  ;;  %v9880_v18 = vld [vmem:[%s13678_s1 + $0x78] sm:$0xff]  ;;  %v9894_v20 = vld [vmem:[%s13677_s0 + $0x40] sm:$0xff] }
   0x8   :  { %v9885_v19 = vld [vmem:[%s13678_s1 + $0x38] sm:$0xff]  ;;  %506 = vmatpush.bf16.msra.mxu1 %v9880_v18  ;;  %802 = vmatpush.bf16.msra.mxu3 %v9880_v18  ;;  %v9909_v23 = vld [vmem:[%s13678_s1 + $0x70] sm:$0xff]  ;;  %v9926_v25 = vld [vmem:[%s13678_s1 + $0x68] sm:$0xff] }
   0x9   :  { %743 = vmatpush.bf16.msra.mxu2 %v9885_v19  ;;  %447 = vmatpush.bf16.msra.mxu0 %v9885_v19  ;;  %v9899_v21 = vld [vmem:[%s13677_s0 + $0x98] sm:$0xff]  ;;  %v9914_v24 = vld [vmem:[%s13678_s1 + $0x30] sm:$0xff]  ;;  %v9933_v26 = vld [vmem:[%s13678_s1 + $0x28] sm:$0xff] }
   0xa   :  { %249 = vrot.lane.b32.xlu1 %v9775_v3, %s9685_s21  ;;  %172 = vrot.lane.b32.xlu0 %v9780_v4, %s9685_s21  ;;  %v9904_v22 = vld [vmem:[%s13677_s0 + $0xd8] sm:$0xff]  ;;  %v9939_v27 = vld [vmem:[%s13677_s0 + $0x48] sm:$0xff] }
   0xb   :  { %685 = vrot.lane.b32.xlu2 %v9785_v5, %s9685_s21  ;;  %v9944_v28 = vld [vmem:[%s13677_s0 + $0xa0] sm:$0xff]  ;;  %v9968_v31 = vld [vmem:[%s13678_s1 + $0x58] sm:$0xff]  ;;  %v9214_v33 = vld [vmem:[%s13677_s0 + $0x50] sm:$0xff] }
   0xc   :  { %507 = vmatpush.bf16.msra.mxu1 %v9909_v23  ;;  %803 = vmatpush.bf16.msra.mxu3 %v9909_v23  ;;  %v9952_v29 = vld [vmem:[%s13678_s1 + $0x60] sm:$0xff]  ;;  %v9975_v32 = vld [vmem:[%s13678_s1 + $0x18] sm:$0xff]  ;;  %v9225_v34 = vld [vmem:[%s13677_s0 + $0xa8] sm:$0xff] }
   0xd   :  { %744 = vmatpush.bf16.msra.mxu2 %v9914_v24  ;;  %448 = vmatpush.bf16.msra.mxu0 %v9914_v24  ;;  %v9957_v30 = vld [vmem:[%s13678_s1 + $0x20] sm:$0xff]  ;;  %v9995_v36 = vld [vmem:[%s13678_s1 + $0x50] sm:$0xff]  ;;  %v10011_v38 = vld [vmem:[%s13678_s1 + $0x48] sm:$0xff] }
   0xe   :  { %v9990_v35 = vld [vmem:[%s13677_s0 + $0xe0] sm:$0xff]  ;;  %v10000_v37 = vld [vmem:[%s13678_s1 + $0x10] sm:$0xff]  ;;  %v10018_v39 = vld [vmem:[%s13678_s1 + $0x8] sm:$0xff] }
   0xf   :  { %v10024_v40 = vld [vmem:[%s13677_s0 + $0x168] sm:$0xff]  ;;  %v10029_v41 = vld [vmem:[%s13677_s0 + $0x110] sm:$0xff]  ;;  %v10037_v42 = vld [vmem:[%s13678_s1 + $0x40] sm:$0xff] }
  0x10   :  { %508 = vmatpush.bf16.msra.mxu1 %v9926_v25  ;;  %804 = vmatpush.bf16.msra.mxu3 %v9926_v25  ;;  %v10042_v43 = vld [vmem:[%s13678_s1] sm:$0xff]  ;;  %v10060_v45 = vld [vmem:[%s13677_s0 + $0x170] sm:$0xff]  ;;  %v10068_v46 = vld [vmem:[%s13677_s0 + $0xe8] sm:$0xff] }
  0x11   :  { %745 = vmatpush.bf16.msra.mxu2 %v9933_v26  ;;  %449 = vmatpush.bf16.msra.mxu0 %v9933_v26  ;;  %v9240_v44 = vld [vmem:[%s13677_s0 + $0x120] sm:$0xff]  ;;  %v9241_v48 = vld [vmem:[%s13677_s0 + $0x128] sm:$0xff]  ;;  %v9243_v49 = vld [vmem:[%s13677_s0 + $0x138] sm:$0xff] }
  0x12   :  { %176 = vrot.lane.b32.xlu1 %v9796_v6, %s9685_s21  ;;  %251 = vrot.lane.b32.xlu0 %v9801_v7, %s9685_s21  ;;  %v9252_v47 = vld [vmem:[%s13677_s0 + $0x180] sm:$0xff]  ;;  %v9253_v50 = vld [vmem:[%s13677_s0 + $0x188] sm:$0xff] }
  0x13   :  { %687 = vrot.lane.b32.xlu2 %v9820_v10, %s9685_s21  ;;  %v10108_v51 = vld [vmem:[%s13677_s0 + $0xf0] sm:$0xff]  ;;  %v9255_v52 = vld [vmem:[%s13677_s0 + $0x198] sm:$0xff]  ;;  %v9244_v53 = vld [vmem:[%s13677_s0 + $0x140] sm:$0xff] }
  0x14   :  { %509 = vmatpush.bf16.msra.mxu1 %v9952_v29  ;;  %805 = vmatpush.bf16.msra.mxu3 %v9952_v29  ;;  %v9215_v54 = vld [vmem:[%s13677_s0 + $0x58] sm:$0xff]  ;;  %v9226_v55 = vld [vmem:[%s13677_s0 + $0xb0] sm:$0xff]  ;;  %v9256_v61 = vld [vmem:[%s13677_s0 + $0x1a0] sm:$0xff] }
  0x15   :  { %746 = vmatpush.bf16.msra.mxu2 %v9957_v30  ;;  %450 = vmatpush.bf16.msra.mxu0 %v9957_v30  ;;  %v9246_v60 = vld [vmem:[%s13677_s0 + $0x150] sm:$0xff]  ;;  %v9204_v63 = vld [vmem:[%s13677_s0] sm:$0xff] }
  0x18   :  { %510 = vmatpush.bf16.msra.mxu1 %v9968_v31  ;;  %806 = vmatpush.bf16.msra.mxu3 %v9968_v31 }
  0x19   :  { %747 = vmatpush.bf16.msra.mxu2 %v9975_v32  ;;  %451 = vmatpush.bf16.msra.mxu0 %v9975_v32 }
  0x1a   :  { %178 = vrot.lane.b32.xlu1 %v9810_v8, %s9685_s21  ;;  %253 = vrot.lane.b32.xlu0 %v9815_v9, %s9685_s21 }
  0x1b   :  { %689 = vrot.lane.b32.xlu2 %v9855_v15, %s9685_s21 }
  0x1c   :  { %511 = vmatpush.bf16.msra.mxu1 %v9995_v36  ;;  %807 = vmatpush.bf16.msra.mxu3 %v9995_v36 }
  0x1d   :  { %748 = vmatpush.bf16.msra.mxu2 %v10000_v37  ;;  %452 = vmatpush.bf16.msra.mxu0 %v10000_v37 }
  0x20   :  { %512 = vmatpush.bf16.msra.mxu1 %v10011_v38  ;;  %808 = vmatpush.bf16.msra.mxu3 %v10011_v38 }
  0x21   :  { %749 = vmatpush.bf16.msra.mxu2 %v10018_v39  ;;  %453 = vmatpush.bf16.msra.mxu0 %v10018_v39 }
  0x22   :  { %180 = vrot.lane.b32.xlu1 %v9831_v11, %s9685_s21  ;;  %255 = vrot.lane.b32.xlu0 %v9836_v12, %s9685_s21 }
  0x23   :  { %691 = vrot.lane.b32.xlu2 %v9904_v22, %s9685_s21 }
  0x24   :  { %513 = vmatpush.bf16.msra.mxu1 %v10037_v42  ;;  %809 = vmatpush.bf16.msra.mxu3 %v10037_v42 }
  0x25   :  { %750 = vmatpush.bf16.msra.mxu2 %v10042_v43  ;;  %454 = vmatpush.bf16.msra.mxu0 %v10042_v43 }
  0x28   :  { %1394 = vmatpush.bf16.msrb.mxu3 %v9880_v18  ;;  %1098 = vmatpush.bf16.msrb.mxu1 %v9880_v18 }
  0x29   :  { %1335 = vmatpush.bf16.msrb.mxu2 %v9885_v19  ;;  %1039 = vmatpush.bf16.msrb.mxu0 %v9885_v19 }
  0x2a   :  { %182 = vrot.lane.b32.xlu1 %v9845_v13, %s9685_s21  ;;  %257 = vrot.lane.b32.xlu0 %v9850_v14, %s9685_s21 }
  0x2b   :  { %693 = vrot.lane.b32.xlu2 %v9990_v35, %s9685_s21 }
  0x2c   :  { %1395 = vmatpush.bf16.msrb.mxu3 %v9909_v23  ;;  %1099 = vmatpush.bf16.msrb.mxu1 %v9909_v23 }
  0x2d   :  { %1336 = vmatpush.bf16.msrb.mxu2 %v9914_v24  ;;  %1040 = vmatpush.bf16.msrb.mxu0 %v9914_v24 }
  0x30   :  { %1396 = vmatpush.bf16.msrb.mxu3 %v9926_v25  ;;  %1100 = vmatpush.bf16.msrb.mxu1 %v9926_v25 }
  0x31   :  { %1337 = vmatpush.bf16.msrb.mxu2 %v9933_v26  ;;  %1041 = vmatpush.bf16.msrb.mxu0 %v9933_v26 }
  0x32   :  { %184 = vrot.lane.b32.xlu1 %v9866_v16, %s9685_s21  ;;  %259 = vrot.lane.b32.xlu0 %v9871_v17, %s9685_s21 }
  0x33   :  { %695 = vrot.lane.b32.xlu2 %v10068_v46, %s9685_s21 }
  0x34   :  { %1397 = vmatpush.bf16.msrb.mxu3 %v9952_v29  ;;  %1101 = vmatpush.bf16.msrb.mxu1 %v9952_v29 }
  0x35   :  { %1338 = vmatpush.bf16.msrb.mxu2 %v9957_v30  ;;  %1042 = vmatpush.bf16.msrb.mxu0 %v9957_v30 }
  0x38   :  { %1398 = vmatpush.bf16.msrb.mxu3 %v9968_v31  ;;  %1102 = vmatpush.bf16.msrb.mxu1 %v9968_v31 }
  0x39   :  { %1339 = vmatpush.bf16.msrb.mxu2 %v9975_v32  ;;  %1043 = vmatpush.bf16.msrb.mxu0 %v9975_v32 }
  0x3a   :  { %186 = vrot.lane.b32.xlu1 %v9894_v20, %s9685_s21  ;;  %261 = vrot.lane.b32.xlu0 %v9899_v21, %s9685_s21 }
  0x3b   :  { %697 = vrot.lane.b32.xlu2 %v10108_v51, %s9685_s21 }
  0x3c   :  { %1399 = vmatpush.bf16.msrb.mxu3 %v9995_v36  ;;  %1103 = vmatpush.bf16.msrb.mxu1 %v9995_v36 }
  0x3d   :  { %1340 = vmatpush.bf16.msrb.mxu2 %v10000_v37  ;;  %1044 = vmatpush.bf16.msrb.mxu0 %v10000_v37 }
  0x40   :  { %1400 = vmatpush.bf16.msrb.mxu3 %v10011_v38  ;;  %1104 = vmatpush.bf16.msrb.mxu1 %v10011_v38 }
  0x41   :  { %1341 = vmatpush.bf16.msrb.mxu2 %v10018_v39  ;;  %1045 = vmatpush.bf16.msrb.mxu0 %v10018_v39 }
  0x42   :  { %188 = vrot.lane.b32.xlu1 %v9939_v27, %s9685_s21  ;;  %263 = vrot.lane.b32.xlu0 %v9944_v28, %s9685_s21 }
  0x44   :  { %1105 = vmatpush.bf16.msrb.mxu1 %v10037_v42  ;;  %1401 = vmatpush.bf16.msrb.mxu3 %v10037_v42 }
  0x45   :  { %1342 = vmatpush.bf16.msrb.mxu2 %v10042_v43  ;;  %1046 = vmatpush.bf16.msrb.mxu0 %v10042_v43 }
  0x4a   :  { %190 = vrot.lane.b32.xlu1 %v9214_v33, %s9685_s21  ;;  %265 = vrot.lane.b32.xlu0 %v9225_v34, %s9685_s21  ;;  %v10160_v33 = vld [vmem:[%s13677_s0 + $0xf8] sm:$0xff] }
  0x4b   :  { %699 = vrot.lane.b32.xlu2 %v10160_v33, %s9685_s21 }
  0x52   :  { %1275 = vrot.lane.b32.xlu1 %v10024_v40, %s9685_s21  ;;  %979 = vrot.lane.b32.xlu0 %v10029_v41, %s9685_s21 }
  0x5a   :  { %983 = vrot.lane.b32.xlu1 %v9240_v44, %s9685_s21  ;;  %1277 = vrot.lane.b32.xlu0 %v10060_v45, %s9685_s21 }
  0x5d   :  { %v175_v62 = vpop.permute.xlu2 %174 }
  0x62   :  { %1281 = vrot.lane.b32.xlu1 %v9252_v47, %s9685_s21  ;;  %985 = vrot.lane.b32.xlu0 %v9241_v48, %s9685_s21  ;;  %v9258_v48 = vld [vmem:[%s13677_s0 + $0x1b0] sm:$0xff] }
  0x6a   :  { %989 = vrot.lane.b32.xlu1 %v9243_v49, %s9685_s21  ;;  %1283 = vrot.lane.b32.xlu0 %v9253_v50, %s9685_s21  ;;  %v9247_v49 = vld [vmem:[%s13677_s0 + $0x158] sm:$0xff]  ;;  %v686_v50 = vpop.permute.xlu2 %685 }
  0x72   :  { %1287 = vrot.lane.b32.xlu1 %v9255_v52, %s9685_s21  ;;  %991 = vrot.lane.b32.xlu0 %v9244_v53, %s9685_s21 }
  0x74   :  { %v684_v56 = vpop.permute.xlu1 %683  ;;  %v248_v57 = vpop.permute.xlu0 %247 }
  0x75   :  { %v310_v58 = vsel %vm267_vm0, %v9215_v54, %v248_v57  ;;  %v10142_v59 = vsel %vm267_vm0, %v9226_v55, %v684_v56  ;;  %v10188_v54 = vsel %vm267_vm0, %v9754_v0, %v686_v50  ;;  %v9271_v56 = vld [vmem:[%s13677_s0 + $0x218] sm:$0xff]  ;;  %v9236_v0 = vld [vmem:[%s13677_s0 + $0x100] sm:$0xff] }
  0x76   :  { %514 = vmatmul.bf16.vlgmr.msra.gmra.mxu1 %v310_v58  ;;  %751 = vmatmul.bf16.vlgmr.msra.gmra.mxu2 %v310_v58 }
  0x77   :  { %810 = vmatmul.bf16.vlgmr.msra.gmra.mxu3 %v10142_v59  ;;  %1927 = vmatpush.bf16.msra.mxu2 %v9885_v19 }
  0x78   :  { %1986 = vmatpush.bf16.msra.mxu3 %v9880_v18  ;;  %1690 = vmatpush.bf16.msra.mxu1 %v9880_v18 }
  0x79   :  { %701 = vrot.lane.b32.xlu2 %v9236_v0, %s9685_s21 }
  0x7a   :  { %995 = vrot.lane.b32.xlu1 %v9246_v60, %s9685_s21  ;;  %1289 = vrot.lane.b32.xlu0 %v9256_v61, %s9685_s21  ;;  %v274_v60 = vsel %vm267_vm0, %v9780_v4, %v175_v62  ;;  %v9273_v61 = vld [vmem:[%s13677_s0 + $0x228] sm:$0xff] }
  0x7b   :  { %1928 = vmatpush.bf16.msra.mxu2 %v9914_v24 }
  0x7c   :  { %v250_v34 = vpop.permute.xlu1 %249  ;;  %v173_v44 = vpop.permute.xlu0 %172  ;;  %1987 = vmatpush.bf16.msra.mxu3 %v9909_v23  ;;  %1691 = vmatpush.bf16.msra.mxu1 %v9909_v23 }
  0x7d   :  { %v270_v47 = vsel %vm267_vm0, %v9204_v63, %v173_v44  ;;  %v314_v52 = vsel %vm267_vm0, %v9759_v1, %v250_v34  ;;  %v9261_v1 = vld [vmem:[%s13677_s0 + $0x1c8] sm:$0xff]  ;;  %v9262_v63 = vld [vmem:[%s13677_s0 + $0x1d0] sm:$0xff]  ;;  %v688_v34 = vpop.permute.xlu2 %687 }
  0x7e   :  { %455 = vmatmul.bf16.vlgmr.msra.gmra.mxu0 %v270_v47  ;;  %v10232_v44 = vsel %vm267_vm0, %v9785_v5, %v688_v34  ;;  %v9279_v34 = vld [vmem:[%s13677_s0 + $0x258] sm:$0xff] }
  0x7f   :  { %1631 = vmatpush.bf16.msra.mxu0 %v9885_v19  ;;  %1929 = vmatpush.bf16.msra.mxu2 %v9933_v26 }
  0x80   :  { %1988 = vmatpush.bf16.msra.mxu3 %v9926_v25  ;;  %1692 = vmatpush.bf16.msra.mxu1 %v9926_v25 }
  0x82   :  { %1293 = vrot.lane.b32.xlu1 %v9258_v48, %s9685_s21  ;;  %997 = vrot.lane.b32.xlu0 %v9247_v49, %s9685_s21  ;;  %v9274_v48 = vld [vmem:[%s13677_s0 + $0x230] sm:$0xff] }
  0x83   :  { %1632 = vmatpush.bf16.msra.mxu0 %v9914_v24  ;;  %1930 = vmatpush.bf16.msra.mxu2 %v9957_v30 }
  0x84   :  { %v177_v53 = vpop.permute.xlu1 %176  ;;  %v252_v55 = vpop.permute.xlu0 %251  ;;  %1989 = vmatpush.bf16.msra.mxu3 %v9952_v29  ;;  %1693 = vmatpush.bf16.msra.mxu1 %v9952_v29 }
  0x85   :  { %v318_v4 = vsel %vm267_vm0, %v9775_v3, %v252_v55  ;;  %v9264_v3 = vld [vmem:[%s13677_s0 + $0x1e0] sm:$0xff]  ;;  %v278_v5 = vsel %vm267_vm0, %v9768_v2, %v177_v53  ;;  %v9265_v55 = vld [vmem:[%s13677_s0 + $0x1e8] sm:$0xff] }
  0x86   :  { %519 = vmatmul.bf16.gmra.mxu1 %v314_v52  ;;  %756 = vmatmul.bf16.gmra.mxu2 %v314_v52  ;;  %v9276_v52 = vld [vmem:[%s13677_s0 + $0x240] sm:$0xff] }
  0x87   :  { %815 = vmatmul.bf16.gmra.mxu3 %v10188_v54  ;;  %1633 = vmatpush.bf16.msra.mxu0 %v9933_v26 }
  0x88   :  { %1931 = vmatpush.bf16.msra.mxu2 %v9975_v32  ;;  %1990 = vmatpush.bf16.msra.mxu3 %v9968_v31 }
  0x89   :  { %1694 = vmatpush.bf16.msra.mxu1 %v9968_v31 }
  0x8a   :  { %1573 = vrot.lane.b32.xlu1 %v9261_v1, %s9685_s21  ;;  %1867 = vrot.lane.b32.xlu0 %v9271_v56, %s9685_s21  ;;  %v690_v1 = vpop.permute.xlu2 %689 }
  0x8b   :  { %1634 = vmatpush.bf16.msra.mxu0 %v9957_v30  ;;  %v10266_v56 = vsel %vm267_vm0, %v9820_v10, %v690_v1 }
  0x8c   :  { %v179_v57 = vpop.permute.xlu1 %178  ;;  %v254_v58 = vpop.permute.xlu0 %253  ;;  %1932 = vmatpush.bf16.msra.mxu2 %v10000_v37  ;;  %1991 = vmatpush.bf16.msra.mxu3 %v9995_v36 }
  0x8d   :  { %1695 = vmatpush.bf16.msra.mxu1 %v9995_v36  ;;  %v322_v2 = vsel %vm267_vm0, %v9801_v7, %v254_v58  ;;  %v10278_v7 = vld [vmem:[%s13677_s0 + $0x118] sm:$0xff]  ;;  %v282_v10 = vsel %vm267_vm0, %v9796_v6, %v179_v57 }
  0x8e   :  { %460 = vmatmul.bf16.gmra.mxu0 %v274_v60  ;;  %v9267_v60 = vld [vmem:[%s13677_s0 + $0x1f8] sm:$0xff]  ;;  %981 = vrot.lane.b32.xlu2 %v10278_v7, %s9685_s21 }
  0x8f   :  { %1635 = vmatpush.bf16.msra.mxu0 %v9975_v32 }
  0x90   :  { %1933 = vmatpush.bf16.msra.mxu2 %v10018_v39  ;;  %1992 = vmatpush.bf16.msra.mxu3 %v10011_v38 }
  0x91   :  { %1696 = vmatpush.bf16.msra.mxu1 %v10011_v38 }
  0x92   :  { %1871 = vrot.lane.b32.xlu1 %v9273_v61, %s9685_s21  ;;  %1575 = vrot.lane.b32.xlu0 %v9262_v63, %s9685_s21  ;;  %v9277_v61 = vld [vmem:[%s13677_s0 + $0x248] sm:$0xff] }
  0x93   :  { %1636 = vmatpush.bf16.msra.mxu0 %v10000_v37 }
  0x94   :  { %v181_v62 = vpop.permute.xlu1 %180  ;;  %v256_v47 = vpop.permute.xlu0 %255  ;;  %1934 = vmatpush.bf16.msra.mxu2 %v10042_v43  ;;  %1993 = vmatpush.bf16.msra.mxu3 %v10037_v42 }
  0x95   :  { %1697 = vmatpush.bf16.msra.mxu1 %v10037_v42  ;;  %v326_v6 = vsel %vm267_vm0, %v9815_v9, %v256_v47  ;;  %v10318_v9 = vld [vmem:[%s13677_s0 + $0x178] sm:$0xff] }
  0x96   :  { %524 = vmatmul.bf16.gmra.mxu1 %v318_v4  ;;  %761 = vmatmul.bf16.gmra.mxu2 %v318_v4  ;;  %v9268_v4 = vld [vmem:[%s13677_s0 + $0x200] sm:$0xff] }
  0x97   :  { %820 = vmatmul.bf16.gmra.mxu3 %v10232_v44  ;;  %1637 = vmatpush.bf16.msra.mxu0 %v10018_v39 }
  0x98   :  { %1279 = vrot.lane.b32.xlu2 %v10318_v9, %s9685_s21 }
  0x9a   :  { %1579 = vrot.lane.b32.xlu1 %v9264_v3, %s9685_s21  ;;  %1873 = vrot.lane.b32.xlu0 %v9274_v48, %s9685_s21  ;;  %v692_v3 = vpop.permute.xlu2 %691 }
  0x9b   :  { %1638 = vmatpush.bf16.msra.mxu0 %v10042_v43  ;;  %v10304_v48 = vsel %vm267_vm0, %v9855_v15, %v692_v3  ;;  %v286_v15 = vsel %vm267_vm0, %v9810_v8, %v181_v62  ;;  %v9295_v3 = vld [vmem:[%s13677_s0 + $0x2d8] sm:$0xff] }
  0x9c   :  { %v10250_v49 = vpop.permute.xlu1 %182  ;;  %v258_v50 = vpop.permute.xlu0 %257 }
  0x9d   :  { %v330_v8 = vsel %vm267_vm0, %v9836_v12, %v258_v50  ;;  %v290_v12 = vsel %vm267_vm0, %v9831_v11, %v10250_v49 }
  0x9e   :  { %465 = vmatmul.bf16.gmra.mxu0 %v278_v5 }
  0xa2   :  { %1877 = vrot.lane.b32.xlu1 %v9276_v52, %s9685_s21  ;;  %1581 = vrot.lane.b32.xlu0 %v9265_v55, %s9685_s21  ;;  %v9282_v52 = vld [vmem:[%s13677_s0 + $0x270] sm:$0xff]  ;;  %v9280_v55 = vld [vmem:[%s13677_s0 + $0x260] sm:$0xff] }
  0xa4   :  { %v10262_v53 = vpop.permute.xlu1 %184  ;;  %v260_v0 = vpop.permute.xlu0 %259 }
  0xa5   :  { %v334_v11 = vsel %vm267_vm0, %v9850_v14, %v260_v0  ;;  %v10392_v14 = vld [vmem:[%s13677_s0 + $0x130] sm:$0xff] }
  0xa6   :  { %529 = vmatmul.bf16.gmra.mxu1 %v322_v2  ;;  %766 = vmatmul.bf16.gmra.mxu2 %v322_v2  ;;  %v9294_v2 = vld [vmem:[%s13677_s0 + $0x2d0] sm:$0xff] }
  0xa7   :  { %825 = vmatmul.bf16.gmra.mxu3 %v10266_v56  ;;  %987 = vrot.lane.b32.xlu2 %v10392_v14, %s9685_s21 }
  0xaa   :  { %1585 = vrot.lane.b32.xlu1 %v9267_v60, %s9685_s21  ;;  %1879 = vrot.lane.b32.xlu0 %v9277_v61, %s9685_s21  ;;  %v9283_v60 = vld [vmem:[%s13677_s0 + $0x278] sm:$0xff]  ;;  %v694_v61 = vpop.permute.xlu2 %693 }
  0xac   :  { %v10286_v58 = vpop.permute.xlu1 %186  ;;  %v10288_v63 = vpop.permute.xlu0 %261 }
  0xae   :  { %470 = vmatmul.bf16.gmra.mxu0 %v282_v10  ;;  %v10344_v10 = vsel %vm267_vm0, %v9904_v22, %v694_v61  ;;  %v9298_v61 = vld [vmem:[%s13677_s0 + $0x2f0] sm:$0xff] }
  0xb2   :  { %1883 = vrot.lane.b32.xlu1 %v9279_v34, %s9685_s21  ;;  %1587 = vrot.lane.b32.xlu0 %v9268_v4, %s9685_s21  ;;  %v9285_v4 = vld [vmem:[%s13677_s0 + $0x288] sm:$0xff] }
  0xb4   :  { %v10300_v57 = vpop.permute.xlu1 %188  ;;  %v10306_v5 = vpop.permute.xlu0 %263 }
  0xb6   :  { %534 = vmatmul.bf16.gmra.mxu1 %v326_v6  ;;  %771 = vmatmul.bf16.gmra.mxu2 %v326_v6  ;;  %v9297_v6 = vld [vmem:[%s13677_s0 + $0x2e8] sm:$0xff] }
  0xb7   :  { %830 = vmatmul.bf16.gmra.mxu3 %v10304_v48 }
  0xba   :  { %2163 = vrot.lane.b32.xlu1 %v9282_v52, %s9685_s21  ;;  %1885 = vrot.lane.b32.xlu0 %v9280_v55, %s9685_s21  ;;  %v9286_v52 = vld [vmem:[%s13677_s0 + $0x290] sm:$0xff]  ;;  %v696_v55 = vpop.permute.xlu2 %695 }
  0xbc   :  { %v10326_v47 = vpop.permute.xlu1 %190  ;;  %v10328_v1 = vpop.permute.xlu0 %265 }
  0xbe   :  { %475 = vmatmul.bf16.gmra.mxu0 %v286_v15  ;;  %v10378_v15 = vsel %vm267_vm0, %v9990_v35, %v696_v55  ;;  %v294_v35 = vsel %vm267_vm0, %v9845_v13, %v10262_v53  ;;  %v338_v13 = vsel %vm267_vm0, %v9871_v17, %v10288_v63  ;;  %v9291_v55 = vld [vmem:[%s13677_s0 + $0x2b8] sm:$0xff]  ;;  %v10434_v17 = vld [vmem:[%s13677_s0 + $0x190] sm:$0xff] }
  0xbf   :  { %1285 = vrot.lane.b32.xlu2 %v10434_v17, %s9685_s21 }
  0xc2   :  { %2461 = vrot.lane.b32.xlu1 %v9294_v2, %s9685_s21  ;;  %2165 = vrot.lane.b32.xlu0 %v9283_v60, %s9685_s21  ;;  %v9288_v60 = vld [vmem:[%s13677_s0 + $0x2a0] sm:$0xff] }
  0xc4   :  { %v10340_v62 = vpop.permute.xlu1 %1275  ;;  %v10346_v34 = vpop.permute.xlu0 %979 }
  0xc6   :  { %539 = vmatmul.bf16.gmra.mxu1 %v330_v8  ;;  %776 = vmatmul.bf16.gmra.mxu2 %v330_v8 }
  0xc7   :  { %835 = vmatmul.bf16.gmra.mxu3 %v10344_v10 }
  0xca   :  { %2169 = vrot.lane.b32.xlu1 %v9285_v4, %s9685_s21  ;;  %2463 = vrot.lane.b32.xlu0 %v9295_v3, %s9685_s21  ;;  %v9300_v4 = vld [vmem:[%s13677_s0 + $0x300] sm:$0xff]  ;;  %v9289_v3 = vld [vmem:[%s13677_s0 + $0x2a8] sm:$0xff] }
  0xcc   :  { %v10360_v22 = vpop.permute.xlu1 %983  ;;  %v10362_v50 = vpop.permute.xlu0 %1277 }
  0xce   :  { %480 = vmatmul.bf16.gmra.mxu0 %v290_v12  ;;  %v698_v12 = vpop.permute.xlu2 %697 }
  0xd2   :  { %2467 = vrot.lane.b32.xlu1 %v9297_v6, %s9685_s21  ;;  %2171 = vrot.lane.b32.xlu0 %v9286_v52, %s9685_s21  ;;  %v10420_v6 = vsel %vm267_vm0, %v10068_v46, %v698_v12  ;;  %v298_v46 = vsel %vm267_vm0, %v9866_v16, %v10286_v58  ;;  %v342_v58 = vsel %vm267_vm0, %v9899_v21, %v10306_v5  ;;  %v9316_v21 = vld [vmem:[%s13677_s0 + $0x380] sm:$0xff] }
  0xd3   :  { %13705 = vst [vmem:[#allocation2_spill] sm:$0xff] %v10420_v6 }
  0xd4   :  { %v10374_v49 = vpop.permute.xlu1 %1281  ;;  %v10380_v2 = vpop.permute.xlu0 %985 }
  0xd6   :  { %544 = vmatmul.bf16.gmra.mxu1 %v334_v11  ;;  %781 = vmatmul.bf16.gmra.mxu2 %v334_v11  ;;  %v9301_v11 = vld [vmem:[%s13677_s0 + $0x308] sm:$0xff] }
  0xd7   :  { %840 = vmatmul.bf16.gmra.mxu3 %v10378_v15 }
  0xda   :  { %2175 = vrot.lane.b32.xlu1 %v9288_v60, %s9685_s21  ;;  %2469 = vrot.lane.b32.xlu0 %v9298_v61, %s9685_s21  ;;  %v9315_v61 = vld [vmem:[%s13677_s0 + $0x378] sm:$0xff] }
  0xdc   :  { %v10401_v0 = vpop.permute.xlu1 %989  ;;  %v10403_v8 = vpop.permute.xlu0 %1283 }
  0xde   :  { %485 = vmatmul.bf16.gmra.mxu0 %v294_v35  ;;  %v9304_v35 = vld [vmem:[%s13677_s0 + $0x320] sm:$0xff] }
  0xe2   :  { %2473 = vrot.lane.b32.xlu1 %v9300_v4, %s9685_s21  ;;  %2177 = vrot.lane.b32.xlu0 %v9289_v3, %s9685_s21  ;;  %v9245_v4 = vld [vmem:[%s13677_s0 + $0x148] sm:$0xff]  ;;  %v700_v3 = vpop.permute.xlu2 %699 }
  0xe3   :  { %993 = vrot.lane.b32.xlu2 %v9245_v4, %s9685_s21 }
  0xe4   :  { %v10416_v53 = vpop.permute.xlu1 %1287  ;;  %v10422_v52 = vpop.permute.xlu0 %991 }
  0xe6   :  { %549 = vmatmul.bf16.gmra.mxu1 %v338_v13  ;;  %786 = vmatmul.bf16.gmra.mxu2 %v338_v13  ;;  %v10466_v13 = vsel %vm267_vm0, %v10108_v51, %v700_v3  ;;  %v9257_v51 = vld [vmem:[%s13677_s0 + $0x1a8] sm:$0xff] }
  0xe7   :  { %845 = vmatmul.bf16.gmra.mxu3 %v10420_v6  ;;  %13709 = vst [vmem:[#allocation6_spill] sm:$0xff] %v10466_v13 }
  0xea   :  { %2181 = vrot.lane.b32.xlu1 %v9291_v55, %s9685_s21  ;;  %2475 = vrot.lane.b32.xlu0 %v9301_v11, %s9685_s21  ;;  %v10473_v11 = vld [vmem:[%s13679_s2] ss:$0 sm:$0xff] }
  0xeb   :  { %1291 = vrot.lane.b32.xlu2 %v9257_v51, %s9685_s21 }
  0xec   :  { %v10443_v63 = vpop.permute.xlu1 %995  ;;  %v10445_v60 = vpop.permute.xlu0 %1289 }
  0xed   :  { %13706 = vst [vmem:[#allocation3_spill] sm:$0xff] %v10443_v63 }
  0xee   :  { %13707 = vst [vmem:[#allocation4_spill] sm:$0xff] %v10445_v60  ;;  %490 = vmatmul.bf16.gmra.mxu0 %v298_v46  ;;  %v9306_v46 = vld [vmem:[%s13677_s0 + $0x330] sm:$0xff] }
  0xf2   :  { %3051 = vrot.lane.b32.xlu1 %v9315_v61, %s9685_s21  ;;  %2755 = vrot.lane.b32.xlu0 %v9304_v35, %s9685_s21 }
  0xf3   :  { %v515_v16 = vpop.f32.mrf.mxu1 }
  0xf4   :  { %v10462_v12 = vpop.permute.xlu1 %1293  ;;  %v10468_v55 = vpop.permute.xlu0 %997 }
  0xf5   :  { %13708 = vst [vmem:[#allocation5_spill] sm:$0xff] %v10462_v12 }
  0xf6   :  { %13710 = vst [vmem:[#allocation7_spill] sm:$0xff] %v10468_v55  ;;  %554 = vmatmul.bf16.gmra.mxu1 %v342_v58  ;;  %791 = vmatmul.bf16.gmra.mxu2 %v342_v58  ;;  %v302_v58 = vsel %vm267_vm0, %v9894_v20, %v10300_v57  ;;  %v9260_v20 = vld [vmem:[%s13677_s0 + $0x1c0] sm:$0xff] }
  0xf7   :  { %850 = vmatmul.bf16.gmra.mxu3 %v10466_v13  ;;  %1571 = vrot.lane.b32.xlu2 %v9260_v20, %s9685_s21 }
  0xf9   :  { %v752_v5 = vpop.f32.mrf.mxu2 }
  0xfa   :  { %v753_v61 = vadd.f32 %v10473_v11, %v752_v5  ;;  %v811_v35 = vpop.f32.mrf.mxu3  ;;  %2759 = vrot.lane.b32.xlu1 %v9306_v46, %s9685_s21  ;;  %3053 = vrot.lane.b32.xlu0 %v9316_v21, %s9685_s21  ;;  %v9318_v46 = vld [vmem:[%s13677_s0 + $0x390] sm:$0xff]  ;;  %v9307_v21 = vld [vmem:[%s13677_s0 + $0x338] sm:$0xff]  ;;  %v702_v5 = vpop.permute.xlu2 %701 }
  0xfb   :  { %v456_v4 = vpop.f32.mrf.mxu0  ;;  %v517_v3 = vpop.f32.mrf.mxu1 }
  0xfc   :  { %v812_v12 = vadd.f32 %v811_v35, %v753_v61  ;;  %v457_v55 = vadd.f32 %v10473_v11, %v456_v4  ;;  %v10493_v13 = vpop.permute.xlu1 %1573  ;;  %v10495_v63 = vpop.permute.xlu0 %1867 }
  0xfd   :  { %13711 = vst [vmem:[#allocation8_spill] sm:$0xff] %v10493_v13 }
  0xfe   :  { %13712 = vst [vmem:[#allocation9_spill] sm:$0xff] %v10495_v63  ;;  %v516_v51 = vadd.f32 %v515_v16, %v457_v55  ;;  %495 = vmatmul.bf16.gmra.mxu0 %v302_v58  ;;  %v861_v61 = vmax.f32 %v812_v12, 0.0  ;;  %v346_v58 = vsel %vm267_vm0, %v9944_v28, %v10328_v1  ;;  %v10520_v12 = vsel %vm267_vm0, %v10160_v33, %v702_v5  ;;  %v9309_v28 = vld [vmem:[%s13677_s0 + $0x348] sm:$0xff]  ;;  %v9319_v1 = vld [vmem:[%s13677_s0 + $0x398] sm:$0xff]  ;;  %v9272_v33 = vld [vmem:[%s13677_s0 + $0x220] sm:$0xff] }
  0xff   :  { %1869 = vrot.lane.b32.xlu2 %v9272_v33, %s9685_s21 }
 0x100   :  { %v565_v13 = vmax.f32 %v516_v51, 0.0 }
 0x101   :  { %v754_v57 = vpop.f32.mrf.mxu2 }
 0x102   :  { %v755_v16 = vadd.f32 %v10473_v11, %v754_v57  ;;  %v813_v55 = vpop.f32.mrf.mxu3  ;;  %3057 = vrot.lane.b32.xlu1 %v9318_v46, %s9685_s21  ;;  %2761 = vrot.lane.b32.xlu0 %v9307_v21, %s9685_s21  ;;  %v881_v21 = vpack.c.bf16 %v861_v61, %v861_v61  ;;  %v585_v51 = vpack.c.bf16 %v565_v13, %v565_v13 }
 0x103   :  { %v458_v35 = vpop.f32.mrf.mxu0  ;;  %v10510_v4 = vpop.f32.mrf.mxu1  ;;  %v306_v13 = vsel %vm267_vm0, %v9939_v27, %v10326_v47  ;;  %v9237_v27 = vld [vmem:[%s13677_s0 + $0x108] sm:$0xff]  ;;  %v9263_v47 = vld [vmem:[%s13677_s0 + $0x1d8] sm:$0xff] }
 0x104   :  { %v814_v63 = vadd.f32 %v813_v55, %v755_v16  ;;  %v459_v6 = vadd.f32 %v10473_v11, %v458_v35  ;;  %v10516_v20 = vpop.permute.xlu1 %1871  ;;  %v10522_v46 = vpop.permute.xlu0 %1575 }
 0x105   :  { %13713 = vst [vmem:[#allocation10_spill] sm:$0xff] %v10516_v20 }
 0x106   :  { %v862_v57 = vmax.f32 %v814_v63, 0.0  ;;  %v518_v60 = vadd.f32 %v517_v3, %v459_v6  ;;  %559 = vmatmul.bf16.gmra.mxu1 %v346_v58  ;;  %796 = vmatmul.bf16.gmra.mxu2 %v346_v58  ;;  %v3297_v3 = vunpack.c.l.b16 %v881_v21 }
 0x107   :  { %855 = vmatmul.bf16.gmra.mxu3 %v10520_v12  ;;  %1577 = vrot.lane.b32.xlu2 %v9263_v47, %s9685_s21 }
 0x108   :  { %v882_v5 = vpack.c.bf16 %v862_v57, %v862_v57  ;;  %v566_v63 = vmax.f32 %v518_v60, 0.0  ;;  %v3271_v60 = vunpack.c.l.b16 %v585_v51  ;;  %v9248_v51 = vld [vmem:[%s13677_s0 + $0x160] sm:$0xff] }
 0x109   :  { %v10534_v6 = vpop.f32.mrf.mxu2 }
 0x10a   :  { %v3298_v61 = vunpack.c.l.b16 %v882_v5  ;;  %v586_v16 = vpack.c.bf16 %v566_v63, %v566_v63  ;;  %v10537_v55 = vpop.f32.mrf.mxu3  ;;  %2765 = vrot.lane.b32.xlu1 %v9309_v28, %s9685_s21  ;;  %3059 = vrot.lane.b32.xlu0 %v9319_v1, %s9685_s21  ;;  %v9321_v28 = vld [vmem:[%s13677_s0 + $0x3a8] sm:$0xff]  ;;  %v9310_v1 = vld [vmem:[%s13677_s0 + $0x350] sm:$0xff] }
 0x10b   :  { %v461_v35 = vpop.f32.mrf.mxu0  ;;  %v522_v58 = vpop.f32.mrf.mxu1 }
 0x10c   :  { %v10544_v57 = vpack.c.b16 %v3298_v61, %v3297_v3  ;;  %v3272_v20 = vunpack.c.l.b16 %v586_v16  ;;  %v10546_v33 = vpop.permute.xlu1 %1579  ;;  %v10548_v21 = vpop.permute.xlu0 %1873  ;;  %v1001_v16 = vsel %vm267_vm0, %v9237_v27, %v10346_v34  ;;  %v9322_v34 = vld [vmem:[%s13677_s0 + $0x3b0] sm:$0xff] }
 0x10d   :  { %13714 = vst [vmem:[#allocation11_spill] sm:$0xff] %v10546_v33  ;;  %v10581_v33 = vsel %vm267_vm0, %v9248_v51, %v10340_v62  ;;  %v9275_v62 = vld [vmem:[%s13677_s0 + $0x238] sm:$0xff] }
 0x10e   :  { %13715 = vst [vmem:[#allocation12_spill] sm:$0xff] %v10548_v21  ;;  %500 = vmatmul.bf16.gmra.mxu0 %v306_v13  ;;  %v10556_v5 = vpack.c.b16 %v3272_v20, %v3271_v60  ;;  %v462_v21 = vadd.f32 %v10473_v11, %v461_v35 }
 0x10f   :  { %1875 = vrot.lane.b32.xlu2 %v9275_v62, %s9685_s21 }
 0x110   :  { %v521_v35 = vadd.f32 %v10510_v4, %v462_v21 }
 0x111   :  { %v10567_v63 = vpop.f32.mrf.mxu2 }
 0x112   :  { %v10570_v3 = vpop.f32.mrf.mxu3  ;;  %3063 = vrot.lane.b32.xlu1 %v9321_v28, %s9685_s21  ;;  %2767 = vrot.lane.b32.xlu0 %v9310_v1, %s9685_s21  ;;  %v9312_v28 = vld [vmem:[%s13677_s0 + $0x360] sm:$0xff]  ;;  %v567_v4 = vmax.f32 %v521_v35, 0.0  ;;  %v982_v35 = vpop.permute.xlu2 %981 }
 0x113   :  { %v463_v20 = vpop.f32.mrf.mxu0  ;;  %v525_v61 = vpop.f32.mrf.mxu1 }
 0x114   :  { %v464_v13 = vadd.f32 %v10473_v11, %v463_v20  ;;  %v10577_v60 = vpop.permute.xlu1 %1877  ;;  %v10583_v47 = vpop.permute.xlu0 %1581 }
 0x115   :  { %13716 = vst [vmem:[#allocation13_spill] sm:$0xff] %v10577_v60 }
 0x116   :  { %1106 = vmatmul.bf16.vlgmr.msrb.gmra.mxu1 %v1001_v16  ;;  %1343 = vmatmul.bf16.vlgmr.msrb.gmra.mxu2 %v1001_v16  ;;  %v523_v1 = vadd.f32 %v522_v58, %v464_v13 }
 0x117   :  { %1402 = vmatmul.bf16.vlgmr.msrb.gmra.mxu3 %v10581_v33  ;;  %2519 = vmatpush.bf16.msrb.mxu2 %v9885_v19 }
 0x118   :  { %2578 = vmatpush.bf16.msrb.mxu3 %v9880_v18  ;;  %2282 = vmatpush.bf16.msrb.mxu1 %v9880_v18  ;;  %v568_v58 = vmax.f32 %v523_v1, 0.0  ;;  %v9266_v1 = vld [vmem:[%s13677_s0 + $0x1f0] sm:$0xff] }
 0x119   :  { %v762_v27 = vpop.f32.mrf.mxu2  ;;  %1583 = vrot.lane.b32.xlu2 %v9266_v1, %s9685_s21 }
 0x11a   :  { %v763_v51 = vadd.f32 %v10473_v11, %v762_v27  ;;  %v821_v20 = vpop.f32.mrf.mxu3  ;;  %2771 = vrot.lane.b32.xlu1 %v9312_v28, %s9685_s21  ;;  %3065 = vrot.lane.b32.xlu0 %v9322_v34, %s9685_s21  ;;  %v9324_v28 = vld [vmem:[%s13677_s0 + $0x3c0] sm:$0xff]  ;;  %v9313_v34 = vld [vmem:[%s13677_s0 + $0x368] sm:$0xff] }
 0x11b   :  { %v466_v16 = vpop.f32.mrf.mxu0  ;;  %v527_v60 = vpop.f32.mrf.mxu1  ;;  %2520 = vmatpush.bf16.msrb.mxu2 %v9914_v24 }
 0x11c   :  { %v10605_v13 = vpop.permute.xlu1 %1585  ;;  %v10607_v18 = vpop.permute.xlu0 %1879  ;;  %2579 = vmatpush.bf16.msrb.mxu3 %v9909_v23  ;;  %2283 = vmatpush.bf16.msrb.mxu1 %v9909_v23  ;;  %v822_v21 = vadd.f32 %v821_v20, %v763_v51  ;;  %v467_v62 = vadd.f32 %v10473_v11, %v466_v16  ;;  %v588_v23 = vpack.c.bf16 %v568_v58, %v568_v58 }
 0x11d   :  { %13717 = vst [vmem:[#allocation14_spill] sm:$0xff] %v10605_v13 }
 0x11e   :  { %13718 = vst [vmem:[#allocation15_spill] sm:$0xff] %v10607_v18  ;;  %1047 = vmatmul.bf16.vlgmr.msrb.gmra.mxu0 %v10142_v59  ;;  %v587_v59 = vpack.c.bf16 %v567_v4, %v567_v4  ;;  %v865_v51 = vmax.f32 %v822_v21, 0.0  ;;  %v526_v20 = vadd.f32 %v525_v61, %v467_v62  ;;  %v1005_v18 = vsel %vm267_vm0, %v10029_v41, %v982_v35 }
 0x11f   :  { %2223 = vmatpush.bf16.msrb.mxu0 %v9885_v19  ;;  %2521 = vmatpush.bf16.msrb.mxu2 %v9933_v26  ;;  %v760_v61 = vadd.f32 %v10473_v11, %v10567_v63  ;;  %v3277_v4 = vunpack.c.l.b16 %v588_v23 }
 0x120   :  { %2580 = vmatpush.bf16.msrb.mxu3 %v9926_v25  ;;  %2284 = vmatpush.bf16.msrb.mxu1 %v9926_v25  ;;  %v10635_v25 = vsel %vm267_vm0, %v10024_v40, %v10362_v50  ;;  %v3276_v40 = vunpack.c.l.b16 %v587_v59  ;;  %v885_v41 = vpack.c.bf16 %v865_v51, %v865_v51  ;;  %v569_v50 = vmax.f32 %v526_v20, 0.0 }
 0x121   :  { %v764_v27 = vpop.f32.mrf.mxu2 }
 0x122   :  { %v765_v16 = vadd.f32 %v10473_v11, %v764_v27  ;;  %v823_v13 = vpop.f32.mrf.mxu3  ;;  %3069 = vrot.lane.b32.xlu1 %v9324_v28, %s9685_s21  ;;  %2773 = vrot.lane.b32.xlu0 %v9313_v34, %s9685_s21  ;;  %v3309_v59 = vunpack.c.l.b16 %v885_v41  ;;  %v589_v27 = vpack.c.bf16 %v569_v50, %v569_v50 }
 0x123   :  { %v468_v19 = vpop.f32.mrf.mxu0  ;;  %v530_v58 = vpop.f32.mrf.mxu1  ;;  %2224 = vmatpush.bf16.msrb.mxu0 %v9914_v24  ;;  %2522 = vmatpush.bf16.msrb.mxu2 %v9957_v30  ;;  %v758_v24 = vadd.f32 %v10473_v11, %v10534_v6  ;;  %v3278_v6 = vpack.c.b16 %v3277_v4, %v3276_v40  ;;  %v9269_v40 = vld [vmem:[%s13677_s0 + $0x208] sm:$0xff] }
 0x124   :  { %v824_v21 = vadd.f32 %v823_v13, %v765_v16  ;;  %v469_v62 = vadd.f32 %v10473_v11, %v468_v19  ;;  %v10642_v28 = vpop.permute.xlu1 %1883  ;;  %v10644_v34 = vpop.permute.xlu0 %1587  ;;  %2581 = vmatpush.bf16.msrb.mxu3 %v9952_v29  ;;  %2285 = vmatpush.bf16.msrb.mxu1 %v9952_v29  ;;  %v9278_v13 = vld [vmem:[%s13677_s0 + $0x250] sm:$0xff]  ;;  %v819_v29 = vadd.f32 %v10570_v3, %v760_v61 }
 0x125   :  { %1881 = vrot.lane.b32.xlu2 %v9278_v13, %s9685_s21 }
 0x126   :  { %v866_v1 = vmax.f32 %v824_v21, 0.0  ;;  %v528_v63 = vadd.f32 %v527_v60, %v469_v62  ;;  %1111 = vmatmul.bf16.gmra.mxu1 %v1005_v18  ;;  %1348 = vmatmul.bf16.gmra.mxu2 %v1005_v18  ;;  %v817_v60 = vadd.f32 %v10537_v55, %v758_v24  ;;  %v864_v19 = vmax.f32 %v819_v29, 0.0 }
 0x127   :  { %1407 = vmatmul.bf16.gmra.mxu3 %v10635_v25  ;;  %2225 = vmatpush.bf16.msrb.mxu0 %v9933_v26  ;;  %v3283_v24 = vunpack.c.l.b16 %v589_v27 }
 0x128   :  { %v886_v23 = vpack.c.bf16 %v866_v1, %v866_v1  ;;  %v570_v35 = vmax.f32 %v528_v63, 0.0  ;;  %2523 = vmatpush.bf16.msrb.mxu2 %v9975_v32  ;;  %2582 = vmatpush.bf16.msrb.mxu3 %v9968_v31  ;;  %v863_v62 = vmax.f32 %v817_v60, 0.0  ;;  %v884_v41 = vpack.c.bf16 %v864_v19, %v864_v19 }
 0x129   :  { %v767_v18 = vpop.f32.mrf.mxu2  ;;  %2286 = vmatpush.bf16.msrb.mxu1 %v9968_v31 }
 0x12a   :  { %v3310_v51 = vunpack.c.l.b16 %v886_v23  ;;  %v590_v26 = vpack.c.bf16 %v570_v35, %v570_v35  ;;  %v826_v20 = vpop.f32.mrf.mxu3  ;;  %3279 = vrot.lane.b32.xlu1 %v3278_v6, %s9686_s19 }
 0x12b   :  { %v471_v3 = vpop.f32.mrf.mxu0  ;;  %v532_v16 = vpop.f32.mrf.mxu1  ;;  %2226 = vmatpush.bf16.msrb.mxu0 %v9957_v30  ;;  %v768_v30 = vadd.f32 %v10473_v11, %v767_v18 }
 0x12c   :  { %v3284_v61 = vunpack.c.l.b16 %v590_v26  ;;  %v472_v55 = vadd.f32 %v10473_v11, %v471_v3  ;;  %v10664_v4 = vpop.permute.xlu1 %2163  ;;  %v10666_v21 = vpack.c.b16 %v3310_v51, %v3309_v59  ;;  %v10668_v31 = vpop.permute.xlu0 %1885  ;;  %2524 = vmatpush.bf16.msrb.mxu2 %v10000_v37  ;;  %2583 = vmatpush.bf16.msrb.mxu3 %v9995_v36 }
 0x12d   :  { %2287 = vmatpush.bf16.msrb.mxu1 %v9995_v36  ;;  %v1280_v36 = vpop.permute.xlu2 %1279  ;;  %1589 = vrot.lane.b32.xlu2 %v9269_v40, %s9685_s21  ;;  %v827_v13 = vadd.f32 %v826_v20, %v768_v30  ;;  %v10722_v40 = vld [vmem:[%s13678_s1] sm:$0xff] }
 0x12e   :  { %13719 = vst [vmem:[#allocation16_spill] sm:$0xff] %v10666_v21  ;;  %3312 = vrot.lane.b32.xlu0 %v10666_v21, %s9685_s21  ;;  %1052 = vmatmul.bf16.gmra.mxu0 %v10188_v54  ;;  %v531_v50 = vadd.f32 %v530_v58, %v472_v55  ;;  %v10681_v1 = vpack.c.b16 %v3284_v61, %v3283_v24 }
 0x12f   :  { %2227 = vmatpush.bf16.msrb.mxu0 %v9975_v32  ;;  %v883_v54 = vpack.c.bf16 %v863_v62, %v863_v62  ;;  %v10695_v35 = vsel %vm267_vm0, %v10060_v45, %v1280_v36  ;;  %v867_v45 = vmax.f32 %v827_v13, 0.0 }
 0x130   :  { %13720 = vst [vmem:[#allocation17_spill] sm:$0xff] %v10681_v1  ;;  %2525 = vmatpush.bf16.msrb.mxu2 %v10018_v39  ;;  %2584 = vmatpush.bf16.msrb.mxu3 %v10011_v38  ;;  %v1009_v39 = vsel %vm267_vm0, %v10278_v7, %v10360_v22  ;;  %v571_v6 = vmax.f32 %v531_v50, 0.0 }
 0x131   :  { %v769_v63 = vpop.f32.mrf.mxu2  ;;  %2288 = vmatpush.bf16.msrb.mxu1 %v10011_v38  ;;  %v3303_v38 = vunpack.c.l.b16 %v884_v41  ;;  %v3302_v7 = vunpack.c.l.b16 %v883_v54  ;;  %v887_v19 = vpack.c.bf16 %v867_v45, %v867_v45 }
 0x132   :  { %v770_v29 = vadd.f32 %v10473_v11, %v769_v63  ;;  %v828_v23 = vpop.f32.mrf.mxu3  ;;  %3286 = vrot.lane.b32.xlu1 %v10681_v1, %s9685_s21 }
 0x133   :  { %v473_v32 = vpop.f32.mrf.mxu0  ;;  %v535_v58 = vpop.f32.mrf.mxu1  ;;  %2228 = vmatpush.bf16.msrb.mxu0 %v10000_v37  ;;  %v9293_v37 = vld [vmem:[%s13677_s0 + $0x2c8] sm:$0xff]  ;;  %v3304_v3 = vpack.c.b16 %v3303_v38, %v3302_v7  ;;  %v9284_v38 = vld [vmem:[%s13677_s0 + $0x280] sm:$0xff] }
 0x134   :  { %v829_v60 = vadd.f32 %v828_v23, %v770_v29  ;;  %v474_v18 = vadd.f32 %v10473_v11, %v473_v32  ;;  %v10699_v59 = vpop.permute.xlu1 %2461  ;;  %v10701_v27 = vpop.permute.xlu0 %2165  ;;  %2526 = vmatpush.bf16.msrb.mxu2 %v10042_v43  ;;  %2585 = vmatpush.bf16.msrb.mxu3 %v10037_v42  ;;  %v10713_v43 = vld [vmem:[%s13678_s1 + $0x8] sm:$0xff]  ;;  %v3316_v29 = vunpack.c.l.b16 %v887_v19 }
 0x135   :  { %2289 = vmatpush.bf16.msrb.mxu1 %v10037_v42  ;;  %v591_v42 = vpack.c.bf16 %v571_v6, %v571_v6  ;;  %2459 = vrot.lane.b32.xlu2 %v9293_v37, %s9685_s21  ;;  %v10729_v13 = vpop.permute.xlu2 %987  ;;  %v9601_v37 = vld [vmem:[%s13677_s0 + $0x120] sm:$0xff] }
 0x136   :  { %v868_v22 = vmax.f32 %v829_v60, 0.0  ;;  %v533_v51 = vadd.f32 %v532_v16, %v474_v18  ;;  %1116 = vmatmul.bf16.gmra.mxu1 %v1009_v39  ;;  %1353 = vmatmul.bf16.gmra.mxu2 %v1009_v39 }
 0x137   :  { %1412 = vmatmul.bf16.gmra.mxu3 %v10695_v35  ;;  %2229 = vmatpush.bf16.msrb.mxu0 %v10713_v43  ;;  %v3290_v41 = vunpack.c.l.b16 %v591_v42  ;;  %v1013_v42 = vsel %vm267_vm0, %v9601_v37, %v10380_v2  ;;  %v9296_v2 = vld [vmem:[%s13677_s0 + $0x2e0] sm:$0xff] }
 0x138   :  { %v888_v26 = vpack.c.bf16 %v868_v22, %v868_v22  ;;  %v572_v20 = vmax.f32 %v533_v51, 0.0 }
 0x139   :  { %v772_v16 = vpop.f32.mrf.mxu2 }
 0x13a   :  { %v592_v61 = vpack.c.bf16 %v572_v20, %v572_v20  ;;  %v773_v55 = vadd.f32 %v10473_v11, %v772_v16  ;;  %v831_v62 = vpop.f32.mrf.mxu3  ;;  %3305 = vrot.lane.b32.xlu1 %v3304_v3, %s9686_s19  ;;  %v3317_v50 = vunpack.c.l.b16 %v888_v26 }
 0x13b   :  { %v476_v24 = vpop.f32.mrf.mxu0  ;;  %v537_v30 = vpop.f32.mrf.mxu1  ;;  %2230 = vmatpush.bf16.msrb.mxu0 %v10722_v40 }
 0x13c   :  { %v3291_v36 = vunpack.c.l.b16 %v592_v61  ;;  %v10725_v63 = vpop.permute.xlu1 %2169  ;;  %v10727_v54 = vpop.permute.xlu0 %2463  ;;  %v832_v23 = vadd.f32 %v831_v62, %v773_v55  ;;  %v477_v32 = vadd.f32 %v10473_v11, %v476_v24  ;;  %v10737_v6 = vpack.c.b16 %v3317_v50, %v3316_v29 }
 0x13d   :  { %2167 = vrot.lane.b32.xlu2 %v9284_v38, %s9685_s21  ;;  %v10758_v19 = vpop.permute.xlu2 %1285 }
 0x13e   :  { %1057 = vmatmul.bf16.gmra.mxu0 %v10232_v44  ;;  %v3292_v39 = vpack.c.b16 %v3291_v36, %v3290_v41  ;;  %v869_v18 = vmax.f32 %v832_v23, 0.0  ;;  %v536_v7 = vadd.f32 %v535_v58, %v477_v32  ;;  %v10754_v58 = vsel %vm267_vm0, %v10318_v9, %v10374_v49 }
 0x140   :  { %3293 = vrot.lane.b32.xlu0 %v3292_v39, %s9687_s12  ;;  %v889_v61 = vpack.c.bf16 %v869_v18, %v869_v18  ;;  %v573_v55 = vmax.f32 %v536_v7, 0.0 }
 0x141   :  { %v774_v60 = vpop.f32.mrf.mxu2 }
 0x142   :  { %v775_v45 = vadd.f32 %v10473_v11, %v774_v60  ;;  %v833_v22 = vpop.f32.mrf.mxu3  ;;  %3319 = vrot.lane.b32.xlu1 %v10737_v6, %s9687_s12  ;;  %v3427_v49 = vunpack.c.l.b16 %v889_v61  ;;  %v593_v36 = vpack.c.bf16 %v573_v55, %v573_v55 }
 0x143   :  { %v478_v44 = vpop.f32.mrf.mxu0  ;;  %v540_v51 = vpop.f32.mrf.mxu1 }
 0x144   :  { %v834_v26 = vadd.f32 %v833_v22, %v775_v45  ;;  %v479_v20 = vadd.f32 %v10473_v11, %v478_v44  ;;  %v10749_v3 = vpop.permute.xlu1 %2467  ;;  %v10756_v16 = vpop.permute.xlu0 %2171  ;;  %v3411_v37 = vunpack.c.l.b16 %v593_v36 }
 0x145   :  { %2465 = vrot.lane.b32.xlu2 %v9296_v2, %s9685_s21  ;;  %v10773_v44 = vpop.permute.xlu2 %993 }
 0x146   :  { %v870_v62 = vmax.f32 %v834_v26, 0.0  ;;  %v538_v24 = vadd.f32 %v537_v30, %v479_v20  ;;  %1121 = vmatmul.bf16.gmra.mxu1 %v1013_v42  ;;  %1358 = vmatmul.bf16.gmra.mxu2 %v1013_v42 }
 0x147   :  { %1417 = vmatmul.bf16.gmra.mxu3 %v10754_v58 }
 0x148   :  { %v890_v41 = vpack.c.bf16 %v870_v62, %v870_v62  ;;  %v574_v50 = vmax.f32 %v538_v24, 0.0 }
 0x149   :  { %v777_v9 = vpop.f32.mrf.mxu2 }
 0x14a   :  { %v3428_v29 = vunpack.c.l.b16 %v890_v41  ;;  %v594_v23 = vpack.c.bf16 %v574_v50, %v574_v50  ;;  %v836_v32 = vpop.f32.mrf.mxu3  ;;  %3407 = vrot.lane.b32.xlu1 %v3292_v39, %s9686_s19  ;;  %v778_v42 = vadd.f32 %v10473_v11, %v777_v9  ;;  %v9287_v39 = vld [vmem:[%s13677_s0 + $0x298] sm:$0xff]  ;;  %v9602_v41 = vld [vmem:[%s13677_s0 + $0x128] sm:$0xff] }
 0x14b   :  { %v481_v30 = vpop.f32.mrf.mxu0  ;;  %v542_v38 = vpop.f32.mrf.mxu1 }
 0x14c   :  { %v3412_v60 = vunpack.c.l.b16 %v594_v23  ;;  %v482_v18 = vadd.f32 %v10473_v11, %v481_v30  ;;  %v10767_v7 = vpop.permute.xlu1 %2175  ;;  %v10769_v45 = vpack.c.b16 %v3428_v29, %v3427_v49  ;;  %v10771_v22 = vpop.permute.xlu0 %2469  ;;  %v837_v55 = vadd.f32 %v836_v32, %v778_v42  ;;  %v9603_v29 = vld [vmem:[%s13677_s0 + $0x180] sm:$0xff] }
 0x14d   :  { %2173 = vrot.lane.b32.xlu2 %v9287_v39, %s9685_s21  ;;  %v10801_v23 = vsel %vm267_vm0, %v9603_v29, %v10403_v8 }
 0x14e   :  { %13721 = vst [vmem:[#allocation18_spill] sm:$0xff] %v10769_v45  ;;  %1062 = vmatmul.bf16.gmra.mxu0 %v10266_v56  ;;  %3430 = vrot.lane.b32.xlu0 %v10769_v45, %s9685_s21  ;;  %v541_v26 = vadd.f32 %v540_v51, %v482_v18  ;;  %v10782_v20 = vpack.c.b16 %v3412_v60, %v3411_v37  ;;  %v871_v30 = vmax.f32 %v837_v55, 0.0  ;;  %v9299_v37 = vld [vmem:[%s13677_s0 + $0x2f8] sm:$0xff] }
 0x14f   :  { %v1017_v51 = vsel %vm267_vm0, %v9602_v41, %v10729_v13  ;;  %v10805_v13 = vpop.permute.xlu2 %1291 }
 0x150   :  { %13722 = vst [vmem:[#allocation19_spill] sm:$0xff] %v10782_v20  ;;  %v575_v50 = vmax.f32 %v541_v26, 0.0 }
 0x151   :  { %v779_v61 = vpop.f32.mrf.mxu2 }
 0x152   :  { %v780_v62 = vadd.f32 %v10473_v11, %v779_v61  ;;  %v838_v24 = vpop.f32.mrf.mxu3  ;;  %3414 = vrot.lane.b32.xlu1 %v10782_v20, %s9685_s21  ;;  %v595_v42 = vpack.c.bf16 %v575_v50, %v575_v50  ;;  %v891_v61 = vpack.c.bf16 %v871_v30, %v871_v30 }
 0x153   :  { %v483_v56 = vpop.f32.mrf.mxu0  ;;  %v545_v2 = vpop.f32.mrf.mxu1 }
 0x154   :  { %v839_v9 = vadd.f32 %v838_v24, %v780_v62  ;;  %v484_v49 = vadd.f32 %v10473_v11, %v483_v56  ;;  %v10794_v36 = vpop.permute.xlu1 %2473  ;;  %v10803_v32 = vpop.permute.xlu0 %2177  ;;  %v3418_v41 = vunpack.c.l.b16 %v595_v42  ;;  %v3434_v29 = vunpack.c.l.b16 %v891_v61 }
 0x155   :  { %2471 = vrot.lane.b32.xlu2 %v9299_v37, %s9685_s21 }
 0x156   :  { %v872_v60 = vmax.f32 %v839_v9, 0.0  ;;  %v543_v18 = vadd.f32 %v542_v38, %v484_v49  ;;  %1126 = vmatmul.bf16.gmra.mxu1 %v1017_v51  ;;  %1363 = vmatmul.bf16.gmra.mxu2 %v1017_v51 }
 0x157   :  { %1422 = vmatmul.bf16.gmra.mxu3 %v10801_v23  ;;  %v10827_v42 = vpop.permute.xlu2 %1571 }
 0x158   :  { %v892_v39 = vpack.c.bf16 %v872_v60, %v872_v60  ;;  %v576_v26 = vmax.f32 %v543_v18, 0.0 }
 0x159   :  { %v782_v8 = vpop.f32.mrf.mxu2 }
 0x15a   :  { %v596_v55 = vpack.c.bf16 %v576_v26, %v576_v26  ;;  %v783_v38 = vadd.f32 %v10473_v11, %v782_v8  ;;  %v841_v62 = vpop.f32.mrf.mxu3  ;;  %3423 = vrot.lane.b32.xlu1 %v10737_v6, %s9686_s19  ;;  %v3435_v51 = vunpack.c.l.b16 %v892_v39  ;;  %v9290_v6 = vld [vmem:[%s13677_s0 + $0x2b0] sm:$0xff] }
 0x15b   :  { %v486_v24 = vpop.f32.mrf.mxu0  ;;  %v547_v56 = vpop.f32.mrf.mxu1 }
 0x15c   :  { %v3419_v9 = vunpack.c.l.b16 %v596_v55  ;;  %v10815_v49 = vpop.permute.xlu1 %2181  ;;  %v10817_v50 = vpop.permute.xlu0 %2475  ;;  %v842_v60 = vadd.f32 %v841_v62, %v783_v38  ;;  %v487_v30 = vadd.f32 %v10473_v11, %v486_v24  ;;  %v10825_v37 = vpack.c.b16 %v3435_v51, %v3434_v29 }
 0x15d   :  { %13723 = vst [vmem:[#allocation20_spill] sm:$0xff] %v10815_v49  ;;  %2179 = vrot.lane.b32.xlu2 %v9290_v6, %s9685_s21  ;;  %v1021_v62 = vsel %vm267_vm0, %v10392_v14, %v10401_v0  ;;  %v9302_v14 = vld [vmem:[%s13677_s0 + $0x310] sm:$0xff] }
 0x15e   :  { %1067 = vmatmul.bf16.gmra.mxu0 %v10304_v48  ;;  %v3420_v18 = vpack.c.b16 %v3419_v9, %v3418_v41  ;;  %v873_v26 = vmax.f32 %v842_v60, 0.0  ;;  %v546_v8 = vadd.f32 %v545_v2, %v487_v30  ;;  %v9604_v2 = vld [vmem:[%s13677_s0 + $0x188] sm:$0xff] }
 0x15f   :  { %v10844_v9 = vsel %vm267_vm0, %v9604_v2, %v10758_v19 }
 0x160   :  { %3421 = vrot.lane.b32.xlu0 %v3420_v18, %s9687_s12  ;;  %v893_v60 = vpack.c.bf16 %v873_v26, %v873_v26  ;;  %v577_v30 = vmax.f32 %v546_v8, 0.0 }
 0x161   :  { %v784_v39 = vpop.f32.mrf.mxu2 }
 0x162   :  { %v785_v61 = vadd.f32 %v10473_v11, %v784_v39  ;;  %v843_v55 = vpop.f32.mrf.mxu3  ;;  %3437 = vrot.lane.b32.xlu1 %v10825_v37, %s9687_s12  ;;  %v3523_v19 = vunpack.c.l.b16 %v893_v60 }
 0x163   :  { %v488_v48 = vpop.f32.mrf.mxu0  ;;  %v550_v38 = vpop.f32.mrf.mxu1 }
 0x164   :  { %v844_v24 = vadd.f32 %v843_v55, %v785_v61  ;;  %v489_v41 = vadd.f32 %v10473_v11, %v488_v48  ;;  %v10837_v51 = vpop.permute.xlu1 %3051  ;;  %v10846_v29 = vpop.permute.xlu0 %2755  ;;  %v597_v48 = vpack.c.bf16 %v577_v30, %v577_v30  ;;  %v9305_v30 = vld [vmem:[%s13677_s0 + $0x328] sm:$0xff] }
 0x165   :  { %13724 = vst [vmem:[#allocation21_spill] sm:$0xff] %v10837_v51  ;;  %2477 = vrot.lane.b32.xlu2 %v9302_v14, %s9685_s21 }
 0x166   :  { %13725 = vst [vmem:[#allocation22_spill] sm:$0xff] %v10846_v29  ;;  %v874_v6 = vmax.f32 %v844_v24, 0.0  ;;  %v548_v39 = vadd.f32 %v547_v56, %v489_v41  ;;  %1131 = vmatmul.bf16.gmra.mxu1 %v1021_v62  ;;  %1368 = vmatmul.bf16.gmra.mxu2 %v1021_v62  ;;  %v10854_v56 = vpop.permute.xlu2 %1869 }
 0x167   :  { %1427 = vmatmul.bf16.gmra.mxu3 %v10844_v9 }
 0x168   :  { %v894_v0 = vpack.c.bf16 %v874_v6, %v874_v6  ;;  %v578_v61 = vmax.f32 %v548_v39, 0.0  ;;  %v3507_v39 = vunpack.c.l.b16 %v597_v48 }
 0x169   :  { %v787_v55 = vpop.f32.mrf.mxu2 }
 0x16a   :  { %v3524_v2 = vunpack.c.l.b16 %v894_v0  ;;  %v598_v26 = vpack.c.bf16 %v578_v61, %v578_v61  ;;  %v846_v8 = vpop.f32.mrf.mxu3  ;;  %3503 = vrot.lane.b32.xlu1 %v3420_v18, %s9686_s19  ;;  %v788_v60 = vadd.f32 %v10473_v11, %v787_v55 }
 0x16b   :  { %v491_v62 = vpop.f32.mrf.mxu0  ;;  %v552_v24 = vpop.f32.mrf.mxu1 }
 0x16c   :  { %v3508_v41 = vunpack.c.l.b16 %v598_v26  ;;  %v492_v20 = vadd.f32 %v10473_v11, %v491_v62  ;;  %v10857_v45 = vpop.permute.xlu1 %2759  ;;  %v10859_v6 = vpack.c.b16 %v3524_v2, %v3523_v19  ;;  %v10865_v18 = vpop.permute.xlu0 %3053  ;;  %v847_v19 = vadd.f32 %v846_v8, %v788_v60  ;;  %v9605_v26 = vld [vmem:[%s13677_s0 + $0x138] sm:$0xff] }
 0x16d   :  { %13726 = vst [vmem:[#allocation23_spill] sm:$0xff] %v10857_v45  ;;  %2757 = vrot.lane.b32.xlu2 %v9305_v30, %s9685_s21 }
 0x16e   :  { %13727 = vst [vmem:[#allocation24_spill] sm:$0xff] %v10859_v6  ;;  %1072 = vmatmul.bf16.gmra.mxu0 %v10344_v10  ;;  %3526 = vrot.lane.b32.xlu0 %v10859_v6, %s9685_s21  ;;  %v551_v14 = vadd.f32 %v550_v38, %v492_v20  ;;  %v10870_v0 = vpack.c.b16 %v3508_v41, %v3507_v39  ;;  %v10889_v60 = vpop.permute.xlu2 %1577  ;;  %v875_v30 = vmax.f32 %v847_v19, 0.0 }
 0x16f   :  { %13728 = vst [vmem:[#allocation25_spill] sm:$0xff] %v10865_v18  ;;  %v1025_v20 = vsel %vm267_vm0, %v9605_v26, %v10422_v52  ;;  %v10887_v39 = vsel %vm267_vm0, %v10434_v17, %v10416_v53  ;;  %v9317_v52 = vld [vmem:[%s13677_s0 + $0x388] sm:$0xff] }
 0x170   :  { %13729 = vst [vmem:[#allocation26_spill] sm:$0xff] %v10870_v0  ;;  %v579_v38 = vmax.f32 %v551_v14, 0.0  ;;  %v895_v17 = vpack.c.bf16 %v875_v30, %v875_v30 }
 0x171   :  { %v789_v61 = vpop.f32.mrf.mxu2 }
 0x172   :  { %v790_v55 = vadd.f32 %v10473_v11, %v789_v61  ;;  %v848_v48 = vpop.f32.mrf.mxu3  ;;  %3510 = vrot.lane.b32.xlu1 %v10870_v0, %s9685_s21  ;;  %v599_v14 = vpack.c.bf16 %v579_v38, %v579_v38  ;;  %v3530_v1 = vunpack.c.l.b16 %v895_v17 }
 0x173   :  { %v493_v10 = vpop.f32.mrf.mxu0  ;;  %v555_v2 = vpop.f32.mrf.mxu1 }
 0x174   :  { %v849_v62 = vadd.f32 %v848_v48, %v790_v55  ;;  %v494_v41 = vadd.f32 %v10473_v11, %v493_v10  ;;  %v10882_v8 = vpop.permute.xlu1 %3057  ;;  %v10895_v10 = vpop.permute.xlu0 %2761 }
 0x175   :  { %13730 = vst [vmem:[#allocation27_spill] sm:$0xff] %v10882_v8  ;;  %3055 = vrot.lane.b32.xlu2 %v9317_v52, %s9685_s21 }
 0x176   :  { %v876_v61 = vmax.f32 %v849_v62, 0.0  ;;  %v553_v0 = vadd.f32 %v552_v24, %v494_v41  ;;  %1136 = vmatmul.bf16.gmra.mxu1 %v1025_v20  ;;  %1373 = vmatmul.bf16.gmra.mxu2 %v1025_v20  ;;  %13731 = vst [vmem:[#allocation28_spill] sm:$0xff] %v10895_v10  ;;  %v3514_v41 = vunpack.c.l.b16 %v599_v14  ;;  %v10905_v52 = vpop.permute.xlu2 %1875 }
 0x177   :  { %1432 = vmatmul.bf16.gmra.mxu3 %v10887_v39 }
 0x178   :  { %v896_v55 = vpack.c.bf16 %v876_v61, %v876_v61  ;;  %v580_v48 = vmax.f32 %v553_v0, 0.0 }
 0x179   :  { %v792_v53 = vpop.f32.mrf.mxu2 }
 0x17a   :  { %v600_v19 = vpack.c.bf16 %v580_v48, %v580_v48  ;;  %v793_v24 = vadd.f32 %v10473_v11, %v792_v53  ;;  %v851_v26 = vpop.f32.mrf.mxu3  ;;  %3519 = vrot.lane.b32.xlu1 %v10825_v37, %s9686_s19  ;;  %v3531_v6 = vunpack.c.l.b16 %v896_v55  ;;  %v9308_v37 = vld [vmem:[%s13677_s0 + $0x340] sm:$0xff] }
 0x17b   :  { %v496_v20 = vpop.f32.mrf.mxu0  ;;  %v557_v62 = vpop.f32.mrf.mxu1 }
 0x17c   :  { %v3515_v38 = vunpack.c.l.b16 %v600_v19  ;;  %v852_v61 = vadd.f32 %v851_v26, %v793_v24  ;;  %v10901_v0 = vpop.permute.xlu1 %2765  ;;  %v497_v21 = vadd.f32 %v10473_v11, %v496_v20  ;;  %v10911_v14 = vpack.c.b16 %v3531_v6, %v3530_v1  ;;  %v10914_v17 = vpop.permute.xlu0 %3059  ;;  %v9606_v1 = vld [vmem:[%s13677_s0 + $0x140] sm:$0xff] }
 0x17d   :  { %13732 = vst [vmem:[#allocation29_spill] sm:$0xff] %v10901_v0  ;;  %2763 = vrot.lane.b32.xlu2 %v9308_v37, %s9685_s21  ;;  %v1029_v6 = vsel %vm267_vm0, %v9606_v1, %v10773_v44  ;;  %v9320_v44 = vld [vmem:[%s13677_s0 + $0x3a0] sm:$0xff] }
 0x17e   :  { %1077 = vmatmul.bf16.gmra.mxu0 %v10378_v15  ;;  %v3516_v30 = vpack.c.b16 %v3515_v38, %v3514_v41  ;;  %v877_v48 = vmax.f32 %v852_v61, 0.0  ;;  %v556_v53 = vadd.f32 %v555_v2, %v497_v21  ;;  %13733 = vst [vmem:[#allocation30_spill] sm:$0xff] %v10914_v17  ;;  %v9607_v41 = vld [vmem:[%s13677_s0 + $0x198] sm:$0xff]  ;;  %v13735_v38 = vld [vmem:[#allocation4_spill] sm:$0xff] }
 0x17f   :  { %v10932_v61 = vsel %vm267_vm0, %v9607_v41, %v13735_v38 }
 0x180   :  { %3517 = vrot.lane.b32.xlu0 %v3516_v30, %s9687_s12  ;;  %v897_v37 = vpack.c.bf16 %v877_v48, %v877_v48 }
 0x181   :  { %v794_v55 = vpop.f32.mrf.mxu2 }
 0x182   :  { %v795_v15 = vadd.f32 %v10473_v11, %v794_v55  ;;  %v853_v19 = vpop.f32.mrf.mxu3  ;;  %3533 = vrot.lane.b32.xlu1 %v10911_v14, %s9687_s12  ;;  %v581_v55 = vmax.f32 %v556_v53, 0.0  ;;  %v3619_v41 = vunpack.c.l.b16 %v897_v37 }
 0x183   :  { %v498_v24 = vpop.f32.mrf.mxu0  ;;  %v560_v26 = vpop.f32.mrf.mxu1 }
 0x184   :  { %v854_v20 = vadd.f32 %v853_v19, %v795_v15  ;;  %v499_v21 = vadd.f32 %v10473_v11, %v498_v24  ;;  %v10925_v2 = vpop.permute.xlu1 %3063  ;;  %v10938_v24 = vpop.permute.xlu2 %1583  ;;  %v601_v48 = vpack.c.bf16 %v581_v55, %v581_v55  ;;  %v13738_v55 = vld [vmem:[#allocation2_spill] sm:$0xff] }
 0x185   :  { %13734 = vst [vmem:[#allocation31_spill] sm:$0xff] %v10925_v2  ;;  %3061 = vrot.lane.b32.xlu2 %v9320_v44, %s9685_s21  ;;  %v10944_v8 = vpop.permute.xlu0 %2767 }
 0x186   :  { %v878_v0 = vmax.f32 %v854_v20, 0.0  ;;  %v558_v17 = vadd.f32 %v557_v62, %v499_v21  ;;  %1141 = vmatmul.bf16.gmra.mxu1 %v1029_v6  ;;  %1378 = vmatmul.bf16.gmra.mxu2 %v1029_v6  ;;  %13736 = vst [vmem:[#allocation4_spill] sm:$0xff] %v10944_v8  ;;  %v3603_v10 = vunpack.c.l.b16 %v601_v48 }
 0x187   :  { %1437 = vmatmul.bf16.gmra.mxu3 %v10932_v61 }
 0x188   :  { %v898_v15 = vpack.c.bf16 %v878_v0, %v878_v0  ;;  %v582_v19 = vmax.f32 %v558_v17, 0.0 }
 0x189   :  { %v797_v1 = vpop.f32.mrf.mxu2 }
 0x18a   :  { %v3620_v53 = vunpack.c.l.b16 %v898_v15  ;;  %v602_v20 = vpack.c.bf16 %v582_v19, %v582_v19  ;;  %v856_v62 = vpop.f32.mrf.mxu3  ;;  %3599 = vrot.lane.b32.xlu1 %v3516_v30, %s9686_s19  ;;  %v798_v37 = vadd.f32 %v10473_v11, %v797_v1  ;;  %v9311_v30 = vld [vmem:[%s13677_s0 + $0x358] sm:$0xff] }
 0x18b   :  { %v501_v6 = vpop.f32.mrf.mxu0  ;;  %v562_v21 = vpop.f32.mrf.mxu1 }
 0x18c   :  { %v10942_v38 = vpack.c.b16 %v3620_v53, %v3619_v41  ;;  %v3604_v2 = vunpack.c.l.b16 %v602_v20  ;;  %v502_v0 = vadd.f32 %v10473_v11, %v501_v6  ;;  %v10947_v17 = vpop.permute.xlu1 %2771  ;;  %v857_v41 = vadd.f32 %v856_v62, %v798_v37  ;;  %v10957_v48 = vpop.permute.xlu2 %1881 }
 0x18d   :  { %13737 = vst [vmem:[#allocation32_spill] sm:$0xff] %v10947_v17  ;;  %2769 = vrot.lane.b32.xlu2 %v9311_v30, %s9685_s21 }
 0x18e   :  { %1082 = vmatmul.bf16.gmra.mxu0 %v13738_v55  ;;  %v561_v44 = vadd.f32 %v560_v26, %v502_v0  ;;  %v3605_v15 = vpack.c.b16 %v3604_v2, %v3603_v10  ;;  %v9608_v26 = vld [vmem:[%s13677_s0 + $0x148] sm:$0xff] }
 0x18f   :  { %v13739_v0 = vld [vmem:[#allocation3_spill] sm:$0xff] }
 0x190   :  { %v583_v1 = vmax.f32 %v561_v44, 0.0  ;;  %v1033_v10 = vsel %vm267_vm0, %v9608_v26, %v13739_v0  ;;  %v9610_v44 = vld [vmem:[%s13677_s0 + $0x1a0] sm:$0xff] }
 0x191   :  { %v799_v19 = vpop.f32.mrf.mxu2  ;;  %v10977_v30 = vsel %vm267_vm0, %v9610_v44, %v10805_v13 }
 0x192   :  { %v800_v53 = vadd.f32 %v10473_v11, %v799_v19  ;;  %v858_v20 = vpop.f32.mrf.mxu3  ;;  %3606 = vrot.lane.b32.xlu1 %v3605_v15, %s9685_s21  ;;  %v10967_v11 = vld [vmem:[%s13679_s2] ss:$0 sm:$0xff]  ;;  %v879_v15 = vmax.f32 %v857_v41, 0.0  ;;  %v10979_v19 = vpop.permute.xlu0 %3065  ;;  %v603_v26 = vpack.c.bf16 %v583_v1, %v583_v1 }
 0x193   :  { %v503_v6 = vpop.f32.mrf.mxu0  ;;  %v1107_v55 = vpop.f32.mrf.mxu1  ;;  %13741 = vst [vmem:[#allocation3_spill] sm:$0xff] %v10979_v19 }
 0x194   :  { %v859_v2 = vadd.f32 %v858_v20, %v800_v53  ;;  %v504_v62 = vadd.f32 %v10967_v11, %v503_v6  ;;  %v10970_v37 = vpop.permute.xlu1 %3069  ;;  %v9323_v6 = vld [vmem:[%s13677_s0 + $0x3b8] sm:$0xff]  ;;  %v899_v13 = vpack.c.bf16 %v879_v15, %v879_v15  ;;  %v10990_v45 = vpop.permute.xlu2 %1589 }
 0x195   :  { %13740 = vst [vmem:[#allocation2_spill] sm:$0xff] %v10970_v37  ;;  %3067 = vrot.lane.b32.xlu2 %v9323_v6, %s9685_s21  ;;  %v13742_v6 = vld [vmem:[#allocation6_spill] sm:$0xff] }
 0x196   :  { %v880_v53 = vmax.f32 %v859_v2, 0.0  ;;  %v563_v20 = vadd.f32 %v562_v21, %v504_v62  ;;  %1146 = vmatmul.bf16.gmra.mxu1 %v1033_v10  ;;  %1383 = vmatmul.bf16.gmra.mxu2 %v1033_v10  ;;  %v3610_v21 = vunpack.c.l.b16 %v603_v26 }
 0x197   :  { %1442 = vmatmul.bf16.gmra.mxu3 %v10977_v30 }
 0x198   :  { %v900_v0 = vpack.c.bf16 %v880_v53, %v880_v53  ;;  %v584_v37 = vmax.f32 %v563_v20, 0.0 }
 0x199   :  { %v1344_v17 = vpop.f32.mrf.mxu2 }
 0x19a   :  { %v604_v41 = vpack.c.bf16 %v584_v37, %v584_v37  ;;  %v1345_v44 = vadd.f32 %v10967_v11, %v1344_v17  ;;  %v1403_v2 = vpop.f32.mrf.mxu3  ;;  %3615 = vrot.lane.b32.xlu1 %v10911_v14, %s9686_s19  ;;  %v3627_v62 = vunpack.c.l.b16 %v900_v0  ;;  %v3626_v17 = vunpack.c.l.b16 %v899_v13  ;;  %v10995_v26 = vpop.permute.xlu0 %2773 }
 0x19b   :  { %v1048_v1 = vpop.f32.mrf.mxu0  ;;  %v1109_v10 = vpop.f32.mrf.mxu1  ;;  %13743 = vst [vmem:[#allocation6_spill] sm:$0xff] %v10995_v26 }
 0x19c   :  { %v3611_v19 = vunpack.c.l.b16 %v604_v41  ;;  %v1404_v8 = vadd.f32 %v1403_v2, %v1345_v44  ;;  %v1049_v53 = vadd.f32 %v10967_v11, %v1048_v1  ;;  %v3280_v20 = vpop.permute.xlu1 %3279  ;;  %v3628_v18 = vpack.c.b16 %v3627_v62, %v3626_v17 }
 0x19d   :  { %v3376_v37 = vsel %vm3373_vm1, %v10556_v5, %v3280_v20  ;;  %v9611_v5 = vld [vmem:[%s13677_s0 + $0x150] sm:$0xff]  ;;  %v13745_v20 = vld [vmem:[#allocation5_spill] sm:$0xff] }
 0x19e   :  { %v1108_v15 = vadd.f32 %v1107_v55, %v1049_v53  ;;  %1087 = vmatmul.bf16.gmra.mxu0 %v13742_v6  ;;  %v3612_v14 = vpack.c.b16 %v3611_v19, %v3610_v21  ;;  %v1453_v41 = vmax.f32 %v1404_v8, 0.0  ;;  %v13744_v55 = vld [vmem:[#allocation7_spill] sm:$0xff] }
 0x19f   :  { %v1037_v19 = vsel %vm267_vm0, %v9611_v5, %v13744_v55  ;;  %v9612_v8 = vld [vmem:[%s13677_s0 + $0x1a8] sm:$0xff] }
 0x1a0   :  { %3613 = vrot.lane.b32.xlu0 %v3612_v14, %s9687_s12  ;;  %v1157_v13 = vmax.f32 %v1108_v15, 0.0  ;;  %v1473_v6 = vpack.c.bf16 %v1453_v41, %v1453_v41  ;;  %v11014_v15 = vpop.permute.xlu2 %2459 }
 0x1a1   :  { %v1346_v0 = vpop.f32.mrf.mxu2 }
 0x1a2   :  { %v1347_v44 = vadd.f32 %v10967_v11, %v1346_v0  ;;  %v1405_v2 = vpop.f32.mrf.mxu3  ;;  %3629 = vrot.lane.b32.xlu1 %v3628_v18, %s9687_s12  ;;  %v11011_v18 = vsel %vm267_vm0, %v9612_v8, %v13745_v20  ;;  %v3349_v55 = vunpack.c.l.b16 %v1473_v6  ;;  %v3313_v26 = vpop.permute.xlu0 %3312 }
 0x1a3   :  { %v1050_v1 = vpop.f32.mrf.mxu0  ;;  %v1112_v51 = vpop.f32.mrf.mxu1 }
 0x1a4   :  { %v1406_v21 = vadd.f32 %v1405_v2, %v1347_v44  ;;  %v1051_v62 = vadd.f32 %v10967_v11, %v1050_v1  ;;  %v3287_v53 = vpop.permute.xlu1 %3286  ;;  %v1177_v44 = vpack.c.bf16 %v1157_v13, %v1157_v13 }
 0x1a5   :  { %v3378_v17 = vsel %vm267_vm0, %v3376_v37, %v3287_v53 }
 0x1a6   :  { %v1454_v14 = vmax.f32 %v1406_v21, 0.0  ;;  %v1110_v0 = vadd.f32 %v1109_v10, %v1051_v62  ;;  %1151 = vmatmul.bf16.gmra.mxu1 %v1037_v19  ;;  %1388 = vmatmul.bf16.gmra.mxu2 %v1037_v19  ;;  %v3323_v10 = vunpack.c.l.b16 %v1177_v44  ;;  %v9270_v44 = vld [vmem:[%s13677_s0 + $0x210] sm:$0xff] }
 0x1a7   :  { %1447 = vmatmul.bf16.gmra.mxu3 %v11011_v18 }
 0x1a8   :  { %v1474_v2 = vpack.c.bf16 %v1454_v14, %v1454_v14  ;;  %v1158_v1 = vmax.f32 %v1110_v0, 0.0 }
 0x1a9   :  { %v1349_v5 = vpop.f32.mrf.mxu2 }
 0x1aa   :  { %v3350_v29 = vunpack.c.l.b16 %v1474_v2  ;;  %v1178_v8 = vpack.c.bf16 %v1158_v1, %v1158_v1  ;;  %v1350_v20 = vadd.f32 %v10967_v11, %v1349_v5  ;;  %v1408_v37 = vpop.f32.mrf.mxu3  ;;  %v11035_v1 = vpop.permute.xlu2 %2167 }
 0x1ab   :  { %v1053_v41 = vpop.f32.mrf.mxu0  ;;  %v1114_v21 = vpop.f32.mrf.mxu1 }
 0x1ac   :  { %v11018_v62 = vpack.c.b16 %v3350_v29, %v3349_v55  ;;  %v3324_v19 = vunpack.c.l.b16 %v1178_v8  ;;  %v1054_v53 = vadd.f32 %v10967_v11, %v1053_v41  ;;  %v3306_v49 = vpop.permute.xlu1 %3305  ;;  %v1409_v14 = vadd.f32 %v1408_v37, %v1350_v20  ;;  %v9259_v29 = vld [vmem:[%s13677_s0 + $0x1b8] sm:$0xff] }
 0x1ad   :  { %v3385_v13 = vsel %vm3373_vm1, %v10544_v57, %v3306_v49  ;;  %v1593_v55 = vsel %vm267_vm0, %v9259_v29, %v10827_v42  ;;  %v13749_v41 = vld [vmem:[#allocation9_spill] sm:$0xff] }
 0x1ae   :  { %1092 = vmatmul.bf16.gmra.mxu0 %v10520_v12  ;;  %v11025_v6 = vsel %vm267_vm0, %v3385_v13, %v3313_v26  ;;  %v11027_v0 = vpack.c.b16 %v3324_v19, %v3323_v10  ;;  %v1113_v2 = vadd.f32 %v1112_v51, %v1054_v53  ;;  %v1455_v49 = vmax.f32 %v1409_v14, 0.0  ;;  %v9613_v42 = vld [vmem:[%s13678_s1 + $0x38] sm:$0xff] }
 0x1af   :  { %13746 = vst [vmem:[#allocation7_spill] sm:$0xff] %v11025_v6  ;;  %v11045_v51 = vsel %vm267_vm0, %v9270_v44, %v13749_v41  ;;  %v9625_v6 = vld [vmem:[%s13678_s1 + $0x10] sm:$0xff] }
 0x1b0   :  { %13747 = vst [vmem:[#allocation5_spill] sm:$0xff] %v11027_v0  ;;  %v1159_v10 = vmax.f32 %v1113_v2, 0.0  ;;  %v1475_v13 = vpack.c.bf16 %v1455_v49, %v1455_v49  ;;  %v9614_v2 = vld [vmem:[%s13678_s1 + $0x78] sm:$0xff] }
 0x1b1   :  { %v1351_v57 = vpop.f32.mrf.mxu2 }
 0x1b2   :  { %v1352_v12 = vadd.f32 %v10967_v11, %v1351_v57  ;;  %v1410_v26 = vpop.f32.mrf.mxu3  ;;  %v3294_v5 = vpop.permute.xlu0 %3293 }
 0x1b3   :  { %v11041_v8 = vsel %vm3379_vm2, %v3378_v17, %v3294_v5  ;;  %v1055_v20 = vpop.f32.mrf.mxu0  ;;  %v1117_v37 = vpop.f32.mrf.mxu1  ;;  %v1179_v17 = vpack.c.bf16 %v1159_v10, %v1159_v10  ;;  %v9615_v10 = vld [vmem:[%s13678_s1 + $0x30] sm:$0xff] }
 0x1b4   :  { %13748 = vst [vmem:[#allocation33_spill] sm:$0xff] %v11041_v8  ;;  %v1411_v19 = vadd.f32 %v1410_v26, %v1352_v12  ;;  %v1056_v53 = vadd.f32 %v10967_v11, %v1055_v20  ;;  %v11056_v20 = vpop.permute.xlu2 %2465 }
 0x1b6   :  { %v1456_v14 = vmax.f32 %v1411_v19, 0.0  ;;  %v1115_v57 = vadd.f32 %v1114_v21, %v1056_v53  ;;  %1698 = vmatmul.bf16.vlgmr.msra.gmra.mxu1 %v1593_v55  ;;  %1935 = vmatmul.bf16.vlgmr.msra.gmra.mxu2 %v1593_v55  ;;  %v3354_v21 = vunpack.c.l.b16 %v1475_v13  ;;  %v3328_v53 = vunpack.c.l.b16 %v1179_v17  ;;  %v9616_v13 = vld [vmem:[%s13678_s1 + $0x70] sm:$0xff]  ;;  %v9617_v17 = vld [vmem:[%s13678_s1 + $0x28] sm:$0xff] }
 0x1b7   :  { %1994 = vmatmul.bf16.vlgmr.msra.gmra.mxu3 %v11045_v51  ;;  %3111 = vmatpush.bf16.msra.mxu2 %v9613_v42 }
 0x1b8   :  { %v1476_v29 = vpack.c.bf16 %v1456_v14, %v1456_v14  ;;  %v1160_v44 = vmax.f32 %v1115_v57, 0.0  ;;  %3170 = vmatpush.bf16.msra.mxu3 %v9614_v2  ;;  %2874 = vmatpush.bf16.msra.mxu1 %v9614_v2 }
 0x1b9   :  { %v1354_v49 = vpop.f32.mrf.mxu2 }
 0x1ba   :  { %v3355_v12 = vunpack.c.l.b16 %v1476_v29  ;;  %v1180_v26 = vpack.c.bf16 %v1160_v44, %v1160_v44  ;;  %v1355_v5 = vadd.f32 %v10967_v11, %v1354_v49  ;;  %v1413_v55 = vpop.f32.mrf.mxu3 }
 0x1bb   :  { %v1058_v41 = vpop.f32.mrf.mxu0  ;;  %v1119_v19 = vpop.f32.mrf.mxu1  ;;  %3112 = vmatpush.bf16.msra.mxu2 %v9615_v10 }
 0x1bc   :  { %v3329_v14 = vunpack.c.l.b16 %v1180_v26  ;;  %v1059_v57 = vadd.f32 %v10967_v11, %v1058_v41  ;;  %v3356_v2 = vpack.c.b16 %v3355_v12, %v3354_v21  ;;  %3171 = vmatpush.bf16.msra.mxu3 %v9616_v13  ;;  %2875 = vmatpush.bf16.msra.mxu1 %v9616_v13  ;;  %v1414_v29 = vadd.f32 %v1413_v55, %v1355_v5  ;;  %v9618_v21 = vld [vmem:[%s13678_s1 + $0x68] sm:$0xff]  ;;  %v9619_v41 = vld [vmem:[%s13677_s0 + $0x1c0] sm:$0xff] }
 0x1be   :  { %1639 = vmatmul.bf16.vlgmr.msra.gmra.mxu0 %v10581_v33  ;;  %3357 = vrot.lane.b32.xlu0 %v3356_v2, %s9686_s19  ;;  %v3330_v44 = vpack.c.b16 %v3329_v14, %v3328_v53  ;;  %v1118_v49 = vadd.f32 %v1117_v37, %v1059_v57  ;;  %v1457_v33 = vmax.f32 %v1414_v29, 0.0  ;;  %v13750_v37 = vld [vmem:[#allocation8_spill] sm:$0xff]  ;;  %v9620_v14 = vld [vmem:[%s13678_s1 + $0x20] sm:$0xff]  ;;  %v9621_v29 = vld [vmem:[%s13677_s0 + $0x218] sm:$0xff] }
 0x1bf   :  { %2815 = vmatpush.bf16.msra.mxu0 %v9613_v42  ;;  %3113 = vmatpush.bf16.msra.mxu2 %v9617_v17  ;;  %v1597_v53 = vsel %vm267_vm0, %v9619_v41, %v13750_v37  ;;  %v9623_v41 = vld [vmem:[%s13678_s1 + $0x18] sm:$0xff] }
 0x1c0   :  { %3331 = vrot.lane.b32.xlu2 %v3330_v44, %s9686_s19  ;;  %3172 = vmatpush.bf16.msra.mxu3 %v9618_v21  ;;  %v1161_v57 = vmax.f32 %v1118_v49, 0.0  ;;  %v11089_v44 = vsel %vm267_vm0, %v9621_v29, %v10854_v56  ;;  %v1477_v49 = vpack.c.bf16 %v1457_v33, %v1457_v33  ;;  %v9624_v37 = vld [vmem:[%s13678_s1 + $0x58] sm:$0xff] }
 0x1c1   :  { %v1356_v12 = vpop.f32.mrf.mxu2  ;;  %2876 = vmatpush.bf16.msra.mxu1 %v9618_v21  ;;  %v11091_v21 = vpop.permute.xlu2 %2173 }
 0x1c2   :  { %v1357_v26 = vadd.f32 %v10967_v11, %v1356_v12  ;;  %v1415_v5 = vpop.f32.mrf.mxu3 }
 0x1c3   :  { %v1060_v42 = vpop.f32.mrf.mxu0  ;;  %v1122_v55 = vpop.f32.mrf.mxu1  ;;  %2816 = vmatpush.bf16.msra.mxu0 %v9615_v10  ;;  %3114 = vmatpush.bf16.msra.mxu2 %v9620_v14  ;;  %v9622_v10 = vld [vmem:[%s13678_s1 + $0x60] sm:$0xff] }
 0x1c4   :  { %v1416_v2 = vadd.f32 %v1415_v5, %v1357_v26  ;;  %v1061_v13 = vadd.f32 %v10967_v11, %v1060_v42  ;;  %3173 = vmatpush.bf16.msra.mxu3 %v9622_v10  ;;  %v1181_v5 = vpack.c.bf16 %v1161_v57, %v1161_v57 }
 0x1c5   :  { %2877 = vmatpush.bf16.msra.mxu1 %v9622_v10 }
 0x1c6   :  { %v1458_v12 = vmax.f32 %v1416_v2, 0.0  ;;  %v1120_v26 = vadd.f32 %v1119_v19, %v1061_v13  ;;  %1703 = vmatmul.bf16.gmra.mxu1 %v1597_v53  ;;  %1940 = vmatmul.bf16.gmra.mxu2 %v1597_v53  ;;  %v3361_v19 = vunpack.c.l.b16 %v1477_v49  ;;  %v3335_v10 = vunpack.c.l.b16 %v1181_v5  ;;  %v9626_v49 = vld [vmem:[%s13678_s1 + $0x50] sm:$0xff] }
 0x1c7   :  { %1999 = vmatmul.bf16.gmra.mxu3 %v11089_v44  ;;  %2817 = vmatpush.bf16.msra.mxu0 %v9617_v17 }
 0x1c8   :  { %v1478_v42 = vpack.c.bf16 %v1458_v12, %v1458_v12  ;;  %v1162_v56 = vmax.f32 %v1120_v26, 0.0  ;;  %3115 = vmatpush.bf16.msra.mxu2 %v9623_v41  ;;  %3174 = vmatpush.bf16.msra.mxu3 %v9624_v37 }
 0x1c9   :  { %v1359_v33 = vpop.f32.mrf.mxu2  ;;  %2878 = vmatpush.bf16.msra.mxu1 %v9624_v37  ;;  %v11118_v5 = vpop.permute.xlu2 %2471 }
 0x1ca   :  { %v3362_v53 = vunpack.c.l.b16 %v1478_v42  ;;  %v1182_v2 = vpack.c.bf16 %v1162_v56, %v1162_v56  ;;  %v1360_v17 = vadd.f32 %v10967_v11, %v1359_v33  ;;  %v1418_v57 = vpop.f32.mrf.mxu3  ;;  %v9627_v33 = vld [vmem:[%s13678_s1 + $0x48] sm:$0xff] }
 0x1cb   :  { %v1063_v13 = vpop.f32.mrf.mxu0  ;;  %v1124_v29 = vpop.f32.mrf.mxu1  ;;  %2818 = vmatpush.bf16.msra.mxu0 %v9620_v14 }
 0x1cc   :  { %v3336_v12 = vunpack.c.l.b16 %v1182_v2  ;;  %v1064_v26 = vadd.f32 %v10967_v11, %v1063_v13  ;;  %v11105_v8 = vpack.c.b16 %v3362_v53, %v3361_v19  ;;  %3116 = vmatpush.bf16.msra.mxu2 %v9625_v6  ;;  %3175 = vmatpush.bf16.msra.mxu3 %v9626_v49  ;;  %v1419_v42 = vadd.f32 %v1418_v57, %v1360_v17 }
 0x1cd   :  { %2879 = vmatpush.bf16.msra.mxu1 %v9626_v49 }
 0x1ce   :  { %13751 = vst [vmem:[#allocation9_spill] sm:$0xff] %v11105_v8  ;;  %1644 = vmatmul.bf16.gmra.mxu0 %v10635_v25  ;;  %3364 = vrot.lane.b32.xlu2 %v11105_v8, %s9685_s21  ;;  %v11116_v14 = vpack.c.b16 %v3336_v12, %v3335_v10  ;;  %v1123_v56 = vadd.f32 %v1122_v55, %v1064_v26  ;;  %v1459_v25 = vmax.f32 %v1419_v42, 0.0  ;;  %v9628_v55 = vld [vmem:[%s13677_s0 + $0x1c8] sm:$0xff]  ;;  %v9629_v12 = vld [vmem:[%s13677_s0 + $0x220] sm:$0xff] }
 0x1cf   :  { %2819 = vmatpush.bf16.msra.mxu0 %v9623_v41  ;;  %v1601_v41 = vsel %vm267_vm0, %v9628_v55, %v10522_v46  ;;  %v13753_v26 = vld [vmem:[#allocation10_spill] sm:$0xff] }
 0x1d0   :  { %13752 = vst [vmem:[#allocation8_spill] sm:$0xff] %v11116_v14  ;;  %3338 = vrot.lane.b32.xlu0 %v11116_v14, %s9685_s21  ;;  %3117 = vmatpush.bf16.msra.mxu2 %v10713_v43  ;;  %v1163_v57 = vmax.f32 %v1123_v56, 0.0  ;;  %v11138_v49 = vsel %vm267_vm0, %v9629_v12, %v13753_v26  ;;  %v9630_v42 = vld [vmem:[%s13678_s1 + $0x40] sm:$0xff]  ;;  %v1479_v46 = vpack.c.bf16 %v1459_v25, %v1459_v25 }
 0x1d1   :  { %v1361_v37 = vpop.f32.mrf.mxu2  ;;  %3176 = vmatpush.bf16.msra.mxu3 %v9627_v33  ;;  %2880 = vmatpush.bf16.msra.mxu1 %v9627_v33 }
 0x1d2   :  { %v1362_v19 = vadd.f32 %v10967_v11, %v1361_v37  ;;  %v1420_v53 = vpop.f32.mrf.mxu3  ;;  %v1183_v37 = vpack.c.bf16 %v1163_v57, %v1163_v57  ;;  %v3368_v55 = vunpack.c.l.b16 %v1479_v46 }
 0x1d3   :  { %v1065_v2 = vpop.f32.mrf.mxu0  ;;  %v1127_v17 = vpop.f32.mrf.mxu1  ;;  %2820 = vmatpush.bf16.msra.mxu0 %v9625_v6 }
 0x1d4   :  { %v1421_v13 = vadd.f32 %v1420_v53, %v1362_v19  ;;  %v1066_v10 = vadd.f32 %v10967_v11, %v1065_v2  ;;  %3118 = vmatpush.bf16.msra.mxu2 %v10722_v40  ;;  %v11146_v53 = vpop.permute.xlu2 %2179 }
 0x1d5   :  { %2881 = vmatpush.bf16.msra.mxu1 %v9630_v42  ;;  %3177 = vmatpush.bf16.msra.mxu3 %v9630_v42 }
 0x1d6   :  { %v1460_v6 = vmax.f32 %v1421_v13, 0.0  ;;  %v1125_v56 = vadd.f32 %v1124_v29, %v1066_v10  ;;  %1708 = vmatmul.bf16.gmra.mxu1 %v1601_v41  ;;  %1945 = vmatmul.bf16.gmra.mxu2 %v1601_v41  ;;  %v3342_v29 = vunpack.c.l.b16 %v1183_v37 }
 0x1d7   :  { %2004 = vmatmul.bf16.gmra.mxu3 %v11138_v49  ;;  %2821 = vmatpush.bf16.msra.mxu0 %v10713_v43 }
 0x1d8   :  { %v1480_v33 = vpack.c.bf16 %v1460_v6, %v1460_v6  ;;  %v1164_v19 = vmax.f32 %v1125_v56, 0.0 }
 0x1d9   :  { %v1364_v2 = vpop.f32.mrf.mxu2 }
 0x1da   :  { %v3369_v12 = vunpack.c.l.b16 %v1480_v33  ;;  %v1184_v26 = vpack.c.bf16 %v1164_v19, %v1164_v19  ;;  %v1423_v14 = vpop.f32.mrf.mxu3  ;;  %v9631_v19 = vld [vmem:[%s13677_s0 + $0x1d0] sm:$0xff] }
 0x1db   :  { %v1068_v42 = vpop.f32.mrf.mxu0  ;;  %v1129_v25 = vpop.f32.mrf.mxu1  ;;  %2822 = vmatpush.bf16.msra.mxu0 %v10722_v40 }
 0x1dc   :  { %v3343_v41 = vunpack.c.l.b16 %v1184_v26  ;;  %v1069_v13 = vadd.f32 %v10967_v11, %v1068_v42  ;;  %v3370_v10 = vpack.c.b16 %v3369_v12, %v3368_v55  ;;  %v11154_v33 = vpop.permute.xlu2 %2477  ;;  %v1365_v55 = vadd.f32 %v10967_v11, %v1364_v2  ;;  %v9632_v26 = vld [vmem:[%s13677_s0 + $0x228] sm:$0xff]  ;;  %v13755_v42 = vld [vmem:[#allocation12_spill] sm:$0xff] }
 0x1dd   :  { %13754 = vst [vmem:[#allocation10_spill] sm:$0xff] %v11154_v33 }
 0x1de   :  { %1649 = vmatmul.bf16.gmra.mxu0 %v10695_v35  ;;  %3455 = vrot.lane.b32.xlu0 %v3370_v10, %s9686_s19  ;;  %v3344_v43 = vpack.c.b16 %v3343_v41, %v3342_v29  ;;  %v1128_v57 = vadd.f32 %v1127_v17, %v1069_v13  ;;  %v1605_v35 = vsel %vm267_vm0, %v9631_v19, %v10889_v60 }
 0x1df   :  { %v11168_v29 = vsel %vm267_vm0, %v9632_v26, %v13755_v42  ;;  %v1424_v60 = vadd.f32 %v1423_v14, %v1365_v55 }
 0x1e0   :  { %3345 = vrot.lane.b32.xlu2 %v3344_v43, %s9687_s12  ;;  %v1165_v17 = vmax.f32 %v1128_v57, 0.0 }
 0x1e1   :  { %v1366_v46 = vpop.f32.mrf.mxu2  ;;  %v1461_v42 = vmax.f32 %v1424_v60, 0.0 }
 0x1e2   :  { %v1367_v6 = vadd.f32 %v10967_v11, %v1366_v46  ;;  %v1425_v56 = vpop.f32.mrf.mxu3  ;;  %v1185_v46 = vpack.c.bf16 %v1165_v17, %v1165_v17 }
 0x1e3   :  { %v1070_v40 = vpop.f32.mrf.mxu0  ;;  %v1132_v37 = vpop.f32.mrf.mxu1  ;;  %v1481_v17 = vpack.c.bf16 %v1461_v42, %v1461_v42 }
 0x1e4   :  { %v1071_v12 = vadd.f32 %v10967_v11, %v1070_v40  ;;  %v1426_v41 = vadd.f32 %v1425_v56, %v1367_v6  ;;  %v3443_v6 = vunpack.c.l.b16 %v1185_v46  ;;  %v11173_v56 = vpop.permute.xlu2 %2757 }
 0x1e6   :  { %v1130_v13 = vadd.f32 %v1129_v25, %v1071_v12  ;;  %1713 = vmatmul.bf16.gmra.mxu1 %v1605_v35  ;;  %1950 = vmatmul.bf16.gmra.mxu2 %v1605_v35  ;;  %v1462_v40 = vmax.f32 %v1426_v41, 0.0 }
 0x1e7   :  { %2009 = vmatmul.bf16.gmra.mxu3 %v11168_v29 }
 0x1e8   :  { %v1166_v2 = vmax.f32 %v1130_v13, 0.0  ;;  %3439 = vrot.lane.b32.xlu2 %v3344_v43, %s9686_s19  ;;  %v1482_v14 = vpack.c.bf16 %v1462_v40, %v1462_v40  ;;  %v3459_v40 = vunpack.c.l.b16 %v1481_v17 }
 0x1e9   :  { %v1369_v57 = vpop.f32.mrf.mxu2 }
 0x1ea   :  { %v1186_v19 = vpack.c.bf16 %v1166_v2, %v1166_v2  ;;  %v1370_v8 = vadd.f32 %v10967_v11, %v1369_v57  ;;  %v1428_v0 = vpop.f32.mrf.mxu3  ;;  %v3460_v13 = vunpack.c.l.b16 %v1482_v14 }
 0x1eb   :  { %v1073_v33 = vpop.f32.mrf.mxu0  ;;  %v1134_v26 = vpop.f32.mrf.mxu1 }
 0x1ec   :  { %v3444_v25 = vunpack.c.l.b16 %v1186_v19  ;;  %v1074_v35 = vadd.f32 %v10967_v11, %v1073_v33  ;;  %v1429_v55 = vadd.f32 %v1428_v0, %v1370_v8  ;;  %v13757_v0 = vld [vmem:[#allocation11_spill] sm:$0xff]  ;;  %v11196_v14 = vpop.permute.xlu2 %3055 }
 0x1ee   :  { %1654 = vmatmul.bf16.gmra.mxu0 %v10754_v58  ;;  %v11177_v43 = vpack.c.b16 %v3444_v25, %v3443_v6  ;;  %v1133_v12 = vadd.f32 %v1132_v37, %v1074_v35  ;;  %v1463_v60 = vmax.f32 %v1429_v55, 0.0  ;;  %v9633_v58 = vld [vmem:[%s13677_s0 + $0x1d8] sm:$0xff] }
 0x1ef   :  { %v1609_v8 = vsel %vm267_vm0, %v9633_v58, %v13757_v0 }
 0x1f0   :  { %13756 = vst [vmem:[#allocation12_spill] sm:$0xff] %v11177_v43  ;;  %3371 = vrot.lane.b32.xlu2 %v3370_v10, %s9687_s12  ;;  %3446 = vrot.lane.b32.xlu0 %v11177_v43, %s9685_s21  ;;  %v9634_v10 = vld [vmem:[%s13677_s0 + $0x230] sm:$0xff]  ;;  %v1167_v19 = vmax.f32 %v1133_v12, 0.0  ;;  %v1483_v25 = vpack.c.bf16 %v1463_v60, %v1463_v60 }
 0x1f1   :  { %v1371_v41 = vpop.f32.mrf.mxu2  ;;  %v11193_v37 = vsel %vm267_vm0, %v9634_v10, %v10905_v52 }
 0x1f2   :  { %v1372_v46 = vadd.f32 %v10967_v11, %v1371_v41  ;;  %v1430_v2 = vpop.f32.mrf.mxu3  ;;  %v11198_v41 = vpack.c.b16 %v3460_v13, %v3459_v40  ;;  %v1187_v58 = vpack.c.bf16 %v1167_v19, %v1167_v19  ;;  %v3466_v12 = vunpack.c.l.b16 %v1483_v25 }
 0x1f3   :  { %v1075_v33 = vpop.f32.mrf.mxu0  ;;  %v1137_v57 = vpop.f32.mrf.mxu1 }
 0x1f4   :  { %v1431_v42 = vadd.f32 %v1430_v2, %v1372_v46  ;;  %v1076_v6 = vadd.f32 %v10967_v11, %v1075_v33  ;;  %13758 = vst [vmem:[#allocation11_spill] sm:$0xff] %v11198_v41  ;;  %v11206_v19 = vpop.permute.xlu2 %2763 }
 0x1f6   :  { %v1464_v35 = vmax.f32 %v1431_v42, 0.0  ;;  %v1135_v55 = vadd.f32 %v1134_v26, %v1076_v6  ;;  %1718 = vmatmul.bf16.gmra.mxu1 %v1609_v8  ;;  %1955 = vmatmul.bf16.gmra.mxu2 %v1609_v8  ;;  %v3450_v26 = vunpack.c.l.b16 %v1187_v58 }
 0x1f7   :  { %2014 = vmatmul.bf16.gmra.mxu3 %v11193_v37 }
 0x1f8   :  { %v1484_v0 = vpack.c.bf16 %v1464_v35, %v1464_v35  ;;  %v1168_v52 = vmax.f32 %v1135_v55, 0.0  ;;  %3462 = vrot.lane.b32.xlu2 %v11198_v41, %s9685_s21 }
 0x1f9   :  { %v1374_v17 = vpop.f32.mrf.mxu2 }
 0x1fa   :  { %v3467_v46 = vunpack.c.l.b16 %v1484_v0  ;;  %v1188_v60 = vpack.c.bf16 %v1168_v52, %v1168_v52  ;;  %v1433_v2 = vpop.f32.mrf.mxu3  ;;  %v9635_v52 = vld [vmem:[%s13677_s0 + $0x1e0] sm:$0xff] }
 0x1fb   :  { %v1078_v33 = vpop.f32.mrf.mxu0  ;;  %v1139_v10 = vpop.f32.mrf.mxu1 }
 0x1fc   :  { %v3451_v42 = vunpack.c.l.b16 %v1188_v60  ;;  %v1079_v13 = vadd.f32 %v10967_v11, %v1078_v33  ;;  %v3468_v8 = vpack.c.b16 %v3467_v46, %v3466_v12  ;;  %v1375_v12 = vadd.f32 %v10967_v11, %v1374_v17  ;;  %v9636_v60 = vld [vmem:[%s13677_s0 + $0x238] sm:$0xff]  ;;  %v11228_v43 = vpop.permute.xlu2 %3061 }
 0x1fd   :  { %v13759_v33 = vld [vmem:[#allocation13_spill] sm:$0xff] }
 0x1fe   :  { %1659 = vmatmul.bf16.gmra.mxu0 %v10801_v23  ;;  %3551 = vrot.lane.b32.xlu0 %v3468_v8, %s9686_s19  ;;  %v3452_v40 = vpack.c.b16 %v3451_v42, %v3450_v26  ;;  %v1138_v6 = vadd.f32 %v1137_v57, %v1079_v13  ;;  %v1613_v23 = vsel %vm267_vm0, %v9635_v52, %v10583_v47  ;;  %v11225_v47 = vpop.permute.xlu0 %3430 }
 0x1ff   :  { %v11222_v26 = vsel %vm267_vm0, %v9636_v60, %v13759_v33  ;;  %13760 = vst [vmem:[#allocation13_spill] sm:$0xff] %v11225_v47  ;;  %v1434_v17 = vadd.f32 %v1433_v2, %v1375_v12 }
 0x200   :  { %3453 = vrot.lane.b32.xlu2 %v3452_v40, %s9687_s12  ;;  %v1169_v46 = vmax.f32 %v1138_v6, 0.0 }
 0x201   :  { %v1376_v25 = vpop.f32.mrf.mxu2 }
 0x202   :  { %v1377_v35 = vadd.f32 %v10967_v11, %v1376_v25  ;;  %v1435_v55 = vpop.f32.mrf.mxu3  ;;  %v1189_v6 = vpack.c.bf16 %v1169_v46, %v1169_v46 }
 0x203   :  { %v1080_v0 = vpop.f32.mrf.mxu0  ;;  %v1142_v58 = vpop.f32.mrf.mxu1 }
 0x204   :  { %v1081_v57 = vadd.f32 %v10967_v11, %v1080_v0  ;;  %v1436_v42 = vadd.f32 %v1435_v55, %v1377_v35 }
 0x206   :  { %v1140_v13 = vadd.f32 %v1139_v10, %v1081_v57  ;;  %1723 = vmatmul.bf16.gmra.mxu1 %v1613_v23  ;;  %1960 = vmatmul.bf16.gmra.mxu2 %v1613_v23  ;;  %v1466_v52 = vmax.f32 %v1436_v42, 0.0  ;;  %v1465_v23 = vmax.f32 %v1434_v17, 0.0  ;;  %v3539_v57 = vunpack.c.l.b16 %v1189_v6 }
 0x207   :  { %2019 = vmatmul.bf16.gmra.mxu3 %v11222_v26 }
 0x208   :  { %v1170_v25 = vmax.f32 %v1140_v13, 0.0  ;;  %3535 = vrot.lane.b32.xlu2 %v3452_v40, %s9686_s19  ;;  %v1486_v2 = vpack.c.bf16 %v1466_v52, %v1466_v52  ;;  %v11235_v40 = vpop.permute.xlu0 %3421  ;;  %v1485_v42 = vpack.c.bf16 %v1465_v23, %v1465_v23 }
 0x209   :  { %v1379_v0 = vpop.f32.mrf.mxu2  ;;  %13762 = vst [vmem:[#allocation35_spill] sm:$0xff] %v11235_v40 }
 0x20a   :  { %v1190_v41 = vpack.c.bf16 %v1170_v25, %v1170_v25  ;;  %v1380_v60 = vadd.f32 %v10967_v11, %v1379_v0  ;;  %v1438_v35 = vpop.f32.mrf.mxu3  ;;  %v3556_v6 = vunpack.c.l.b16 %v1486_v2  ;;  %v11254_v2 = vpop.permute.xlu2 %2769 }
 0x20b   :  { %v1083_v10 = vpop.f32.mrf.mxu0  ;;  %v1144_v55 = vpop.f32.mrf.mxu1 }
 0x20c   :  { %v3540_v33 = vunpack.c.l.b16 %v1190_v41  ;;  %v1084_v47 = vadd.f32 %v10967_v11, %v1083_v10  ;;  %v1439_v46 = vadd.f32 %v1438_v35, %v1380_v60  ;;  %v3555_v35 = vunpack.c.l.b16 %v1485_v42 }
 0x20e   :  { %v11232_v12 = vpack.c.b16 %v3540_v33, %v3539_v57  ;;  %1664 = vmatmul.bf16.gmra.mxu0 %v10844_v9  ;;  %v1143_v13 = vadd.f32 %v1142_v58, %v1084_v47  ;;  %v1467_v41 = vmax.f32 %v1439_v46, 0.0  ;;  %v9637_v9 = vld [vmem:[%s13677_s0 + $0x1e8] sm:$0xff] }
 0x20f   :  { %v1617_v58 = vsel %vm267_vm0, %v9637_v9, %v10938_v24  ;;  %v13763_v47 = vld [vmem:[#allocation15_spill] sm:$0xff]  ;;  %v11256_v24 = vpack.c.b16 %v3556_v6, %v3555_v35 }
 0x210   :  { %13761 = vst [vmem:[#allocation34_spill] sm:$0xff] %v11232_v12  ;;  %3469 = vrot.lane.b32.xlu2 %v3468_v8, %s9687_s12  ;;  %3542 = vrot.lane.b32.xlu0 %v11232_v12, %s9685_s21  ;;  %v9638_v8 = vld [vmem:[%s13677_s0 + $0x240] sm:$0xff]  ;;  %v1171_v23 = vmax.f32 %v1143_v13, 0.0  ;;  %v1487_v46 = vpack.c.bf16 %v1467_v41, %v1467_v41  ;;  %v11259_v9 = vpop.permute.xlu0 %3526 }
 0x211   :  { %v1381_v17 = vpop.f32.mrf.mxu2  ;;  %v11251_v60 = vsel %vm267_vm0, %v9638_v8, %v13763_v47  ;;  %13764 = vst [vmem:[#allocation15_spill] sm:$0xff] %v11254_v2 }
 0x212   :  { %v1382_v25 = vadd.f32 %v10967_v11, %v1381_v17  ;;  %v1440_v0 = vpop.f32.mrf.mxu3  ;;  %13765 = vst [vmem:[#allocation36_spill] sm:$0xff] %v11256_v24  ;;  %v1191_v8 = vpack.c.bf16 %v1171_v23, %v1171_v23  ;;  %v11266_v23 = vpop.permute.xlu2 %3067 }
 0x213   :  { %v1085_v52 = vpop.f32.mrf.mxu0  ;;  %v1147_v10 = vpop.f32.mrf.mxu1  ;;  %13766 = vst [vmem:[#allocation37_spill] sm:$0xff] %v11259_v9 }
 0x214   :  { %v1441_v57 = vadd.f32 %v1440_v0, %v1382_v25  ;;  %v1086_v33 = vadd.f32 %v10967_v11, %v1085_v52  ;;  %v3562_v25 = vunpack.c.l.b16 %v1487_v46  ;;  %13767 = vst [vmem:[#allocation38_spill] sm:$0xff] %v11266_v23 }
 0x216   :  { %v1468_v17 = vmax.f32 %v1441_v57, 0.0  ;;  %v1145_v12 = vadd.f32 %v1144_v55, %v1086_v33  ;;  %1728 = vmatmul.bf16.gmra.mxu1 %v1617_v58  ;;  %1965 = vmatmul.bf16.gmra.mxu2 %v1617_v58  ;;  %v3546_v58 = vunpack.c.l.b16 %v1191_v8 }
 0x217   :  { %2024 = vmatmul.bf16.gmra.mxu3 %v11251_v60 }
 0x218   :  { %v1488_v47 = vpack.c.bf16 %v1468_v17, %v1468_v17  ;;  %v1172_v42 = vmax.f32 %v1145_v12, 0.0  ;;  %3558 = vrot.lane.b32.xlu2 %v11256_v24, %s9685_s21  ;;  %v11268_v17 = vpop.permute.xlu0 %3517 }
 0x219   :  { %v1384_v13 = vpop.f32.mrf.mxu2  ;;  %13768 = vst [vmem:[#allocation39_spill] sm:$0xff] %v11268_v17 }
 0x21a   :  { %v3563_v0 = vunpack.c.l.b16 %v1488_v47  ;;  %v1192_v41 = vpack.c.bf16 %v1172_v42, %v1172_v42  ;;  %v1443_v52 = vpop.f32.mrf.mxu3 }
 0x21b   :  { %v1088_v55 = vpop.f32.mrf.mxu0  ;;  %v1149_v57 = vpop.f32.mrf.mxu1 }
 0x21c   :  { %v3564_v6 = vpack.c.b16 %v3563_v0, %v3562_v25  ;;  %v3547_v35 = vunpack.c.l.b16 %v1192_v41  ;;  %v1089_v33 = vadd.f32 %v10967_v11, %v1088_v55  ;;  %v13769_v41 = vld [vmem:[#allocation14_spill] sm:$0xff] }
 0x21e   :  { %1669 = vmatmul.bf16.gmra.mxu0 %v10887_v39  ;;  %3647 = vrot.lane.b32.xlu0 %v3564_v6, %s9686_s19  ;;  %v3548_v12 = vpack.c.b16 %v3547_v35, %v3546_v58  ;;  %v1148_v46 = vadd.f32 %v1147_v10, %v1089_v33  ;;  %v9639_v39 = vld [vmem:[%s13677_s0 + $0x1f0] sm:$0xff]  ;;  %v1385_v58 = vadd.f32 %v10967_v11, %v1384_v13  ;;  %v9640_v33 = vld [vmem:[%s13677_s0 + $0x248] sm:$0xff] }
 0x21f   :  { %v1621_v55 = vsel %vm267_vm0, %v9639_v39, %v13769_v41 }
 0x220   :  { %3549 = vrot.lane.b32.xlu2 %v3548_v12, %s9687_s12  ;;  %v1173_v35 = vmax.f32 %v1148_v46, 0.0  ;;  %v11287_v39 = vpop.permute.xlu0 %3613  ;;  %v1444_v13 = vadd.f32 %v1443_v52, %v1385_v58 }
 0x221   :  { %v1386_v47 = vpop.f32.mrf.mxu2  ;;  %13770 = vst [vmem:[#allocation14_spill] sm:$0xff] %v11287_v39 }
 0x222   :  { %v1387_v42 = vadd.f32 %v10967_v11, %v1386_v47  ;;  %v1445_v8 = vpop.f32.mrf.mxu3  ;;  %v11284_v47 = vsel %vm267_vm0, %v9640_v33, %v10957_v48  ;;  %v1193_v46 = vpack.c.bf16 %v1173_v35, %v1173_v35 }
 0x223   :  { %v1090_v25 = vpop.f32.mrf.mxu0  ;;  %v1152_v0 = vpop.f32.mrf.mxu1 }
 0x224   :  { %v1091_v10 = vadd.f32 %v10967_v11, %v1090_v25  ;;  %v1446_v24 = vadd.f32 %v1445_v8, %v1387_v42  ;;  %v11290_v25 = vpop.permute.xlu2 %3331  ;;  %v3635_v8 = vunpack.c.l.b16 %v1193_v46 }
 0x226   :  { %v1150_v17 = vadd.f32 %v1149_v57, %v1091_v10  ;;  %1733 = vmatmul.bf16.gmra.mxu1 %v1621_v55  ;;  %1970 = vmatmul.bf16.gmra.mxu2 %v1621_v55  ;;  %v1470_v40 = vmax.f32 %v1446_v24, 0.0  ;;  %v1469_v57 = vmax.f32 %v1444_v13, 0.0 }
 0x227   :  { %2029 = vmatmul.bf16.gmra.mxu3 %v11284_v47 }
 0x228   :  { %v1174_v41 = vmax.f32 %v1150_v17, 0.0  ;;  %3631 = vrot.lane.b32.xlu2 %v3548_v12, %s9686_s19  ;;  %v1490_v2 = vpack.c.bf16 %v1470_v40, %v1470_v40  ;;  %v1489_v52 = vpack.c.bf16 %v1469_v57, %v1469_v57  ;;  %v9642_v57 = vld [vmem:[%s13677_s0 + $0x250] sm:$0xff] }
 0x229   :  { %v1389_v9 = vpop.f32.mrf.mxu2 }
 0x22a   :  { %v1194_v23 = vpack.c.bf16 %v1174_v41, %v1174_v41  ;;  %v1448_v48 = vpop.f32.mrf.mxu3  ;;  %v3652_v13 = vunpack.c.l.b16 %v1490_v2 }
 0x22b   :  { %v1093_v33 = vpop.f32.mrf.mxu0  ;;  %v1154_v42 = vpop.f32.mrf.mxu1 }
 0x22c   :  { %v3636_v55 = vunpack.c.l.b16 %v1194_v23  ;;  %v1094_v10 = vadd.f32 %v10967_v11, %v1093_v33  ;;  %v3365_v12 = vpop.permute.xlu2 %3364 }
 0x22e   :  { %v3637_v39 = vpack.c.b16 %v3636_v55, %v3635_v8  ;;  %1674 = vmatmul.bf16.gmra.mxu0 %v10932_v61  ;;  %v1153_v17 = vadd.f32 %v1152_v0, %v1094_v10  ;;  %v1390_v61 = vadd.f32 %v10967_v11, %v1389_v9  ;;  %v11314_v9 = vsel %vm267_vm0, %v9642_v57, %v10642_v28 }
 0x230   :  { %3565 = vrot.lane.b32.xlu2 %v3564_v6, %s9687_s12  ;;  %3638 = vrot.lane.b32.xlu0 %v3637_v39, %s9685_s21  ;;  %v3358_v24 = vpop.permute.xlu0 %3357  ;;  %v9641_v6 = vld [vmem:[%s13677_s0 + $0x1f8] sm:$0xff]  ;;  %v1175_v33 = vmax.f32 %v1153_v17, 0.0 }
 0x231   :  { %v3401_v58 = vsel %vm3373_vm1, %v11018_v62, %v3358_v24  ;;  %v1391_v35 = vpop.f32.mrf.mxu2  ;;  %v1625_v39 = vsel %vm267_vm0, %v9641_v6, %v10644_v34  ;;  %v3651_v62 = vunpack.c.l.b16 %v1489_v52  ;;  %v1449_v24 = vadd.f32 %v1448_v48, %v1390_v61 }
 0x232   :  { %v1392_v23 = vadd.f32 %v10967_v11, %v1391_v35  ;;  %v1450_v46 = vpop.f32.mrf.mxu3  ;;  %v11300_v40 = vsel %vm267_vm0, %v3401_v58, %v3365_v12  ;;  %v1195_v34 = vpack.c.bf16 %v1175_v33, %v1175_v33 }
 0x233   :  { %v1095_v0 = vpop.f32.mrf.mxu0  ;;  %v1699_v41 = vpop.f32.mrf.mxu1  ;;  %v3653_v8 = vpack.c.b16 %v3652_v13, %v3651_v62  ;;  %v1471_v13 = vmax.f32 %v1449_v24, 0.0  ;;  %v9643_v24 = vld [vmem:[%s13677_s0 + $0x200] sm:$0xff] }
 0x234   :  { %v1096_v2 = vadd.f32 %v10967_v11, %v1095_v0  ;;  %v1451_v55 = vadd.f32 %v1450_v46, %v1392_v23  ;;  %v3642_v46 = vunpack.c.l.b16 %v1195_v34  ;;  %v1629_v34 = vsel %vm267_vm0, %v9643_v24, %v10990_v45  ;;  %v9292_v24 = vld [vmem:[%s13677_s0 + $0x2c0] sm:$0xff] }
 0x236   :  { %v1155_v10 = vadd.f32 %v1154_v42, %v1096_v2  ;;  %1738 = vmatmul.bf16.gmra.mxu1 %v1625_v39  ;;  %1975 = vmatmul.bf16.gmra.mxu2 %v1625_v39  ;;  %v1472_v12 = vmax.f32 %v1451_v55, 0.0 }
 0x237   :  { %2034 = vmatmul.bf16.gmra.mxu3 %v11314_v9 }
 0x238   :  { %v1176_v52 = vmax.f32 %v1155_v10, 0.0  ;;  %3654 = vrot.lane.b32.xlu2 %v3653_v8, %s9685_s21  ;;  %3622 = vrot.lane.b32.xlu0 %v10942_v38, %s9685_s21  ;;  %v1492_v6 = vpack.c.bf16 %v1472_v12, %v1472_v12  ;;  %v1491_v38 = vpack.c.bf16 %v1471_v13, %v1471_v13 }
 0x239   :  { %v1936_v17 = vpop.f32.mrf.mxu2 }
 0x23a   :  { %v1196_v58 = vpack.c.bf16 %v1176_v52, %v1176_v52  ;;  %v1937_v28 = vadd.f32 %v10967_v11, %v1936_v17  ;;  %v1995_v35 = vpop.f32.mrf.mxu3  ;;  %v3659_v2 = vunpack.c.l.b16 %v1492_v6  ;;  %v3658_v52 = vunpack.c.l.b16 %v1491_v38 }
 0x23b   :  { %v1640_v42 = vpop.f32.mrf.mxu0  ;;  %v1701_v23 = vpop.f32.mrf.mxu1 }
 0x23c   :  { %v3643_v48 = vunpack.c.l.b16 %v1196_v58  ;;  %v1996_v61 = vadd.f32 %v1995_v35, %v1937_v28  ;;  %v1641_v0 = vadd.f32 %v10967_v11, %v1640_v42  ;;  %v3660_v35 = vpack.c.b16 %v3659_v2, %v3658_v52 }
 0x23e   :  { %v3644_v39 = vpack.c.b16 %v3643_v48, %v3642_v46  ;;  %v1700_v62 = vadd.f32 %v1699_v41, %v1641_v0  ;;  %1679 = vmatmul.bf16.gmra.mxu0 %v10977_v30  ;;  %v2045_v57 = vmax.f32 %v1996_v61, 0.0  ;;  %v9644_v30 = vld [vmem:[%s13677_s0 + $0x258] sm:$0xff] }
 0x23f   :  { %v11335_v41 = vsel %vm267_vm0, %v9644_v30, %v10668_v31 }
 0x240   :  { %3645 = vrot.lane.b32.xlu2 %v3644_v39, %s9687_s12  ;;  %v1749_v17 = vmax.f32 %v1700_v62, 0.0  ;;  %v2065_v13 = vpack.c.bf16 %v2045_v57, %v2045_v57 }
 0x241   :  { %v1938_v33 = vpop.f32.mrf.mxu2 }
 0x242   :  { %v1939_v8 = vadd.f32 %v10967_v11, %v1938_v33  ;;  %v1997_v55 = vpop.f32.mrf.mxu3  ;;  %v1769_v45 = vpack.c.bf16 %v1749_v17, %v1749_v17  ;;  %v3723_v0 = vunpack.c.l.b16 %v2065_v13 }
 0x243   :  { %v1642_v10 = vpop.f32.mrf.mxu0  ;;  %v1704_v28 = vpop.f32.mrf.mxu1 }
 0x244   :  { %v1998_v12 = vadd.f32 %v1997_v55, %v1939_v8  ;;  %v1643_v58 = vadd.f32 %v10967_v11, %v1642_v10  ;;  %v3697_v38 = vunpack.c.l.b16 %v1769_v45  ;;  %v9281_v10 = vld [vmem:[%s13677_s0 + $0x268] sm:$0xff] }
 0x246   :  { %v2046_v42 = vmax.f32 %v1998_v12, 0.0  ;;  %v1702_v46 = vadd.f32 %v1701_v23, %v1643_v58  ;;  %1743 = vmatmul.bf16.gmra.mxu1 %v1629_v34  ;;  %1980 = vmatmul.bf16.gmra.mxu2 %v1629_v34  ;;  %v11345_v23 = vld [vmem:[%s13679_s2] ss:$0 sm:$0xff]  ;;  %v2185_v12 = vsel %vm267_vm0, %v9281_v10, %v10664_v4 }
 0x247   :  { %2039 = vmatmul.bf16.gmra.mxu3 %v11335_v41 }
 0x248   :  { %v2066_v48 = vpack.c.bf16 %v2046_v42, %v2046_v42  ;;  %v1750_v61 = vmax.f32 %v1702_v46, 0.0  ;;  %3661 = vrot.lane.b32.xlu2 %v3660_v35, %s9687_s12 }
 0x249   :  { %v1941_v31 = vpop.f32.mrf.mxu2 }
 0x24a   :  { %v3724_v6 = vunpack.c.l.b16 %v2066_v48  ;;  %v1770_v39 = vpack.c.bf16 %v1750_v61, %v1750_v61  ;;  %v2000_v62 = vpop.f32.mrf.mxu3  ;;  %v1942_v35 = vadd.f32 %v11345_v23, %v1941_v31 }
 0x24b   :  { %v1645_v11 = vpop.f32.mrf.mxu0  ;;  %v1706_v8 = vpop.f32.mrf.mxu1 }
 0x24c   :  { %v11340_v33 = vpack.c.b16 %v3724_v6, %v3723_v0  ;;  %v3698_v2 = vunpack.c.l.b16 %v1770_v39  ;;  %v1646_v57 = vadd.f32 %v11345_v23, %v1645_v11  ;;  %v2001_v48 = vadd.f32 %v2000_v62, %v1942_v35  ;;  %v9646_v35 = vld [vmem:[%s13677_s0 + $0x270] sm:$0xff] }
 0x24e   :  { %1684 = vmatmul.bf16.gmra.mxu0 %v11011_v18  ;;  %v11349_v55 = vpack.c.b16 %v3698_v2, %v3697_v38  ;;  %v1705_v34 = vadd.f32 %v1704_v28, %v1646_v57  ;;  %v11362_v18 = vsel %vm267_vm0, %v9292_v24, %v11014_v15  ;;  %v2047_v38 = vmax.f32 %v2001_v48, 0.0 }
 0x250   :  { %v1751_v13 = vmax.f32 %v1705_v34, 0.0  ;;  %v2067_v34 = vpack.c.bf16 %v2047_v38, %v2047_v38 }
 0x251   :  { %v1943_v30 = vpop.f32.mrf.mxu2 }
 0x252   :  { %v1944_v52 = vadd.f32 %v11345_v23, %v1943_v30  ;;  %v2002_v17 = vpop.f32.mrf.mxu3  ;;  %v1771_v61 = vpack.c.bf16 %v1751_v13, %v1751_v13  ;;  %v2189_v13 = vsel %vm267_vm0, %v9646_v35, %v10701_v27 }
 0x253   :  { %v1647_v58 = vpop.f32.mrf.mxu0  ;;  %v1709_v46 = vpop.f32.mrf.mxu1 }
 0x254   :  { %v1648_v42 = vadd.f32 %v11345_v23, %v1647_v58  ;;  %v2003_v45 = vadd.f32 %v2002_v17, %v1944_v52  ;;  %v3702_v31 = vunpack.c.l.b16 %v1771_v61 }
 0x256   :  { %v1707_v28 = vadd.f32 %v1706_v8, %v1648_v42  ;;  %2290 = vmatmul.bf16.vlgmr.msrb.gmra.mxu1 %v2185_v12  ;;  %2527 = vmatmul.bf16.vlgmr.msrb.gmra.mxu2 %v2185_v12  ;;  %v2048_v6 = vmax.f32 %v2003_v45, 0.0 }
 0x257   :  { %2586 = vmatmul.bf16.vlgmr.msrb.gmra.mxu3 %v11362_v18 }
 0x258   :  { %v1752_v4 = vmax.f32 %v1707_v28, 0.0  ;;  %v2068_v24 = vpack.c.bf16 %v2048_v6, %v2048_v6 }
 0x259   :  { %v1946_v0 = vpop.f32.mrf.mxu2 }
 0x25a   :  { %v1772_v39 = vpack.c.bf16 %v1752_v4, %v1752_v4  ;;  %v2005_v15 = vpop.f32.mrf.mxu3  ;;  %v3729_v52 = vunpack.c.l.b16 %v2068_v24  ;;  %v1947_v45 = vadd.f32 %v11345_v23, %v1946_v0 }
 0x25b   :  { %v1650_v11 = vpop.f32.mrf.mxu0  ;;  %v1711_v10 = vpop.f32.mrf.mxu1 }
 0x25c   :  { %v3703_v2 = vunpack.c.l.b16 %v1772_v39  ;;  %v1651_v57 = vadd.f32 %v11345_v23, %v1650_v11  ;;  %v2006_v27 = vadd.f32 %v2005_v15, %v1947_v45 }
 0x25e   :  { %v3704_v8 = vpack.c.b16 %v3703_v2, %v3702_v31  ;;  %2231 = vmatmul.bf16.vlgmr.msrb.gmra.mxu0 %v11045_v51  ;;  %v1710_v30 = vadd.f32 %v1709_v46, %v1651_v57  ;;  %v9647_v51 = vld [vmem:[%s13677_s0 + $0x2c8] sm:$0xff]  ;;  %v3728_v46 = vunpack.c.l.b16 %v2067_v34  ;;  %v2049_v24 = vmax.f32 %v2006_v27, 0.0 }
 0x25f   :  { %v11381_v42 = vsel %vm267_vm0, %v9647_v51, %v10699_v59 }
 0x260   :  { %3705 = vrot.lane.b32.xlu2 %v3704_v8, %s9686_s19  ;;  %v1753_v28 = vmax.f32 %v1710_v30, 0.0  ;;  %v3730_v4 = vpack.c.b16 %v3729_v52, %v3728_v46  ;;  %v2069_v15 = vpack.c.bf16 %v2049_v24, %v2049_v24  ;;  %v9648_v46 = vld [vmem:[%s13677_s0 + $0x278] sm:$0xff] }
 0x261   :  { %v1948_v62 = vpop.f32.mrf.mxu2  ;;  %v2193_v45 = vsel %vm267_vm0, %v9648_v46, %v11035_v1 }
 0x262   :  { %v1949_v17 = vadd.f32 %v11345_v23, %v1948_v62  ;;  %v2007_v12 = vpop.f32.mrf.mxu3  ;;  %v1773_v11 = vpack.c.bf16 %v1753_v28, %v1753_v28 }
 0x263   :  { %v1652_v58 = vpop.f32.mrf.mxu0  ;;  %v1714_v61 = vpop.f32.mrf.mxu1 }
 0x264   :  { %v1653_v48 = vadd.f32 %v11345_v23, %v1652_v58  ;;  %v2008_v6 = vadd.f32 %v2007_v12, %v1949_v17  ;;  %v3709_v8 = vunpack.c.l.b16 %v1773_v11 }
 0x266   :  { %v1712_v39 = vadd.f32 %v1711_v10, %v1653_v48  ;;  %2295 = vmatmul.bf16.gmra.mxu1 %v2189_v13  ;;  %2532 = vmatmul.bf16.gmra.mxu2 %v2189_v13  ;;  %v2050_v31 = vmax.f32 %v2008_v6, 0.0  ;;  %v3735_v48 = vunpack.c.l.b16 %v2069_v15 }
 0x267   :  { %2591 = vmatmul.bf16.gmra.mxu3 %v11381_v42 }
 0x268   :  { %v1754_v38 = vmax.f32 %v1712_v39, 0.0  ;;  %3731 = vrot.lane.b32.xlu2 %v3730_v4, %s9686_s19  ;;  %v2070_v62 = vpack.c.bf16 %v2050_v31, %v2050_v31 }
 0x269   :  { %v1951_v59 = vpop.f32.mrf.mxu2 }
 0x26a   :  { %v1774_v2 = vpack.c.bf16 %v1754_v38, %v1754_v38  ;;  %v2010_v0 = vpop.f32.mrf.mxu3  ;;  %v3736_v58 = vunpack.c.l.b16 %v2070_v62 }
 0x26b   :  { %v1655_v57 = vpop.f32.mrf.mxu0  ;;  %v1716_v10 = vpop.f32.mrf.mxu1 }
 0x26c   :  { %v3710_v34 = vunpack.c.l.b16 %v1774_v2  ;;  %v1656_v30 = vadd.f32 %v11345_v23, %v1655_v57  ;;  %v11408_v27 = vpack.c.b16 %v3736_v58, %v3735_v48 }
 0x26e   :  { %v11388_v52 = vpack.c.b16 %v3710_v34, %v3709_v8  ;;  %2236 = vmatmul.bf16.gmra.mxu0 %v11089_v44  ;;  %v1715_v17 = vadd.f32 %v1714_v61, %v1656_v30  ;;  %v9649_v44 = vld [vmem:[%s13677_s0 + $0x2d0] sm:$0xff]  ;;  %v1952_v61 = vadd.f32 %v11345_v23, %v1951_v59 }
 0x26f   :  { %v11404_v28 = vsel %vm267_vm0, %v9649_v44, %v10727_v54  ;;  %v9650_v44 = vld [vmem:[%s13677_s0 + $0x280] sm:$0xff] }
 0x270   :  { %3712 = vrot.lane.b32.xlu0 %v11388_v52, %s9685_s21  ;;  %v1755_v4 = vmax.f32 %v1715_v17, 0.0  ;;  %v2011_v1 = vadd.f32 %v2010_v0, %v1952_v61  ;;  %v2197_v48 = vsel %vm267_vm0, %v9650_v44, %v10725_v63 }
 0x271   :  { %v1953_v12 = vpop.f32.mrf.mxu2 }
 0x272   :  { %v1954_v35 = vadd.f32 %v11345_v23, %v1953_v12  ;;  %v2012_v13 = vpop.f32.mrf.mxu3  ;;  %v1775_v31 = vpack.c.bf16 %v1755_v4, %v1755_v4  ;;  %v2051_v34 = vmax.f32 %v2011_v1, 0.0 }
 0x273   :  { %v1657_v51 = vpop.f32.mrf.mxu0  ;;  %v1719_v39 = vpop.f32.mrf.mxu1 }
 0x274   :  { %v1658_v6 = vadd.f32 %v11345_v23, %v1657_v51  ;;  %v2013_v11 = vadd.f32 %v2012_v13, %v1954_v35  ;;  %v3716_v30 = vunpack.c.l.b16 %v1775_v31  ;;  %v2071_v0 = vpack.c.bf16 %v2051_v34, %v2051_v34 }
 0x276   :  { %v1717_v38 = vadd.f32 %v1716_v10, %v1658_v6  ;;  %2300 = vmatmul.bf16.gmra.mxu1 %v2193_v45  ;;  %2537 = vmatmul.bf16.gmra.mxu2 %v2193_v45  ;;  %v2052_v59 = vmax.f32 %v2013_v11, 0.0  ;;  %v3742_v4 = vunpack.c.l.b16 %v2071_v0 }
 0x277   :  { %2596 = vmatmul.bf16.gmra.mxu3 %v11404_v28 }
 0x278   :  { %v1756_v2 = vmax.f32 %v1717_v38, 0.0  ;;  %3738 = vrot.lane.b32.xlu0 %v11408_v27, %s9685_s21  ;;  %v2072_v17 = vpack.c.bf16 %v2052_v59, %v2052_v59 }
 0x279   :  { %v1956_v54 = vpop.f32.mrf.mxu2 }
 0x27a   :  { %v1776_v57 = vpack.c.bf16 %v1756_v2, %v1756_v2  ;;  %v2015_v24 = vpop.f32.mrf.mxu3  ;;  %v3743_v13 = vunpack.c.l.b16 %v2072_v17  ;;  %v1957_v6 = vadd.f32 %v11345_v23, %v1956_v54 }
 0x27b   :  { %v1660_v8 = vpop.f32.mrf.mxu0  ;;  %v1721_v15 = vpop.f32.mrf.mxu1 }
 0x27c   :  { %v3717_v62 = vunpack.c.l.b16 %v1776_v57  ;;  %v1661_v10 = vadd.f32 %v11345_v23, %v1660_v8  ;;  %v3744_v1 = vpack.c.b16 %v3743_v13, %v3742_v4  ;;  %v2016_v63 = vadd.f32 %v2015_v24, %v1957_v6 }
 0x27e   :  { %v3718_v12 = vpack.c.b16 %v3717_v62, %v3716_v30  ;;  %2241 = vmatmul.bf16.gmra.mxu0 %v11138_v49  ;;  %v1720_v58 = vadd.f32 %v1719_v39, %v1661_v10  ;;  %v9651_v49 = vld [vmem:[%s13677_s0 + $0x2d8] sm:$0xff]  ;;  %v2053_v62 = vmax.f32 %v2016_v63, 0.0 }
 0x27f   :  { %v11428_v61 = vsel %vm267_vm0, %v9651_v49, %v11056_v20 }
 0x280   :  { %3763 = vrot.lane.b32.xlu2 %v3718_v12, %s9686_s19  ;;  %3719 = vrot.lane.b32.xlu1 %v3718_v12, %s9687_s12  ;;  %v1757_v39 = vmax.f32 %v1720_v58, 0.0  ;;  %v2073_v24 = vpack.c.bf16 %v2053_v62, %v2053_v62 }
 0x281   :  { %v1958_v35 = vpop.f32.mrf.mxu2 }
 0x282   :  { %v1959_v51 = vadd.f32 %v11345_v23, %v1958_v35  ;;  %v2017_v46 = vpop.f32.mrf.mxu3  ;;  %v1777_v59 = vpack.c.bf16 %v1757_v39, %v1757_v39  ;;  %v3783_v6 = vunpack.c.l.b16 %v2073_v24 }
 0x283   :  { %v1662_v45 = vpop.f32.mrf.mxu0  ;;  %v1724_v38 = vpop.f32.mrf.mxu1 }
 0x284   :  { %v1663_v11 = vadd.f32 %v11345_v23, %v1662_v45  ;;  %v2018_v31 = vadd.f32 %v2017_v46, %v1959_v51  ;;  %v3767_v10 = vunpack.c.l.b16 %v1777_v59 }
 0x286   :  { %v1722_v2 = vadd.f32 %v1721_v15, %v1663_v11  ;;  %2305 = vmatmul.bf16.gmra.mxu1 %v2197_v48  ;;  %2542 = vmatmul.bf16.gmra.mxu2 %v2197_v48  ;;  %v2054_v54 = vmax.f32 %v2018_v31, 0.0  ;;  %v9652_v48 = vld [vmem:[%s13677_s0 + $0x288] sm:$0xff] }
 0x287   :  { %2601 = vmatmul.bf16.gmra.mxu3 %v11428_v61  ;;  %v2201_v49 = vsel %vm267_vm0, %v9652_v48, %v10756_v16  ;;  %v9654_v48 = vld [vmem:[%s13677_s0 + $0x290] sm:$0xff] }
 0x288   :  { %v1758_v57 = vmax.f32 %v1722_v2, 0.0  ;;  %3779 = vrot.lane.b32.xlu2 %v3744_v1, %s9686_s19  ;;  %3745 = vrot.lane.b32.xlu1 %v3744_v1, %s9687_s12  ;;  %v2074_v0 = vpack.c.bf16 %v2054_v54, %v2054_v54 }
 0x289   :  { %v1961_v20 = vpop.f32.mrf.mxu2 }
 0x28a   :  { %v1778_v8 = vpack.c.bf16 %v1758_v57, %v1758_v57  ;;  %v2020_v34 = vpop.f32.mrf.mxu3  ;;  %v3784_v51 = vunpack.c.l.b16 %v2074_v0  ;;  %v1962_v39 = vadd.f32 %v11345_v23, %v1961_v20 }
 0x28b   :  { %v1665_v30 = vpop.f32.mrf.mxu0  ;;  %v1726_v12 = vpop.f32.mrf.mxu1 }
 0x28c   :  { %v3768_v17 = vunpack.c.l.b16 %v1778_v8  ;;  %v1666_v15 = vadd.f32 %v11345_v23, %v1665_v30  ;;  %v11456_v31 = vpack.c.b16 %v3784_v51, %v3783_v6  ;;  %v2021_v16 = vadd.f32 %v2020_v34, %v1962_v39 }
 0x28e   :  { %v11436_v58 = vpack.c.b16 %v3768_v17, %v3767_v10  ;;  %2246 = vmatmul.bf16.gmra.mxu0 %v11168_v29  ;;  %v1725_v35 = vadd.f32 %v1724_v38, %v1666_v15  ;;  %v9653_v29 = vld [vmem:[%s13677_s0 + $0x2e0] sm:$0xff]  ;;  %v2055_v62 = vmax.f32 %v2021_v16, 0.0 }
 0x28f   :  { %v11452_v4 = vsel %vm267_vm0, %v9653_v29, %v10749_v3 }
 0x290   :  { %3770 = vrot.lane.b32.xlu0 %v11436_v58, %s9685_s21  ;;  %v1759_v11 = vmax.f32 %v1725_v35, 0.0  ;;  %v2075_v34 = vpack.c.bf16 %v2055_v62, %v2055_v62 }
 0x291   :  { %v1963_v13 = vpop.f32.mrf.mxu2 }
 0x292   :  { %v1964_v46 = vadd.f32 %v11345_v23, %v1963_v13  ;;  %v2022_v45 = vpop.f32.mrf.mxu3  ;;  %v1779_v59 = vpack.c.bf16 %v1759_v11, %v1759_v11  ;;  %v3790_v6 = vunpack.c.l.b16 %v2075_v34 }
 0x293   :  { %v1667_v44 = vpop.f32.mrf.mxu0  ;;  %v1729_v1 = vpop.f32.mrf.mxu1 }
 0x294   :  { %v1668_v38 = vadd.f32 %v11345_v23, %v1667_v44  ;;  %v2023_v2 = vadd.f32 %v2022_v45, %v1964_v46  ;;  %v3774_v10 = vunpack.c.l.b16 %v1779_v59 }
 0x296   :  { %v1727_v63 = vadd.f32 %v1726_v12, %v1668_v38  ;;  %2310 = vmatmul.bf16.gmra.mxu1 %v2201_v49  ;;  %2547 = vmatmul.bf16.gmra.mxu2 %v2201_v49  ;;  %v2056_v20 = vmax.f32 %v2023_v2, 0.0  ;;  %v2205_v49 = vsel %vm267_vm0, %v9654_v48, %v11091_v21 }
 0x297   :  { %2606 = vmatmul.bf16.gmra.mxu3 %v11452_v4 }
 0x298   :  { %v1760_v57 = vmax.f32 %v1727_v63, 0.0  ;;  %3786 = vrot.lane.b32.xlu0 %v11456_v31, %s9685_s21  ;;  %v2076_v0 = vpack.c.bf16 %v2056_v20, %v2056_v20 }
 0x299   :  { %v1966_v3 = vpop.f32.mrf.mxu2 }
 0x29a   :  { %v1780_v54 = vpack.c.bf16 %v1760_v57, %v1760_v57  ;;  %v2025_v8 = vpop.f32.mrf.mxu3  ;;  %v3791_v51 = vunpack.c.l.b16 %v2076_v0  ;;  %v1967_v39 = vadd.f32 %v11345_v23, %v1966_v3 }
 0x29b   :  { %v1670_v30 = vpop.f32.mrf.mxu0  ;;  %v1731_v12 = vpop.f32.mrf.mxu1 }
 0x29c   :  { %v3775_v17 = vunpack.c.l.b16 %v1780_v54  ;;  %v1671_v15 = vadd.f32 %v11345_v23, %v1670_v30  ;;  %v3792_v2 = vpack.c.b16 %v3791_v51, %v3790_v6  ;;  %v2026_v21 = vadd.f32 %v2025_v8, %v1967_v39 }
 0x29e   :  { %v3776_v24 = vpack.c.b16 %v3775_v17, %v3774_v10  ;;  %2251 = vmatmul.bf16.gmra.mxu0 %v11193_v37  ;;  %v1730_v35 = vadd.f32 %v1729_v1, %v1671_v15  ;;  %v9655_v37 = vld [vmem:[%s13677_s0 + $0x2e8] sm:$0xff]  ;;  %v2057_v62 = vmax.f32 %v2026_v21, 0.0 }
 0x29f   :  { %v11476_v29 = vsel %vm267_vm0, %v9655_v37, %v10771_v22 }
 0x2a0   :  { %3811 = vrot.lane.b32.xlu2 %v3776_v24, %s9686_s19  ;;  %3777 = vrot.lane.b32.xlu1 %v3776_v24, %s9687_s12  ;;  %v1761_v11 = vmax.f32 %v1730_v35, 0.0  ;;  %v2077_v8 = vpack.c.bf16 %v2057_v62, %v2057_v62 }
 0x2a1   :  { %v1968_v13 = vpop.f32.mrf.mxu2 }
 0x2a2   :  { %v1969_v46 = vadd.f32 %v11345_v23, %v1968_v13  ;;  %v2027_v45 = vpop.f32.mrf.mxu3  ;;  %v1781_v59 = vpack.c.bf16 %v1761_v11, %v1761_v11  ;;  %v3831_v37 = vunpack.c.l.b16 %v2077_v8 }
 0x2a3   :  { %v1672_v44 = vpop.f32.mrf.mxu0  ;;  %v1734_v1 = vpop.f32.mrf.mxu1 }
 0x2a4   :  { %v1673_v38 = vadd.f32 %v11345_v23, %v1672_v44  ;;  %v2028_v63 = vadd.f32 %v2027_v45, %v1969_v46  ;;  %v3815_v10 = vunpack.c.l.b16 %v1781_v59  ;;  %v9656_v44 = vld [vmem:[%s13677_s0 + $0x298] sm:$0xff] }
 0x2a5   :  { %v2209_v48 = vsel %vm267_vm0, %v9656_v44, %v10767_v7 }
 0x2a6   :  { %v1732_v16 = vadd.f32 %v1731_v12, %v1673_v38  ;;  %2315 = vmatmul.bf16.gmra.mxu1 %v2205_v49  ;;  %2552 = vmatmul.bf16.gmra.mxu2 %v2205_v49  ;;  %v2058_v3 = vmax.f32 %v2028_v63, 0.0 }
 0x2a7   :  { %2611 = vmatmul.bf16.gmra.mxu3 %v11476_v29 }
 0x2a8   :  { %v1762_v57 = vmax.f32 %v1732_v16, 0.0  ;;  %3827 = vrot.lane.b32.xlu2 %v3792_v2, %s9686_s19  ;;  %3793 = vrot.lane.b32.xlu1 %v3792_v2, %s9687_s12  ;;  %v2078_v0 = vpack.c.bf16 %v2058_v3, %v2058_v3 }
 0x2a9   :  { %v1971_v22 = vpop.f32.mrf.mxu2 }
 0x2aa   :  { %v1782_v20 = vpack.c.bf16 %v1762_v57, %v1762_v57  ;;  %v2030_v54 = vpop.f32.mrf.mxu3  ;;  %v3832_v13 = vunpack.c.l.b16 %v2078_v0  ;;  %v1972_v6 = vadd.f32 %v11345_v23, %v1971_v22 }
 0x2ab   :  { %v1675_v30 = vpop.f32.mrf.mxu0  ;;  %v1736_v15 = vpop.f32.mrf.mxu1 }
 0x2ac   :  { %v3816_v17 = vunpack.c.l.b16 %v1782_v20  ;;  %v1676_v12 = vadd.f32 %v11345_v23, %v1675_v30  ;;  %v2031_v7 = vadd.f32 %v2030_v54, %v1972_v6 }
 0x2ae   :  { %v11484_v24 = vpack.c.b16 %v3816_v17, %v3815_v10  ;;  %2256 = vmatmul.bf16.gmra.mxu0 %v11222_v26  ;;  %v1735_v34 = vadd.f32 %v1734_v1, %v1676_v12  ;;  %v9657_v26 = vld [vmem:[%s13677_s0 + $0x2f0] sm:$0xff]  ;;  %v11504_v1 = vpack.c.b16 %v3832_v13, %v3831_v37  ;;  %v2059_v20 = vmax.f32 %v2031_v7, 0.0 }
 0x2af   :  { %v11500_v49 = vsel %vm267_vm0, %v9657_v26, %v11118_v5 }
 0x2b0   :  { %3818 = vrot.lane.b32.xlu0 %v11484_v24, %s9685_s21  ;;  %v1763_v39 = vmax.f32 %v1735_v34, 0.0  ;;  %v2079_v54 = vpack.c.bf16 %v2059_v20, %v2059_v20 }
 0x2b1   :  { %v1973_v35 = vpop.f32.mrf.mxu2 }
 0x2b2   :  { %v1974_v51 = vadd.f32 %v11345_v23, %v1973_v35  ;;  %v2032_v46 = vpop.f32.mrf.mxu3  ;;  %v1783_v16 = vpack.c.bf16 %v1763_v39, %v1763_v39 }
 0x2b3   :  { %v1677_v45 = vpop.f32.mrf.mxu0  ;;  %v1739_v38 = vpop.f32.mrf.mxu1 }
 0x2b4   :  { %v1678_v11 = vadd.f32 %v11345_v23, %v1677_v45  ;;  %v2033_v2 = vadd.f32 %v2032_v46, %v1974_v51  ;;  %v3822_v30 = vunpack.c.l.b16 %v1783_v16  ;;  %v9658_v46 = vld [vmem:[%s13677_s0 + $0x2a0] sm:$0xff] }
 0x2b5   :  { %v2213_v45 = vsel %vm267_vm0, %v9658_v46, %v10803_v32 }
 0x2b6   :  { %v1737_v63 = vadd.f32 %v1736_v15, %v1678_v11  ;;  %2320 = vmatmul.bf16.gmra.mxu1 %v2209_v48  ;;  %2557 = vmatmul.bf16.gmra.mxu2 %v2209_v48  ;;  %v2060_v59 = vmax.f32 %v2033_v2, 0.0  ;;  %v3838_v48 = vunpack.c.l.b16 %v2079_v54 }
 0x2b7   :  { %2616 = vmatmul.bf16.gmra.mxu3 %v11500_v49 }
 0x2b8   :  { %v1764_v21 = vmax.f32 %v1737_v63, 0.0  ;;  %3834 = vrot.lane.b32.xlu0 %v11504_v1, %s9685_s21  ;;  %v2080_v15 = vpack.c.bf16 %v2060_v59, %v2060_v59 }
 0x2b9   :  { %v1976_v5 = vpop.f32.mrf.mxu2 }
 0x2ba   :  { %v1784_v57 = vpack.c.bf16 %v1764_v21, %v1764_v21  ;;  %v2035_v22 = vpop.f32.mrf.mxu3  ;;  %v3839_v34 = vunpack.c.l.b16 %v2080_v15  ;;  %v1977_v26 = vadd.f32 %v11345_v23, %v1976_v5 }
 0x2bb   :  { %v1680_v3 = vpop.f32.mrf.mxu0  ;;  %v1741_v17 = vpop.f32.mrf.mxu1 }
 0x2bc   :  { %v3823_v62 = vunpack.c.l.b16 %v1784_v57  ;;  %v1681_v10 = vadd.f32 %v11345_v23, %v1680_v3  ;;  %v3840_v11 = vpack.c.b16 %v3839_v34, %v3838_v48  ;;  %v2036_v32 = vadd.f32 %v2035_v22, %v1977_v26  ;;  %v9661_v48 = vld [vmem:[%s13677_s0 + $0x300] sm:$0xff] }
 0x2bd   :  { %v11547_v26 = vsel %vm267_vm0, %v9661_v48, %v10817_v50 }
 0x2be   :  { %v3824_v12 = vpack.c.b16 %v3823_v62, %v3822_v30  ;;  %2261 = vmatmul.bf16.gmra.mxu0 %v11251_v60  ;;  %v1740_v0 = vadd.f32 %v1739_v38, %v1681_v10  ;;  %v9659_v60 = vld [vmem:[%s13677_s0 + $0x2f8] sm:$0xff]  ;;  %v2061_v57 = vmax.f32 %v2036_v32, 0.0 }
 0x2bf   :  { %v11524_v44 = vsel %vm267_vm0, %v9659_v60, %v10794_v36 }
 0x2c0   :  { %3859 = vrot.lane.b32.xlu2 %v3824_v12, %s9686_s19  ;;  %3825 = vrot.lane.b32.xlu1 %v3824_v12, %s9687_s12  ;;  %v1765_v37 = vmax.f32 %v1740_v0, 0.0  ;;  %v2081_v22 = vpack.c.bf16 %v2061_v57, %v2061_v57 }
 0x2c1   :  { %v1978_v8 = vpop.f32.mrf.mxu2 }
 0x2c2   :  { %v1979_v35 = vadd.f32 %v11345_v23, %v1978_v8  ;;  %v2037_v13 = vpop.f32.mrf.mxu3  ;;  %v1785_v63 = vpack.c.bf16 %v1765_v37, %v1765_v37 }
 0x2c3   :  { %v1682_v51 = vpop.f32.mrf.mxu0  ;;  %v1744_v39 = vpop.f32.mrf.mxu1 }
 0x2c4   :  { %v1683_v6 = vadd.f32 %v11345_v23, %v1682_v51  ;;  %v2038_v38 = vadd.f32 %v2037_v13, %v1979_v35  ;;  %v3863_v3 = vunpack.c.l.b16 %v1785_v63  ;;  %v9660_v13 = vld [vmem:[%s13677_s0 + $0x2a8] sm:$0xff] }
 0x2c5   :  { %v2217_v51 = vsel %vm267_vm0, %v9660_v13, %v11146_v53  ;;  %v13772_v13 = vld [vmem:[#allocation10_spill] sm:$0xff] }
 0x2c6   :  { %v1742_v2 = vadd.f32 %v1741_v17, %v1683_v6  ;;  %2325 = vmatmul.bf16.gmra.mxu1 %v2213_v45  ;;  %2562 = vmatmul.bf16.gmra.mxu2 %v2213_v45  ;;  %v2062_v16 = vmax.f32 %v2038_v38, 0.0 }
 0x2c7   :  { %2621 = vmatmul.bf16.gmra.mxu3 %v11524_v44 }
 0x2c8   :  { %v1766_v7 = vmax.f32 %v1742_v2, 0.0  ;;  %3875 = vrot.lane.b32.xlu2 %v3840_v11, %s9686_s19  ;;  %3841 = vrot.lane.b32.xlu1 %v3840_v11, %s9687_s12  ;;  %v2082_v10 = vpack.c.bf16 %v2062_v16, %v2062_v16 }
 0x2c9   :  { %v1981_v36 = vpop.f32.mrf.mxu2 }
 0x2ca   :  { %v1786_v21 = vpack.c.bf16 %v1766_v7, %v1766_v7  ;;  %v2040_v5 = vpop.f32.mrf.mxu3  ;;  %v3880_v54 = vunpack.c.l.b16 %v2082_v10  ;;  %v1982_v34 = vadd.f32 %v11345_v23, %v1981_v36 }
 0x2cb   :  { %v1685_v59 = vpop.f32.mrf.mxu0  ;;  %v1746_v62 = vpop.f32.mrf.mxu1 }
 0x2cc   :  { %v3864_v20 = vunpack.c.l.b16 %v1786_v21  ;;  %v1686_v30 = vadd.f32 %v11345_v23, %v1685_v59  ;;  %v2041_v11 = vadd.f32 %v2040_v5, %v1982_v34  ;;  %v13771_v34 = vld [vmem:[#allocation20_spill] sm:$0xff] }
 0x2ce   :  { %v3865_v17 = vpack.c.b16 %v3864_v20, %v3863_v3  ;;  %2266 = vmatmul.bf16.gmra.mxu0 %v11284_v47  ;;  %v1745_v15 = vadd.f32 %v1744_v39, %v1686_v30  ;;  %v3879_v47 = vunpack.c.l.b16 %v2081_v22  ;;  %v2063_v50 = vmax.f32 %v2041_v11, 0.0 }
 0x2d0   :  { %3866 = vrot.lane.b32.xlu0 %v3865_v17, %s9685_s21  ;;  %v1767_v46 = vmax.f32 %v1745_v15, 0.0  ;;  %v3881_v37 = vpack.c.b16 %v3880_v54, %v3879_v47  ;;  %v2083_v10 = vpack.c.bf16 %v2063_v50, %v2063_v50 }
 0x2d1   :  { %v1983_v12 = vpop.f32.mrf.mxu2 }
 0x2d2   :  { %v1984_v0 = vadd.f32 %v11345_v23, %v1983_v12  ;;  %v2042_v8 = vpop.f32.mrf.mxu3  ;;  %v1787_v53 = vpack.c.bf16 %v1767_v46, %v1767_v46  ;;  %v3886_v47 = vunpack.c.l.b16 %v2083_v10  ;;  %v9314_v10 = vld [vmem:[%s13677_s0 + $0x370] sm:$0xff] }
 0x2d3   :  { %v1687_v35 = vpop.f32.mrf.mxu0  ;;  %v2291_v60 = vpop.f32.mrf.mxu1 }
 0x2d4   :  { %v1688_v45 = vadd.f32 %v11345_v23, %v1687_v35  ;;  %v2043_v6 = vadd.f32 %v2042_v8, %v1984_v0  ;;  %v3870_v21 = vunpack.c.l.b16 %v1787_v53  ;;  %v9662_v8 = vld [vmem:[%s13677_s0 + $0x2b0] sm:$0xff] }
 0x2d5   :  { %v2221_v35 = vsel %vm267_vm0, %v9662_v8, %v13771_v34 }
 0x2d6   :  { %v1747_v39 = vadd.f32 %v1746_v62, %v1688_v45  ;;  %2330 = vmatmul.bf16.gmra.mxu1 %v2217_v51  ;;  %2567 = vmatmul.bf16.gmra.mxu2 %v2217_v51  ;;  %v2064_v32 = vmax.f32 %v2043_v6, 0.0 }
 0x2d7   :  { %2626 = vmatmul.bf16.gmra.mxu3 %v11547_v26 }
 0x2d8   :  { %v1768_v38 = vmax.f32 %v1747_v39, 0.0  ;;  %3882 = vrot.lane.b32.xlu0 %v3881_v37, %s9685_s21  ;;  %v2084_v20 = vpack.c.bf16 %v2064_v32, %v2064_v32 }
 0x2d9   :  { %v2528_v2 = vpop.f32.mrf.mxu2 }
 0x2da   :  { %v1788_v63 = vpack.c.bf16 %v1768_v38, %v1768_v38  ;;  %v2529_v7 = vadd.f32 %v11345_v23, %v2528_v2  ;;  %v2587_v36 = vpop.f32.mrf.mxu3  ;;  %v3887_v22 = vunpack.c.l.b16 %v2084_v20  ;;  %v9348_v20 = vld [vmem:[%s13680_s3 + $0xb8] sm:$0xff] }
 0x2db   :  { %v2232_v16 = vpop.f32.mrf.mxu0  ;;  %v2293_v5 = vpop.f32.mrf.mxu1  ;;  %4769 = vmatpush.bf16.msrb.mxu2 %v9348_v20 }
 0x2dc   :  { %v3871_v59 = vunpack.c.l.b16 %v1788_v63  ;;  %v2588_v57 = vadd.f32 %v2587_v36, %v2529_v7  ;;  %v2233_v3 = vadd.f32 %v11345_v23, %v2232_v16  ;;  %v3888_v37 = vpack.c.b16 %v3887_v22, %v3886_v47 }
 0x2de   :  { %v3872_v30 = vpack.c.b16 %v3871_v59, %v3870_v21  ;;  %v2292_v62 = vadd.f32 %v2291_v60, %v2233_v3  ;;  %2271 = vmatmul.bf16.gmra.mxu0 %v11314_v9  ;;  %v2637_v15 = vmax.f32 %v2588_v57, 0.0  ;;  %v9663_v9 = vld [vmem:[%s13677_s0 + $0x308] sm:$0xff] }
 0x2df   :  { %v11566_v51 = vsel %vm267_vm0, %v9663_v9, %v13772_v13 }
 0x2e0   :  { %3873 = vrot.lane.b32.xlu1 %v3872_v30, %s9687_s12  ;;  %v2341_v46 = vmax.f32 %v2292_v62, 0.0  ;;  %v2657_v6 = vpack.c.bf16 %v2637_v15, %v2637_v15  ;;  %v9303_v62 = vld [vmem:[%s13677_s0 + $0x318] sm:$0xff] }
 0x2e1   :  { %v2530_v17 = vpop.f32.mrf.mxu2 }
 0x2e2   :  { %v2531_v12 = vadd.f32 %v11345_v23, %v2530_v17  ;;  %v2589_v54 = vpop.f32.mrf.mxu3  ;;  %v2361_v53 = vpack.c.bf16 %v2341_v46, %v2341_v46  ;;  %v3935_v63 = vunpack.c.l.b16 %v2657_v6 }
 0x2e3   :  { %v2234_v0 = vpop.f32.mrf.mxu0  ;;  %v2296_v48 = vpop.f32.mrf.mxu1 }
 0x2e4   :  { %v2590_v45 = vadd.f32 %v2589_v54, %v2531_v12  ;;  %v2235_v60 = vadd.f32 %v11345_v23, %v2234_v0  ;;  %v3909_v21 = vunpack.c.l.b16 %v2361_v53  ;;  %v9332_v12 = vld [vmem:[%s13680_s3 + $0x38] sm:$0xff]  ;;  %v13773_v0 = vld [vmem:[#allocation22_spill] sm:$0xff] }
 0x2e5   :  { %v9356_v54 = vld [vmem:[%s13680_s3 + $0xf8] sm:$0xff]  ;;  %v2777_v8 = vsel %vm267_vm0, %v9303_v62, %v13773_v0  ;;  %4591 = vmatpush.bf16.msrb.mxu0 %v9332_v12 }
 0x2e6   :  { %v2638_v39 = vmax.f32 %v2590_v45, 0.0  ;;  %v2294_v11 = vadd.f32 %v2293_v5, %v2235_v60  ;;  %2335 = vmatmul.bf16.gmra.mxu1 %v2221_v35  ;;  %2572 = vmatmul.bf16.gmra.mxu2 %v2221_v35  ;;  %v13774_v35 = vld [vmem:[#allocation21_spill] sm:$0xff] }
 0x2e7   :  { %2631 = vmatmul.bf16.gmra.mxu3 %v11566_v51  ;;  %v3073_v9 = vsel %vm267_vm0, %v9314_v10, %v13774_v35  ;;  %v9340_v60 = vld [vmem:[%s13680_s3 + $0x78] sm:$0xff] }
 0x2e8   :  { %v2658_v38 = vpack.c.bf16 %v2638_v39, %v2638_v39  ;;  %v2342_v2 = vmax.f32 %v2294_v11, 0.0  ;;  %3889 = vrot.lane.b32.xlu1 %v3888_v37, %s9687_s12  ;;  %4858 = vmatpush.bf16.msrb.mxu3 %v9356_v54  ;;  %v13775_v54 = vld [vmem:[#allocation25_spill] sm:$0xff] }
 0x2e9   :  { %v2533_v32 = vpop.f32.mrf.mxu2  ;;  %4680 = vmatpush.bf16.msrb.mxu1 %v9340_v60 }
 0x2ea   :  { %v3936_v7 = vunpack.c.l.b16 %v2658_v38  ;;  %v2362_v36 = vpack.c.bf16 %v2342_v2, %v2342_v2  ;;  %v2592_v50 = vpop.f32.mrf.mxu3  ;;  %v2534_v13 = vadd.f32 %v11345_v23, %v2533_v32 }
 0x2eb   :  { %v2237_v16 = vpop.f32.mrf.mxu0  ;;  %v2298_v3 = vpop.f32.mrf.mxu1 }
 0x2ec   :  { %v11571_v59 = vpack.c.b16 %v3936_v7, %v3935_v63  ;;  %v3910_v57 = vunpack.c.l.b16 %v2362_v36  ;;  %v2238_v5 = vadd.f32 %v11345_v23, %v2237_v16  ;;  %v2593_v6 = vadd.f32 %v2592_v50, %v2534_v13 }
 0x2ee   :  { %2276 = vmatmul.bf16.gmra.mxu0 %v11335_v41  ;;  %v11578_v30 = vpack.c.b16 %v3910_v57, %v3909_v21  ;;  %v2297_v17 = vadd.f32 %v2296_v48, %v2238_v5  ;;  %v2639_v7 = vmax.f32 %v2593_v6, 0.0 }
 0x2f0   :  { %v2343_v47 = vmax.f32 %v2297_v17, 0.0  ;;  %v2659_v20 = vpack.c.bf16 %v2639_v7, %v2639_v7 }
 0x2f1   :  { %v2535_v22 = vpop.f32.mrf.mxu2 }
 0x2f2   :  { %v2536_v15 = vadd.f32 %v11345_v23, %v2535_v22  ;;  %v2594_v41 = vpop.f32.mrf.mxu3  ;;  %v2363_v39 = vpack.c.bf16 %v2343_v47, %v2343_v47  ;;  %v9347_v47 = vld [vmem:[%s13680_s3 + $0xb0] sm:$0xff] }
 0x2f3   :  { %v2239_v34 = vpop.f32.mrf.mxu0  ;;  %v2301_v45 = vpop.f32.mrf.mxu1  ;;  %4770 = vmatpush.bf16.msrb.mxu2 %v9347_v47 }
 0x2f4   :  { %v2240_v46 = vadd.f32 %v11345_v23, %v2239_v34  ;;  %v2595_v48 = vadd.f32 %v2594_v41, %v2536_v15  ;;  %v3914_v36 = vunpack.c.l.b16 %v2363_v39  ;;  %v9664_v41 = vld [vmem:[%s13677_s0 + $0x320] sm:$0xff] }
 0x2f5   :  { %v2781_v12 = vsel %vm267_vm0, %v9664_v41, %v11173_v56  ;;  %v9331_v56 = vld [vmem:[%s13680_s3 + $0x30] sm:$0xff]  ;;  %v9666_v41 = vld [vmem:[%s13677_s0 + $0x328] sm:$0xff] }
 0x2f6   :  { %v2299_v37 = vadd.f32 %v2298_v3, %v2240_v46  ;;  %2882 = vmatmul.bf16.vlgmr.msra.gmra.mxu1 %v2777_v8  ;;  %3119 = vmatmul.bf16.vlgmr.msra.gmra.mxu2 %v2777_v8  ;;  %v2640_v38 = vmax.f32 %v2595_v48, 0.0  ;;  %v3940_v8 = vunpack.c.l.b16 %v2659_v20  ;;  %v9355_v46 = vld [vmem:[%s13680_s3 + $0xf0] sm:$0xff] }
 0x2f7   :  { %3178 = vmatmul.bf16.vlgmr.msra.gmra.mxu3 %v3073_v9  ;;  %4592 = vmatpush.bf16.msrb.mxu0 %v9331_v56 }
 0x2f8   :  { %v2344_v11 = vmax.f32 %v2299_v37, 0.0  ;;  %v2660_v5 = vpack.c.bf16 %v2640_v38, %v2640_v38  ;;  %4859 = vmatpush.bf16.msrb.mxu3 %v9355_v46 }
 0x2f9   :  { %v2538_v53 = vpop.f32.mrf.mxu2 }
 0x2fa   :  { %v2364_v2 = vpack.c.bf16 %v2344_v11, %v2344_v11  ;;  %v2597_v32 = vpop.f32.mrf.mxu3  ;;  %v3941_v10 = vunpack.c.l.b16 %v2660_v5  ;;  %v2539_v34 = vadd.f32 %v11345_v23, %v2538_v53 }
 0x2fb   :  { %v2242_v63 = vpop.f32.mrf.mxu0  ;;  %v2303_v57 = vpop.f32.mrf.mxu1 }
 0x2fc   :  { %v3915_v16 = vunpack.c.l.b16 %v2364_v2  ;;  %v2243_v21 = vadd.f32 %v11345_v23, %v2242_v63  ;;  %v3942_v60 = vpack.c.b16 %v3941_v10, %v3940_v8  ;;  %v2598_v6 = vadd.f32 %v2597_v32, %v2539_v34 }
 0x2fe   :  { %v3916_v3 = vpack.c.b16 %v3915_v16, %v3914_v36  ;;  %2823 = vmatmul.bf16.vlgmr.msra.gmra.mxu0 %v11362_v18  ;;  %v2302_v62 = vadd.f32 %v2301_v45, %v2243_v21  ;;  %v9665_v18 = vld [vmem:[%s13677_s0 + $0x378] sm:$0xff]  ;;  %v9339_v45 = vld [vmem:[%s13680_s3 + $0x70] sm:$0xff]  ;;  %v2641_v36 = vmax.f32 %v2598_v6, 0.0 }
 0x2ff   :  { %v3077_v0 = vsel %vm267_vm0, %v9665_v18, %v13775_v54  ;;  %4681 = vmatpush.bf16.msrb.mxu1 %v9339_v45 }
 0x300   :  { %3917 = vrot.lane.b32.xlu2 %v3916_v3, %s9686_s19  ;;  %v2345_v35 = vmax.f32 %v2302_v62, 0.0  ;;  %v2661_v20 = vpack.c.bf16 %v2641_v36, %v2641_v36  ;;  %v9330_v36 = vld [vmem:[%s13680_s3 + $0x28] sm:$0xff] }
 0x301   :  { %v2540_v50 = vpop.f32.mrf.mxu2  ;;  %4593 = vmatpush.bf16.msrb.mxu0 %v9330_v36 }
 0x302   :  { %v2541_v17 = vadd.f32 %v11345_v23, %v2540_v50  ;;  %v2599_v22 = vpop.f32.mrf.mxu3  ;;  %v2365_v39 = vpack.c.bf16 %v2345_v35, %v2345_v35 }
 0x303   :  { %v2244_v15 = vpop.f32.mrf.mxu0  ;;  %v2306_v13 = vpop.f32.mrf.mxu1 }
 0x304   :  { %v2245_v9 = vadd.f32 %v11345_v23, %v2244_v15  ;;  %v2600_v48 = vadd.f32 %v2599_v22, %v2541_v17  ;;  %v3921_v16 = vunpack.c.l.b16 %v2365_v39 }
 0x306   :  { %v2304_v37 = vadd.f32 %v2303_v57, %v2245_v9  ;;  %2887 = vmatmul.bf16.gmra.mxu1 %v2781_v12  ;;  %3124 = vmatmul.bf16.gmra.mxu2 %v2781_v12  ;;  %v2642_v38 = vmax.f32 %v2600_v48, 0.0  ;;  %v13776_v12 = vld [vmem:[#allocation23_spill] sm:$0xff] }
 0x307   :  { %3183 = vmatmul.bf16.gmra.mxu3 %v3077_v0  ;;  %v2785_v18 = vsel %vm267_vm0, %v9666_v41, %v13776_v12  ;;  %v3947_v0 = vunpack.c.l.b16 %v2661_v20  ;;  %v9670_v12 = vld [vmem:[%s13677_s0 + $0x388] sm:$0xff] }
 0x308   :  { %v2346_v11 = vmax.f32 %v2304_v37, 0.0  ;;  %3943 = vrot.lane.b32.xlu2 %v3942_v60, %s9686_s19  ;;  %v2662_v3 = vpack.c.bf16 %v2642_v38, %v2642_v38 }
 0x309   :  { %v2543_v53 = vpop.f32.mrf.mxu2 }
 0x30a   :  { %v2366_v2 = vpack.c.bf16 %v2346_v11, %v2346_v11  ;;  %v2602_v63 = vpop.f32.mrf.mxu3  ;;  %v3948_v10 = vunpack.c.l.b16 %v2662_v3  ;;  %v2544_v8 = vadd.f32 %v11345_v23, %v2543_v53 }
 0x30b   :  { %v2247_v7 = vpop.f32.mrf.mxu0  ;;  %v2308_v57 = vpop.f32.mrf.mxu1 }
 0x30c   :  { %v3922_v21 = vunpack.c.l.b16 %v2366_v2  ;;  %v2248_v5 = vadd.f32 %v11345_v23, %v2247_v7  ;;  %v11653_v47 = vpack.c.b16 %v3948_v10, %v3947_v0  ;;  %v11660_v2 = vld [vmem:[%s13679_s2] ss:$0 sm:$0xff] }
 0x30e   :  { %v11632_v32 = vpack.c.b16 %v3922_v21, %v3921_v16  ;;  %2828 = vmatmul.bf16.gmra.mxu0 %v11381_v42  ;;  %v2307_v62 = vadd.f32 %v2306_v13, %v2248_v5  ;;  %v9667_v42 = vld [vmem:[%s13677_s0 + $0x380] sm:$0xff]  ;;  %v9346_v13 = vld [vmem:[%s13680_s3 + $0xa8] sm:$0xff] }
 0x30f   :  { %v3081_v54 = vsel %vm267_vm0, %v9667_v42, %v11196_v14  ;;  %4771 = vmatpush.bf16.msrb.mxu2 %v9346_v13  ;;  %v2603_v14 = vadd.f32 %v2602_v63, %v2544_v8  ;;  %v9354_v16 = vld [vmem:[%s13680_s3 + $0xe8] sm:$0xff] }
 0x310   :  { %3924 = vrot.lane.b32.xlu0 %v11632_v32, %s9685_s21  ;;  %v2347_v34 = vmax.f32 %v2307_v62, 0.0  ;;  %4860 = vmatpush.bf16.msrb.mxu3 %v9354_v16  ;;  %v9338_v5 = vld [vmem:[%s13680_s3 + $0x68] sm:$0xff] }
 0x311   :  { %v2545_v50 = vpop.f32.mrf.mxu2  ;;  %v2643_v11 = vmax.f32 %v2603_v14, 0.0  ;;  %4682 = vmatpush.bf16.msrb.mxu1 %v9338_v5  ;;  %v9353_v5 = vld [vmem:[%s13680_s3 + $0xe0] sm:$0xff] }
 0x312   :  { %v2546_v17 = vadd.f32 %v11345_v23, %v2545_v50  ;;  %v2604_v22 = vpop.f32.mrf.mxu3  ;;  %v2367_v45 = vpack.c.bf16 %v2347_v34, %v2347_v34 }
 0x313   :  { %v2249_v15 = vpop.f32.mrf.mxu0  ;;  %v2311_v9 = vpop.f32.mrf.mxu1  ;;  %v2663_v3 = vpack.c.bf16 %v2643_v11, %v2643_v11 }
 0x314   :  { %v2250_v35 = vadd.f32 %v11345_v23, %v2249_v15  ;;  %v2605_v56 = vadd.f32 %v2604_v22, %v2546_v17  ;;  %v3928_v53 = vunpack.c.l.b16 %v2367_v45  ;;  %v13777_v15 = vld [vmem:[#allocation28_spill] sm:$0xff]  ;;  %4861 = vmatpush.bf16.msrb.mxu3 %v9353_v5 }
 0x316   :  { %v2309_v46 = vadd.f32 %v2308_v57, %v2250_v35  ;;  %2892 = vmatmul.bf16.gmra.mxu1 %v2785_v18  ;;  %3129 = vmatmul.bf16.gmra.mxu2 %v2785_v18  ;;  %v2644_v48 = vmax.f32 %v2605_v56, 0.0  ;;  %v13778_v18 = vld [vmem:[#allocation27_spill] sm:$0xff] }
 0x317   :  { %3188 = vmatmul.bf16.gmra.mxu3 %v3081_v54  ;;  %v3085_v42 = vsel %vm267_vm0, %v9670_v12, %v13778_v18  ;;  %v3954_v54 = vunpack.c.l.b16 %v2663_v3  ;;  %v9337_v3 = vld [vmem:[%s13680_s3 + $0x60] sm:$0xff] }
 0x318   :  { %v2348_v60 = vmax.f32 %v2309_v46, 0.0  ;;  %3950 = vrot.lane.b32.xlu0 %v11653_v47, %s9685_s21  ;;  %v2664_v21 = vpack.c.bf16 %v2644_v48, %v2644_v48  ;;  %4683 = vmatpush.bf16.msrb.mxu1 %v9337_v3 }
 0x319   :  { %v2548_v23 = vpop.f32.mrf.mxu2 }
 0x31a   :  { %v2368_v37 = vpack.c.bf16 %v2348_v60, %v2348_v60  ;;  %v2607_v6 = vpop.f32.mrf.mxu3  ;;  %v3955_v50 = vunpack.c.l.b16 %v2664_v21  ;;  %v2549_v0 = vadd.f32 %v11660_v2, %v2548_v23  ;;  %v9345_v21 = vld [vmem:[%s13680_s3 + $0xa0] sm:$0xff] }
 0x31b   :  { %v2252_v39 = vpop.f32.mrf.mxu0  ;;  %v2313_v7 = vpop.f32.mrf.mxu1  ;;  %4772 = vmatpush.bf16.msrb.mxu2 %v9345_v21 }
 0x31c   :  { %v3929_v38 = vunpack.c.l.b16 %v2368_v37  ;;  %v2253_v63 = vadd.f32 %v11660_v2, %v2252_v39  ;;  %v2608_v46 = vadd.f32 %v2607_v6, %v2549_v0  ;;  %v11690_v39 = vpop.permute.xlu2 %3345 }
 0x31e   :  { %v3930_v57 = vpack.c.b16 %v3929_v38, %v3928_v53  ;;  %2833 = vmatmul.bf16.gmra.mxu0 %v11404_v28  ;;  %v2312_v20 = vadd.f32 %v2311_v9, %v2253_v63  ;;  %v9669_v28 = vld [vmem:[%s13677_s0 + $0x330] sm:$0xff]  ;;  %v3956_v9 = vpack.c.b16 %v3955_v50, %v3954_v54  ;;  %v2645_v53 = vmax.f32 %v2608_v46, 0.0  ;;  %v11727_v46 = vpop.permute.xlu1 %3319 }
 0x31f   :  { %v2789_v41 = vsel %vm267_vm0, %v9669_v28, %v13777_v15  ;;  %v9671_v28 = vld [vmem:[%s13677_s0 + $0x390] sm:$0xff]  ;;  %v13779_v15 = vld [vmem:[#allocation30_spill] sm:$0xff] }
 0x320   :  { %3975 = vrot.lane.b32.xlu2 %v3930_v57, %s9686_s19  ;;  %3931 = vrot.lane.b32.xlu1 %v3930_v57, %s9687_s12  ;;  %v2349_v8 = vmax.f32 %v2312_v20, 0.0  ;;  %v9329_v57 = vld [vmem:[%s13680_s3 + $0x20] sm:$0xff]  ;;  %v2665_v20 = vpack.c.bf16 %v2645_v53, %v2645_v53 }
 0x321   :  { %v2550_v62 = vpop.f32.mrf.mxu2  ;;  %4594 = vmatpush.bf16.msrb.mxu0 %v9329_v57 }
 0x322   :  { %v2551_v10 = vadd.f32 %v11660_v2, %v2550_v62  ;;  %v2609_v17 = vpop.f32.mrf.mxu3  ;;  %v2369_v14 = vpack.c.bf16 %v2349_v8, %v2349_v8  ;;  %v3995_v12 = vunpack.c.l.b16 %v2665_v20 }
 0x323   :  { %v2254_v22 = vpop.f32.mrf.mxu0  ;;  %v2316_v35 = vpop.f32.mrf.mxu1 }
 0x324   :  { %v2255_v34 = vadd.f32 %v11660_v2, %v2254_v22  ;;  %v2610_v13 = vadd.f32 %v2609_v17, %v2551_v10  ;;  %v3979_v38 = vunpack.c.l.b16 %v2369_v14  ;;  %v11718_v8 = vpop.permute.xlu2 %3439 }
 0x326   :  { %v2314_v56 = vadd.f32 %v2313_v7, %v2255_v34  ;;  %2897 = vmatmul.bf16.gmra.mxu1 %v2789_v41  ;;  %3134 = vmatmul.bf16.gmra.mxu2 %v2789_v41  ;;  %v2646_v48 = vmax.f32 %v2610_v13, 0.0  ;;  %v3089_v41 = vsel %vm267_vm0, %v9671_v28, %v13779_v15  ;;  %v9672_v34 = vld [vmem:[%s13677_s0 + $0x338] sm:$0xff] }
 0x327   :  { %3193 = vmatmul.bf16.gmra.mxu3 %v3085_v42 }
 0x328   :  { %v2350_v45 = vmax.f32 %v2314_v56, 0.0  ;;  %3991 = vrot.lane.b32.xlu2 %v3956_v9, %s9686_s19  ;;  %3957 = vrot.lane.b32.xlu1 %v3956_v9, %s9687_s12  ;;  %v2666_v6 = vpack.c.bf16 %v2646_v48, %v2646_v48 }
 0x329   :  { %v2553_v60 = vpop.f32.mrf.mxu2 }
 0x32a   :  { %v2370_v23 = vpack.c.bf16 %v2350_v45, %v2350_v45  ;;  %v2612_v37 = vpop.f32.mrf.mxu3  ;;  %v3996_v50 = vunpack.c.l.b16 %v2666_v6  ;;  %v2554_v18 = vadd.f32 %v11660_v2, %v2553_v60 }
 0x32b   :  { %v2257_v11 = vpop.f32.mrf.mxu0  ;;  %v2318_v7 = vpop.f32.mrf.mxu1 }
 0x32c   :  { %v3980_v63 = vunpack.c.l.b16 %v2370_v23  ;;  %v2258_v36 = vadd.f32 %v11660_v2, %v2257_v11  ;;  %v11725_v9 = vpack.c.b16 %v3996_v50, %v3995_v12  ;;  %v2613_v14 = vadd.f32 %v2612_v37, %v2554_v18  ;;  %v9344_v37 = vld [vmem:[%s13680_s3 + $0x98] sm:$0xff]  ;;  %v11736_v5 = vpop.permute.xlu2 %3371 }
 0x32d   :  { %4773 = vmatpush.bf16.msrb.mxu2 %v9344_v37 }
 0x32e   :  { %v11693_v16 = vpack.c.b16 %v3980_v63, %v3979_v38  ;;  %2838 = vmatmul.bf16.gmra.mxu0 %v11428_v61  ;;  %v2317_v62 = vadd.f32 %v2316_v35, %v2258_v36  ;;  %v2793_v35 = vsel %vm267_vm0, %v9672_v34, %v11206_v19  ;;  %v2647_v38 = vmax.f32 %v2613_v14, 0.0  ;;  %v13780_v34 = vld [vmem:[#allocation29_spill] sm:$0xff] }
 0x330   :  { %3982 = vrot.lane.b32.xlu0 %v11693_v16, %s9685_s21  ;;  %v2351_v42 = vmax.f32 %v2317_v62, 0.0  ;;  %v2667_v3 = vpack.c.bf16 %v2647_v38, %v2647_v38  ;;  %v11740_v62 = vpop.permute.xlu1 %3407 }
 0x331   :  { %v2555_v61 = vpop.f32.mrf.mxu2 }
 0x332   :  { %v2556_v10 = vadd.f32 %v11660_v2, %v2555_v61  ;;  %v2614_v17 = vpop.f32.mrf.mxu3  ;;  %v2371_v45 = vpack.c.bf16 %v2351_v42, %v2351_v42  ;;  %v4002_v15 = vunpack.c.l.b16 %v2667_v3 }
 0x333   :  { %v2259_v22 = vpop.f32.mrf.mxu0  ;;  %v2321_v0 = vpop.f32.mrf.mxu1 }
 0x334   :  { %v2260_v54 = vadd.f32 %v11660_v2, %v2259_v22  ;;  %v2615_v13 = vadd.f32 %v2614_v17, %v2556_v10  ;;  %v3986_v63 = vunpack.c.l.b16 %v2371_v45  ;;  %v9328_v17 = vld [vmem:[%s13680_s3 + $0x18] sm:$0xff] }
 0x335   :  { %v9352_v22 = vld [vmem:[%s13680_s3 + $0xd8] sm:$0xff]  ;;  %4595 = vmatpush.bf16.msrb.mxu0 %v9328_v17 }
 0x336   :  { %v2319_v56 = vadd.f32 %v2318_v7, %v2260_v54  ;;  %2902 = vmatmul.bf16.gmra.mxu1 %v2793_v35  ;;  %3139 = vmatmul.bf16.gmra.mxu2 %v2793_v35  ;;  %v2648_v23 = vmax.f32 %v2615_v13, 0.0  ;;  %v9336_v54 = vld [vmem:[%s13680_s3 + $0x58] sm:$0xff] }
 0x337   :  { %3198 = vmatmul.bf16.gmra.mxu3 %v3089_v41  ;;  %v9674_v13 = vld [vmem:[%s13677_s0 + $0x398] sm:$0xff]  ;;  %4684 = vmatpush.bf16.msrb.mxu1 %v9336_v54 }
 0x338   :  { %v2352_v60 = vmax.f32 %v2319_v56, 0.0  ;;  %3998 = vrot.lane.b32.xlu0 %v11725_v9, %s9685_s21  ;;  %v2668_v21 = vpack.c.bf16 %v2648_v23, %v2648_v23  ;;  %4862 = vmatpush.bf16.msrb.mxu3 %v9352_v22  ;;  %v3093_v56 = vsel %vm267_vm0, %v9674_v13, %v11228_v43  ;;  %v9675_v13 = vld [vmem:[%s13677_s0 + $0x348] sm:$0xff] }
 0x339   :  { %v2558_v48 = vpop.f32.mrf.mxu2 }
 0x33a   :  { %v2372_v11 = vpack.c.bf16 %v2352_v60, %v2352_v60  ;;  %v2617_v53 = vpop.f32.mrf.mxu3  ;;  %v4003_v50 = vunpack.c.l.b16 %v2668_v21  ;;  %v2559_v41 = vadd.f32 %v11660_v2, %v2558_v48 }
 0x33b   :  { %v2262_v19 = vpop.f32.mrf.mxu0  ;;  %v2323_v6 = vpop.f32.mrf.mxu1 }
 0x33c   :  { %v3987_v36 = vunpack.c.l.b16 %v2372_v11  ;;  %v2263_v7 = vadd.f32 %v11660_v2, %v2262_v19  ;;  %v4004_v14 = vpack.c.b16 %v4003_v50, %v4002_v15  ;;  %v2618_v48 = vadd.f32 %v2617_v53, %v2559_v41  ;;  %v11766_v19 = vpop.permute.xlu2 %3462 }
 0x33e   :  { %v3988_v57 = vpack.c.b16 %v3987_v36, %v3986_v63  ;;  %2843 = vmatmul.bf16.gmra.mxu0 %v11452_v4  ;;  %v2322_v20 = vadd.f32 %v2321_v0, %v2263_v7  ;;  %v9673_v0 = vld [vmem:[%s13677_s0 + $0x340] sm:$0xff]  ;;  %v11768_v7 = vpop.permute.xlu1 %3414  ;;  %v2649_v21 = vmax.f32 %v2618_v48, 0.0 }
 0x33f   :  { %v2797_v35 = vsel %vm267_vm0, %v9673_v0, %v13780_v34  ;;  %v9327_v34 = vld [vmem:[%s13680_s3 + $0x10] sm:$0xff] }
 0x340   :  { %4023 = vrot.lane.b32.xlu2 %v3988_v57, %s9686_s19  ;;  %3989 = vrot.lane.b32.xlu1 %v3988_v57, %s9687_s12  ;;  %v2353_v12 = vmax.f32 %v2322_v20, 0.0  ;;  %v2669_v50 = vpack.c.bf16 %v2649_v21, %v2649_v21 }
 0x341   :  { %v2560_v61 = vpop.f32.mrf.mxu2  ;;  %4596 = vmatpush.bf16.msrb.mxu0 %v9327_v34 }
 0x342   :  { %v2561_v10 = vadd.f32 %v11660_v2, %v2560_v61  ;;  %v2619_v4 = vpop.f32.mrf.mxu3  ;;  %v2373_v23 = vpack.c.bf16 %v2353_v12, %v2353_v12  ;;  %v4043_v12 = vunpack.c.l.b16 %v2669_v50 }
 0x343   :  { %v2264_v28 = vpop.f32.mrf.mxu0  ;;  %v2326_v42 = vpop.f32.mrf.mxu1 }
 0x344   :  { %v2265_v18 = vadd.f32 %v11660_v2, %v2264_v28  ;;  %v2620_v45 = vadd.f32 %v2619_v4, %v2561_v10  ;;  %v4027_v57 = vunpack.c.l.b16 %v2373_v23  ;;  %v11777_v15 = vpop.permute.xlu2 %3453  ;;  %v9351_v23 = vld [vmem:[%s13680_s3 + $0xd0] sm:$0xff] }
 0x345   :  { %4863 = vmatpush.bf16.msrb.mxu3 %v9351_v23 }
 0x346   :  { %v2324_v60 = vadd.f32 %v2323_v6, %v2265_v18  ;;  %2907 = vmatmul.bf16.gmra.mxu1 %v2797_v35  ;;  %3144 = vmatmul.bf16.gmra.mxu2 %v2797_v35  ;;  %v2650_v63 = vmax.f32 %v2620_v45, 0.0  ;;  %v11787_v35 = vpop.permute.xlu1 %3423  ;;  %v9676_v45 = vld [vmem:[%s13677_s0 + $0x3a0] sm:$0xff] }
 0x347   :  { %3203 = vmatmul.bf16.gmra.mxu3 %v3093_v56  ;;  %v13782_v56 = vld [vmem:[#allocation4_spill] sm:$0xff] }
 0x348   :  { %v2354_v11 = vmax.f32 %v2324_v60, 0.0  ;;  %4039 = vrot.lane.b32.xlu2 %v4004_v14, %s9686_s19  ;;  %4005 = vrot.lane.b32.xlu1 %v4004_v14, %s9687_s12  ;;  %v2670_v20 = vpack.c.bf16 %v2650_v63, %v2650_v63  ;;  %v2801_v14 = vsel %vm267_vm0, %v9675_v13, %v13782_v56  ;;  %v13783_v60 = vld [vmem:[#allocation31_spill] sm:$0xff] }
 0x349   :  { %v2563_v38 = vpop.f32.mrf.mxu2  ;;  %v3097_v48 = vsel %vm267_vm0, %v9676_v45, %v13783_v60 }
 0x34a   :  { %v2374_v36 = vpack.c.bf16 %v2354_v11, %v2354_v11  ;;  %v2622_v43 = vpop.f32.mrf.mxu3  ;;  %v4044_v17 = vunpack.c.l.b16 %v2670_v20  ;;  %v2564_v18 = vadd.f32 %v11660_v2, %v2563_v38  ;;  %v9335_v11 = vld [vmem:[%s13680_s3 + $0x50] sm:$0xff] }
 0x34b   :  { %v2267_v6 = vpop.f32.mrf.mxu0  ;;  %v2328_v3 = vpop.f32.mrf.mxu1  ;;  %4685 = vmatpush.bf16.msrb.mxu1 %v9335_v11  ;;  %v9677_v11 = vld [vmem:[%s13677_s0 + $0x350] sm:$0xff] }
 0x34c   :  { %v4028_v37 = vunpack.c.l.b16 %v2374_v36  ;;  %v2268_v53 = vadd.f32 %v11660_v2, %v2267_v6  ;;  %v11805_v38 = vpack.c.b16 %v4044_v17, %v4043_v12  ;;  %v2623_v6 = vadd.f32 %v2622_v43, %v2564_v18  ;;  %v11810_v43 = vpop.permute.xlu2 %3535 }
 0x34e   :  { %v11771_v61 = vpack.c.b16 %v4028_v37, %v4027_v57  ;;  %2848 = vmatmul.bf16.gmra.mxu0 %v11476_v29  ;;  %v2327_v10 = vadd.f32 %v2326_v42, %v2268_v53  ;;  %v9343_v42 = vld [vmem:[%s13680_s3 + $0x90] sm:$0xff]  ;;  %13784 = vst [vmem:[#allocation10_spill] sm:$0xff] %v11805_v38  ;;  %v11813_v18 = vpop.permute.xlu1 %3437 }
 0x34f   :  { %4774 = vmatpush.bf16.msrb.mxu2 %v9343_v42 }
 0x350   :  { %13781 = vst [vmem:[#allocation20_spill] sm:$0xff] %v11771_v61  ;;  %4030 = vrot.lane.b32.xlu0 %v11771_v61, %s9685_s21  ;;  %v2355_v54 = vmax.f32 %v2327_v10, 0.0 }
 0x351   :  { %v2565_v4 = vpop.f32.mrf.mxu2 }
 0x352   :  { %v2566_v22 = vadd.f32 %v11660_v2, %v2565_v4  ;;  %v2624_v28 = vpop.f32.mrf.mxu3  ;;  %v2375_v21 = vpack.c.bf16 %v2355_v54, %v2355_v54  ;;  %v2651_v4 = vmax.f32 %v2623_v6, 0.0  ;;  %v9678_v6 = vld [vmem:[%s13677_s0 + $0x3a8] sm:$0xff] }
 0x353   :  { %v2269_v41 = vpop.f32.mrf.mxu0  ;;  %v2331_v29 = vpop.f32.mrf.mxu1 }
 0x354   :  { %v2270_v0 = vadd.f32 %v11660_v2, %v2269_v41  ;;  %v2625_v63 = vadd.f32 %v2624_v28, %v2566_v22  ;;  %v2671_v54 = vpack.c.bf16 %v2651_v4, %v2651_v4 }
 0x356   :  { %v2329_v36 = vadd.f32 %v2328_v3, %v2270_v0  ;;  %2912 = vmatmul.bf16.gmra.mxu1 %v2801_v14  ;;  %3149 = vmatmul.bf16.gmra.mxu2 %v2801_v14  ;;  %v2652_v53 = vmax.f32 %v2625_v63, 0.0  ;;  %v4034_v3 = vunpack.c.l.b16 %v2375_v21  ;;  %v4050_v45 = vunpack.c.l.b16 %v2671_v54  ;;  %v13785_v63 = vld [vmem:[#allocation15_spill] sm:$0xff] }
 0x357   :  { %3208 = vmatmul.bf16.gmra.mxu3 %v3097_v48  ;;  %v13786_v21 = vld [vmem:[#allocation3_spill] sm:$0xff] }
 0x358   :  { %v2356_v57 = vmax.f32 %v2329_v36, 0.0  ;;  %4046 = vrot.lane.b32.xlu0 %v11805_v38, %s9685_s21  ;;  %v2672_v41 = vpack.c.bf16 %v2652_v53, %v2652_v53  ;;  %v2805_v36 = vsel %vm267_vm0, %v9677_v11, %v13785_v63 }
 0x359   :  { %v2568_v37 = vpop.f32.mrf.mxu2 }
 0x35a   :  { %v2376_v20 = vpack.c.bf16 %v2356_v57, %v2356_v57  ;;  %v2627_v50 = vpop.f32.mrf.mxu3  ;;  %v4051_v34 = vunpack.c.l.b16 %v2672_v41  ;;  %v2569_v60 = vadd.f32 %v11660_v2, %v2568_v37  ;;  %v3101_v57 = vsel %vm267_vm0, %v9678_v6, %v13786_v21 }
 0x35b   :  { %v2272_v10 = vpop.f32.mrf.mxu0  ;;  %v2333_v28 = vpop.f32.mrf.mxu1 }
 0x35c   :  { %v4035_v17 = vunpack.c.l.b16 %v2376_v20  ;;  %v2273_v22 = vadd.f32 %v11660_v2, %v2272_v10  ;;  %v4052_v37 = vpack.c.b16 %v4051_v34, %v4050_v45  ;;  %v11833_v10 = vpop.permute.xlu2 %3469  ;;  %v2628_v4 = vadd.f32 %v2627_v50, %v2569_v60  ;;  %v9326_v50 = vld [vmem:[%s13680_s3 + $0x8] sm:$0xff] }
 0x35d   :  { %v9350_v45 = vld [vmem:[%s13680_s3 + $0xc8] sm:$0xff]  ;;  %4597 = vmatpush.bf16.msrb.mxu0 %v9326_v50 }
 0x35e   :  { %v4036_v12 = vpack.c.b16 %v4035_v17, %v4034_v3  ;;  %2853 = vmatmul.bf16.gmra.mxu0 %v11500_v49  ;;  %v2332_v0 = vadd.f32 %v2331_v29, %v2273_v22  ;;  %v9342_v29 = vld [vmem:[%s13680_s3 + $0x88] sm:$0xff]  ;;  %v11837_v22 = vpop.permute.xlu1 %3503  ;;  %4864 = vmatpush.bf16.msrb.mxu3 %v9350_v45 }
 0x35f   :  { %4775 = vmatpush.bf16.msrb.mxu2 %v9342_v29  ;;  %v9334_v60 = vld [vmem:[%s13680_s3 + $0x48] sm:$0xff] }
 0x360   :  { %4071 = vrot.lane.b32.xlu2 %v4036_v12, %s9686_s19  ;;  %4037 = vrot.lane.b32.xlu1 %v4036_v12, %s9687_s12  ;;  %v2357_v48 = vmax.f32 %v2332_v0, 0.0 }
 0x361   :  { %v2570_v42 = vpop.f32.mrf.mxu2  ;;  %4686 = vmatpush.bf16.msrb.mxu1 %v9334_v60 }
 0x362   :  { %v2571_v13 = vadd.f32 %v11660_v2, %v2570_v42  ;;  %v2629_v56 = vpop.f32.mrf.mxu3  ;;  %v2377_v3 = vpack.c.bf16 %v2357_v48, %v2357_v48  ;;  %v2653_v42 = vmax.f32 %v2628_v4, 0.0 }
 0x363   :  { %v2274_v14 = vpop.f32.mrf.mxu0  ;;  %v2336_v23 = vpop.f32.mrf.mxu1 }
 0x364   :  { %v2275_v49 = vadd.f32 %v11660_v2, %v2274_v14  ;;  %v2630_v53 = vadd.f32 %v2629_v56, %v2571_v13  ;;  %v4075_v34 = vunpack.c.l.b16 %v2377_v3  ;;  %v2673_v29 = vpack.c.bf16 %v2653_v42, %v2653_v42  ;;  %v11851_v63 = vpop.permute.xlu2 %3558  ;;  %v11866_v3 = vpop.permute.xlu0 %3338  ;;  %v9679_v42 = vld [vmem:[%s13677_s0 + $0x358] sm:$0xff] }
 0x366   :  { %v2334_v20 = vadd.f32 %v2333_v28, %v2275_v49  ;;  %2917 = vmatmul.bf16.gmra.mxu1 %v2805_v36  ;;  %3154 = vmatmul.bf16.gmra.mxu2 %v2805_v36  ;;  %v2654_v12 = vmax.f32 %v2630_v53, 0.0  ;;  %v11863_v53 = vpop.permute.xlu1 %3510 }
 0x367   :  { %3213 = vmatmul.bf16.gmra.mxu3 %v3101_v57 }
 0x368   :  { %v2358_v17 = vmax.f32 %v2334_v20, 0.0  ;;  %4087 = vrot.lane.b32.xlu2 %v4052_v37, %s9686_s19  ;;  %4053 = vrot.lane.b32.xlu1 %v4052_v37, %s9687_s12  ;;  %v2674_v48 = vpack.c.bf16 %v2654_v12, %v2654_v12  ;;  %v9333_v37 = vld [vmem:[%s13680_s3 + $0x40] sm:$0xff] }
 0x369   :  { %v2573_v41 = vpop.f32.mrf.mxu2  ;;  %4687 = vmatpush.bf16.msrb.mxu1 %v9333_v37 }
 0x36a   :  { %v2378_v54 = vpack.c.bf16 %v2358_v17, %v2358_v17  ;;  %v2632_v0 = vpop.f32.mrf.mxu3  ;;  %v4092_v6 = vunpack.c.l.b16 %v2674_v48  ;;  %v2574_v20 = vadd.f32 %v11660_v2, %v2573_v41  ;;  %v4091_v17 = vunpack.c.l.b16 %v2673_v29  ;;  %v9680_v41 = vld [vmem:[%s13677_s0 + $0x3b0] sm:$0xff] }
 0x36b   :  { %v2277_v28 = vpop.f32.mrf.mxu0  ;;  %v2338_v14 = vpop.f32.mrf.mxu1 }
 0x36c   :  { %v4076_v13 = vunpack.c.l.b16 %v2378_v54  ;;  %v2278_v56 = vadd.f32 %v11660_v2, %v2277_v28  ;;  %v4093_v45 = vpack.c.b16 %v4092_v6, %v4091_v17  ;;  %v9325_v6 = vld [vmem:[%s13680_s3] sm:$0xff] }
 0x36d   :  { %4598 = vmatpush.bf16.msrb.mxu0 %v9325_v6 }
 0x36e   :  { %v4077_v49 = vpack.c.b16 %v4076_v13, %v4075_v34  ;;  %2858 = vmatmul.bf16.gmra.mxu0 %v11524_v44  ;;  %v2337_v11 = vadd.f32 %v2336_v23, %v2278_v56  ;;  %v9341_v44 = vld [vmem:[%s13680_s3 + $0x80] sm:$0xff]  ;;  %v13787_v34 = vld [vmem:[#allocation32_spill] sm:$0xff] }
 0x36f   :  { %v9349_v23 = vld [vmem:[%s13680_s3 + $0xc0] sm:$0xff]  ;;  %4776 = vmatpush.bf16.msrb.mxu2 %v9341_v44  ;;  %v2809_v13 = vsel %vm267_vm0, %v9679_v42, %v13787_v34  ;;  %v11889_v34 = vpop.permute.xlu1 %3519 }
 0x370   :  { %4078 = vrot.lane.b32.xlu0 %v4077_v49, %s9685_s21  ;;  %v2359_v12 = vmax.f32 %v2337_v11, 0.0  ;;  %v13788_v56 = vld [vmem:[#allocation38_spill] sm:$0xff]  ;;  %4865 = vmatpush.bf16.msrb.mxu3 %v9349_v23  ;;  %v2633_v49 = vadd.f32 %v2632_v0, %v2574_v20  ;;  %v11886_v0 = vpop.permute.xlu0 %3455 }
 0x371   :  { %v2575_v36 = vpop.f32.mrf.mxu2  ;;  %v3105_v50 = vsel %vm267_vm0, %v9680_v41, %v13788_v56 }
 0x372   :  { %v2576_v21 = vadd.f32 %v11660_v2, %v2575_v36  ;;  %v2634_v57 = vpop.f32.mrf.mxu3  ;;  %v2379_v29 = vpack.c.bf16 %v2359_v12, %v2359_v12 }
 0x373   :  { %v2279_v4 = vpop.f32.mrf.mxu0  ;;  %v2883_v28 = vpop.f32.mrf.mxu1 }
 0x374   :  { %v2280_v54 = vadd.f32 %v11660_v2, %v2279_v4  ;;  %v2635_v60 = vadd.f32 %v2634_v57, %v2576_v21  ;;  %v11884_v21 = vpop.permute.xlu2 %3549  ;;  %v4082_v23 = vunpack.c.l.b16 %v2379_v29 }
 0x376   :  { %v2339_v48 = vadd.f32 %v2338_v14, %v2280_v54  ;;  %2922 = vmatmul.bf16.gmra.mxu1 %v2809_v13  ;;  %3159 = vmatmul.bf16.gmra.mxu2 %v2809_v13  ;;  %v2656_v37 = vmax.f32 %v2635_v60, 0.0  ;;  %v2655_v14 = vmax.f32 %v2633_v49, 0.0 }
 0x377   :  { %3218 = vmatmul.bf16.gmra.mxu3 %v3105_v50 }
 0x378   :  { %v2360_v11 = vmax.f32 %v2339_v48, 0.0  ;;  %4094 = vrot.lane.b32.xlu0 %v4093_v45, %s9685_s21  ;;  %v2676_v13 = vpack.c.bf16 %v2656_v37, %v2656_v37  ;;  %v2675_v50 = vpack.c.bf16 %v2655_v14, %v2655_v14  ;;  %v13789_v14 = vld [vmem:[#allocation6_spill] sm:$0xff] }
 0x379   :  { %v3120_v36 = vpop.f32.mrf.mxu2 }
 0x37a   :  { %v2380_v44 = vpack.c.bf16 %v2360_v11, %v2360_v11  ;;  %v3121_v4 = vadd.f32 %v11660_v2, %v3120_v36  ;;  %v3179_v42 = vpop.f32.mrf.mxu3  ;;  %v4099_v60 = vunpack.c.l.b16 %v2676_v13  ;;  %v11894_v36 = vpop.permute.xlu0 %3446 }
 0x37b   :  { %v2824_v57 = vpop.f32.mrf.mxu0  ;;  %v2885_v54 = vpop.f32.mrf.mxu1 }
 0x37c   :  { %v4083_v20 = vunpack.c.l.b16 %v2380_v44  ;;  %v3180_v17 = vadd.f32 %v3179_v42, %v3121_v4  ;;  %v2825_v12 = vadd.f32 %v11660_v2, %v2824_v57  ;;  %v4098_v44 = vunpack.c.l.b16 %v2675_v50  ;;  %v11897_v6 = vpop.permute.xlu2 %3631  ;;  %v11909_v50 = vpop.permute.xlu1 %3533 }
 0x37e   :  { %v4084_v41 = vpack.c.b16 %v4083_v20, %v4082_v23  ;;  %v2884_v56 = vadd.f32 %v2883_v28, %v2825_v12  ;;  %2863 = vmatmul.bf16.gmra.mxu0 %v11547_v26  ;;  %v3229_v48 = vmax.f32 %v3180_v17, 0.0  ;;  %v9681_v26 = vld [vmem:[%s13677_s0 + $0x360] sm:$0xff]  ;;  %v9682_v23 = vld [vmem:[%s13677_s0 + $0x3b8] sm:$0xff]  ;;  %v4100_v12 = vpack.c.b16 %v4099_v60, %v4098_v44 }
 0x37f   :  { %v2813_v57 = vsel %vm267_vm0, %v9681_v26, %v13789_v14  ;;  %v13790_v20 = vld [vmem:[#allocation2_spill] sm:$0xff] }
 0x380   :  { %4085 = vrot.lane.b32.xlu1 %v4084_v41, %s9687_s12  ;;  %v2933_v4 = vmax.f32 %v2884_v56, 0.0  ;;  %v3109_v17 = vsel %vm267_vm0, %v9682_v23, %v13790_v20  ;;  %v3249_v13 = vpack.c.bf16 %v3229_v48, %v3229_v48 }
 0x381   :  { %v3122_v45 = vpop.f32.mrf.mxu2 }
 0x382   :  { %v3123_v49 = vadd.f32 %v11660_v2, %v3122_v45  ;;  %v3181_v29 = vpop.f32.mrf.mxu3  ;;  %v2953_v45 = vpack.c.bf16 %v2933_v4, %v2933_v4  ;;  %v4147_v26 = vunpack.c.l.b16 %v3249_v13  ;;  %v11912_v60 = vpop.permute.xlu0 %3551 }
 0x383   :  { %v2826_v11 = vpop.f32.mrf.mxu0  ;;  %v2888_v28 = vpop.f32.mrf.mxu1 }
 0x384   :  { %v3182_v42 = vadd.f32 %v3181_v29, %v3123_v49  ;;  %v2827_v37 = vadd.f32 %v11660_v2, %v2826_v11  ;;  %v4121_v48 = vunpack.c.l.b16 %v2953_v45 }
 0x386   :  { %v3230_v41 = vmax.f32 %v3182_v42, 0.0  ;;  %v2886_v56 = vadd.f32 %v2885_v54, %v2827_v37  ;;  %2927 = vmatmul.bf16.gmra.mxu1 %v2813_v57  ;;  %3164 = vmatmul.bf16.gmra.mxu2 %v2813_v57  ;;  %v11920_v57 = vpop.permute.xlu2 %3565 }
 0x387   :  { %3223 = vmatmul.bf16.gmra.mxu3 %v3109_v17  ;;  %v11922_v17 = vpop.permute.xlu1 %3599 }
 0x388   :  { %v3250_v49 = vpack.c.bf16 %v3230_v41, %v3230_v41  ;;  %v2934_v29 = vmax.f32 %v2886_v56, 0.0  ;;  %4101 = vrot.lane.b32.xlu1 %v4100_v12, %s9687_s12  ;;  %v13793_v12 = vld [vmem:[#allocation5_spill] sm:$0xff] }
 0x389   :  { %v3125_v11 = vpop.f32.mrf.mxu2  ;;  %v3393_v13 = vsel %vm3373_vm1, %v13793_v12, %v11290_v25 }
 0x38a   :  { %v4148_v14 = vunpack.c.l.b16 %v3250_v49  ;;  %v2954_v38 = vpack.c.bf16 %v2934_v29, %v2934_v29  ;;  %v3184_v61 = vpop.f32.mrf.mxu3  ;;  %v3126_v29 = vadd.f32 %v11660_v2, %v3125_v11 }
 0x38b   :  { %v2829_v23 = vpop.f32.mrf.mxu0  ;;  %v2890_v42 = vpop.f32.mrf.mxu1 }
 0x38c   :  { %v11914_v54 = vpack.c.b16 %v4148_v14, %v4147_v26  ;;  %v4122_v44 = vunpack.c.l.b16 %v2954_v38  ;;  %v2830_v37 = vadd.f32 %v11660_v2, %v2829_v23  ;;  %v3395_v38 = vsel %vm267_vm0, %v3393_v13, %v11866_v3  ;;  %v13794_v23 = vld [vmem:[#allocation7_spill] sm:$0xff] }
 0x38d   :  { %v3389_v25 = vsel %vm3379_vm2, %v13794_v23, %v11727_v46  ;;  %v11944_v3 = vsel %vm3379_vm2, %v11300_v40, %v11736_v5  ;;  %v3185_v11 = vadd.f32 %v3184_v61, %v3126_v29 }
 0x38e   :  { %13791 = vst [vmem:[#allocation22_spill] sm:$0xff] %v11914_v54  ;;  %2868 = vmatmul.bf16.gmra.mxu0 %v11566_v51  ;;  %v11918_v4 = vpack.c.b16 %v4122_v44, %v4121_v48  ;;  %v2889_v20 = vadd.f32 %v2888_v28, %v2830_v37  ;;  %v11930_v51 = vpop.permute.xlu0 %3542  ;;  %v11939_v48 = vsel %vm3379_vm2, %v3395_v38, %v11690_v39  ;;  %v11948_v46 = vpop.permute.xlu2 %3654 }
 0x390   :  { %13792 = vst [vmem:[#allocation21_spill] sm:$0xff] %v11918_v4  ;;  %v2935_v26 = vmax.f32 %v2889_v20, 0.0 }
 0x391   :  { %v3127_v41 = vpop.f32.mrf.mxu2 }
 0x392   :  { %v3128_v56 = vadd.f32 %v11660_v2, %v3127_v41  ;;  %v3186_v45 = vpop.f32.mrf.mxu3  ;;  %v2955_v20 = vpack.c.bf16 %v2935_v26, %v2935_v26  ;;  %v13795_v26 = vld [vmem:[#allocation33_spill] sm:$0xff] }
 0x393   :  { %v2831_v49 = vpop.f32.mrf.mxu0  ;;  %v2893_v14 = vpop.f32.mrf.mxu1 }
 0x394   :  { %v2832_v28 = vadd.f32 %v11660_v2, %v2831_v49  ;;  %v3187_v44 = vadd.f32 %v3186_v45, %v3128_v56  ;;  %v11950_v49 = vpop.permute.xlu1 %3606  ;;  %v4126_v56 = vunpack.c.l.b16 %v2955_v20 }
 0x396   :  { %v2891_v37 = vadd.f32 %v2890_v42, %v2832_v28  ;;  %4688 = vmatmul.bf16.vlgmr.msrb.gmra.mxu1 %v3389_v25  ;;  %4777 = vmatmul.bf16.vlgmr.msrb.gmra.mxu2 %v11939_v48  ;;  %v3232_v39 = vmax.f32 %v3187_v44, 0.0  ;;  %v11952_v5 = vpop.permute.xlu0 %3647  ;;  %v3231_v42 = vmax.f32 %v3185_v11, 0.0  ;;  %v13796_v25 = vld [vmem:[#allocation16_spill] sm:$0xff] }
 0x397   :  { %4866 = vmatmul.bf16.vlgmr.msrb.gmra.mxu3 %v11944_v3  ;;  %v3481_v44 = vsel %vm3373_vm1, %v13796_v25, %v11787_v35  ;;  %v13798_v11 = vld [vmem:[#allocation8_spill] sm:$0xff] }
 0x398   :  { %v2936_v12 = vmax.f32 %v2891_v37, 0.0  ;;  %v3252_v61 = vpack.c.bf16 %v3232_v39, %v3232_v39  ;;  %v13797_v37 = vld [vmem:[#allocation9_spill] sm:$0xff]  ;;  %v3251_v54 = vpack.c.bf16 %v3231_v42, %v3231_v42  ;;  %v3489_v20 = vsel %vm3373_vm1, %v13798_v11, %v11718_v8 }
 0x399   :  { %v3130_v13 = vpop.f32.mrf.mxu2  ;;  %v13799_v42 = vld [vmem:[#allocation13_spill] sm:$0xff] }
 0x39a   :  { %v2956_v41 = vpack.c.bf16 %v2936_v12, %v2936_v12  ;;  %v3189_v38 = vpop.f32.mrf.mxu3  ;;  %v3497_v12 = vsel %vm3373_vm1, %v13797_v37, %v11886_v0  ;;  %v11971_v0 = vpop.permute.xlu2 %3645  ;;  %v4152_v8 = vunpack.c.l.b16 %v3251_v54 }
 0x39b   :  { %v2834_v40 = vpop.f32.mrf.mxu0  ;;  %v2895_v23 = vpop.f32.mrf.mxu1 }
 0x39c   :  { %v4127_v45 = vunpack.c.l.b16 %v2956_v41  ;;  %v2835_v28 = vadd.f32 %v11660_v2, %v2834_v40  ;;  %v3491_v41 = vsel %vm267_vm0, %v3489_v20, %v11894_v36  ;;  %v4153_v40 = vunpack.c.l.b16 %v3252_v61  ;;  %v11979_v37 = vpop.permute.xlu1 %3615 }
 0x39e   :  { %v4128_v29 = vpack.c.b16 %v4127_v45, %v4126_v56  ;;  %4599 = vmatmul.bf16.vlgmr.msrb.gmra.mxu0 %v13795_v26  ;;  %v2894_v4 = vadd.f32 %v2893_v14, %v2835_v28  ;;  %v3499_v45 = vsel %vm267_vm0, %v3497_v12, %v11766_v19  ;;  %v3483_v28 = vsel %vm267_vm0, %v3481_v44, %v13799_v42 }
 0x39f   :  { %v3131_v26 = vadd.f32 %v11660_v2, %v3130_v13  ;;  %v3485_v19 = vsel %vm3379_vm2, %v3483_v28, %v11813_v18  ;;  %v11985_v12 = vsel %vm3379_vm2, %v3491_v41, %v11777_v15  ;;  %v11989_v44 = vsel %vm3379_vm2, %v3499_v45, %v11833_v10  ;;  %v13800_v10 = vld [vmem:[#allocation17_spill] sm:$0xff] }
 0x3a0   :  { %4129 = vrot.lane.b32.xlu2 %v4128_v29, %s9686_s19  ;;  %v11975_v29 = vpop.permute.xlu0 %3638  ;;  %v2937_v25 = vmax.f32 %v2894_v4, 0.0  ;;  %v4154_v54 = vpack.c.b16 %v4153_v40, %v4152_v8  ;;  %v3473_v40 = vsel %vm3373_vm1, %v13800_v10, %v11740_v62 }
 0x3a1   :  { %v3132_v39 = vpop.f32.mrf.mxu2  ;;  %v3190_v4 = vadd.f32 %v3189_v38, %v3131_v26  ;;  %v13801_v26 = vld [vmem:[#allocation35_spill] sm:$0xff] }
 0x3a2   :  { %v3133_v56 = vadd.f32 %v11660_v2, %v3132_v39  ;;  %v3191_v35 = vpop.f32.mrf.mxu3  ;;  %v2957_v20 = vpack.c.bf16 %v2937_v25, %v2937_v25  ;;  %v11999_v28 = vpop.permute.xlu2 %3661 }
 0x3a3   :  { %v2836_v14 = vpop.f32.mrf.mxu0  ;;  %v2898_v61 = vpop.f32.mrf.mxu1 }
 0x3a4   :  { %v2837_v36 = vadd.f32 %v11660_v2, %v2836_v14  ;;  %v3192_v11 = vadd.f32 %v3191_v35, %v3133_v56  ;;  %v3233_v35 = vmax.f32 %v3190_v4, 0.0  ;;  %v4133_v45 = vunpack.c.l.b16 %v2957_v20  ;;  %v12008_v62 = vpop.permute.xlu1 %3629 }
 0x3a6   :  { %v2896_v13 = vadd.f32 %v2895_v23, %v2837_v36  ;;  %4693 = vmatmul.bf16.gmra.mxu1 %v3485_v19  ;;  %4782 = vmatmul.bf16.gmra.mxu2 %v11985_v12  ;;  %v3234_v15 = vmax.f32 %v3192_v11, 0.0  ;;  %v3475_v23 = vsel %vm267_vm0, %v3473_v40, %v11768_v7  ;;  %v13802_v7 = vld [vmem:[#allocation18_spill] sm:$0xff]  ;;  %v3253_v20 = vpack.c.bf16 %v3233_v35, %v3233_v35 }
 0x3a7   :  { %4871 = vmatmul.bf16.gmra.mxu3 %v11989_v44  ;;  %v3477_v25 = vsel %vm3379_vm2, %v3475_v23, %v13801_v26  ;;  %v3577_v11 = vsel %vm3373_vm1, %v13802_v7, %v11889_v34 }
 0x3a8   :  { %v2938_v39 = vmax.f32 %v2896_v13, 0.0  ;;  %4155 = vrot.lane.b32.xlu2 %v4154_v54, %s9686_s19  ;;  %v12004_v36 = vpop.permute.xlu0 %3622  ;;  %v3254_v19 = vpack.c.bf16 %v3234_v15, %v3234_v15  ;;  %v13803_v13 = vld [vmem:[#allocation11_spill] sm:$0xff]  ;;  %v13804_v15 = vld [vmem:[#allocation12_spill] sm:$0xff] }
 0x3a9   :  { %v3135_v18 = vpop.f32.mrf.mxu2  ;;  %v3593_v4 = vsel %vm3373_vm1, %v13803_v13, %v11912_v60 }
 0x3aa   :  { %v2958_v41 = vpack.c.bf16 %v2938_v39, %v2938_v39  ;;  %v3194_v14 = vpop.f32.mrf.mxu3  ;;  %v3595_v60 = vsel %vm267_vm0, %v3593_v4, %v11851_v63  ;;  %v12030_v7 = vpop.permute.xlu2 %3705 }
 0x3ab   :  { %v2839_v56 = vpop.f32.mrf.mxu0  ;;  %v2900_v38 = vpop.f32.mrf.mxu1  ;;  %v12040_v63 = vsel %vm3379_vm2, %v3595_v60, %v11920_v57 }
 0x3ac   :  { %v4134_v42 = vunpack.c.l.b16 %v2958_v41  ;;  %v2840_v8 = vadd.f32 %v11660_v2, %v2839_v56  ;;  %v3585_v41 = vsel %vm3373_vm1, %v13804_v15, %v11810_v43  ;;  %v4160_v56 = vunpack.c.l.b16 %v3254_v19  ;;  %v13806_v15 = vld [vmem:[#allocation19_spill] sm:$0xff] }
 0x3ad   :  { %v3587_v40 = vsel %vm267_vm0, %v3585_v41, %v11930_v51  ;;  %v3569_v41 = vsel %vm3373_vm1, %v13806_v15, %v11837_v22 }
 0x3ae   :  { %v12006_v54 = vpack.c.b16 %v4134_v42, %v4133_v45  ;;  %4604 = vmatmul.bf16.gmra.mxu0 %v3477_v25  ;;  %v2899_v39 = vadd.f32 %v2898_v61, %v2840_v8  ;;  %v13805_v61 = vld [vmem:[#allocation37_spill] sm:$0xff]  ;;  %v4159_v42 = vunpack.c.l.b16 %v3253_v20  ;;  %v3136_v8 = vadd.f32 %v11660_v2, %v3135_v18  ;;  %v12047_v20 = vpop.permute.xlu1 %3719 }
 0x3af   :  { %v3579_v45 = vsel %vm267_vm0, %v3577_v11, %v13805_v61  ;;  %v12036_v19 = vsel %vm3379_vm2, %v3587_v40, %v11884_v21 }
 0x3b0   :  { %4136 = vrot.lane.b32.xlu0 %v12006_v54, %s9685_s21  ;;  %v2939_v26 = vmax.f32 %v2899_v39, 0.0  ;;  %v3581_v51 = vsel %vm3379_vm2, %v3579_v45, %v11909_v50  ;;  %v12042_v11 = vpop.permute.xlu0 %3712  ;;  %v12044_v18 = vpack.c.b16 %v4160_v56, %v4159_v42  ;;  %v3195_v50 = vadd.f32 %v3194_v14, %v3136_v8  ;;  %v13807_v45 = vld [vmem:[#allocation39_spill] sm:$0xff] }
 0x3b1   :  { %v3137_v10 = vpop.f32.mrf.mxu2  ;;  %v3571_v56 = vsel %vm267_vm0, %v3569_v41, %v11863_v53 }
 0x3b2   :  { %v3138_v34 = vadd.f32 %v11660_v2, %v3137_v10  ;;  %v3196_v23 = vpop.f32.mrf.mxu3  ;;  %v2959_v21 = vpack.c.bf16 %v2939_v26, %v2939_v26  ;;  %v3573_v42 = vsel %vm3379_vm2, %v3571_v56, %v13807_v45  ;;  %v12060_v22 = vpop.permute.xlu2 %3731 }
 0x3b3   :  { %v2841_v35 = vpop.f32.mrf.mxu0  ;;  %v2903_v25 = vpop.f32.mrf.mxu1 }
 0x3b4   :  { %v2842_v43 = vadd.f32 %v11660_v2, %v2841_v35  ;;  %v3197_v13 = vadd.f32 %v3196_v23, %v3138_v34  ;;  %v3235_v23 = vmax.f32 %v3195_v50, 0.0  ;;  %v4140_v60 = vunpack.c.l.b16 %v2959_v21  ;;  %v13810_v21 = vld [vmem:[#allocation34_spill] sm:$0xff] }
 0x3b6   :  { %v2901_v4 = vadd.f32 %v2900_v38, %v2842_v43  ;;  %4698 = vmatmul.bf16.gmra.mxu1 %v3581_v51  ;;  %4787 = vmatmul.bf16.gmra.mxu2 %v12036_v19  ;;  %v3236_v10 = vmax.f32 %v3197_v13, 0.0  ;;  %v13808_v43 = vld [vmem:[#allocation36_spill] sm:$0xff]  ;;  %v3255_v13 = vpack.c.bf16 %v3235_v23, %v3235_v23  ;;  %v12075_v15 = vpop.permute.xlu1 %3745 }
 0x3b7   :  { %4876 = vmatmul.bf16.gmra.mxu3 %v12040_v63  ;;  %v3689_v51 = vsel %vm3373_vm1, %v13808_v43, %v11952_v5 }
 0x3b8   :  { %v2940_v39 = vmax.f32 %v2901_v4, 0.0  ;;  %4162 = vrot.lane.b32.xlu0 %v12044_v18, %s9685_s21  ;;  %v3256_v8 = vpack.c.bf16 %v3236_v10, %v3236_v10  ;;  %v12065_v53 = vpop.permute.xlu0 %3738  ;;  %v4166_v23 = vunpack.c.l.b16 %v3255_v13 }
 0x3b9   :  { %v3140_v57 = vpop.f32.mrf.mxu2 }
 0x3ba   :  { %v2960_v38 = vpack.c.bf16 %v2940_v39, %v2940_v39  ;;  %v3199_v40 = vpop.f32.mrf.mxu3  ;;  %v3681_v39 = vsel %vm3373_vm1, %v13810_v21, %v11897_v6  ;;  %v4167_v10 = vunpack.c.l.b16 %v3256_v8  ;;  %v3691_v6 = vsel %vm267_vm0, %v3689_v51, %v11948_v46 }
 0x3bb   :  { %v2844_v34 = vpop.f32.mrf.mxu0  ;;  %v2905_v61 = vpop.f32.mrf.mxu1  ;;  %v3683_v5 = vsel %vm267_vm0, %v3681_v39, %v11975_v29 }
 0x3bc   :  { %v4141_v14 = vunpack.c.l.b16 %v2960_v38  ;;  %v2845_v35 = vadd.f32 %v11660_v2, %v2844_v34  ;;  %v13809_v2 = vld [vmem:[#allocation24_spill] sm:$0xff]  ;;  %v12084_v38 = vld [vmem:[%s13679_s2] ss:$0 sm:$0xff]  ;;  %v12095_v45 = vsel %vm3379_vm2, %v3683_v5, %v11971_v0  ;;  %v4168_v46 = vpack.c.b16 %v4167_v10, %v4166_v23 }
 0x3bd   :  { %v3673_v50 = vsel %vm3373_vm1, %v13809_v2, %v11979_v37 }
 0x3be   :  { %v4142_v26 = vpack.c.b16 %v4141_v14, %v4140_v60  ;;  %4609 = vmatmul.bf16.gmra.mxu0 %v3573_v42  ;;  %v2904_v4 = vadd.f32 %v2903_v25, %v2845_v35  ;;  %v3675_v25 = vsel %vm267_vm0, %v3673_v50, %v12004_v36  ;;  %v3141_v60 = vadd.f32 %v12084_v38, %v3140_v57  ;;  %v12102_v57 = vpop.permute.xlu2 %3763  ;;  %v13811_v50 = vld [vmem:[#allocation26_spill] sm:$0xff] }
 0x3bf   :  { %v3677_v35 = vsel %vm3379_vm2, %v3675_v25, %v12008_v62  ;;  %v12099_v42 = vsel %vm3379_vm2, %v3691_v6, %v11999_v28  ;;  %v12109_v28 = vpop.permute.xlu1 %3777  ;;  %v3665_v21 = vsel %vm3373_vm1, %v13811_v50, %v11922_v17 }
 0x3c0   :  { %4187 = vrot.lane.b32.xlu2 %v4142_v26, %s9686_s19  ;;  %4143 = vrot.lane.b32.xlu1 %v4142_v26, %s9687_s12  ;;  %v2941_v29 = vmax.f32 %v2904_v4, 0.0  ;;  %v12105_v43 = vpop.permute.xlu0 %3770  ;;  %v3200_v62 = vadd.f32 %v3199_v40, %v3141_v60  ;;  %v3667_v40 = vsel %vm267_vm0, %v3665_v21, %v11950_v49 }
 0x3c1   :  { %v3142_v41 = vpop.f32.mrf.mxu2 }
 0x3c2   :  { %v3143_v37 = vadd.f32 %v12084_v38, %v3142_v41  ;;  %v3201_v56 = vpop.f32.mrf.mxu3  ;;  %v2961_v51 = vpack.c.bf16 %v2941_v29, %v2941_v29  ;;  %v3237_v41 = vmax.f32 %v3200_v62, 0.0 }
 0x3c3   :  { %v2846_v34 = vpop.f32.mrf.mxu0  ;;  %v2908_v36 = vpop.f32.mrf.mxu1 }
 0x3c4   :  { %v2847_v14 = vadd.f32 %v12084_v38, %v2846_v34  ;;  %v3202_v8 = vadd.f32 %v3201_v56, %v3143_v37  ;;  %v4191_v5 = vunpack.c.l.b16 %v2961_v51  ;;  %v13812_v56 = vld [vmem:[#allocation14_spill] sm:$0xff]  ;;  %v3257_v60 = vpack.c.bf16 %v3237_v41, %v3237_v41 }
 0x3c5   :  { %v3669_v6 = vsel %vm3379_vm2, %v3667_v40, %v13812_v56 }
 0x3c6   :  { %v2906_v26 = vadd.f32 %v2905_v61, %v2847_v14  ;;  %4703 = vmatmul.bf16.gmra.mxu1 %v3677_v35  ;;  %4792 = vmatmul.bf16.gmra.mxu2 %v12095_v45  ;;  %v3238_v61 = vmax.f32 %v3202_v8, 0.0  ;;  %v3780_v17 = vpop.permute.xlu2 %3779  ;;  %v3749_v14 = vsel %vm3373_vm1, %v11349_v55, %v12030_v7  ;;  %v3757_v35 = vsel %vm3373_vm1, %v11340_v33, %v12060_v22 }
 0x3c7   :  { %4881 = vmatmul.bf16.gmra.mxu3 %v12099_v42  ;;  %v3759_v51 = vsel %vm267_vm0, %v3757_v35, %v12065_v53 }
 0x3c8   :  { %v2942_v0 = vmax.f32 %v2906_v26, 0.0  ;;  %4203 = vrot.lane.b32.xlu2 %v4168_v46, %s9686_s19  ;;  %4169 = vrot.lane.b32.xlu1 %v4168_v46, %s9687_s12  ;;  %v3258_v34 = vpack.c.bf16 %v3238_v61, %v3238_v61  ;;  %v3787_v46 = vpop.permute.xlu0 %3786  ;;  %v12142_v21 = vsel %vm3379_vm2, %v3759_v51, %v12075_v15 }
 0x3c9   :  { %v3145_v13 = vpop.f32.mrf.mxu2 }
 0x3ca   :  { %v2962_v4 = vpack.c.bf16 %v2942_v0, %v2942_v0  ;;  %v3204_v2 = vpop.f32.mrf.mxu3  ;;  %v4208_v8 = vunpack.c.l.b16 %v3258_v34  ;;  %v3794_v0 = vpop.permute.xlu1 %3793  ;;  %v3146_v55 = vadd.f32 %v12084_v38, %v3145_v13 }
 0x3cb   :  { %v2849_v39 = vpop.f32.mrf.mxu0  ;;  %v2910_v10 = vpop.f32.mrf.mxu1 }
 0x3cc   :  { %v4192_v25 = vunpack.c.l.b16 %v2962_v4  ;;  %v2850_v37 = vadd.f32 %v12084_v38, %v2849_v39  ;;  %v4207_v4 = vunpack.c.l.b16 %v3257_v60  ;;  %v3205_v13 = vadd.f32 %v3204_v2, %v3146_v55 }
 0x3ce   :  { %v12119_v23 = vpack.c.b16 %v4192_v25, %v4191_v5  ;;  %4614 = vmatmul.bf16.gmra.mxu0 %v3669_v6  ;;  %v2909_v29 = vadd.f32 %v2908_v36, %v2850_v37  ;;  %v3751_v36 = vsel %vm267_vm0, %v3749_v14, %v12042_v11  ;;  %v12144_v11 = vpack.c.b16 %v4208_v8, %v4207_v4 }
 0x3cf   :  { %v12138_v22 = vsel %vm3379_vm2, %v3751_v36, %v12047_v20  ;;  %v12151_v20 = vpop.permute.xlu2 %3811  ;;  %v3239_v6 = vmax.f32 %v3205_v13, 0.0  ;;  %v3805_v36 = vsel %vm3373_vm1, %v11408_v27, %v3780_v17 }
 0x3d0   :  { %4194 = vrot.lane.b32.xlu0 %v12119_v23, %s9685_s21  ;;  %v2943_v7 = vmax.f32 %v2909_v29, 0.0  ;;  %v12153_v5 = vpop.permute.xlu0 %3818 }
 0x3d1   :  { %v3147_v49 = vpop.f32.mrf.mxu2  ;;  %v3259_v35 = vpack.c.bf16 %v3239_v6, %v3239_v6 }
 0x3d2   :  { %v3148_v26 = vadd.f32 %v12084_v38, %v3147_v49  ;;  %v3206_v62 = vpop.f32.mrf.mxu3  ;;  %v2963_v40 = vpack.c.bf16 %v2943_v7, %v2943_v7  ;;  %v12155_v56 = vpop.permute.xlu1 %3825  ;;  %v3807_v7 = vsel %vm267_vm0, %v3805_v36, %v3787_v46 }
 0x3d3   :  { %v2851_v61 = vpop.f32.mrf.mxu0  ;;  %v2913_v33 = vpop.f32.mrf.mxu1 }
 0x3d4   :  { %v2852_v50 = vadd.f32 %v12084_v38, %v2851_v61  ;;  %v3207_v53 = vadd.f32 %v3206_v62, %v3148_v26  ;;  %v4198_v34 = vunpack.c.l.b16 %v2963_v40  ;;  %v3797_v62 = vsel %vm3373_vm1, %v11388_v52, %v12102_v57 }
 0x3d5   :  { %v12177_v40 = vsel %vm3379_vm2, %v3807_v7, %v3794_v0 }
 0x3d6   :  { %v2911_v39 = vadd.f32 %v2910_v10, %v2852_v50  ;;  %4708 = vmatmul.bf16.gmra.mxu1 %v11944_v3  ;;  %4797 = vmatmul.bf16.gmra.mxu2 %v12138_v22  ;;  %v3240_v25 = vmax.f32 %v3207_v53, 0.0  ;;  %v4214_v53 = vunpack.c.l.b16 %v3259_v35 }
 0x3d7   :  { %4886 = vmatmul.bf16.gmra.mxu3 %v12142_v21  ;;  %v3828_v55 = vpop.permute.xlu2 %3827 }
 0x3d8   :  { %v2944_v41 = vmax.f32 %v2911_v39, 0.0  ;;  %4210 = vrot.lane.b32.xlu0 %v12144_v11, %s9685_s21  ;;  %v3260_v49 = vpack.c.bf16 %v3240_v25, %v3240_v25 }
 0x3d9   :  { %v3150_v15 = vpop.f32.mrf.mxu2 }
 0x3da   :  { %v2964_v37 = vpack.c.bf16 %v2944_v41, %v2944_v41  ;;  %v3209_v10 = vpop.f32.mrf.mxu3  ;;  %v4215_v51 = vunpack.c.l.b16 %v3260_v49  ;;  %v3151_v39 = vadd.f32 %v12084_v38, %v3150_v15  ;;  %v3842_v27 = vpop.permute.xlu1 %3841 }
 0x3db   :  { %v2854_v3 = vpop.f32.mrf.mxu0  ;;  %v2915_v29 = vpop.f32.mrf.mxu1 }
 0x3dc   :  { %v4199_v60 = vunpack.c.l.b16 %v2964_v37  ;;  %v2855_v2 = vadd.f32 %v12084_v38, %v2854_v3  ;;  %v3210_v15 = vadd.f32 %v3209_v10, %v3151_v39 }
 0x3de   :  { %v4200_v14 = vpack.c.b16 %v4199_v60, %v4198_v34  ;;  %4619 = vmatmul.bf16.gmra.mxu0 %v11939_v48  ;;  %v2914_v8 = vadd.f32 %v2913_v33, %v2855_v2  ;;  %v3799_v48 = vsel %vm267_vm0, %v3797_v62, %v12105_v43  ;;  %v3835_v33 = vpop.permute.xlu0 %3834  ;;  %v4216_v43 = vpack.c.b16 %v4215_v51, %v4214_v53 }
 0x3df   :  { %v12174_v17 = vsel %vm3379_vm2, %v3799_v48, %v12109_v28  ;;  %v12184_v34 = vpop.permute.xlu2 %3859 }
 0x3e0   :  { %4235 = vrot.lane.b32.xlu2 %v4200_v14, %s9686_s19  ;;  %4201 = vrot.lane.b32.xlu1 %v4200_v14, %s9687_s12  ;;  %v2945_v13 = vmax.f32 %v2914_v8, 0.0 }
 0x3e1   :  { %v3152_v26 = vpop.f32.mrf.mxu2 }
 0x3e2   :  { %v3153_v61 = vadd.f32 %v12084_v38, %v3152_v26  ;;  %v3211_v4 = vpop.f32.mrf.mxu3  ;;  %v2965_v25 = vpack.c.bf16 %v2945_v13, %v2945_v13  ;;  %v12189_v35 = vpop.permute.xlu1 %3873 }
 0x3e3   :  { %v2856_v50 = vpop.f32.mrf.mxu0  ;;  %v2918_v57 = vpop.f32.mrf.mxu1 }
 0x3e4   :  { %v2857_v52 = vadd.f32 %v12084_v38, %v2856_v50  ;;  %v3212_v41 = vadd.f32 %v3211_v4, %v3153_v61  ;;  %v3845_v61 = vsel %vm3373_vm1, %v11436_v58, %v12151_v20  ;;  %v3853_v4 = vsel %vm3373_vm1, %v11456_v31, %v3828_v55 }
 0x3e5   :  { %v3855_v53 = vsel %vm267_vm0, %v3853_v4, %v3835_v33 }
 0x3e6   :  { %v2916_v46 = vadd.f32 %v2915_v29, %v2857_v52  ;;  %4713 = vmatmul.bf16.gmra.mxu1 %v11989_v44  ;;  %4802 = vmatmul.bf16.gmra.mxu2 %v12174_v17  ;;  %v3242_v3 = vmax.f32 %v3212_v41, 0.0  ;;  %v12186_v2 = vpop.permute.xlu0 %3866  ;;  %v3241_v44 = vmax.f32 %v3210_v15, 0.0  ;;  %v4239_v29 = vunpack.c.l.b16 %v2965_v25 }
 0x3e7   :  { %4891 = vmatmul.bf16.gmra.mxu3 %v12177_v40  ;;  %v3876_v20 = vpop.permute.xlu2 %3875  ;;  %v12212_v55 = vsel %vm3379_vm2, %v3855_v53, %v3842_v27 }
 0x3e8   :  { %v2946_v37 = vmax.f32 %v2916_v46, 0.0  ;;  %4251 = vrot.lane.b32.xlu2 %v4216_v43, %s9686_s19  ;;  %4217 = vrot.lane.b32.xlu1 %v4216_v43, %s9687_s12  ;;  %v3262_v8 = vpack.c.bf16 %v3242_v3, %v3242_v3  ;;  %v3261_v62 = vpack.c.bf16 %v3241_v44, %v3241_v44 }
 0x3e9   :  { %v3155_v28 = vpop.f32.mrf.mxu2 }
 0x3ea   :  { %v2966_v0 = vpack.c.bf16 %v2946_v37, %v2946_v37  ;;  %v3214_v6 = vpop.f32.mrf.mxu3  ;;  %v4256_v48 = vunpack.c.l.b16 %v3262_v8  ;;  %v4255_v13 = vunpack.c.l.b16 %v3261_v62  ;;  %v3156_v52 = vadd.f32 %v12084_v38, %v3155_v28  ;;  %v3890_v15 = vpop.permute.xlu1 %3889 }
 0x3eb   :  { %v2859_v60 = vpop.f32.mrf.mxu0  ;;  %v2920_v14 = vpop.f32.mrf.mxu1 }
 0x3ec   :  { %v4240_v49 = vunpack.c.l.b16 %v2966_v0  ;;  %v2860_v10 = vadd.f32 %v12084_v38, %v2859_v60  ;;  %v3215_v25 = vadd.f32 %v3214_v6, %v3156_v52 }
 0x3ee   :  { %v12191_v26 = vpack.c.b16 %v4240_v49, %v4239_v29  ;;  %4624 = vmatmul.bf16.gmra.mxu0 %v11985_v12  ;;  %v2919_v36 = vadd.f32 %v2918_v57, %v2860_v10  ;;  %v3847_v12 = vsel %vm267_vm0, %v3845_v61, %v12153_v5  ;;  %v3883_v41 = vpop.permute.xlu0 %3882  ;;  %v12214_v5 = vpack.c.b16 %v4256_v48, %v4255_v13 }
 0x3ef   :  { %v12209_v31 = vsel %vm3379_vm2, %v3847_v12, %v12155_v56  ;;  %v3243_v44 = vmax.f32 %v3215_v25, 0.0  ;;  %v3893_v48 = vsel %vm3373_vm1, %v11484_v24, %v12184_v34 }
 0x3f0   :  { %4242 = vrot.lane.b32.xlu0 %v12191_v26, %s9685_s21  ;;  %v2947_v57 = vmax.f32 %v2919_v36, 0.0  ;;  %v3895_v53 = vsel %vm267_vm0, %v3893_v48, %v12186_v2 }
 0x3f1   :  { %v3157_v51 = vpop.f32.mrf.mxu2 }
 0x3f2   :  { %v3158_v7 = vadd.f32 %v12084_v38, %v3157_v51  ;;  %v3216_v50 = vpop.f32.mrf.mxu3  ;;  %v2967_v37 = vpack.c.bf16 %v2947_v57, %v2947_v57  ;;  %v12225_v36 = vpop.permute.xlu1 %3931  ;;  %v3263_v51 = vpack.c.bf16 %v3243_v44, %v3243_v44 }
 0x3f3   :  { %v2861_v39 = vpop.f32.mrf.mxu0  ;;  %v2923_v58 = vpop.f32.mrf.mxu1 }
 0x3f4   :  { %v2862_v43 = vadd.f32 %v12084_v38, %v2861_v39  ;;  %v3217_v33 = vadd.f32 %v3216_v50, %v3158_v7  ;;  %v4246_v29 = vunpack.c.l.b16 %v2967_v37  ;;  %v3901_v7 = vsel %vm3373_vm1, %v11504_v1, %v3876_v20 }
 0x3f5   :  { %v3903_v39 = vsel %vm267_vm0, %v3901_v7, %v3883_v41  ;;  %v4262_v52 = vunpack.c.l.b16 %v3263_v51  ;;  %v12242_v1 = vsel %vm3379_vm2, %v3895_v53, %v12189_v35 }
 0x3f6   :  { %v2921_v46 = vadd.f32 %v2920_v14, %v2862_v43  ;;  %4718 = vmatmul.bf16.gmra.mxu1 %v12040_v63  ;;  %4807 = vmatmul.bf16.gmra.mxu2 %v12209_v31  ;;  %v3244_v27 = vmax.f32 %v3217_v33, 0.0  ;;  %v3918_v14 = vpop.permute.xlu2 %3917  ;;  %v12222_v8 = vpop.permute.xlu0 %3924  ;;  %v12245_v34 = vsel %vm3379_vm2, %v3903_v39, %v3890_v15 }
 0x3f7   :  { %4896 = vmatmul.bf16.gmra.mxu3 %v12212_v55  ;;  %v3961_v7 = vsel %vm3373_vm1, %v11578_v30, %v3918_v14 }
 0x3f8   :  { %v2948_v28 = vmax.f32 %v2921_v46, 0.0  ;;  %4258 = vrot.lane.b32.xlu0 %v12214_v5, %s9685_s21  ;;  %v3264_v6 = vpack.c.bf16 %v3244_v27, %v3244_v27  ;;  %v3963_v53 = vsel %vm267_vm0, %v3961_v7, %v12222_v8 }
 0x3f9   :  { %v3160_v56 = vpop.f32.mrf.mxu2 }
 0x3fa   :  { %v2968_v3 = vpack.c.bf16 %v2948_v28, %v2948_v28  ;;  %v3219_v0 = vpop.f32.mrf.mxu3  ;;  %v4263_v50 = vunpack.c.l.b16 %v3264_v6  ;;  %v3161_v57 = vadd.f32 %v12084_v38, %v3160_v56  ;;  %v3958_v35 = vpop.permute.xlu1 %3957 }
 0x3fb   :  { %v2864_v60 = vpop.f32.mrf.mxu0  ;;  %v2925_v10 = vpop.f32.mrf.mxu1 }
 0x3fc   :  { %v4247_v49 = vunpack.c.l.b16 %v2968_v3  ;;  %v2865_v63 = vadd.f32 %v12084_v38, %v2864_v60  ;;  %v4264_v20 = vpack.c.b16 %v4263_v50, %v4262_v52  ;;  %v3220_v25 = vadd.f32 %v3219_v0, %v3161_v57 }
 0x3fe   :  { %v4248_v62 = vpack.c.b16 %v4247_v49, %v4246_v29  ;;  %4629 = vmatmul.bf16.gmra.mxu0 %v12036_v19  ;;  %v2924_v61 = vadd.f32 %v2923_v58, %v2865_v63  ;;  %v3944_v41 = vpop.permute.xlu2 %3943  ;;  %v3951_v46 = vpop.permute.xlu0 %3950 }
 0x3ff   :  { %v3969_v50 = vsel %vm3373_vm1, %v11571_v59, %v3944_v41  ;;  %v12273_v59 = vsel %vm3379_vm2, %v3963_v53, %v12225_v36  ;;  %v12285_v36 = vld [vmem:[%s13681_s4] ss:$0 sm:$0xff]  ;;  %v9364_v41 = vld [vmem:[%s13682_s5 + $0x38] sm:$0xff] }
 0x400   :  { %4283 = vrot.lane.b32.xlu2 %v4248_v62, %s9686_s19  ;;  %4249 = vrot.lane.b32.xlu1 %v4248_v62, %s9687_s12  ;;  %v2949_v43 = vmax.f32 %v2924_v61, 0.0  ;;  %v3971_v39 = vsel %vm267_vm0, %v3969_v50, %v3951_v46 }
 0x401   :  { %v3162_v4 = vpop.f32.mrf.mxu2  ;;  %v12276_v14 = vsel %vm3379_vm2, %v3971_v39, %v3958_v35  ;;  %5471 = vmatpush.bf16.msra.mxu0 %v9364_v41 }
 0x402   :  { %v3163_v12 = vadd.f32 %v12084_v38, %v3162_v4  ;;  %v3221_v19 = vpop.f32.mrf.mxu3  ;;  %v2969_v37 = vpack.c.bf16 %v2949_v43, %v2949_v43  ;;  %v12259_v4 = vpop.permute.xlu1 %3989 }
 0x403   :  { %v2866_v13 = vpop.f32.mrf.mxu0  ;;  %v2928_v24 = vpop.f32.mrf.mxu1 }
 0x404   :  { %v2867_v58 = vadd.f32 %v12084_v38, %v2866_v13  ;;  %v3222_v33 = vadd.f32 %v3221_v19, %v3163_v12  ;;  %v4287_v44 = vunpack.c.l.b16 %v2969_v37 }
 0x406   :  { %v2926_v2 = vadd.f32 %v2925_v10, %v2867_v58  ;;  %4723 = vmatmul.bf16.gmra.mxu1 %v12099_v42  ;;  %4812 = vmatmul.bf16.gmra.mxu2 %v12242_v1  ;;  %v3246_v56 = vmax.f32 %v3222_v33, 0.0  ;;  %v3245_v42 = vmax.f32 %v3220_v25, 0.0  ;;  %v12254_v6 = vpop.permute.xlu2 %3975  ;;  %v12256_v62 = vpop.permute.xlu0 %3982 }
 0x407   :  { %4901 = vmatmul.bf16.gmra.mxu3 %v12245_v34 }
 0x408   :  { %v2950_v28 = vmax.f32 %v2926_v2, 0.0  ;;  %4299 = vrot.lane.b32.xlu2 %v4264_v20, %s9686_s19  ;;  %4265 = vrot.lane.b32.xlu1 %v4264_v20, %s9687_s12  ;;  %v3266_v10 = vpack.c.bf16 %v3246_v56, %v3246_v56  ;;  %v3265_v51 = vpack.c.bf16 %v3245_v42, %v3245_v42 }
 0x409   :  { %v3165_v15 = vpop.f32.mrf.mxu2 }
 0x40a   :  { %v2970_v27 = vpack.c.bf16 %v2950_v28, %v2950_v28  ;;  %v3224_v3 = vpop.f32.mrf.mxu3  ;;  %v4304_v12 = vunpack.c.l.b16 %v3266_v10  ;;  %v4303_v52 = vunpack.c.l.b16 %v3265_v51  ;;  %v3166_v57 = vadd.f32 %v12084_v38, %v3165_v15  ;;  %v4006_v15 = vpop.permute.xlu1 %4005 }
 0x40b   :  { %v2869_v60 = vpop.f32.mrf.mxu0  ;;  %v2930_v63 = vpop.f32.mrf.mxu1 }
 0x40c   :  { %v4288_v29 = vunpack.c.l.b16 %v2970_v27  ;;  %v2870_v49 = vadd.f32 %v12084_v38, %v2869_v60  ;;  %v3225_v33 = vadd.f32 %v3224_v3, %v3166_v57 }
 0x40e   :  { %v4289_v0 = vpack.c.b16 %v4288_v29, %v4287_v44  ;;  %4634 = vmatmul.bf16.gmra.mxu0 %v12095_v45  ;;  %v2929_v61 = vadd.f32 %v2928_v24, %v2870_v49  ;;  %v4305_v24 = vpack.c.b16 %v4304_v12, %v4303_v52  ;;  %v3992_v46 = vpop.permute.xlu2 %3991  ;;  %v3999_v25 = vpop.permute.xlu0 %3998  ;;  %v3247_v27 = vmax.f32 %v3225_v33, 0.0 }
 0x40f   :  { %v4017_v39 = vsel %vm3373_vm1, %v11653_v47, %v3992_v46 }
 0x410   :  { %4290 = vrot.lane.b32.xlu0 %v4289_v0, %s9685_s21  ;;  %v2951_v43 = vmax.f32 %v2929_v61, 0.0  ;;  %v3267_v10 = vpack.c.bf16 %v3247_v27, %v3247_v27 }
 0x411   :  { %v3167_v48 = vpop.f32.mrf.mxu2 }
 0x412   :  { %v3168_v45 = vadd.f32 %v12084_v38, %v3167_v48  ;;  %v3226_v19 = vpop.f32.mrf.mxu3  ;;  %v2971_v2 = vpack.c.bf16 %v2951_v43, %v2951_v43  ;;  %v4019_v43 = vsel %vm267_vm0, %v4017_v39, %v3999_v25 }
 0x413   :  { %v2871_v13 = vpop.f32.mrf.mxu0  ;;  %v4689_v30 = vpop.f32.mrf.mxu1  ;;  %v12309_v47 = vsel %vm3379_vm2, %v4019_v43, %v4006_v15 }
 0x414   :  { %v2872_v58 = vadd.f32 %v12084_v38, %v2871_v13  ;;  %v3227_v20 = vadd.f32 %v3226_v19, %v3168_v45  ;;  %v4294_v3 = vunpack.c.l.b16 %v2971_v2  ;;  %v4009_v45 = vsel %vm3373_vm1, %v11632_v32, %v12254_v6  ;;  %v4038_v19 = vpop.permute.xlu1 %4037 }
 0x415   :  { %v4310_v13 = vunpack.c.l.b16 %v3267_v10 }
 0x416   :  { %v2931_v8 = vadd.f32 %v2930_v63, %v2872_v58  ;;  %4728 = vmatmul.bf16.gmra.mxu1 %v12142_v21  ;;  %4817 = vmatmul.bf16.gmra.mxu2 %v12273_v59  ;;  %v3248_v37 = vmax.f32 %v3227_v20, 0.0  ;;  %v4024_v51 = vpop.permute.xlu2 %4023  ;;  %v4031_v48 = vpop.permute.xlu0 %4030 }
 0x417   :  { %4906 = vmatmul.bf16.gmra.mxu3 %v12276_v14 }
 0x418   :  { %v2952_v38 = vmax.f32 %v2931_v8, 0.0  ;;  %4306 = vrot.lane.b32.xlu0 %v4305_v24, %s9685_s21  ;;  %v3268_v29 = vpack.c.bf16 %v3248_v37, %v3248_v37 }
 0x419   :  { %v4778_v21 = vpop.f32.mrf.mxu2 }
 0x41a   :  { %v2972_v28 = vpack.c.bf16 %v2952_v38, %v2952_v38  ;;  %v4867_v35 = vpop.f32.mrf.mxu3  ;;  %v4311_v7 = vunpack.c.l.b16 %v3268_v29 }
 0x41b   :  { %v4600_v56 = vpop.f32.mrf.mxu0  ;;  %v4691_v44 = vpop.f32.mrf.mxu1 }
 0x41c   :  { %v4295_v60 = vunpack.c.l.b16 %v2972_v28  ;;  %v4601_v42 = vadd.f32 %v12285_v36, %v4600_v56 }
 0x41e   :  { %v4296_v49 = vpack.c.b16 %v4295_v60, %v4294_v3  ;;  %v4690_v63 = vadd.f32 %v4689_v30, %v4601_v42  ;;  %4639 = vmatmul.bf16.gmra.mxu0 %v12138_v22  ;;  %v4011_v22 = vsel %vm267_vm0, %v4009_v45, %v12256_v62  ;;  %v4312_v30 = vpack.c.b16 %v4311_v7, %v4310_v13  ;;  %v4047_v2 = vpop.permute.xlu0 %4046 }
 0x41f   :  { %v12304_v58 = vsel %vm3379_vm2, %v4011_v22, %v12259_v4  ;;  %v4040_v4 = vpop.permute.xlu2 %4039  ;;  %v4057_v60 = vsel %vm3373_vm1, %v11693_v16, %v4024_v51 }
 0x420   :  { %v4779_v0 = vadd.f32 %v4778_v21, %v4690_v63  ;;  %4297 = vrot.lane.b32.xlu1 %v4296_v49, %s9687_s12  ;;  %v4054_v21 = vpop.permute.xlu1 %4053  ;;  %v4065_v29 = vsel %vm3373_vm1, %v11725_v9, %v4040_v4  ;;  %v4059_v49 = vsel %vm267_vm0, %v4057_v60, %v4031_v48  ;;  %v9363_v48 = vld [vmem:[%s13682_s5 + $0x30] sm:$0xff] }
 0x421   :  { %v4780_v61 = vpop.f32.mrf.mxu2  ;;  %5472 = vmatpush.bf16.msra.mxu0 %v9363_v48 }
 0x422   :  { %v4868_v50 = vadd.f32 %v4867_v35, %v4779_v0  ;;  %v4869_v12 = vpop.f32.mrf.mxu3 }
 0x423   :  { %v4602_v53 = vpop.f32.mrf.mxu0  ;;  %v4694_v57 = vpop.f32.mrf.mxu1 }
 0x424   :  { %v4603_v52 = vadd.f32 %v12285_v36, %v4602_v53  ;;  %v4947_v6 = vmax.f32 %v4868_v50, 0.0  ;;  %v12325_v50 = vsel %vm3379_vm2, %v4059_v49, %v4038_v19  ;;  %v9380_v49 = vld [vmem:[%s13682_s5 + $0xb8] sm:$0xff] }
 0x425   :  { %5529 = vmatpush.bf16.msra.mxu2 %v9380_v49 }
 0x426   :  { %v4692_v32 = vadd.f32 %v4691_v44, %v4603_v52  ;;  %4733 = vmatmul.bf16.gmra.mxu1 %v12177_v40  ;;  %4822 = vmatmul.bf16.gmra.mxu2 %v12304_v58  ;;  %v4979_v38 = vpack.c.bf16 %v4947_v6, %v4947_v6  ;;  %v4079_v63 = vpop.permute.xlu0 %4078 }
 0x427   :  { %4911 = vmatmul.bf16.gmra.mxu3 %v12309_v47  ;;  %v4072_v42 = vpop.permute.xlu2 %4071 }
 0x428   :  { %v4781_v62 = vadd.f32 %v4780_v61, %v4692_v32  ;;  %4313 = vrot.lane.b32.xlu1 %v4312_v30, %s9687_s12  ;;  %v5013_v28 = vunpack.c.l.b16 %v4979_v38  ;;  %v4067_v61 = vsel %vm267_vm0, %v4065_v29, %v4047_v2  ;;  %v4086_v7 = vpop.permute.xlu1 %4085  ;;  %v13813_v2 = vld [vmem:[#allocation20_spill] sm:$0xff] }
 0x429   :  { %v4783_v24 = vpop.f32.mrf.mxu2  ;;  %v12330_v16 = vsel %vm3379_vm2, %v4067_v61, %v4054_v21  ;;  %v4105_v38 = vsel %vm3373_vm1, %v13813_v2, %v4072_v42 }
 0x42a   :  { %v4870_v20 = vadd.f32 %v4869_v12, %v4781_v62  ;;  %v4872_v8 = vpop.f32.mrf.mxu3  ;;  %v4107_v21 = vsel %vm267_vm0, %v4105_v38, %v4079_v63 }
 0x42b   :  { %v4605_v33 = vpop.f32.mrf.mxu0  ;;  %v4696_v46 = vpop.f32.mrf.mxu1 }
 0x42c   :  { %v4948_v41 = vmax.f32 %v4870_v20, 0.0  ;;  %v4606_v40 = vadd.f32 %v12285_v36, %v4605_v33 }
 0x42e   :  { %v4695_v25 = vadd.f32 %v4694_v57, %v4606_v40  ;;  %4644 = vmatmul.bf16.gmra.mxu0 %v12174_v17  ;;  %v4980_v37 = vpack.c.bf16 %v4948_v41, %v4948_v41  ;;  %v4095_v43 = vpop.permute.xlu0 %4094  ;;  %v13814_v40 = vld [vmem:[#allocation10_spill] sm:$0xff] }
 0x42f   :  { %v4088_v57 = vpop.permute.xlu2 %4087 }
 0x430   :  { %v4784_v35 = vadd.f32 %v4783_v24, %v4695_v25  ;;  %v5014_v15 = vunpack.c.l.b16 %v4980_v37  ;;  %v4102_v6 = vpop.permute.xlu1 %4101 }
 0x431   :  { %v4785_v56 = vpop.f32.mrf.mxu2 }
 0x432   :  { %v4874_v27 = vpop.f32.mrf.mxu3  ;;  %v12315_v3 = vpack.c.b16 %v5014_v15, %v5013_v28  ;;  %v4873_v17 = vadd.f32 %v4872_v8, %v4784_v35  ;;  %v12350_v15 = vsel %vm3379_vm2, %v4107_v21, %v4086_v7 }
 0x433   :  { %v4607_v44 = vpop.f32.mrf.mxu0  ;;  %v4699_v0 = vpop.f32.mrf.mxu1 }
 0x434   :  { %v4608_v10 = vadd.f32 %v12285_v36, %v4607_v44  ;;  %v4949_v9 = vmax.f32 %v4873_v17, 0.0 }
 0x436   :  { %v4697_v12 = vadd.f32 %v4696_v46, %v4608_v10  ;;  %4738 = vmatmul.bf16.gmra.mxu1 %v12212_v55  ;;  %4827 = vmatmul.bf16.gmra.mxu2 %v12325_v50  ;;  %v4981_v22 = vpack.c.bf16 %v4949_v9, %v4949_v9  ;;  %v4113_v46 = vsel %vm3373_vm1, %v13814_v40, %v4088_v57 }
 0x437   :  { %4916 = vmatmul.bf16.gmra.mxu3 %v12330_v16  ;;  %v4115_v28 = vsel %vm267_vm0, %v4113_v46, %v4095_v43  ;;  %v4130_v35 = vpop.permute.xlu2 %4129 }
 0x438   :  { %v4786_v51 = vadd.f32 %v4785_v56, %v4697_v12  ;;  %v5018_v62 = vunpack.c.l.b16 %v4981_v22  ;;  %v4137_v56 = vpop.permute.xlu0 %4136  ;;  %v12355_v60 = vsel %vm3379_vm2, %v4115_v28, %v4102_v6  ;;  %v4144_v42 = vpop.permute.xlu1 %4143  ;;  %v9388_v22 = vld [vmem:[%s13682_s5 + $0xf8] sm:$0xff] }
 0x439   :  { %v4788_v45 = vpop.f32.mrf.mxu2  ;;  %5558 = vmatpush.bf16.msra.mxu3 %v9388_v22 }
 0x43a   :  { %v4875_v53 = vadd.f32 %v4874_v27, %v4786_v51  ;;  %v4877_v19 = vpop.f32.mrf.mxu3 }
 0x43b   :  { %v4610_v39 = vpop.f32.mrf.mxu0  ;;  %v4701_v52 = vpop.f32.mrf.mxu1 }
 0x43c   :  { %v4950_v55 = vmax.f32 %v4875_v53, 0.0  ;;  %v4611_v13 = vadd.f32 %v12285_v36, %v4610_v39 }
 0x43e   :  { %v4982_v30 = vpack.c.bf16 %v4950_v55, %v4950_v55  ;;  %v4700_v32 = vadd.f32 %v4699_v0, %v4611_v13  ;;  %4649 = vmatmul.bf16.gmra.mxu0 %v12209_v31  ;;  %v9372_v55 = vld [vmem:[%s13682_s5 + $0x78] sm:$0xff] }
 0x43f   :  { %v4156_v48 = vpop.permute.xlu2 %4155  ;;  %5500 = vmatpush.bf16.msra.mxu1 %v9372_v55 }
 0x440   :  { %v5019_v24 = vunpack.c.l.b16 %v4982_v30  ;;  %v4789_v20 = vadd.f32 %v4788_v45, %v4700_v32  ;;  %v4163_v45 = vpop.permute.xlu0 %4162  ;;  %v4170_v13 = vpop.permute.xlu1 %4169 }
 0x441   :  { %v4790_v8 = vpop.f32.mrf.mxu2 }
 0x442   :  { %v4879_v4 = vpop.f32.mrf.mxu3  ;;  %v12338_v33 = vpack.c.b16 %v5019_v24, %v5018_v62  ;;  %v4878_v25 = vadd.f32 %v4877_v19, %v4789_v20  ;;  %v13816_v62 = vld [vmem:[#allocation22_spill] sm:$0xff] }
 0x443   :  { %v4612_v41 = vpop.f32.mrf.mxu0  ;;  %v4704_v37 = vpop.f32.mrf.mxu1  ;;  %v4181_v24 = vsel %vm3373_vm1, %v13816_v62, %v4156_v48 }
 0x444   :  { %v4613_v31 = vadd.f32 %v12285_v36, %v4612_v41  ;;  %5021 = vrot.lane.b32.xlu2 %v12338_v33, %s9685_s21  ;;  %v4951_v44 = vmax.f32 %v4878_v25, 0.0  ;;  %v4183_v2 = vsel %vm267_vm0, %v4181_v24, %v4163_v45  ;;  %v9387_v24 = vld [vmem:[%s13682_s5 + $0xf0] sm:$0xff] }
 0x445   :  { %v4185_v40 = vsel %vm3379_vm2, %v4183_v2, %v4170_v13  ;;  %v9360_v2 = vld [vmem:[%s13682_s5 + $0x18] sm:$0xff]  ;;  %5559 = vmatpush.bf16.msra.mxu3 %v9387_v24 }
 0x446   :  { %v4702_v27 = vadd.f32 %v4701_v52, %v4613_v31  ;;  %4743 = vmatmul.bf16.gmra.mxu1 %v12245_v34  ;;  %4832 = vmatmul.bf16.gmra.mxu2 %v12350_v15  ;;  %v4983_v34 = vpack.c.bf16 %v4951_v44, %v4951_v44 }
 0x447   :  { %4921 = vmatmul.bf16.gmra.mxu3 %v12355_v60  ;;  %v4188_v46 = vpop.permute.xlu2 %4187 }
 0x448   :  { %v4791_v29 = vadd.f32 %v4790_v8, %v4702_v27  ;;  %v5025_v53 = vunpack.c.l.b16 %v4983_v34  ;;  %v4195_v21 = vpop.permute.xlu0 %4194 }
 0x449   :  { %v4793_v63 = vpop.f32.mrf.mxu2 }
 0x44a   :  { %v4880_v17 = vadd.f32 %v4879_v4, %v4791_v29  ;;  %v4882_v10 = vpop.f32.mrf.mxu3 }
 0x44b   :  { %v4615_v0 = vpop.f32.mrf.mxu0  ;;  %v4706_v12 = vpop.f32.mrf.mxu1 }
 0x44c   :  { %v4952_v61 = vmax.f32 %v4880_v17, 0.0  ;;  %v4616_v7 = vadd.f32 %v12285_v36, %v4615_v0 }
 0x44e   :  { %v4984_v9 = vpack.c.bf16 %v4952_v61, %v4952_v61  ;;  %v4705_v51 = vadd.f32 %v4704_v37, %v4616_v7  ;;  %4654 = vmatmul.bf16.gmra.mxu0 %v12242_v1  ;;  %v13815_v1 = vld [vmem:[#allocation21_spill] sm:$0xff]  ;;  %v9362_v37 = vld [vmem:[%s13682_s5 + $0x28] sm:$0xff] }
 0x44f   :  { %v4173_v32 = vsel %vm3373_vm1, %v13815_v1, %v4130_v35  ;;  %5473 = vmatpush.bf16.msra.mxu0 %v9362_v37 }
 0x450   :  { %v5026_v19 = vunpack.c.l.b16 %v4984_v9  ;;  %v4794_v39 = vadd.f32 %v4793_v63, %v4705_v51  ;;  %v4175_v20 = vsel %vm267_vm0, %v4173_v32, %v4137_v56  ;;  %v4211_v34 = vpop.permute.xlu0 %4210 }
 0x451   :  { %v4795_v52 = vpop.f32.mrf.mxu2  ;;  %v4177_v38 = vsel %vm3379_vm2, %v4175_v20, %v4144_v42  ;;  %v9371_v20 = vld [vmem:[%s13682_s5 + $0x70] sm:$0xff] }
 0x452   :  { %v4883_v57 = vadd.f32 %v4882_v10, %v4794_v39  ;;  %v4884_v43 = vpop.f32.mrf.mxu3  ;;  %v12369_v30 = vpack.c.b16 %v5026_v19, %v5025_v53  ;;  %v4202_v28 = vpop.permute.xlu1 %4201  ;;  %5501 = vmatpush.bf16.msra.mxu1 %v9371_v20 }
 0x453   :  { %v4617_v6 = vpop.f32.mrf.mxu0  ;;  %v12377_v4 = vpop.f32.mrf.mxu1 }
 0x454   :  { %v4618_v8 = vadd.f32 %v12285_v36, %v4617_v6  ;;  %5080 = vrot.lane.b32.xlu0 %v12369_v30, %s9685_s21  ;;  %v4953_v25 = vmax.f32 %v4883_v57, 0.0  ;;  %v4204_v10 = vpop.permute.xlu2 %4203 }
 0x455   :  { %v4229_v48 = vsel %vm3373_vm1, %v12044_v18, %v4204_v10 }
 0x456   :  { %v4707_v41 = vadd.f32 %v4706_v12, %v4618_v8  ;;  %4748 = vmatmul.bf16.gmra.mxu1 %v12276_v14  ;;  %4837 = vmatmul.bf16.gmra.mxu2 %v4177_v38  ;;  %v4985_v42 = vpack.c.bf16 %v4953_v25, %v4953_v25  ;;  %v4221_v12 = vsel %vm3373_vm1, %v12006_v54, %v4188_v46  ;;  %v9379_v54 = vld [vmem:[%s13682_s5 + $0xb0] sm:$0xff] }
 0x457   :  { %4926 = vmatmul.bf16.gmra.mxu3 %v4185_v40  ;;  %v4223_v45 = vsel %vm267_vm0, %v4221_v12, %v4195_v21  ;;  %v4231_v53 = vsel %vm267_vm0, %v4229_v48, %v4211_v34  ;;  %5530 = vmatpush.bf16.msra.mxu2 %v9379_v54  ;;  %v9358_v34 = vld [vmem:[%s13682_s5 + $0x8] sm:$0xff] }
 0x458   :  { %v4796_v31 = vadd.f32 %v4795_v52, %v4707_v41  ;;  %v5084_v63 = vunpack.c.l.b16 %v4985_v42  ;;  %v4225_v19 = vsel %vm3379_vm2, %v4223_v45, %v4202_v28 }
 0x459   :  { %v12388_v35 = vpop.f32.mrf.mxu2 }
 0x45a   :  { %v4885_v56 = vadd.f32 %v4884_v43, %v4796_v31  ;;  %v12390_v27 = vpop.f32.mrf.mxu3  ;;  %v4218_v9 = vpop.permute.xlu1 %4217 }
 0x45b   :  { %v4620_v14 = vpop.f32.mrf.mxu0  ;;  %v4711_v29 = vpop.f32.mrf.mxu1  ;;  %v4233_v39 = vsel %vm3379_vm2, %v4231_v53, %v4218_v9 }
 0x45c   :  { %v4954_v44 = vmax.f32 %v4885_v56, 0.0  ;;  %v4236_v13 = vpop.permute.xlu2 %4235  ;;  %v4621_v6 = vadd.f32 %v12285_v36, %v4620_v14  ;;  %v9359_v14 = vld [vmem:[%s13682_s5 + $0x10] sm:$0xff] }
 0x45d   :  { %v4269_v40 = vsel %vm3373_vm1, %v12119_v23, %v4236_v13 }
 0x45e   :  { %4659 = vmatmul.bf16.gmra.mxu0 %v12273_v59  ;;  %v4986_v49 = vpack.c.bf16 %v4954_v44, %v4954_v44  ;;  %v4710_v21 = vadd.f32 %v12377_v4, %v4621_v6 }
 0x460   :  { %v5085_v17 = vunpack.c.l.b16 %v4986_v49  ;;  %v4799_v4 = vadd.f32 %v12388_v35, %v4710_v21 }
 0x461   :  { %v4800_v0 = vpop.f32.mrf.mxu2 }
 0x462   :  { %v4889_v61 = vpop.f32.mrf.mxu3  ;;  %v12393_v7 = vpack.c.b16 %v5085_v17, %v5084_v63  ;;  %v4243_v43 = vpop.permute.xlu0 %4242  ;;  %v4888_v35 = vadd.f32 %v12390_v27, %v4799_v4 }
 0x463   :  { %v4622_v51 = vpop.f32.mrf.mxu0  ;;  %v4714_v59 = vpop.f32.mrf.mxu1  ;;  %v4271_v25 = vsel %vm267_vm0, %v4269_v40, %v4243_v43 }
 0x464   :  { %v4623_v1 = vadd.f32 %v12285_v36, %v4622_v51  ;;  %v4252_v42 = vpop.permute.xlu2 %4251 }
 0x465   :  { %v4277_v17 = vsel %vm3373_vm1, %v12144_v11, %v4252_v42 }
 0x466   :  { %4753 = vmatmul.bf16.gmra.mxu1 %v12309_v47  ;;  %4842 = vmatmul.bf16.gmra.mxu2 %v4225_v19  ;;  %v9361_v47 = vld [vmem:[%s13682_s5 + $0x20] sm:$0xff]  ;;  %v4712_v38 = vadd.f32 %v4711_v29, %v4623_v1 }
 0x467   :  { %4931 = vmatmul.bf16.gmra.mxu3 %v4233_v39  ;;  %5474 = vmatpush.bf16.msra.mxu0 %v9361_v47 }
 0x468   :  { %v4801_v44 = vadd.f32 %v4800_v0, %v4712_v38 }
 0x469   :  { %v4803_v22 = vpop.f32.mrf.mxu2 }
 0x46a   :  { %v4892_v55 = vpop.f32.mrf.mxu3  ;;  %v4259_v23 = vpop.permute.xlu0 %4258  ;;  %v4890_v12 = vadd.f32 %v4889_v61, %v4801_v44  ;;  %v9357_v61 = vld [vmem:[%s13682_s5] sm:$0xff] }
 0x46b   :  { %v4625_v18 = vpop.f32.mrf.mxu0  ;;  %v4716_v57 = vpop.f32.mrf.mxu1  ;;  %5475 = vmatpush.bf16.msra.mxu0 %v9360_v2  ;;  %v4279_v0 = vsel %vm267_vm0, %v4277_v17, %v4259_v23 }
 0x46c   :  { %v4626_v52 = vadd.f32 %v12285_v36, %v4625_v18  ;;  %v4956_v39 = vmax.f32 %v4890_v12, 0.0 }
 0x46e   :  { %v4715_v32 = vadd.f32 %v4714_v59, %v4626_v52  ;;  %4664 = vmatmul.bf16.gmra.mxu0 %v12304_v58 }
 0x46f   :  { %5476 = vmatpush.bf16.msra.mxu0 %v9359_v14 }
 0x470   :  { %v4804_v62 = vadd.f32 %v4803_v22, %v4715_v32 }
 0x471   :  { %v4805_v8 = vpop.f32.mrf.mxu2 }
 0x472   :  { %v4894_v41 = vpop.f32.mrf.mxu3  ;;  %v4250_v58 = vpop.permute.xlu1 %4249  ;;  %v4893_v31 = vadd.f32 %v4892_v55, %v4804_v62  ;;  %v4955_v55 = vmax.f32 %v4888_v35, 0.0 }
 0x473   :  { %v4627_v46 = vpop.f32.mrf.mxu0  ;;  %v4719_v28 = vpop.f32.mrf.mxu1  ;;  %v4273_v56 = vsel %vm3379_vm2, %v4271_v25, %v4250_v58  ;;  %5477 = vmatpush.bf16.msra.mxu0 %v9358_v34 }
 0x474   :  { %v4628_v37 = vadd.f32 %v12285_v36, %v4627_v46  ;;  %v4957_v49 = vmax.f32 %v4893_v31, 0.0  ;;  %v4987_v32 = vpack.c.bf16 %v4955_v55, %v4955_v55  ;;  %v4284_v31 = vpop.permute.xlu2 %4283 }
 0x475   :  { %v4317_v17 = vsel %vm3373_vm1, %v12191_v26, %v4284_v31 }
 0x476   :  { %v4717_v29 = vadd.f32 %v4716_v57, %v4628_v37  ;;  %4758 = vmatmul.bf16.gmra.mxu1 %v12330_v16  ;;  %4847 = vmatmul.bf16.gmra.mxu2 %v4273_v56  ;;  %v4989_v59 = vpack.c.bf16 %v4957_v49, %v4957_v49  ;;  %v4988_v57 = vpack.c.bf16 %v4956_v39, %v4956_v39  ;;  %v9386_v49 = vld [vmem:[%s13682_s5 + $0xe8] sm:$0xff] }
 0x477   :  { %5478 = vmatpush.bf16.msra.mxu0 %v9357_v61  ;;  %5560 = vmatpush.bf16.msra.mxu3 %v9386_v49 }
 0x478   :  { %v4806_v63 = vadd.f32 %v4805_v8, %v4717_v29  ;;  %v5037_v18 = vunpack.c.l.b16 %v4989_v59  ;;  %v5030_v8 = vunpack.c.l.b16 %v4987_v32 }
 0x479   :  { %v4808_v10 = vpop.f32.mrf.mxu2 }
 0x47a   :  { %v4895_v9 = vadd.f32 %v4894_v41, %v4806_v63  ;;  %v4897_v16 = vpop.f32.mrf.mxu3  ;;  %v4266_v51 = vpop.permute.xlu1 %4265  ;;  %v9378_v41 = vld [vmem:[%s13682_s5 + $0xa8] sm:$0xff] }
 0x47b   :  { %v4630_v48 = vpop.f32.mrf.mxu0  ;;  %v4281_v45 = vsel %vm3379_vm2, %v4279_v0, %v4266_v51  ;;  %v4721_v19 = vpop.f32.mrf.mxu1  ;;  %5531 = vmatpush.bf16.msra.mxu2 %v9378_v41  ;;  %v9370_v63 = vld [vmem:[%s13682_s5 + $0x68] sm:$0xff] }
 0x47c   :  { %v4958_v53 = vmax.f32 %v4895_v9, 0.0  ;;  %v4631_v11 = vadd.f32 %v12285_v36, %v4630_v48  ;;  %4936 = vmatmul.bf16.gmra.mxu3 %v4281_v45  ;;  %5502 = vmatpush.bf16.msra.mxu1 %v9370_v63  ;;  %v4300_v26 = vpop.permute.xlu2 %4299 }
 0x47e   :  { %v4990_v54 = vpack.c.bf16 %v4958_v53, %v4958_v53  ;;  %v4720_v22 = vadd.f32 %v4719_v28, %v4631_v11  ;;  %4669 = vmatmul.bf16.gmra.mxu0 %v12325_v50  ;;  %v5031_v50 = vunpack.c.l.b16 %v4988_v57 }
 0x480   :  { %v5038_v13 = vunpack.c.l.b16 %v4990_v54  ;;  %v4809_v27 = vadd.f32 %v4808_v10, %v4720_v22  ;;  %v12456_v21 = vpack.c.b16 %v5031_v50, %v5030_v8 }
 0x481   :  { %v4810_v52 = vpop.f32.mrf.mxu2 }
 0x482   :  { %v4899_v43 = vpop.f32.mrf.mxu3  ;;  %v12447_v47 = vpack.c.b16 %v5038_v13, %v5037_v18  ;;  %v4898_v6 = vadd.f32 %v4897_v16, %v4809_v27  ;;  %v4291_v14 = vpop.permute.xlu0 %4290 }
 0x483   :  { %v4632_v1 = vpop.f32.mrf.mxu0  ;;  %v4724_v24 = vpop.f32.mrf.mxu1  ;;  %v4319_v34 = vsel %vm267_vm0, %v4317_v17, %v4291_v14 }
 0x484   :  { %v4633_v62 = vadd.f32 %v12285_v36, %v4632_v1  ;;  %5087 = vrot.lane.b32.xlu1 %v12447_v47, %s9685_s21  ;;  %v4959_v2 = vmax.f32 %v4898_v6, 0.0 }
 0x486   :  { %v4722_v20 = vadd.f32 %v4721_v19, %v4633_v62  ;;  %4763 = vmatmul.bf16.gmra.mxu1 %v12355_v60  ;;  %v4991_v37 = vpack.c.bf16 %v4959_v2, %v4959_v2  ;;  %v4325_v19 = vsel %vm3373_vm1, %v12214_v5, %v4300_v26 }
 0x488   :  { %v4811_v38 = vadd.f32 %v4810_v52, %v4722_v20  ;;  %v5042_v29 = vunpack.c.l.b16 %v4991_v37 }
 0x489   :  { %v4813_v58 = vpop.f32.mrf.mxu2 }
 0x48a   :  { %v4900_v40 = vadd.f32 %v4899_v43, %v4811_v38  ;;  %v4902_v46 = vpop.f32.mrf.mxu3  ;;  %v4307_v59 = vpop.permute.xlu0 %4306 }
 0x48b   :  { %v4635_v25 = vpop.f32.mrf.mxu0  ;;  %v4726_v60 = vpop.f32.mrf.mxu1  ;;  %v4327_v39 = vsel %vm267_vm0, %v4325_v19, %v4307_v59 }
 0x48c   :  { %v4960_v28 = vmax.f32 %v4900_v40, 0.0  ;;  %v4636_v56 = vadd.f32 %v12285_v36, %v4635_v25  ;;  %5033 = vrot.lane.b32.xlu1 %v12456_v21, %s9685_s21 }
 0x48e   :  { %v4992_v42 = vpack.c.bf16 %v4960_v28, %v4960_v28  ;;  %v4725_v44 = vadd.f32 %v4724_v24, %v4636_v56  ;;  %4674 = vmatmul.bf16.gmra.mxu0 %v12350_v15 }
 0x490   :  { %v5043_v23 = vunpack.c.l.b16 %v4992_v42  ;;  %v4814_v4 = vadd.f32 %v4813_v58, %v4725_v44 }
 0x491   :  { %v4815_v10 = vpop.f32.mrf.mxu2 }
 0x492   :  { %v4904_v12 = vpop.f32.mrf.mxu3  ;;  %v4298_v0 = vpop.permute.xlu1 %4297  ;;  %v12471_v15 = vpack.c.b16 %v5043_v23, %v5042_v29  ;;  %v4903_v51 = vadd.f32 %v4902_v46, %v4814_v4 }
 0x493   :  { %v4637_v9 = vpop.f32.mrf.mxu0  ;;  %v4321_v16 = vsel %vm3379_vm2, %v4319_v34, %v4298_v0  ;;  %v4729_v45 = vpop.f32.mrf.mxu1  ;;  %v9369_v34 = vld [vmem:[%s13682_s5 + $0x60] sm:$0xff] }
 0x494   :  { %v4638_v48 = vadd.f32 %v12285_v36, %v4637_v9  ;;  %4852 = vmatmul.bf16.gmra.mxu2 %v4321_v16  ;;  %5045 = vrot.lane.b32.xlu2 %v12471_v15, %s9685_s21  ;;  %v4961_v53 = vmax.f32 %v4903_v51, 0.0 }
 0x495   :  { %5503 = vmatpush.bf16.msra.mxu1 %v9369_v34 }
 0x496   :  { %v4727_v35 = vadd.f32 %v4726_v60, %v4638_v48  ;;  %v4993_v27 = vpack.c.bf16 %v4961_v53, %v4961_v53 }
 0x498   :  { %v4816_v11 = vadd.f32 %v4815_v10, %v4727_v35  ;;  %v5091_v62 = vunpack.c.l.b16 %v4993_v27  ;;  %v9385_v10 = vld [vmem:[%s13682_s5 + $0xe0] sm:$0xff] }
 0x499   :  { %v4818_v61 = vpop.f32.mrf.mxu2  ;;  %5561 = vmatpush.bf16.msra.mxu3 %v9385_v10 }
 0x49a   :  { %v4905_v54 = vadd.f32 %v4904_v12, %v4816_v11  ;;  %v4907_v22 = vpop.f32.mrf.mxu3  ;;  %v4314_v55 = vpop.permute.xlu1 %4313 }
 0x49b   :  { %v4640_v18 = vpop.f32.mrf.mxu0  ;;  %v4329_v13 = vsel %vm3379_vm2, %v4327_v39, %v4314_v55  ;;  %v4731_v43 = vpop.f32.mrf.mxu1 }
 0x49c   :  { %v4962_v52 = vmax.f32 %v4905_v54, 0.0  ;;  %v4641_v57 = vadd.f32 %v12285_v36, %v4640_v18  ;;  %4941 = vmatmul.bf16.gmra.mxu3 %v4329_v13 }
 0x49e   :  { %v4994_v1 = vpack.c.bf16 %v4962_v52, %v4962_v52  ;;  %v4730_v32 = vadd.f32 %v4729_v45, %v4641_v57  ;;  %v5022_v6 = vpop.permute.xlu2 %5021 }
 0x49f   :  { %v5066_v5 = vsel %vm267_vm0, %v12315_v3, %v5022_v6  ;;  %v9377_v3 = vld [vmem:[%s13682_s5 + $0xa0] sm:$0xff] }
 0x4a0   :  { %v5092_v24 = vunpack.c.l.b16 %v4994_v1  ;;  %v4819_v50 = vadd.f32 %v4818_v61, %v4730_v32  ;;  %5479 = vmatmul.bf16.vlgmr.msra.gmra.mxu0 %v5066_v5  ;;  %5532 = vmatpush.bf16.msra.mxu2 %v9377_v3  ;;  %v9376_v1 = vld [vmem:[%s13682_s5 + $0x98] sm:$0xff] }
 0x4a1   :  { %v4820_v20 = vpop.f32.mrf.mxu2 }
 0x4a2   :  { %v4909_v8 = vpop.f32.mrf.mxu3  ;;  %v12484_v2 = vpack.c.b16 %v5092_v24, %v5091_v62  ;;  %v4908_v41 = vadd.f32 %v4907_v22, %v4819_v50 }
 0x4a3   :  { %v4642_v38 = vpop.f32.mrf.mxu0  ;;  %v4734_v40 = vpop.f32.mrf.mxu1 }
 0x4a4   :  { %v4643_v58 = vadd.f32 %v12285_v36, %v4642_v38  ;;  %5094 = vrot.lane.b32.xlu2 %v12484_v2, %s9685_s21  ;;  %v4963_v25 = vmax.f32 %v4908_v41, 0.0  ;;  %5533 = vmatpush.bf16.msra.mxu2 %v9376_v1 }
 0x4a6   :  { %v4732_v46 = vadd.f32 %v4731_v43, %v4643_v58  ;;  %v4995_v14 = vpack.c.bf16 %v4963_v25, %v4963_v25  ;;  %v9374_v25 = vld [vmem:[%s13682_s5 + $0x88] sm:$0xff] }
 0x4a8   :  { %v4821_v31 = vadd.f32 %v4820_v20, %v4732_v46  ;;  %v5049_v49 = vunpack.c.l.b16 %v4995_v14  ;;  %v9375_v20 = vld [vmem:[%s13682_s5 + $0x90] sm:$0xff] }
 0x4a9   :  { %v4823_v37 = vpop.f32.mrf.mxu2  ;;  %5534 = vmatpush.bf16.msra.mxu2 %v9375_v20  ;;  %v9383_v20 = vld [vmem:[%s13682_s5 + $0xd0] sm:$0xff] }
 0x4aa   :  { %v4910_v28 = vadd.f32 %v4909_v8, %v4821_v31  ;;  %v4912_v56 = vpop.f32.mrf.mxu3 }
 0x4ab   :  { %v4645_v60 = vpop.f32.mrf.mxu0  ;;  %v4736_v29 = vpop.f32.mrf.mxu1 }
 0x4ac   :  { %v4964_v42 = vmax.f32 %v4910_v28, 0.0  ;;  %v4646_v44 = vadd.f32 %v12285_v36, %v4645_v60 }
 0x4ad   :  { %5535 = vmatpush.bf16.msra.mxu2 %v9374_v25 }
 0x4ae   :  { %v4996_v23 = vpack.c.bf16 %v4964_v42, %v4964_v42  ;;  %v4735_v4 = vadd.f32 %v4734_v40, %v4646_v44  ;;  %v9368_v42 = vld [vmem:[%s13682_s5 + $0x58] sm:$0xff]  ;;  %v9373_v44 = vld [vmem:[%s13682_s5 + $0x80] sm:$0xff] }
 0x4af   :  { %5504 = vmatpush.bf16.msra.mxu1 %v9368_v42 }
 0x4b0   :  { %v5050_v63 = vunpack.c.l.b16 %v4996_v23  ;;  %v4824_v17 = vadd.f32 %v4823_v37, %v4735_v4 }
 0x4b1   :  { %v4825_v12 = vpop.f32.mrf.mxu2  ;;  %5536 = vmatpush.bf16.msra.mxu2 %v9373_v44  ;;  %v9389_v44 = vld [vmem:[%s13682_s5 + $0x100] sm:$0xff] }
 0x4b2   :  { %v4914_v0 = vpop.f32.mrf.mxu3  ;;  %v12499_v9 = vpack.c.b16 %v5050_v63, %v5049_v49  ;;  %v4913_v51 = vadd.f32 %v4912_v56, %v4824_v17 }
 0x4b3   :  { %v4647_v16 = vpop.f32.mrf.mxu0  ;;  %v4739_v45 = vpop.f32.mrf.mxu1 }
 0x4b4   :  { %v4648_v48 = vadd.f32 %v12285_v36, %v4647_v16  ;;  %5119 = vrot.lane.b32.xlu2 %v12499_v9, %s9685_s21  ;;  %v4965_v35 = vmax.f32 %v4913_v51, 0.0 }
 0x4b6   :  { %v4737_v26 = vadd.f32 %v4736_v29, %v4648_v48  ;;  %v4997_v39 = vpack.c.bf16 %v4965_v35, %v4965_v35  ;;  %v9367_v48 = vld [vmem:[%s13682_s5 + $0x50] sm:$0xff] }
 0x4b7   :  { %5505 = vmatpush.bf16.msra.mxu1 %v9367_v48 }
 0x4b8   :  { %v4826_v59 = vadd.f32 %v4825_v12, %v4737_v26  ;;  %v5054_v27 = vunpack.c.l.b16 %v4997_v39 }
 0x4b9   :  { %v4828_v53 = vpop.f32.mrf.mxu2 }
 0x4ba   :  { %v4915_v11 = vadd.f32 %v4914_v0, %v4826_v59  ;;  %v4917_v19 = vpop.f32.mrf.mxu3 }
 0x4bb   :  { %v4650_v61 = vpop.f32.mrf.mxu0  ;;  %v4741_v55 = vpop.f32.mrf.mxu1 }
 0x4bc   :  { %v4966_v54 = vmax.f32 %v4915_v11, 0.0  ;;  %v4651_v22 = vadd.f32 %v12285_v36, %v4650_v61 }
 0x4be   :  { %v4998_v18 = vpack.c.bf16 %v4966_v54, %v4966_v54  ;;  %v4740_v13 = vadd.f32 %v4739_v45, %v4651_v22 }
 0x4c0   :  { %v5055_v52 = vunpack.c.l.b16 %v4998_v18  ;;  %v4829_v57 = vadd.f32 %v4828_v53, %v4740_v13  ;;  %v9366_v53 = vld [vmem:[%s13682_s5 + $0x48] sm:$0xff]  ;;  %v9365_v18 = vld [vmem:[%s13682_s5 + $0x40] sm:$0xff] }
 0x4c1   :  { %v4830_v43 = vpop.f32.mrf.mxu2  ;;  %5506 = vmatpush.bf16.msra.mxu1 %v9366_v53 }
 0x4c2   :  { %v4919_v32 = vpop.f32.mrf.mxu3  ;;  %v12508_v6 = vpack.c.b16 %v5055_v52, %v5054_v27  ;;  %v4918_v62 = vadd.f32 %v4917_v19, %v4829_v57 }
 0x4c3   :  { %v4652_v5 = vpop.f32.mrf.mxu0  ;;  %v4744_v50 = vpop.f32.mrf.mxu1 }
 0x4c4   :  { %v4653_v24 = vadd.f32 %v12285_v36, %v4652_v5  ;;  %5057 = vrot.lane.b32.xlu0 %v12508_v6, %s9685_s21  ;;  %v4967_v58 = vmax.f32 %v4918_v62, 0.0 }
 0x4c5   :  { %5507 = vmatpush.bf16.msra.mxu1 %v9365_v18 }
 0x4c6   :  { %v4742_v8 = vadd.f32 %v4741_v55, %v4653_v24  ;;  %v5081_v38 = vpop.permute.xlu0 %5080  ;;  %v4999_v28 = vpack.c.bf16 %v4967_v58, %v4967_v58 }
 0x4c7   :  { %v5105_v41 = vsel %vm267_vm0, %v12338_v33, %v5081_v38  ;;  %v9384_v33 = vld [vmem:[%s13682_s5 + $0xd8] sm:$0xff] }
 0x4c8   :  { %v4831_v40 = vadd.f32 %v4830_v43, %v4742_v8  ;;  %5484 = vmatmul.bf16.gmra.mxu0 %v5105_v41  ;;  %5562 = vmatpush.bf16.msra.mxu3 %v9384_v33  ;;  %v5061_v4 = vunpack.c.l.b16 %v4999_v28  ;;  %v9392_v38 = vld [vmem:[%s13682_s5 + $0x118] sm:$0xff] }
 0x4c9   :  { %v4833_v46 = vpop.f32.mrf.mxu2  ;;  %5591 = vmatpush.bf16.msrb.mxu0 %v9392_v38 }
 0x4ca   :  { %v4920_v31 = vadd.f32 %v4919_v32, %v4831_v40  ;;  %v4922_v3 = vpop.f32.mrf.mxu3 }
 0x4cb   :  { %v4655_v37 = vpop.f32.mrf.mxu0  ;;  %v4746_v14 = vpop.f32.mrf.mxu1 }
 0x4cc   :  { %v4968_v56 = vmax.f32 %v4920_v31, 0.0  ;;  %v4656_v60 = vadd.f32 %v12285_v36, %v4655_v37  ;;  %5563 = vmatpush.bf16.msra.mxu3 %v9383_v20 }
 0x4ce   :  { %v5000_v29 = vpack.c.bf16 %v4968_v56, %v4968_v56  ;;  %v4745_v23 = vadd.f32 %v4744_v50, %v4656_v60  ;;  %v9390_v56 = vld [vmem:[%s13682_s5 + $0x108] sm:$0xff] }
 0x4d0   :  { %v5062_v49 = vunpack.c.l.b16 %v5000_v29  ;;  %v4834_v63 = vadd.f32 %v4833_v46, %v4745_v23  ;;  %v9391_v46 = vld [vmem:[%s13682_s5 + $0x110] sm:$0xff] }
 0x4d1   :  { %v4835_v17 = vpop.f32.mrf.mxu2  ;;  %5592 = vmatpush.bf16.msrb.mxu0 %v9391_v46 }
 0x4d2   :  { %v4924_v10 = vpop.f32.mrf.mxu3  ;;  %v12531_v34 = vpack.c.b16 %v5062_v49, %v5061_v4  ;;  %v4923_v0 = vadd.f32 %v4922_v3, %v4834_v63 }
 0x4d3   :  { %v4657_v12 = vpop.f32.mrf.mxu0  ;;  %v4749_v51 = vpop.f32.mrf.mxu1 }
 0x4d4   :  { %v4658_v16 = vadd.f32 %v12285_v36, %v4657_v12  ;;  %5096 = vrot.lane.b32.xlu0 %v12531_v34, %s9685_s21  ;;  %v4969_v26 = vmax.f32 %v4923_v0, 0.0 }
 0x4d5   :  { %5593 = vmatpush.bf16.msrb.mxu0 %v9390_v56 }
 0x4d6   :  { %v4747_v45 = vadd.f32 %v4746_v14, %v4658_v16  ;;  %v5001_v39 = vpack.c.bf16 %v4969_v26, %v4969_v26 }
 0x4d8   :  { %v4836_v35 = vadd.f32 %v4835_v17, %v4747_v45  ;;  %v5100_v52 = vunpack.c.l.b16 %v5001_v39 }
 0x4d9   :  { %v4838_v59 = vpop.f32.mrf.mxu2  ;;  %5594 = vmatpush.bf16.msrb.mxu0 %v9389_v44 }
 0x4da   :  { %v4925_v11 = vadd.f32 %v4924_v10, %v4836_v35  ;;  %v4927_v19 = vpop.f32.mrf.mxu3 }
 0x4db   :  { %v4660_v61 = vpop.f32.mrf.mxu0  ;;  %v12543_v55 = vpop.f32.mrf.mxu1 }
 0x4dc   :  { %v4970_v54 = vmax.f32 %v4925_v11, 0.0  ;;  %v4661_v22 = vadd.f32 %v12285_v36, %v4660_v61 }
 0x4de   :  { %v5002_v13 = vpack.c.bf16 %v4970_v54, %v4970_v54  ;;  %v4750_v27 = vadd.f32 %v4749_v51, %v4661_v22 }
 0x4e0   :  { %v5101_v57 = vunpack.c.l.b16 %v5002_v13  ;;  %v4839_v43 = vadd.f32 %v4838_v59, %v4750_v27 }
 0x4e1   :  { %v12548_v1 = vpop.f32.mrf.mxu2 }
 0x4e2   :  { %v12550_v32 = vadd.f32 %v4927_v19, %v4839_v43  ;;  %v12552_v5 = vpack.c.b16 %v5101_v57, %v5100_v52  ;;  %v12554_v62 = vpop.f32.mrf.mxu3  ;;  %v9382_v52 = vld [vmem:[%s13682_s5 + $0xc8] sm:$0xff] }
 0x4e3   :  { %v12556_v24 = vpop.f32.mrf.mxu0  ;;  %v4754_v50 = vpop.f32.mrf.mxu1  ;;  %5564 = vmatpush.bf16.msra.mxu3 %v9382_v52 }
 0x4e4   :  { %5148 = vrot.lane.b32.xlu0 %v12552_v5, %s9685_s21 }
 0x4e9   :  { %v4843_v8 = vpop.f32.mrf.mxu2 }
 0x4ea   :  { %v4932_v40 = vpop.f32.mrf.mxu3 }
 0x4eb   :  { %v4665_v41 = vpop.f32.mrf.mxu0  ;;  %v4756_v28 = vpop.f32.mrf.mxu1 }
 0x4ec   :  { %v4666_v58 = vadd.f32 %v12285_v36, %v4665_v41 }
 0x4ee   :  { %v4755_v25 = vadd.f32 %v4754_v50, %v4666_v58  ;;  %v5046_v31 = vpop.permute.xlu2 %5045 }
 0x4ef   :  { %v5074_v3 = vsel %vm267_vm0, %v12447_v47, %v5046_v31  ;;  %v9381_v31 = vld [vmem:[%s13682_s5 + $0xc0] sm:$0xff] }
 0x4f0   :  { %v4844_v37 = vadd.f32 %v4843_v8, %v4755_v25  ;;  %5537 = vmatmul.bf16.vlgmr.msra.gmra.mxu2 %v5074_v3  ;;  %5565 = vmatpush.bf16.msra.mxu3 %v9381_v31 }
 0x4f1   :  { %v4845_v60 = vpop.f32.mrf.mxu2 }
 0x4f2   :  { %v4933_v33 = vadd.f32 %v4932_v40, %v4844_v37  ;;  %v4934_v23 = vpop.f32.mrf.mxu3 }
 0x4f3   :  { %v4667_v14 = vpop.f32.mrf.mxu0  ;;  %v4759_v10 = vpop.f32.mrf.mxu1 }
 0x4f4   :  { %v4668_v42 = vadd.f32 %v12285_v36, %v4667_v14  ;;  %v4973_v49 = vmax.f32 %v4933_v33, 0.0  ;;  %v12584_v36 = vld [vmem:[%s13681_s4] ss:$0 sm:$0xff] }
 0x4f6   :  { %v4757_v29 = vadd.f32 %v4756_v28, %v4668_v42  ;;  %v5088_v47 = vpop.permute.xlu1 %5087  ;;  %v5005_v0 = vpack.c.bf16 %v4973_v49, %v4973_v49 }
 0x4f7   :  { %v5139_v4 = vsel %vm267_vm0, %v12456_v21, %v5088_v47  ;;  %v5109_v40 = vsel %vm267_vm0, %v12393_v7, %v5088_v47 }
 0x4f8   :  { %v4846_v63 = vadd.f32 %v4845_v60, %v4757_v29  ;;  %5489 = vmatmul.bf16.gmra.mxu0 %v5139_v4  ;;  %v5128_v19 = vunpack.c.l.b16 %v5005_v0 }
 0x4f9   :  { %v4848_v48 = vpop.f32.mrf.mxu2 }
 0x4fa   :  { %v4935_v17 = vadd.f32 %v4934_v23, %v4846_v63 }
 0x4fb   :  { %v4670_v12 = vpop.f32.mrf.mxu0  ;;  %v4761_v27 = vpop.f32.mrf.mxu1 }
 0x4fc   :  { %v4974_v16 = vmax.f32 %v4935_v17, 0.0  ;;  %v4671_v51 = vadd.f32 %v12584_v36, %v4670_v12 }
 0x4fe   :  { %v5006_v45 = vpack.c.bf16 %v4974_v16, %v4974_v16  ;;  %v4760_v26 = vadd.f32 %v4759_v10, %v4671_v51  ;;  %v5034_v21 = vpop.permute.xlu1 %5033  ;;  %v5095_v35 = vpop.permute.xlu2 %5094 }
 0x4ff   :  { %v5070_v59 = vsel %vm267_vm0, %v12369_v30, %v5034_v21  ;;  %v4937_v53 = vpop.f32.mrf.mxu3  ;;  %v5113_v11 = vsel %vm267_vm0, %v12471_v15, %v5095_v35 }
 0x500   :  { %v5129_v61 = vunpack.c.l.b16 %v5006_v45  ;;  %v4849_v39 = vadd.f32 %v4848_v48, %v4760_v26  ;;  %5508 = vmatmul.bf16.vlgmr.msra.gmra.mxu1 %v5070_v59  ;;  %5542 = vmatmul.bf16.gmra.mxu2 %v5113_v11  ;;  %v4663_v11 = vadd.f32 %v12584_v36, %v12556_v24 }
 0x501   :  { %v4850_v57 = vpop.f32.mrf.mxu2 }
 0x502   :  { %v12591_v54 = vpack.c.b16 %v5129_v61, %v5128_v19  ;;  %v4938_v18 = vadd.f32 %v4937_v53, %v4849_v39  ;;  %v4752_v19 = vadd.f32 %v12543_v55, %v4663_v11  ;;  %v12633_v55 = vld [vmem:[%s13683_s6] ss:$0 sm:$0xff] }
 0x503   :  { %v4672_v22 = vpop.f32.mrf.mxu0  ;;  %v4764_v56 = vpop.f32.mrf.mxu1 }
 0x504   :  { %v4673_v13 = vadd.f32 %v12584_v36, %v4672_v22  ;;  %5131 = vrot.lane.b32.xlu1 %v12591_v54, %s9685_s21  ;;  %v4975_v43 = vmax.f32 %v4938_v18, 0.0  ;;  %v4841_v61 = vadd.f32 %v12548_v1, %v4752_v19  ;;  %v4971_v18 = vmax.f32 %v12550_v32, 0.0 }
 0x506   :  { %v4762_v30 = vadd.f32 %v4761_v27, %v4673_v13  ;;  %v5007_v38 = vpack.c.bf16 %v4975_v43, %v4975_v43  ;;  %v4930_v39 = vadd.f32 %v12554_v62, %v4841_v61  ;;  %v5003_v27 = vpack.c.bf16 %v4971_v18, %v4971_v18 }
 0x507   :  { %v4939_v20 = vpop.f32.mrf.mxu3 }
 0x508   :  { %v4851_v50 = vadd.f32 %v4850_v57, %v4762_v30  ;;  %5494 = vmatmul.bf16.gmra.mxu0 %v5074_v3  ;;  %v5135_v46 = vunpack.c.l.b16 %v5007_v38  ;;  %v4972_v22 = vmax.f32 %v4930_v39, 0.0  ;;  %v5123_v52 = vunpack.c.l.b16 %v5003_v27 }
 0x50a   :  { %v4940_v8 = vadd.f32 %v4939_v20, %v4851_v50  ;;  %v5004_v13 = vpack.c.bf16 %v4972_v22, %v4972_v22 }
 0x50b   :  { %v4675_v7 = vpop.f32.mrf.mxu0  ;;  %v4766_v29 = vpop.f32.mrf.mxu1 }
 0x50c   :  { %v4976_v41 = vmax.f32 %v4940_v8, 0.0  ;;  %v4676_v44 = vadd.f32 %v12584_v36, %v4675_v7  ;;  %v5124_v30 = vunpack.c.l.b16 %v5004_v13 }
 0x50e   :  { %v5008_v58 = vpack.c.bf16 %v4976_v41, %v4976_v41  ;;  %v5120_v3 = vpop.permute.xlu2 %5119  ;;  %v4765_v49 = vadd.f32 %v4764_v56, %v4676_v44 }
 0x50f   :  { %v5142_v28 = vsel %vm267_vm0, %v12471_v15, %v5120_v3 }
 0x510   :  { %v5136_v25 = vunpack.c.l.b16 %v5008_v58  ;;  %5513 = vmatmul.bf16.gmra.mxu1 %v5109_v40 }
 0x512   :  { %v5137_v37 = vpack.c.b16 %v5136_v25, %v5135_v46 }
 0x513   :  { %v4677_v33 = vpop.f32.mrf.mxu0 }
 0x514   :  { %5150 = vrot.lane.b32.xlu1 %v5137_v37, %s9685_s21  ;;  %v4678_v42 = vadd.f32 %v12584_v36, %v4677_v33 }
 0x516   :  { %v4767_v23 = vadd.f32 %v4766_v29, %v4678_v42 }
 0x517   :  { %v4853_v60 = vpop.f32.mrf.mxu2 }
 0x518   :  { %8416 = vmatmul.msk.bf16.vlgmr.msrb.gmra.mxu0 %vm267_vm0, %v12531_v34  ;;  %v4854_v17 = vadd.f32 %v4853_v60, %v4765_v49 }
 0x51f   :  { %v4942_v14 = vpop.f32.mrf.mxu3  ;;  %v4855_v47 = vpop.f32.mrf.mxu2 }
 0x520   :  { %5518 = vmatmul.bf16.gmra.mxu1 %v5142_v28  ;;  %v4856_v63 = vadd.f32 %v4855_v47, %v4767_v23  ;;  %v4943_v0 = vadd.f32 %v4942_v14, %v4854_v17 }
 0x522   :  { %v4977_v51 = vmax.f32 %v4943_v0, 0.0 }
 0x524   :  { %v5009_v45 = vpack.c.bf16 %v4977_v51, %v4977_v51 }
 0x526   :  { %v5154_v21 = vunpack.c.l.b16 %v5009_v45 }
 0x527   :  { %v4944_v4 = vpop.f32.mrf.mxu3 }
 0x528   :  { %8417 = vmatmul.msk.bf16.gmra.mxu0 %vm267_vm0, %v12552_v5  ;;  %v4945_v10 = vadd.f32 %v4944_v4, %v4856_v63 }
 0x52a   :  { %v4978_v16 = vmax.f32 %v4945_v10, 0.0 }
 0x52c   :  { %v5010_v48 = vpack.c.bf16 %v4978_v16, %v4978_v16 }
 0x52e   :  { %v5155_v26 = vunpack.c.l.b16 %v5010_v48 }
 0x530   :  { %v5156_v59 = vpack.c.b16 %v5155_v26, %v5154_v21 }
 0x536   :  { %v5058_v15 = vpop.permute.xlu0 %5057 }
 0x537   :  { %v5078_v12 = vsel %vm267_vm0, %v12499_v9, %v5058_v15  ;;  %v5158_v5 = vsel %vm267_vm0, %v12484_v2, %v5058_v15 }
 0x538   :  { %5523 = vmatmul.bf16.gmra.mxu1 %v5158_v5  ;;  %5566 = vmatmul.bf16.vlgmr.msra.gmra.mxu3 %v5078_v12 }
 0x539   :  { %8418 = vmatmul.msk.bf16.gmra.mxu0 %vm267_vm0, %v5137_v37 }
 0x546   :  { %v5097_v35 = vpop.permute.xlu0 %5096 }
 0x547   :  { %v5117_v53 = vsel %vm267_vm0, %v12508_v6, %v5097_v35  ;;  %v5480_v6 = vpop.f32.mrf.mxu0 }
 0x548   :  { %5547 = vmatmul.bf16.gmra.mxu2 %v5117_v53  ;;  %5571 = vmatmul.bf16.gmra.mxu3 %v5117_v53  ;;  %v5481_v1 = vadd.f32 %v12633_v55, %v5480_v6 }
 0x549   :  { %8419 = vmatmul.msk.bf16.gmra.mxu0 %vm267_vm0, %v5156_v59 }
 0x54f   :  { %v5482_v57 = vpop.f32.mrf.mxu0 }
 0x550   :  { %v5483_v8 = vadd.f32 %v12633_v55, %v5482_v57 }
 0x556   :  { %v5149_v2 = vpop.permute.xlu0 %5148 }
 0x557   :  { %v5162_v9 = vsel %vm267_vm0, %v12531_v34, %v5149_v2  ;;  %v5125_v34 = vpack.c.b16 %v5124_v30, %v5123_v52  ;;  %v5485_v62 = vpop.f32.mrf.mxu0 }
 0x558   :  { %5552 = vmatmul.bf16.gmra.mxu2 %v5162_v9  ;;  %v5486_v12 = vadd.f32 %v12633_v55, %v5485_v62 }
 0x55f   :  { %v5487_v41 = vpop.f32.mrf.mxu0 }
 0x560   :  { %v5488_v59 = vadd.f32 %v12633_v55, %v5487_v41  ;;  %v9442_v41 = vld [vmem:[%s13684_s7 + $0x18c] sm:$0xf] }
 0x573   :  { %v5538_v24 = vpop.f32.mrf.mxu2 }
 0x575   :  { %v5490_v3 = vpop.f32.mrf.mxu0 }
 0x576   :  { %v5132_v43 = vpop.permute.xlu1 %5131  ;;  %v5491_v56 = vadd.f32 %v12633_v55, %v5490_v3  ;;  %v8560_v3 = vld [vmem:[%s13684_s7 + $0x128] sm:$0xf0] }
 0x577   :  { %v5146_v50 = vsel %vm267_vm0, %v5125_v34, %v5132_v43 }
 0x578   :  { %5576 = vmatmul.bf16.gmra.mxu3 %v5146_v50 }
 0x57b   :  { %v5540_v46 = vpop.f32.mrf.mxu2 }
 0x57d   :  { %v5509_v32 = vpop.f32.mrf.mxu1  ;;  %v5492_v7 = vpop.f32.mrf.mxu0 }
 0x57e   :  { %v5510_v36 = vadd.f32 %v5509_v32, %v5481_v1  ;;  %v5493_v42 = vadd.f32 %v12633_v55, %v5492_v7  ;;  %v9418_v7 = vld [vmem:[%s13684_s7 + $0xcc] sm:$0xf] }
 0x580   :  { %v5539_v20 = vadd.f32 %v5538_v24, %v5510_v36 }
 0x585   :  { %v5511_v38 = vpop.f32.mrf.mxu1  ;;  %v12640_v33 = vpop.f32.mrf.mxu0 }
 0x586   :  { %v5512_v58 = vadd.f32 %v5511_v38, %v5483_v8  ;;  %v5151_v40 = vpop.permute.xlu1 %5150  ;;  %v8656_v8 = vld [vmem:[%s13684_s7 + $0x1e8] sm:$0xf0] }
 0x587   :  { %v5166_v25 = vsel %vm267_vm0, %v12591_v54, %v5151_v40  ;;  %v5543_v54 = vpop.f32.mrf.mxu2 }
 0x588   :  { %5581 = vmatmul.bf16.gmra.mxu3 %v5166_v25  ;;  %v5541_v31 = vadd.f32 %v5540_v46, %v5512_v58  ;;  %v8624_v58 = vld [vmem:[%s13684_s7 + $0x1a8] sm:$0xf0] }
 0x589   :  { %v8627_v40 = vor.u32 %v9442_v41, %v8624_v58  ;;  %v9434_v46 = vld [vmem:[%s13684_s7 + $0x14c] sm:$0xf]  ;;  %v9425_v41 = vld [vmem:[%s13684_s7 + $0x104] sm:$0xf]  ;;  %v5496_v58 = vadd.f32 %v12633_v55, %v12640_v33  ;;  %v8518_v33 = vld [vmem:[%s13684_s7 + $0xc0] sm:$0xf] }
 0x58a   :  { %v8592_v25 = vld [vmem:[%s13684_s7 + $0x168] sm:$0xf0] }
 0x58d   :  { %v5514_v37 = vpop.f32.mrf.mxu1  ;;  %v12643_v47 = vpop.f32.mrf.mxu0 }
 0x58e   :  { %v5515_v16 = vadd.f32 %v5514_v37, %v5486_v12  ;;  %v9426_v37 = vld [vmem:[%s13684_s7 + $0x10c] sm:$0xf] }
 0x58f   :  { %v5545_v17 = vpop.f32.mrf.mxu2 }
 0x590   :  { %v5544_v35 = vadd.f32 %v5543_v54, %v5515_v16  ;;  %v8464_v54 = vld [vmem:[%s13684_s7 + $0x68] sm:$0xf0] }
 0x595   :  { %v5516_v28 = vpop.f32.mrf.mxu1  ;;  %v5596_v23 = vpop.f32.mrf.mxu0 }
 0x596   :  { %v5517_v39 = vadd.f32 %v5516_v28, %v5488_v59  ;;  %v8563_v28 = vor.u32 %v9426_v37, %v8560_v3  ;;  %v8568_v37 = vld [vmem:[%s13684_s7 + $0x130] sm:$0xf0] }
 0x598   :  { %v5546_v18 = vadd.f32 %v5545_v17, %v5517_v39  ;;  %v9453_v17 = vld [vmem:[%s13684_s7 + $0x1dc] sm:$0xf0]  ;;  %v9443_v39 = vld [vmem:[%s13684_s7 + $0x194] sm:$0xf] }
 0x59d   :  { %v5519_v60 = vpop.f32.mrf.mxu1  ;;  %v5598_v15 = vpop.f32.mrf.mxu0 }
 0x59e   :  { %v5520_v14 = vadd.f32 %v5519_v60, %v5491_v56  ;;  %v8528_v56 = vld [vmem:[%s13684_s7 + $0xe8] sm:$0xf0] }
 0x59f   :  { %v8531_v60 = vor.u32 %v9418_v7, %v8528_v56 }
 0x5a5   :  { %v5521_v44 = vpop.f32.mrf.mxu1  ;;  %v5601_v26 = vpop.f32.mrf.mxu0 }
 0x5a6   :  { %v5522_v29 = vadd.f32 %v5521_v44, %v5493_v42  ;;  %v8496_v42 = vld [vmem:[%s13684_s7 + $0xa8] sm:$0xf0] }
 0x5ad   :  { %v5603_v34 = vpop.f32.mrf.mxu0 }
 0x5b6   :  { %v5606_v44 = vpop.f32.mrf.mxu0 }
 0x5bb   :  { %v5567_v4 = vpop.f32.mrf.mxu3 }
 0x5bc   :  { %v5568_v49 = vadd.f32 %v5567_v4, %v5539_v20  ;;  %v9450_v20 = vld [vmem:[%s13684_s7 + $0x1cc] sm:$0xf] }
 0x5bd   :  { %v8659_v38 = vor.u32 %v9450_v20, %v8656_v8  ;;  %v8550_v20 = vld [vmem:[%s13684_s7 + $0x100] sm:$0xf] }
 0x5be   :  { %v5597_v63 = vadd.f32 %v5596_v23, %v5568_v49  ;;  %v9402_v23 = vld [vmem:[%s13684_s7 + $0x4c] sm:$0xf]  ;;  %v9429_v8 = vld [vmem:[%s13684_s7 + $0x11c] sm:$0xf0] }
 0x5bf   :  { %6534 = vmatpush.bf16.msra.mxu0 %v8659_v38  ;;  %v8467_v49 = vor.u32 %v9402_v23, %v8464_v54 }
 0x5c0   :  { %v5616_v5 = vmax.f32 %v5597_v63, 0.0 }
 0x5c2   :  { %v5624_v48 = vpack.c.bf16 %v5616_v5, %v5616_v5  ;;  %v8648_v5 = vld [vmem:[%s13684_s7 + $0x1e0] sm:$0xf0] }
 0x5c3   :  { %v5569_v10 = vpop.f32.mrf.mxu3  ;;  %6535 = vmatpush.bf16.msra.mxu0 %v8627_v40 }
 0x5c4   :  { %v5570_v0 = vadd.f32 %v5569_v10, %v5541_v31  ;;  %v5634_v9 = vunpack.c.l.b16 %v5624_v48  ;;  %v8595_v31 = vor.u32 %v9434_v46, %v8592_v25  ;;  %v9449_v10 = vld [vmem:[%s13684_s7 + $0x1c4] sm:$0xf]  ;;  %v8432_v48 = vld [vmem:[%s13684_s7 + $0x28] sm:$0xf0]  ;;  %v8551_v25 = vor.u32 %v9429_v8, %v8550_v20 }
 0x5c5   :  { %v8651_v16 = vor.u32 %v9449_v10, %v8648_v5  ;;  %v8424_v20 = vld [vmem:[%s13684_s7 + $0x20] sm:$0xf0] }
 0x5c6   :  { %v5599_v51 = vadd.f32 %v5598_v15, %v5570_v0  ;;  %v8646_v15 = vld [vmem:[%s13684_s7 + $0x1c0] sm:$0xf] }
 0x5c7   :  { %6536 = vmatpush.bf16.msra.mxu0 %v8595_v31  ;;  %v8647_v12 = vor.u32 %v9453_v17, %v8646_v15  ;;  %6478 = vmatpush.bf16.msrb.mxu3 %v8651_v16  ;;  %v9427_v31 = vld [vmem:[%s13684_s7 + $0x114] sm:$0xf]  ;;  %v9413_v16 = vld [vmem:[%s13684_s7 + $0x9c] sm:$0xf0] }
 0x5c8   :  { %v5617_v45 = vmax.f32 %v5599_v51, 0.0  ;;  %v9394_v51 = vld [vmem:[%s13684_s7 + $0xc] sm:$0xf]  ;;  %v8571_v23 = vor.u32 %v9427_v31, %v8568_v37  ;;  %v8536_v15 = vld [vmem:[%s13684_s7 + $0xf0] sm:$0xf0] }
 0x5c9   :  { %6450 = vmatpush.bf16.msrb.mxu1 %v8647_v12  ;;  %v8440_v31 = vld [vmem:[%s13684_s7 + $0x30] sm:$0xf0] }
 0x5ca   :  { %v5625_v21 = vpack.c.bf16 %v5617_v45, %v5617_v45  ;;  %v9451_v45 = vld [vmem:[%s13684_s7 + $0x1d4] sm:$0xf] }
 0x5cb   :  { %v5548_v53 = vpop.f32.mrf.mxu2  ;;  %v5572_v2 = vpop.f32.mrf.mxu3  ;;  %6537 = vmatpush.bf16.msra.mxu0 %v8563_v28 }
 0x5cc   :  { %v5635_v11 = vunpack.c.l.b16 %v5625_v21  ;;  %v5549_v19 = vadd.f32 %v5548_v53, %v5520_v14  ;;  %v5573_v61 = vadd.f32 %v5572_v2, %v5544_v35  ;;  %v9410_v14 = vld [vmem:[%s13684_s7 + $0x8c] sm:$0xf]  ;;  %v8664_v21 = vld [vmem:[%s13684_s7 + $0x1f0] sm:$0xf0]  ;;  %v8614_v53 = vld [vmem:[%s13684_s7 + $0x180] sm:$0xf] }
 0x5cd   :  { %v8667_v59 = vor.u32 %v9451_v45, %v8664_v21  ;;  %v9445_v2 = vld [vmem:[%s13684_s7 + $0x19c] sm:$0xf0]  ;;  %v8488_v45 = vld [vmem:[%s13684_s7 + $0xa0] sm:$0xf0] }
 0x5ce   :  { %v12647_v22 = vpack.c.b16 %v5635_v11, %v5634_v9  ;;  %v5602_v6 = vadd.f32 %v5601_v26, %v5573_v61  ;;  %v8435_v26 = vor.u32 %v9394_v51, %v8432_v48  ;;  %v5608_v9 = vpop.f32.mrf.mxu0  ;;  %v8615_v11 = vor.u32 %v9445_v2, %v8614_v53  ;;  %v8616_v61 = vld [vmem:[%s13684_s7 + $0x1a0] sm:$0xf0]  ;;  %v9411_v2 = vld [vmem:[%s13684_s7 + $0x94] sm:$0xf] }
 0x5cf   :  { %6538 = vmatpush.bf16.msra.mxu0 %v8531_v60  ;;  %v9421_v60 = vld [vmem:[%s13684_s7 + $0xdc] sm:$0xf0]  ;;  %v9409_v48 = vld [vmem:[%s13684_s7 + $0x84] sm:$0xf] }
 0x5d0   :  { %v5618_v30 = vmax.f32 %v5602_v6, 0.0  ;;  %6451 = vmatpush.bf16.msrb.mxu1 %v8615_v11 }
 0x5d2   :  { %v5626_v50 = vpack.c.bf16 %v5618_v30, %v5618_v30  ;;  %v5524_v30 = vpop.f32.mrf.mxu1 }
 0x5d3   :  { %v5550_v13 = vpop.f32.mrf.mxu2  ;;  %v5574_v27 = vpop.f32.mrf.mxu3  ;;  %v5525_v3 = vadd.f32 %v5524_v30, %v5496_v58 }
 0x5d4   :  { %v12649_v52 = vadd.f32 %v5550_v13, %v5522_v29  ;;  %v5575_v57 = vadd.f32 %v5574_v27, %v5546_v18  ;;  %v5639_v24 = vunpack.c.l.b16 %v5626_v50  ;;  %v8499_v29 = vor.u32 %v9410_v14, %v8496_v42  ;;  %v8632_v18 = vld [vmem:[%s13684_s7 + $0x1b0] sm:$0xf0]  ;;  %v8582_v13 = vld [vmem:[%s13684_s7 + $0x140] sm:$0xf]  ;;  %v9433_v50 = vld [vmem:[%s13684_s7 + $0x144] sm:$0xf] }
 0x5d5   :  { %v9437_v27 = vld [vmem:[%s13684_s7 + $0x15c] sm:$0xf0]  ;;  %v9417_v14 = vld [vmem:[%s13684_s7 + $0xc4] sm:$0xf] }
 0x5d6   :  { %v5604_v43 = vadd.f32 %v5603_v34, %v5575_v57  ;;  %6539 = vmatpush.bf16.msra.mxu0 %v8499_v29  ;;  %v8635_v34 = vor.u32 %v9443_v39, %v8632_v18  ;;  %v8520_v42 = vld [vmem:[%s13684_s7 + $0xe0] sm:$0xf0]  ;;  %v5611_v54 = vpop.f32.mrf.mxu0 }
 0x5d7   :  { %v8523_v5 = vor.u32 %v9417_v14, %v8520_v42  ;;  %v9401_v39 = vld [vmem:[%s13684_s7 + $0x44] sm:$0xf]  ;;  %v9517_v14 = vld [vmem:[%s13684_s7 + $0x3dc] sm:$0xf0] }
 0x5d8   :  { %v5619_v1 = vmax.f32 %v5604_v43, 0.0  ;;  %v8583_v43 = vor.u32 %v9437_v27, %v8582_v13  ;;  %v9513_v42 = vld [vmem:[%s13684_s7 + $0x3c4] sm:$0xf] }
 0x5da   :  { %v5627_v62 = vpack.c.bf16 %v5619_v1, %v5619_v1  ;;  %6540 = vmatpush.bf16.msra.mxu0 %v8467_v49  ;;  %v8584_v1 = vld [vmem:[%s13684_s7 + $0x160] sm:$0xf0]  ;;  %6452 = vmatpush.bf16.msrb.mxu1 %v8583_v43  ;;  %v8519_v49 = vor.u32 %v9421_v60, %v8518_v33  ;;  %v5526_v51 = vpop.f32.mrf.mxu1  ;;  %v8672_v33 = vld [vmem:[%s13684_s7 + $0x1f8] sm:$0xf0]  ;;  %v8902_v60 = vld [vmem:[%s13684_s7 + $0x3c0] sm:$0xf] }
 0x5db   :  { %v5553_v38 = vpop.f32.mrf.mxu2 }
 0x5dc   :  { %v5640_v32 = vunpack.c.l.b16 %v5627_v62  ;;  %v9435_v62 = vld [vmem:[%s13684_s7 + $0x154] sm:$0xf] }
 0x5de   :  { %v5641_v36 = vpack.c.b16 %v5640_v32, %v5639_v24  ;;  %6541 = vmatpush.bf16.msra.mxu0 %v8435_v26  ;;  %v8587_v32 = vor.u32 %v9433_v50, %v8584_v1  ;;  %6453 = vmatpush.bf16.msrb.mxu1 %v8551_v25  ;;  %v5498_v26 = vadd.f32 %v12633_v55, %v12643_v47  ;;  %v8454_v55 = vld [vmem:[%s13684_s7 + $0x40] sm:$0xf]  ;;  %v9395_v25 = vld [vmem:[%s13684_s7 + $0x14] sm:$0xf] }
 0x5df   :  { %v9405_v47 = vld [vmem:[%s13684_s7 + $0x5c] sm:$0xf0] }
 0x5e0   :  { %5642 = vrot.lane.b32.xlu2 %v5641_v36, %s9685_s21  ;;  %v8600_v36 = vld [vmem:[%s13684_s7 + $0x170] sm:$0xf0]  ;;  %v5527_v11 = vadd.f32 %v5526_v51, %v5498_v26  ;;  %v8455_v30 = vor.u32 %v9405_v47, %v8454_v55  ;;  %v9505_v51 = vld [vmem:[%s13684_s7 + $0x384] sm:$0xf]  ;;  %v8846_v55 = vld [vmem:[%s13684_s7 + $0x348] sm:$0xf] }
 0x5e1   :  { %v8603_v46 = vor.u32 %v9435_v62, %v8600_v36  ;;  %v8422_v62 = vld [vmem:[%s13684_s7] sm:$0xf]  ;;  %v9393_v36 = vld [vmem:[%s13684_s7 + $0x4] sm:$0xf]  ;;  %v9502_v47 = vld [vmem:[%s13684_s7 + $0x364] sm:$0xf0] }
 0x5e2   :  { %6590 = vmatpush.bf16.msrb.mxu0 %v8667_v59  ;;  %6454 = vmatpush.bf16.msrb.mxu1 %v8519_v49  ;;  %v9518_v49 = vld [vmem:[%s13684_s7 + $0x3e4] sm:$0xf0]  ;;  %v8872_v26 = vld [vmem:[%s13684_s7 + $0x3a0] sm:$0xf0] }
 0x5e3   :  { %v5555_v59 = vpop.f32.mrf.mxu2 }
 0x5e4   :  { %v5556_v18 = vadd.f32 %v5555_v59, %v5527_v11  ;;  %v9510_v59 = vld [vmem:[%s13684_s7 + $0x3a4] sm:$0xf0]  ;;  %v9501_v11 = vld [vmem:[%s13684_s7 + $0x35c] sm:$0xf0] }
 0x5e6   :  { %6591 = vmatpush.bf16.msrb.mxu0 %v8635_v34  ;;  %v8472_v34 = vld [vmem:[%s13684_s7 + $0x70] sm:$0xf0] }
 0x5ea   :  { %6592 = vmatpush.bf16.msrb.mxu0 %v8603_v46 }
 0x5ee   :  { %6593 = vmatpush.bf16.msrb.mxu0 %v8571_v23  ;;  %v8903_v23 = vor.u32 %v9517_v14, %v8902_v60  ;;  %v9473_v14 = vld [vmem:[%s13684_s7 + $0x284] sm:$0xf] }
 0x5f0   :  { %6464 = vmatpush.bf16.msrb.mxu2 %v8903_v23 }
 0x5fb   :  { %v5577_v4 = vpop.f32.mrf.mxu3 }
 0x5fc   :  { %v5578_v63 = vadd.f32 %v5577_v4, %v5549_v19  ;;  %v9441_v19 = vld [vmem:[%s13684_s7 + $0x184] sm:$0xf] }
 0x5fd   :  { %v8619_v6 = vor.u32 %v9441_v19, %v8616_v61  ;;  %v8491_v61 = vor.u32 %v9409_v48, %v8488_v45 }
 0x5fe   :  { %v5607_v0 = vadd.f32 %v5606_v44, %v5578_v63  ;;  %v5554_v44 = vadd.f32 %v5553_v38, %v5525_v3  ;;  %v9419_v63 = vld [vmem:[%s13684_s7 + $0xd4] sm:$0xf] }
 0x5ff   :  { %6479 = vmatpush.bf16.msrb.mxu3 %v8619_v6  ;;  %v8456_v6 = vld [vmem:[%s13684_s7 + $0x60] sm:$0xf0] }
 0x600   :  { %v5620_v35 = vmax.f32 %v5607_v0, 0.0  ;;  %v8486_v0 = vld [vmem:[%s13684_s7 + $0x80] sm:$0xf]  ;;  %v8459_v1 = vor.u32 %v9401_v39, %v8456_v6 }
 0x601   :  { %v8487_v53 = vor.u32 %v9413_v16, %v8486_v0  ;;  %v8870_v0 = vld [vmem:[%s13684_s7 + $0x380] sm:$0xf] }
 0x602   :  { %v5628_v28 = vpack.c.bf16 %v5620_v35, %v5620_v35  ;;  %v8539_v35 = vor.u32 %v9419_v63, %v8536_v15  ;;  %v9444_v15 = vld [vmem:[%s13684_s7 + $0x19c] sm:$0xf]  ;;  %v9509_v16 = vld [vmem:[%s13684_s7 + $0x39c] sm:$0xf0] }
 0x603   :  { %v5579_v57 = vpop.f32.mrf.mxu3  ;;  %6480 = vmatpush.bf16.msrb.mxu3 %v8587_v32  ;;  %6455 = vmatpush.bf16.msrb.mxu1 %v8487_v53  ;;  %v5613_v32 = vpop.f32.mrf.mxu0  ;;  %v8871_v45 = vor.u32 %v9509_v16, %v8870_v0  ;;  %v8875_v53 = vor.u32 %v9505_v51, %v8872_v26  ;;  %v8718_v0 = vld [vmem:[%s13684_s7 + $0x248] sm:$0xf]  ;;  %v9396_v51 = vld [vmem:[%s13684_s7 + $0x1c] sm:$0xf] }
 0x604   :  { %v5580_v24 = vadd.f32 %v5579_v57, %v12649_v52  ;;  %v8552_v52 = vld [vmem:[%s13684_s7 + $0x120] sm:$0xf0]  ;;  %v5646_v17 = vunpack.c.l.b16 %v5628_v28  ;;  %6594 = vmatpush.bf16.msrb.mxu0 %v8539_v35  ;;  %v9403_v57 = vld [vmem:[%s13684_s7 + $0x54] sm:$0xf]  ;;  %v8443_v28 = vor.u32 %v9395_v25, %v8440_v31  ;;  %v8878_v35 = vld [vmem:[%s13684_s7 + $0x388] sm:$0xf] }
 0x605   :  { %v8555_v56 = vor.u32 %v9425_v41, %v8552_v52  ;;  %v8475_v38 = vor.u32 %v9403_v57, %v8472_v34  ;;  %6465 = vmatpush.bf16.msrb.mxu2 %v8871_v45  ;;  %v8576_v57 = vld [vmem:[%s13684_s7 + $0x138] sm:$0xf0]  ;;  %v8847_v34 = vor.u32 %v9502_v47, %v8846_v55  ;;  %v9486_v25 = vld [vmem:[%s13684_s7 + $0x2e4] sm:$0xf0] }
 0x606   :  { %v5609_v40 = vadd.f32 %v5608_v9, %v5580_v24  ;;  %v8504_v9 = vld [vmem:[%s13684_s7 + $0xb0] sm:$0xf0]  ;;  %v9397_v24 = vld [vmem:[%s13684_s7 + $0x1c] sm:$0xf0]  ;;  %v9470_v16 = vld [vmem:[%s13684_s7 + $0x264] sm:$0xf0] }
 0x607   :  { %6481 = vmatpush.bf16.msrb.mxu3 %v8555_v56  ;;  %v8507_v13 = vor.u32 %v9411_v2, %v8504_v9  ;;  %6456 = vmatpush.bf16.msrb.mxu1 %v8455_v30  ;;  %v8423_v41 = vor.u32 %v9397_v24, %v8422_v62  ;;  %v9452_v56 = vld [vmem:[%s13684_s7 + $0x1dc] sm:$0xf]  ;;  %v8879_v2 = vor.u32 %v9510_v59, %v8878_v35  ;;  %v8838_v9 = vld [vmem:[%s13684_s7 + $0x340] sm:$0xf]  ;;  %v9494_v62 = vld [vmem:[%s13684_s7 + $0x324] sm:$0xf0] }
 0x608   :  { %v5621_v7 = vmax.f32 %v5609_v40, 0.0  ;;  %v8427_v40 = vor.u32 %v9393_v36, %v8424_v20  ;;  %v8839_v39 = vor.u32 %v9501_v11, %v8838_v9  ;;  %v9493_v30 = vld [vmem:[%s13684_s7 + $0x31c] sm:$0xf0]  ;;  %v9420_v36 = vld [vmem:[%s13684_s7 + $0xdc] sm:$0xf]  ;;  %v8719_v9 = vor.u32 %v9470_v16, %v8718_v0 }
 0x609   :  { %6595 = vmatpush.bf16.msrb.mxu0 %v8507_v13  ;;  %v8678_v59 = vld [vmem:[%s13684_s7 + $0x200] sm:$0xf]  ;;  %v8680_v11 = vld [vmem:[%s13684_s7 + $0x220] sm:$0xf0]  ;;  %v8686_v55 = vld [vmem:[%s13684_s7 + $0x208] sm:$0xf] }
 0x60a   :  { %v5629_v29 = vpack.c.bf16 %v5621_v7, %v5621_v7  ;;  %6466 = vmatpush.bf16.msrb.mxu2 %v8839_v39  ;;  %v9462_v47 = vld [vmem:[%s13684_s7 + $0x224] sm:$0xf0]  ;;  %v9514_v39 = vld [vmem:[%s13684_s7 + $0x3cc] sm:$0xf] }
 0x60b   :  { %v5582_v4 = vpop.f32.mrf.mxu3  ;;  %6482 = vmatpush.bf16.msrb.mxu3 %v8523_v5  ;;  %6457 = vmatpush.bf16.msrb.mxu1 %v8423_v41  ;;  %v8608_v5 = vld [vmem:[%s13684_s7 + $0x178] sm:$0xf0]  ;;  %v8494_v16 = vld [vmem:[%s13684_s7 + $0x88] sm:$0xf] }
 0x60c   :  { %v5647_v10 = vunpack.c.l.b16 %v5629_v29  ;;  %v5583_v12 = vadd.f32 %v5582_v4, %v5554_v44  ;;  %v8675_v29 = vor.u32 %v9452_v56, %v8672_v33  ;;  %v8910_v4 = vld [vmem:[%s13684_s7 + $0x3c8] sm:$0xf]  ;;  %v8544_v41 = vld [vmem:[%s13684_s7 + $0xf8] sm:$0xf0]  ;;  %v9477_v56 = vld [vmem:[%s13684_s7 + $0x29c] sm:$0xf0] }
 0x60d   :  { %6596 = vmatpush.bf16.msrb.mxu0 %v8475_v38  ;;  %v9485_v38 = vld [vmem:[%s13684_s7 + $0x2dc] sm:$0xf0]  ;;  %v8512_v33 = vld [vmem:[%s13684_s7 + $0xb8] sm:$0xf0] }
 0x60e   :  { %v12807_v21 = vpack.c.b16 %v5647_v10, %v5646_v17  ;;  %v5612_v19 = vadd.f32 %v5611_v54, %v5583_v12  ;;  %v8904_v54 = vld [vmem:[%s13684_s7 + $0x3e0] sm:$0xf0]  ;;  %v8640_v17 = vld [vmem:[%s13684_s7 + $0x1b8] sm:$0xf0]  ;;  %v8911_v12 = vor.u32 %v9518_v49, %v8910_v4 }
 0x60f   :  { %6483 = vmatpush.bf16.msrb.mxu3 %v8491_v61  ;;  %v8907_v10 = vor.u32 %v9513_v42, %v8904_v54  ;;  %v8643_v48 = vor.u32 %v9444_v15, %v8640_v17  ;;  %v8840_v61 = vld [vmem:[%s13684_s7 + $0x360] sm:$0xf0]  ;;  %v9404_v4 = vld [vmem:[%s13684_s7 + $0x5c] sm:$0xf]  ;;  %v8710_v15 = vld [vmem:[%s13684_s7 + $0x240] sm:$0xf] }
 0x610   :  { %v5622_v43 = vmax.f32 %v5612_v19, 0.0  ;;  %v9497_v19 = vld [vmem:[%s13684_s7 + $0x344] sm:$0xf]  ;;  %v9469_v17 = vld [vmem:[%s13684_s7 + $0x25c] sm:$0xf0] }
 0x611   :  { %6597 = vmatpush.bf16.msrb.mxu0 %v8443_v28  ;;  %6492 = vmatpush.bf16.msra.mxu1 %v8907_v10  ;;  %v8843_v13 = vor.u32 %v9497_v19, %v8840_v61  ;;  %v8744_v42 = vld [vmem:[%s13684_s7 + $0x2a0] sm:$0xf0]  ;;  %v8480_v10 = vld [vmem:[%s13684_s7 + $0x78] sm:$0xf0]  ;;  %v8711_v45 = vor.u32 %v9469_v17, %v8710_v15  ;;  %v8654_v19 = vld [vmem:[%s13684_s7 + $0x1c8] sm:$0xf] }
 0x612   :  { %v5630_v52 = vpack.c.bf16 %v5622_v43, %v5622_v43  ;;  %v9489_v43 = vld [vmem:[%s13684_s7 + $0x304] sm:$0xf]  ;;  %v8747_v49 = vor.u32 %v9473_v14, %v8744_v42  ;;  %v8483_v26 = vor.u32 %v9404_v4, %v8480_v10  ;;  %v9454_v61 = vld [vmem:[%s13684_s7 + $0x1e4] sm:$0xf0]  ;;  %v8816_v14 = vld [vmem:[%s13684_s7 + $0x328] sm:$0xf0] }
 0x613   :  { %v5584_v27 = vpop.f32.mrf.mxu3  ;;  %6484 = vmatpush.bf16.msrb.mxu3 %v8459_v1  ;;  %v8814_v1 = vld [vmem:[%s13684_s7 + $0x308] sm:$0xf]  ;;  %v8822_v42 = vld [vmem:[%s13684_s7 + $0x310] sm:$0xf]  ;;  %v9482_v15 = vld [vmem:[%s13684_s7 + $0x2cc] sm:$0xf] }
 0x614   :  { %v5585_v50 = vadd.f32 %v5584_v27, %v5556_v18  ;;  %v5651_v37 = vunpack.c.l.b16 %v5630_v52  ;;  %v9428_v18 = vld [vmem:[%s13684_s7 + $0x11c] sm:$0xf]  ;;  %v8806_v27 = vld [vmem:[%s13684_s7 + $0x300] sm:$0xf]  ;;  %v8815_v52 = vor.u32 %v9494_v62, %v8814_v1  ;;  %v8622_v62 = vld [vmem:[%s13684_s7 + $0x188] sm:$0xf] }
 0x615   :  { %6493 = vmatpush.bf16.msra.mxu1 %v8875_v53  ;;  %v8807_v24 = vor.u32 %v9493_v30, %v8806_v27  ;;  %v9461_v53 = vld [vmem:[%s13684_s7 + $0x21c] sm:$0xf0]  ;;  %v9519_v27 = vld [vmem:[%s13684_s7 + $0x3ec] sm:$0xf0]  ;;  %v8526_v4 = vld [vmem:[%s13684_s7 + $0xc8] sm:$0xf] }
 0x616   :  { %v5614_v8 = vadd.f32 %v5613_v32, %v5585_v50  ;;  %v8808_v50 = vld [vmem:[%s13684_s7 + $0x320] sm:$0xf0]  ;;  %v8579_v32 = vor.u32 %v9428_v18, %v8576_v57  ;;  %v8912_v18 = vld [vmem:[%s13684_s7 + $0x3e8] sm:$0xf0]  ;;  %v8790_v10 = vld [vmem:[%s13684_s7 + $0x2d0] sm:$0xf] }
 0x617   :  { %6485 = vmatpush.bf16.msrb.mxu3 %v8427_v40  ;;  %v8811_v20 = vor.u32 %v9489_v43, %v8808_v50  ;;  %v8776_v40 = vld [vmem:[%s13684_s7 + $0x2e0] sm:$0xf0]  ;;  %6467 = vmatpush.bf16.msrb.mxu2 %v8807_v24  ;;  %v8687_v43 = vor.u32 %v9462_v47, %v8686_v55  ;;  %v8915_v50 = vor.u32 %v9514_v39, %v8912_v18  ;;  %v9446_v24 = vld [vmem:[%s13684_s7 + $0x1a4] sm:$0xf0]  ;;  %v8784_v17 = vld [vmem:[%s13684_s7 + $0x2e8] sm:$0xf0] }
 0x618   :  { %v5623_v58 = vmax.f32 %v5614_v8, 0.0  ;;  %v8774_v8 = vld [vmem:[%s13684_s7 + $0x2c0] sm:$0xf]  ;;  %v8726_v55 = vld [vmem:[%s13684_s7 + $0x250] sm:$0xf] }
 0x619   :  { %6494 = vmatpush.bf16.msra.mxu1 %v8843_v13  ;;  %v8775_v31 = vor.u32 %v9485_v38, %v8774_v8  ;;  %v8918_v13 = vld [vmem:[%s13684_s7 + $0x3d0] sm:$0xf]  ;;  %v8623_v38 = vor.u32 %v9446_v24, %v8622_v62 }
 0x61a   :  { %v5631_v46 = vpack.c.bf16 %v5623_v58, %v5623_v58  ;;  %v9481_v58 = vld [vmem:[%s13684_s7 + $0x2c4] sm:$0xf]  ;;  %v8919_v1 = vor.u32 %v9519_v27, %v8918_v13  ;;  %v9511_v8 = vld [vmem:[%s13684_s7 + $0x3ac] sm:$0xf0]  ;;  %v8430_v13 = vld [vmem:[%s13684_s7 + $0x8] sm:$0xf] }
 0x61b   :  { %6520 = vmatpush.bf16.msra.mxu3 %v8911_v12  ;;  %v8779_v28 = vor.u32 %v9481_v58, %v8776_v40  ;;  %6468 = vmatpush.bf16.msrb.mxu2 %v8775_v31  ;;  %v8590_v58 = vld [vmem:[%s13684_s7 + $0x148] sm:$0xf]  ;;  %v8854_v31 = vld [vmem:[%s13684_s7 + $0x350] sm:$0xf] }
 0x61c   :  { %v5652_v3 = vunpack.c.l.b16 %v5631_v46  ;;  %v8782_v46 = vld [vmem:[%s13684_s7 + $0x2c8] sm:$0xf]  ;;  %v9471_v47 = vld [vmem:[%s13684_s7 + $0x26c] sm:$0xf0] }
 0x61d   :  { %6495 = vmatpush.bf16.msra.mxu1 %v8811_v20  ;;  %v8783_v60 = vor.u32 %v9486_v25, %v8782_v46  ;;  %v8886_v20 = vld [vmem:[%s13684_s7 + $0x390] sm:$0xf]  ;;  %v9438_v40 = vld [vmem:[%s13684_s7 + $0x164] sm:$0xf0]  ;;  %v9498_v46 = vld [vmem:[%s13684_s7 + $0x34c] sm:$0xf]  ;;  %v8727_v18 = vor.u32 %v9471_v47, %v8726_v55 }
 0x61e   :  { %v5653_v7 = vpack.c.b16 %v5652_v3, %v5651_v37  ;;  %v8547_v37 = vor.u32 %v9420_v36, %v8544_v41  ;;  %v9412_v3 = vld [vmem:[%s13684_s7 + $0x9c] sm:$0xf]  ;;  %v8880_v36 = vld [vmem:[%s13684_s7 + $0x3a8] sm:$0xf0]  ;;  %v9398_v27 = vld [vmem:[%s13684_s7 + $0x24] sm:$0xf0] }
 0x61f   :  { %6521 = vmatpush.bf16.msra.mxu3 %v8879_v2  ;;  %v8515_v54 = vor.u32 %v9412_v3, %v8512_v33  ;;  %v9457_v2 = vld [vmem:[%s13684_s7 + $0x204] sm:$0xf]  ;;  %v8848_v25 = vld [vmem:[%s13684_s7 + $0x368] sm:$0xf0]  ;;  %v8591_v3 = vor.u32 %v9438_v40, %v8590_v58  ;;  %v9430_v33 = vld [vmem:[%s13684_s7 + $0x124] sm:$0xf0] }
 0x620   :  { %5654 = vrot.lane.b32.xlu0 %v5653_v7, %s9685_s21  ;;  %v8742_v7 = vld [vmem:[%s13684_s7 + $0x280] sm:$0xf]  ;;  %v8683_v57 = vor.u32 %v9457_v2, %v8680_v11  ;;  %v9406_v11 = vld [vmem:[%s13684_s7 + $0x64] sm:$0xf0]  ;;  %v8662_v24 = vld [vmem:[%s13684_s7 + $0x1d0] sm:$0xf] }
 0x621   :  { %v8743_v23 = vor.u32 %v9477_v56, %v8742_v7  ;;  %6496 = vmatpush.bf16.msra.mxu1 %v8779_v28  ;;  %v8851_v28 = vor.u32 %v9498_v46, %v8848_v25  ;;  %v8558_v56 = vld [vmem:[%s13684_s7 + $0x108] sm:$0xf]  ;;  %v8630_v46 = vld [vmem:[%s13684_s7 + $0x190] sm:$0xf]  ;;  %v9475_v55 = vld [vmem:[%s13684_s7 + $0x294] sm:$0xf] }
 0x622   :  { %v9447_v25 = vld [vmem:[%s13684_s7 + $0x1ac] sm:$0xf0]  ;;  %v8760_v47 = vld [vmem:[%s13684_s7 + $0x2b0] sm:$0xf0] }
 0x623   :  { %6522 = vmatpush.bf16.msra.mxu3 %v8847_v34  ;;  %6469 = vmatpush.bf16.msrb.mxu2 %v8743_v23  ;;  %v8655_v34 = vor.u32 %v9454_v61, %v8654_v19  ;;  %v9466_v19 = vld [vmem:[%s13684_s7 + $0x24c] sm:$0xf] }
 0x624   :  { %v8720_v61 = vld [vmem:[%s13684_s7 + $0x268] sm:$0xf0] }
 0x625   :  { %6497 = vmatpush.bf16.msra.mxu1 %v8747_v49  ;;  %v9422_v49 = vld [vmem:[%s13684_s7 + $0xe4] sm:$0xf0] }
 0x627   :  { %6523 = vmatpush.bf16.msra.mxu3 %v8815_v52  ;;  %6470 = vmatpush.bf16.msrb.mxu2 %v8711_v45  ;;  %v8887_v52 = vor.u32 %v9511_v8, %v8886_v20  ;;  %v8752_v45 = vld [vmem:[%s13684_s7 + $0x2a8] sm:$0xf0]  ;;  %v8920_v20 = vld [vmem:[%s13684_s7 + $0x3f0] sm:$0xf0]  ;;  %v8926_v8 = vld [vmem:[%s13684_s7 + $0x3d8] sm:$0xf] }
 0x62b   :  { %6524 = vmatpush.bf16.msra.mxu3 %v8783_v60  ;;  %v9490_v60 = vld [vmem:[%s13684_s7 + $0x30c] sm:$0xf] }
 0x62c   :  { %v8819_v23 = vor.u32 %v9490_v60, %v8816_v14  ;;  %v8598_v60 = vld [vmem:[%s13684_s7 + $0x150] sm:$0xf] }
 0x62d   :  { %v9439_v14 = vld [vmem:[%s13684_s7 + $0x16c] sm:$0xf0] }
 0x63a   :  { %v5643_v44 = vpop.permute.xlu2 %5642 }
 0x63b   :  { %v12878_v63 = vsel %vm267_vm0, %v12647_v22, %v5643_v44  ;;  %v9436_v22 = vld [vmem:[%s13684_s7 + $0x15c] sm:$0xf]  ;;  %v8750_v44 = vld [vmem:[%s13684_s7 + $0x288] sm:$0xf] }
 0x63c   :  { %6458 = vmatmul.bf16.vlgmr.msrb.gmra.mxu1 %v12878_v63  ;;  %6486 = vmatmul.bf16.vlgmr.msrb.gmra.mxu3 %v12878_v63  ;;  %v8611_v6 = vor.u32 %v9436_v22, %v8608_v5  ;;  %v9465_v22 = vld [vmem:[%s13684_s7 + $0x244] sm:$0xf] }
 0x63d   :  { %6542 = vmatmul.bf16.vlgmr.msra.gmra.mxu0 %v12878_v63  ;;  %v8712_v5 = vld [vmem:[%s13684_s7 + $0x260] sm:$0xf0] }
 0x63e   :  { %6646 = vmatpush.bf16.msra.mxu0 %v8675_v29  ;;  %v9478_v29 = vld [vmem:[%s13684_s7 + $0x2a4] sm:$0xf0]  ;;  %v8715_v35 = vor.u32 %v9465_v22, %v8712_v5  ;;  %v8527_v22 = vor.u32 %v9422_v49, %v8526_v4  ;;  %v8787_v5 = vor.u32 %v9482_v15, %v8784_v17  ;;  %v8566_v15 = vld [vmem:[%s13684_s7 + $0x110] sm:$0xf] }
 0x63f   :  { %v8751_v12 = vor.u32 %v9478_v29, %v8750_v44  ;;  %v9495_v44 = vld [vmem:[%s13684_s7 + $0x32c] sm:$0xf0]  ;;  %v8559_v29 = vor.u32 %v9430_v33, %v8558_v56 }
 0x640   :  { %6498 = vmatpush.bf16.msra.mxu1 %v8715_v35  ;;  %v9479_v35 = vld [vmem:[%s13684_s7 + $0x2ac] sm:$0xf0] }
 0x641   :  { %6525 = vmatpush.bf16.msra.mxu3 %v8751_v12  ;;  %v9487_v12 = vld [vmem:[%s13684_s7 + $0x2ec] sm:$0xf0] }
 0x642   :  { %6647 = vmatpush.bf16.msra.mxu0 %v8643_v48  ;;  %v8448_v48 = vld [vmem:[%s13684_s7 + $0x38] sm:$0xf0]  ;;  %v8791_v0 = vor.u32 %v9487_v12, %v8790_v10  ;;  %v9431_v17 = vld [vmem:[%s13684_s7 + $0x12c] sm:$0xf0]  ;;  %v9491_v10 = vld [vmem:[%s13684_s7 + $0x314] sm:$0xf] }
 0x643   :  { %v8451_v30 = vor.u32 %v9396_v51, %v8448_v48  ;;  %v9414_v51 = vld [vmem:[%s13684_s7 + $0xa4] sm:$0xf0]  ;;  %v9474_v48 = vld [vmem:[%s13684_s7 + $0x28c] sm:$0xf]  ;;  %v8824_v12 = vld [vmem:[%s13684_s7 + $0x330] sm:$0xf0] }
 0x644   :  { %6499 = vmatpush.bf16.msra.mxu1 %v8683_v57  ;;  %v8431_v57 = vor.u32 %v9398_v27, %v8430_v13  ;;  %v8763_v13 = vor.u32 %v9475_v55, %v8760_v47  ;;  %v9408_v55 = vld [vmem:[%s13684_s7 + $0x74] sm:$0xf0] }
 0x645   :  { %6526 = vmatpush.bf16.msra.mxu3 %v8719_v9  ;;  %v8462_v9 = vld [vmem:[%s13684_s7 + $0x48] sm:$0xf]  ;;  %v9536_v47 = vld [vmem:[%s13685_s9 + $0x78] sm:$0xff] }
 0x646   :  { %6648 = vmatpush.bf16.msra.mxu0 %v8611_v6  ;;  %v8679_v6 = vor.u32 %v9461_v53, %v8678_v59  ;;  %v8495_v59 = vor.u32 %v9414_v51, %v8494_v16  ;;  %v8755_v53 = vor.u32 %v9474_v48, %v8752_v45  ;;  %v8463_v39 = vor.u32 %v9406_v11, %v8462_v9  ;;  %v8534_v48 = vld [vmem:[%s13684_s7 + $0xd0] sm:$0xf] }
 0x647   :  { %v8827_v16 = vor.u32 %v9491_v10, %v8824_v12  ;;  %v9423_v45 = vld [vmem:[%s13684_s7 + $0xec] sm:$0xf0]  ;;  %v9432_v10 = vld [vmem:[%s13684_s7 + $0x134] sm:$0xf0]  ;;  %v9492_v12 = vld [vmem:[%s13684_s7 + $0x31c] sm:$0xf] }
 0x648   :  { %6471 = vmatpush.bf16.msrb.mxu2 %v8679_v6  ;;  %6548 = vmatpush.bf16.msrb.mxu1 %v8915_v50  ;;  %v8723_v6 = vor.u32 %v9466_v19, %v8720_v61  ;;  %v8694_v50 = vld [vmem:[%s13684_s7 + $0x210] sm:$0xf] }
 0x649   :  { %6527 = vmatpush.bf16.msra.mxu3 %v8687_v43  ;;  %v8502_v19 = vld [vmem:[%s13684_s7 + $0x90] sm:$0xf] }
 0x64a   :  { %6649 = vmatpush.bf16.msra.mxu0 %v8579_v32  ;;  %v9506_v32 = vld [vmem:[%s13684_s7 + $0x38c] sm:$0xf]  ;;  %v9415_v61 = vld [vmem:[%s13684_s7 + $0xac] sm:$0xf0] }
 0x64b   :  { %v8883_v41 = vor.u32 %v9506_v32, %v8880_v36  ;;  %v9455_v32 = vld [vmem:[%s13684_s7 + $0x1ec] sm:$0xf0]  ;;  %v9515_v36 = vld [vmem:[%s13684_s7 + $0x3d4] sm:$0xf] }
 0x64c   :  { %6506 = vmatpush.bf16.msra.mxu2 %v8655_v34  ;;  %v8688_v34 = vld [vmem:[%s13684_s7 + $0x228] sm:$0xf0]  ;;  %v8923_v58 = vor.u32 %v9515_v36, %v8920_v20  ;;  %v9399_v20 = vld [vmem:[%s13684_s7 + $0x2c] sm:$0xf0] }
 0x64d   :  { %6598 = vmatmul.bf16.vlgmr.msrb.gmra.mxu0 %v12878_v63  ;;  %6576 = vmatpush.bf16.msrb.mxu3 %v8919_v1  ;;  %v9463_v1 = vld [vmem:[%s13684_s7 + $0x22c] sm:$0xf0] }
 0x64e   :  { %6650 = vmatpush.bf16.msra.mxu0 %v8547_v37  ;;  %v9503_v37 = vld [vmem:[%s13684_s7 + $0x36c] sm:$0xf0]  ;;  %6549 = vmatpush.bf16.msrb.mxu1 %v8883_v41  ;;  %v8695_v62 = vor.u32 %v9463_v1, %v8694_v50  ;;  %v8663_v41 = vor.u32 %v9455_v32, %v8662_v24  ;;  %v8734_v50 = vld [vmem:[%s13684_s7 + $0x258] sm:$0xf] }
 0x64f   :  { %v8855_v7 = vor.u32 %v9503_v37, %v8854_v31  ;;  %v9507_v31 = vld [vmem:[%s13684_s7 + $0x394] sm:$0xf]  ;;  %v9472_v1 = vld [vmem:[%s13684_s7 + $0x274] sm:$0xf0]  ;;  %v8438_v24 = vld [vmem:[%s13684_s7 + $0x10] sm:$0xf] }
 0x650   :  { %6507 = vmatpush.bf16.msra.mxu2 %v8623_v38  ;;  %v9520_v38 = vld [vmem:[%s13684_s7 + $0x3f4] sm:$0xf0]  ;;  %v8735_v36 = vor.u32 %v9472_v1, %v8734_v50  ;;  %v9534_v50 = vld [vmem:[%s13685_s9 + $0x68] sm:$0xff] }
 0x651   :  { %6577 = vmatpush.bf16.msrb.mxu3 %v8887_v52  ;;  %v8927_v40 = vor.u32 %v9520_v38, %v8926_v8  ;;  %v9459_v8 = vld [vmem:[%s13684_s7 + $0x214] sm:$0xf] }
 0x652   :  { %6651 = vmatpush.bf16.msra.mxu0 %v8515_v54  ;;  %6550 = vmatpush.bf16.msrb.mxu1 %v8851_v28  ;;  %v8823_v54 = vor.u32 %v9495_v44, %v8822_v42  ;;  %v8894_v28 = vld [vmem:[%s13684_s7 + $0x398] sm:$0xf]  ;;  %v9499_v42 = vld [vmem:[%s13684_s7 + $0x354] sm:$0xf] }
 0x653   :  { %v8856_v44 = vld [vmem:[%s13684_s7 + $0x370] sm:$0xf0] }
 0x654   :  { %6508 = vmatpush.bf16.msra.mxu2 %v8591_v3  ;;  %v8888_v3 = vld [vmem:[%s13684_s7 + $0x3b0] sm:$0xf0]  ;;  %v8859_v4 = vor.u32 %v9499_v42, %v8856_v44 }
 0x655   :  { %6578 = vmatpush.bf16.msrb.mxu3 %v8855_v7  ;;  %v9512_v7 = vld [vmem:[%s13684_s7 + $0x3b4] sm:$0xf0]  ;;  %v8891_v56 = vor.u32 %v9507_v31, %v8888_v3  ;;  %v8696_v38 = vld [vmem:[%s13684_s7 + $0x230] sm:$0xf0]  ;;  %v8439_v31 = vor.u32 %v9399_v20, %v8438_v24  ;;  %v9526_v20 = vld [vmem:[%s13685_s9 + $0x28] sm:$0xff] }
 0x656   :  { %6652 = vmatpush.bf16.msra.mxu0 %v8483_v26  ;;  %6551 = vmatpush.bf16.msrb.mxu1 %v8819_v23  ;;  %v8758_v26 = vld [vmem:[%s13684_s7 + $0x290] sm:$0xf]  ;;  %v8895_v33 = vor.u32 %v9512_v7, %v8894_v28  ;;  %v9504_v23 = vld [vmem:[%s13684_s7 + $0x374] sm:$0xf0]  ;;  %v8699_v3 = vor.u32 %v9459_v8, %v8696_v38 }
 0x657   :  { %v8759_v2 = vor.u32 %v9479_v35, %v8758_v26  ;;  %v9483_v26 = vld [vmem:[%s13684_s7 + $0x2d4] sm:$0xf]  ;;  %v9528_v24 = vld [vmem:[%s13685_s9 + $0x38] sm:$0xff] }
 0x658   :  { %6509 = vmatpush.bf16.msra.mxu2 %v8559_v29  ;;  %v8862_v29 = vld [vmem:[%s13684_s7 + $0x358] sm:$0xf]  ;;  %v8792_v35 = vld [vmem:[%s13684_s7 + $0x2f0] sm:$0xf0] }
 0x659   :  { %6579 = vmatpush.bf16.msrb.mxu3 %v8823_v54  ;;  %v8599_v54 = vor.u32 %v9439_v14, %v8598_v60  ;;  %v8863_v49 = vor.u32 %v9504_v23, %v8862_v29  ;;  %v8795_v9 = vor.u32 %v9483_v26, %v8792_v35  ;;  %v9508_v60 = vld [vmem:[%s13684_s7 + $0x39c] sm:$0xf]  ;;  %v8606_v29 = vld [vmem:[%s13684_s7 + $0x158] sm:$0xf] }
 0x65a   :  { %6653 = vmatpush.bf16.msra.mxu0 %v8451_v30  ;;  %6552 = vmatpush.bf16.msrb.mxu1 %v8787_v5  ;;  %v9458_v30 = vld [vmem:[%s13684_s7 + $0x20c] sm:$0xf]  ;;  %v9496_v5 = vld [vmem:[%s13684_s7 + $0x334] sm:$0xf0]  ;;  %v8896_v14 = vld [vmem:[%s13684_s7 + $0x3b8] sm:$0xf0] }
 0x65b   :  { %v8691_v43 = vor.u32 %v9458_v30, %v8688_v34  ;;  %v8470_v30 = vld [vmem:[%s13684_s7 + $0x50] sm:$0xf]  ;;  %v9467_v34 = vld [vmem:[%s13684_s7 + $0x254] sm:$0xf]  ;;  %v8899_v44 = vor.u32 %v9508_v60, %v8896_v14  ;;  %v9440_v23 = vld [vmem:[%s13684_s7 + $0x174] sm:$0xf0] }
 0x65c   :  { %6510 = vmatpush.bf16.msra.mxu2 %v8527_v22  ;;  %v8830_v22 = vld [vmem:[%s13684_s7 + $0x318] sm:$0xf]  ;;  %v9521_v14 = vld [vmem:[%s13685_s9] sm:$0xff] }
 0x65d   :  { %6654 = vmatmul.bf16.vlgmr.msra.gmra.mxu0 %v12878_v63  ;;  %6580 = vmatpush.bf16.msrb.mxu3 %v8791_v0  ;;  %v8567_v0 = vor.u32 %v9431_v17, %v8566_v15  ;;  %v8831_v51 = vor.u32 %v9496_v5, %v8830_v22  ;;  %v8574_v17 = vld [vmem:[%s13684_s7 + $0x118] sm:$0xf]  ;;  %v8832_v22 = vld [vmem:[%s13684_s7 + $0x338] sm:$0xf0] }
 0x65e   :  { %6553 = vmatpush.bf16.msrb.mxu1 %v8755_v53  ;;  %v9488_v53 = vld [vmem:[%s13684_s7 + $0x2f4] sm:$0xf0]  ;;  %v8575_v5 = vor.u32 %v9432_v10, %v8574_v17  ;;  %v9539_v10 = vld [vmem:[%s13685_s9 + $0x90] sm:$0xff] }
 0x65f   :  { %v9532_v8 = vld [vmem:[%s13685_s9 + $0x58] sm:$0xff] }
 0x660   :  { %6511 = vmatpush.bf16.msra.mxu2 %v8495_v59  ;;  %v8798_v59 = vld [vmem:[%s13684_s7 + $0x2d8] sm:$0xf] }
 0x661   :  { %6581 = vmatpush.bf16.msrb.mxu3 %v8759_v2  ;;  %v8535_v2 = vor.u32 %v9423_v45, %v8534_v48  ;;  %v8799_v11 = vor.u32 %v9488_v53, %v8798_v59  ;;  %v9484_v48 = vld [vmem:[%s13684_s7 + $0x2dc] sm:$0xf]  ;;  %v8510_v59 = vld [vmem:[%s13684_s7 + $0x98] sm:$0xf] }
 0x662   :  { %6554 = vmatpush.bf16.msrb.mxu1 %v8723_v6  ;;  %v9480_v6 = vld [vmem:[%s13684_s7 + $0x2b4] sm:$0xf0]  ;;  %v8800_v45 = vld [vmem:[%s13684_s7 + $0x2f8] sm:$0xf0] }
 0x663   :  { %v8803_v35 = vor.u32 %v9484_v48, %v8800_v45  ;;  %v9416_v53 = vld [vmem:[%s13684_s7 + $0xb4] sm:$0xf0]  ;;  %v9558_v48 = vld [vmem:[%s13685_s9 + $0x128] sm:$0xff] }
 0x664   :  { %6512 = vmatpush.bf16.msra.mxu2 %v8463_v39  ;;  %v8766_v39 = vld [vmem:[%s13684_s7 + $0x298] sm:$0xf] }
 0x665   :  { %6582 = vmatpush.bf16.msrb.mxu3 %v8727_v18  ;;  %v8503_v18 = vor.u32 %v9415_v61, %v8502_v19  ;;  %v8767_v27 = vor.u32 %v9480_v6, %v8766_v39  ;;  %v8478_v61 = vld [vmem:[%s13684_s7 + $0x58] sm:$0xf]  ;;  %v9468_v39 = vld [vmem:[%s13684_s7 + $0x25c] sm:$0xf] }
 0x666   :  { %6555 = vmatpush.bf16.msrb.mxu1 %v8691_v43  ;;  %v8728_v43 = vld [vmem:[%s13684_s7 + $0x270] sm:$0xf0]  ;;  %v8736_v6 = vld [vmem:[%s13684_s7 + $0x278] sm:$0xf0] }
 0x667   :  { %v8731_v32 = vor.u32 %v9467_v34, %v8728_v43  ;;  %v9460_v34 = vld [vmem:[%s13684_s7 + $0x21c] sm:$0xf] }
 0x668   :  { %6513 = vmatpush.bf16.msra.mxu2 %v8431_v57  ;;  %v9407_v57 = vld [vmem:[%s13684_s7 + $0x6c] sm:$0xf0]  ;;  %v8704_v43 = vld [vmem:[%s13684_s7 + $0x238] sm:$0xf0] }
 0x669   :  { %6583 = vmatpush.bf16.msrb.mxu3 %v8695_v62  ;;  %v8471_v62 = vor.u32 %v9407_v57, %v8470_v30  ;;  %v8446_v30 = vld [vmem:[%s13684_s7 + $0x18] sm:$0xf] }
 0x66a   :  { %v9400_v57 = vld [vmem:[%s13684_s7 + $0x34] sm:$0xf0] }
 0x66b   :  { %v8447_v1 = vor.u32 %v9400_v57, %v8446_v30  ;;  %v9552_v38 = vld [vmem:[%s13685_s9 + $0xf8] sm:$0xff] }
 0x66c   :  { %v9568_v60 = vld [vmem:[%s13685_s9 + $0x178] sm:$0xff] }
 0x66d   :  { %v9564_v45 = vld [vmem:[%s13685_s9 + $0x158] sm:$0xff] }
 0x692   :  { %v5655_v52 = vpop.permute.xlu0 %5654 }
 0x693   :  { %v13226_v37 = vsel %vm267_vm0, %v12807_v21, %v5655_v52  ;;  %v8631_v21 = vor.u32 %v9447_v25, %v8630_v46  ;;  %v9456_v52 = vld [vmem:[%s13684_s7 + $0x1f4] sm:$0xf0]  ;;  %v9516_v46 = vld [vmem:[%s13684_s7 + $0x3dc] sm:$0xf] }
 0x694   :  { %6472 = vmatmul.bf16.vlgmr.msrb.gmra.mxu2 %v13226_v37  ;;  %6500 = vmatmul.bf16.vlgmr.msra.gmra.mxu1 %v13226_v37  ;;  %v8928_v25 = vld [vmem:[%s13684_s7 + $0x3f8] sm:$0xf0] }
 0x695   :  { %6528 = vmatmul.bf16.vlgmr.msra.gmra.mxu3 %v13226_v37  ;;  %6562 = vmatpush.bf16.msrb.mxu2 %v8663_v41  ;;  %v8670_v41 = vld [vmem:[%s13684_s7 + $0x1d8] sm:$0xf] }
 0x696   :  { %6604 = vmatpush.bf16.msra.mxu1 %v8923_v58  ;;  %6632 = vmatpush.bf16.msra.mxu3 %v8927_v40  ;;  %v8702_v58 = vld [vmem:[%s13684_s7 + $0x218] sm:$0xf]  ;;  %v8671_v28 = vor.u32 %v9456_v52, %v8670_v41  ;;  %v9551_v41 = vld [vmem:[%s13685_s9 + $0xf0] sm:$0xff] }
 0x697   :  { %v9464_v40 = vld [vmem:[%s13684_s7 + $0x234] sm:$0xf0] }
 0x698   :  { %v8703_v7 = vor.u32 %v9464_v40, %v8702_v58  ;;  %v9524_v52 = vld [vmem:[%s13685_s9 + $0x18] sm:$0xff]  ;;  %v9530_v58 = vld [vmem:[%s13685_s9 + $0x48] sm:$0xff] }
 0x699   :  { %6563 = vmatpush.bf16.msrb.mxu2 %v8631_v21  ;;  %v8931_v21 = vor.u32 %v9516_v46, %v8928_v25  ;;  %v9544_v40 = vld [vmem:[%s13685_s9 + $0xb8] sm:$0xff]  ;;  %v9550_v46 = vld [vmem:[%s13685_s9 + $0xe8] sm:$0xff]  ;;  %v9523_v25 = vld [vmem:[%s13685_s9 + $0x10] sm:$0xff] }
 0x69a   :  { %6605 = vmatpush.bf16.msra.mxu1 %v8891_v56  ;;  %6633 = vmatpush.bf16.msra.mxu3 %v8895_v33  ;;  %v8638_v56 = vld [vmem:[%s13684_s7 + $0x198] sm:$0xf] }
 0x69b   :  { %v9448_v33 = vld [vmem:[%s13684_s7 + $0x1b4] sm:$0xf0]  ;;  %7242 = vmatpush.bf16.msrb.mxu0 %v9544_v40 }
 0x69c   :  { %v8639_v42 = vor.u32 %v9448_v33, %v8638_v56  ;;  %v9542_v56 = vld [vmem:[%s13685_s9 + $0xa8] sm:$0xff]  ;;  %v9548_v33 = vld [vmem:[%s13685_s9 + $0xd8] sm:$0xff] }
 0x69d   :  { %6564 = vmatpush.bf16.msrb.mxu2 %v8599_v54  ;;  %v9500_v54 = vld [vmem:[%s13684_s7 + $0x35c] sm:$0xf] }
 0x69e   :  { %6606 = vmatpush.bf16.msra.mxu1 %v8859_v4  ;;  %6634 = vmatpush.bf16.msra.mxu3 %v8863_v49  ;;  %v8864_v4 = vld [vmem:[%s13684_s7 + $0x378] sm:$0xf0]  ;;  %v8607_v49 = vor.u32 %v9440_v23, %v8606_v29  ;;  %v9567_v29 = vld [vmem:[%s13685_s9 + $0x170] sm:$0xff] }
 0x69f   :  { %v8867_v15 = vor.u32 %v9500_v54, %v8864_v4  ;;  %v9540_v54 = vld [vmem:[%s13685_s9 + $0x98] sm:$0xff]  ;;  %v9546_v4 = vld [vmem:[%s13685_s9 + $0xc8] sm:$0xff] }
 0x6a1   :  { %6565 = vmatpush.bf16.msrb.mxu2 %v8567_v0  ;;  %v8835_v0 = vor.u32 %v9492_v12, %v8832_v22  ;;  %v9545_v12 = vld [vmem:[%s13685_s9 + $0xc0] sm:$0xff]  ;;  %v9559_v22 = vld [vmem:[%s13685_s9 + $0x130] sm:$0xff] }
 0x6a2   :  { %6607 = vmatpush.bf16.msra.mxu1 %v8827_v16  ;;  %6635 = vmatpush.bf16.msra.mxu3 %v8831_v51  ;;  %v8542_v16 = vld [vmem:[%s13684_s7 + $0xd8] sm:$0xf] }
 0x6a3   :  { %v9424_v51 = vld [vmem:[%s13684_s7 + $0xf4] sm:$0xf0] }
 0x6a4   :  { %6514 = vmatmul.bf16.vlgmr.msra.gmra.mxu2 %v12878_v63  ;;  %6556 = vmatmul.bf16.vlgmr.msrb.gmra.mxu1 %v13226_v37  ;;  %v8543_v26 = vor.u32 %v9424_v51, %v8542_v16  ;;  %v9538_v51 = vld [vmem:[%s13685_s9 + $0x88] sm:$0xff] }
 0x6a5   :  { %6566 = vmatpush.bf16.msrb.mxu2 %v8535_v2  ;;  %6584 = vmatmul.bf16.vlgmr.msrb.gmra.mxu3 %v13226_v37  ;;  %v9476_v2 = vld [vmem:[%s13684_s7 + $0x29c] sm:$0xf] }
 0x6a6   :  { %6608 = vmatpush.bf16.msra.mxu1 %v8795_v9  ;;  %6636 = vmatpush.bf16.msra.mxu3 %v8799_v11  ;;  %v8768_v9 = vld [vmem:[%s13684_s7 + $0x2b8] sm:$0xf0]  ;;  %v8511_v11 = vor.u32 %v9416_v53, %v8510_v59  ;;  %v9537_v59 = vld [vmem:[%s13685_s9 + $0x80] sm:$0xff] }
 0x6a7   :  { %v8771_v19 = vor.u32 %v9476_v2, %v8768_v9  ;;  %v9557_v53 = vld [vmem:[%s13685_s9 + $0x120] sm:$0xff]  ;;  %v9563_v2 = vld [vmem:[%s13685_s9 + $0x150] sm:$0xff] }
 0x6a9   :  { %6567 = vmatpush.bf16.msrb.mxu2 %v8503_v18  ;;  %v9535_v18 = vld [vmem:[%s13685_s9 + $0x70] sm:$0xff] }
 0x6aa   :  { %6609 = vmatpush.bf16.msra.mxu1 %v8763_v13  ;;  %6637 = vmatpush.bf16.msra.mxu3 %v8767_v27  ;;  %v8479_v13 = vor.u32 %v9408_v55, %v8478_v61  ;;  %v8739_v27 = vor.u32 %v9468_v39, %v8736_v6  ;;  %v9556_v6 = vld [vmem:[%s13685_s9 + $0x118] sm:$0xff] }
 0x6ad   :  { %6568 = vmatpush.bf16.msrb.mxu2 %v8471_v62  ;;  %v8707_v62 = vor.u32 %v9460_v34, %v8704_v43  ;;  %v9555_v34 = vld [vmem:[%s13685_s9 + $0x110] sm:$0xff]  ;;  %v9561_v43 = vld [vmem:[%s13685_s9 + $0x140] sm:$0xff] }
 0x6ae   :  { %6610 = vmatpush.bf16.msra.mxu1 %v8731_v32  ;;  %6638 = vmatpush.bf16.msra.mxu3 %v8735_v36  ;;  %v9533_v32 = vld [vmem:[%s13685_s9 + $0x60] sm:$0xff]  ;;  %v9527_v36 = vld [vmem:[%s13685_s9 + $0x30] sm:$0xff] }
 0x6b1   :  { %6569 = vmatpush.bf16.msrb.mxu2 %v8439_v31  ;;  %v9529_v31 = vld [vmem:[%s13685_s9 + $0x40] sm:$0xff] }
 0x6b2   :  { %6611 = vmatpush.bf16.msra.mxu1 %v8699_v3  ;;  %6639 = vmatpush.bf16.msra.mxu3 %v8703_v7  ;;  %v9543_v3 = vld [vmem:[%s13685_s9 + $0xb0] sm:$0xff] }
 0x6b3   :  { %7243 = vmatpush.bf16.msrb.mxu0 %v9543_v3 }
 0x6b4   :  { %6570 = vmatmul.bf16.vlgmr.msrb.gmra.mxu2 %v12878_v63 }
 0x6b5   :  { %6618 = vmatpush.bf16.msra.mxu2 %v8671_v28  ;;  %6612 = vmatmul.bf16.vlgmr.msra.gmra.mxu1 %v13226_v37  ;;  %v9549_v28 = vld [vmem:[%s13685_s9 + $0xe0] sm:$0xff] }
 0x6b6   :  { %6660 = vmatpush.bf16.msrb.mxu1 %v8931_v21  ;;  %6640 = vmatmul.bf16.vlgmr.msra.gmra.mxu3 %v13226_v37  ;;  %v9522_v21 = vld [vmem:[%s13685_s9 + $0x8] sm:$0xff] }
 0x6b7   :  { %7228 = vmatpush.bf16.msrb.mxu3 %v9536_v47  ;;  %7244 = vmatpush.bf16.msrb.mxu0 %v9542_v56 }
 0x6b9   :  { %6619 = vmatpush.bf16.msra.mxu2 %v8639_v42  ;;  %v13512_v7 = vpop.f32.mrf.mxu1  ;;  %v9541_v42 = vld [vmem:[%s13685_s9 + $0xa0] sm:$0xff] }
 0x6ba   :  { %6661 = vmatpush.bf16.msrb.mxu1 %v8899_v44  ;;  %v9547_v44 = vld [vmem:[%s13685_s9 + $0xd0] sm:$0xff]  ;;  %v6543_v61 = vpop.f32.mrf.mxu0 }
 0x6bb   :  { %7229 = vmatpush.bf16.msrb.mxu3 %v9535_v18  ;;  %7245 = vmatpush.bf16.msrb.mxu0 %v9541_v42  ;;  %v9562_v18 = vld [vmem:[%s13685_s9 + $0x148] sm:$0xff] }
 0x6bd   :  { %6620 = vmatpush.bf16.msra.mxu2 %v8607_v49  ;;  %v9560_v49 = vld [vmem:[%s13685_s9 + $0x138] sm:$0xff] }
 0x6be   :  { %6662 = vmatpush.bf16.msrb.mxu1 %v8867_v15  ;;  %v9566_v15 = vld [vmem:[%s13685_s9 + $0x168] sm:$0xff] }
 0x6bf   :  { %7230 = vmatpush.bf16.msrb.mxu3 %v9534_v50  ;;  %v6487_v17 = vpop.f32.mrf.mxu3  ;;  %7246 = vmatpush.bf16.msrb.mxu0 %v9540_v54  ;;  %v9584_v50 = vld [vmem:[%s13685_s9 + $0x1f8] sm:$0xff] }
 0x6c1   :  { %6621 = vmatpush.bf16.msra.mxu2 %v8575_v5  ;;  %v6461_v23 = vpop.f32.mrf.mxu1  ;;  %v9565_v5 = vld [vmem:[%s13685_s9 + $0x160] sm:$0xff] }
 0x6c2   :  { %6663 = vmatpush.bf16.msrb.mxu1 %v8835_v0  ;;  %v13565_v0 = vld [vmem:[%s13686_s8] sm:$0xff] }
 0x6c3   :  { %7231 = vmatpush.bf16.msrb.mxu3 %v9533_v32  ;;  %7247 = vmatpush.bf16.msrb.mxu0 %v9539_v10  ;;  %v5796_v56 = vperm.slane %v13565_v0, 2 }
 0x6c5   :  { %6622 = vmatpush.bf16.msra.mxu2 %v8543_v26  ;;  %v5795_v26 = vperm.slane %v13565_v0, 1 }
 0x6c6   :  { %6664 = vmatpush.bf16.msrb.mxu1 %v8803_v35 }
 0x6c7   :  { %7232 = vmatpush.bf16.msrb.mxu3 %v9532_v8  ;;  %7248 = vmatpush.bf16.msrb.mxu0 %v9538_v51  ;;  %v6489_v35 = vpop.f32.mrf.mxu3  ;;  %v6488_v9 = vadd.f32 %v6487_v17, %v5795_v26  ;;  %v9554_v8 = vld [vmem:[%s13685_s9 + $0x108] sm:$0xff] }
 0x6c8   :  { %v6490_v55 = vadd.f32 %v6489_v35, %v5795_v26 }
 0x6c9   :  { %6623 = vmatpush.bf16.msra.mxu2 %v8511_v11 }
 0x6ca   :  { %6665 = vmatpush.bf16.msrb.mxu1 %v8771_v19  ;;  %v5794_v19 = vperm.slane %v13565_v0, 0 }
 0x6cb   :  { %7249 = vmatpush.bf16.msrb.mxu0 %v9537_v59  ;;  %v9572_v59 = vld [vmem:[%s13685_s9 + $0x198] sm:$0xff] }
 0x6cd   :  { %6624 = vmatpush.bf16.msra.mxu2 %v8479_v13 }
 0x6ce   :  { %6666 = vmatpush.bf16.msrb.mxu1 %v8739_v27  ;;  %v6460_v27 = vadd.f32 %v13512_v7, %v5794_v19 }
 0x6d1   :  { %6625 = vmatpush.bf16.msra.mxu2 %v8447_v1  ;;  %v6462_v1 = vadd.f32 %v6461_v23, %v5794_v19 }
 0x6d2   :  { %6667 = vmatpush.bf16.msrb.mxu1 %v8707_v62 }
 0x6d4   :  { %6626 = vmatmul.bf16.vlgmr.msra.gmra.mxu2 %v12878_v63  ;;  %v9525_v63 = vld [vmem:[%s13685_s9 + $0x20] sm:$0xff] }
 0x6d5   :  { %7214 = vmatpush.bf16.msrb.mxu2 %v9528_v24  ;;  %6668 = vmatmul.bf16.vlgmr.msrb.gmra.mxu1 %v13226_v37  ;;  %v9531_v37 = vld [vmem:[%s13685_s9 + $0x50] sm:$0xff] }
 0x6d6   :  { %7256 = vmatpush.bf16.msra.mxu1 %v9552_v38  ;;  %7233 = vmatpush.bf16.msrb.mxu3 %v9531_v37  ;;  %v9583_v38 = vld [vmem:[%s13685_s9 + $0x1f0] sm:$0xff]  ;;  %v6545_v37 = vpop.f32.mrf.mxu0 }
 0x6d9   :  { %7215 = vmatpush.bf16.msrb.mxu2 %v9527_v36 }
 0x6da   :  { %7257 = vmatpush.bf16.msra.mxu1 %v9551_v41  ;;  %7234 = vmatpush.bf16.msrb.mxu3 %v9530_v58 }
 0x6dd   :  { %7216 = vmatpush.bf16.msrb.mxu2 %v9526_v20 }
 0x6de   :  { %7258 = vmatpush.bf16.msra.mxu1 %v9550_v46  ;;  %7235 = vmatpush.bf16.msrb.mxu3 %v9529_v31  ;;  %v9553_v46 = vld [vmem:[%s13685_s9 + $0x100] sm:$0xff]  ;;  %v9582_v31 = vld [vmem:[%s13685_s9 + $0x1e8] sm:$0xff] }
 0x6e1   :  { %7217 = vmatpush.bf16.msrb.mxu2 %v9525_v63  ;;  %v5797_v63 = vperm.slane %v13565_v0, 3 }
 0x6e2   :  { %7259 = vmatpush.bf16.msra.mxu1 %v9549_v28  ;;  %7284 = vmatpush.bf16.msra.mxu3 %v9568_v60  ;;  %v9581_v60 = vld [vmem:[%s13685_s9 + $0x1e0] sm:$0xff] }
 0x6e3   :  { %v6544_v3 = vadd.f32 %v6543_v61, %v5797_v63  ;;  %v6546_v7 = vadd.f32 %v6545_v37, %v5797_v63 }
 0x6e5   :  { %7218 = vmatpush.bf16.msrb.mxu2 %v9524_v52 }
 0x6e6   :  { %7260 = vmatpush.bf16.msra.mxu1 %v9548_v33  ;;  %7285 = vmatpush.bf16.msra.mxu3 %v9567_v29  ;;  %v9575_v33 = vld [vmem:[%s13685_s9 + $0x1b0] sm:$0xff] }
 0x6e9   :  { %7219 = vmatpush.bf16.msrb.mxu2 %v9523_v25  ;;  %v9576_v25 = vld [vmem:[%s13685_s9 + $0x1b8] sm:$0xff] }
 0x6ea   :  { %7261 = vmatpush.bf16.msra.mxu1 %v9547_v44  ;;  %7286 = vmatpush.bf16.msra.mxu3 %v9566_v15  ;;  %v6599_v44 = vpop.f32.mrf.mxu0  ;;  %v9580_v15 = vld [vmem:[%s13685_s9 + $0x1d8] sm:$0xff] }
 0x6eb   :  { %7298 = vmatpush.bf16.msra.mxu0 %v9576_v25 }
 0x6ed   :  { %7220 = vmatpush.bf16.msrb.mxu2 %v9522_v21 }
 0x6ee   :  { %7262 = vmatpush.bf16.msra.mxu1 %v9546_v4  ;;  %7287 = vmatpush.bf16.msra.mxu3 %v9565_v5  ;;  %v9573_v5 = vld [vmem:[%s13685_s9 + $0x1a0] sm:$0xff] }
 0x6ef   :  { %7299 = vmatpush.bf16.msra.mxu0 %v9575_v33 }
 0x6f1   :  { %7221 = vmatpush.bf16.msrb.mxu2 %v9521_v14 }
 0x6f2   :  { %7263 = vmatpush.bf16.msra.mxu1 %v9545_v12  ;;  %7288 = vmatpush.bf16.msra.mxu3 %v9564_v45  ;;  %v5799_v45 = vperm.slane %v13565_v0, 5 }
 0x6f5   :  { %7270 = vmatpush.bf16.msra.mxu2 %v9560_v49  ;;  %v9574_v49 = vld [vmem:[%s13685_s9 + $0x1a8] sm:$0xff] }
 0x6f6   :  { %7289 = vmatpush.bf16.msra.mxu3 %v9563_v2  ;;  %7312 = vmatpush.bf16.msrb.mxu1 %v9584_v50  ;;  %v6601_v2 = vpop.f32.mrf.mxu0 }
 0x6f7   :  { %7300 = vmatpush.bf16.msra.mxu0 %v9574_v49 }
 0x6f9   :  { %7271 = vmatpush.bf16.msra.mxu2 %v9559_v22 }
 0x6fa   :  { %7290 = vmatpush.bf16.msra.mxu3 %v9562_v18  ;;  %7313 = vmatpush.bf16.msrb.mxu1 %v9583_v38  ;;  %v9577_v18 = vld [vmem:[%s13685_s9 + $0x1c0] sm:$0xff] }
 0x6fb   :  { %7301 = vmatpush.bf16.msra.mxu0 %v9573_v5 }
 0x6fd   :  { %7272 = vmatpush.bf16.msra.mxu2 %v9558_v48 }
 0x6fe   :  { %7291 = vmatpush.bf16.msra.mxu3 %v9561_v43  ;;  %7314 = vmatpush.bf16.msrb.mxu1 %v9582_v31  ;;  %v9570_v43 = vld [vmem:[%s13685_s9 + $0x188] sm:$0xff]  ;;  %v6655_v37 = vpop.f32.mrf.mxu0  ;;  %v5800_v31 = vperm.slane %v13565_v0, 6 }
 0x6ff   :  { %7302 = vmatpush.bf16.msra.mxu0 %v9572_v59 }
 0x701   :  { %7273 = vmatpush.bf16.msra.mxu2 %v9557_v53  ;;  %v9578_v53 = vld [vmem:[%s13685_s9 + $0x1c8] sm:$0xff] }
 0x702   :  { %7315 = vmatpush.bf16.msrb.mxu1 %v9581_v60 }
 0x705   :  { %7274 = vmatpush.bf16.msra.mxu2 %v9556_v6  ;;  %v9571_v6 = vld [vmem:[%s13685_s9 + $0x190] sm:$0xff] }
 0x706   :  { %7316 = vmatpush.bf16.msrb.mxu1 %v9580_v15  ;;  %7303 = vmatpush.bf16.msra.mxu0 %v9571_v6 }
 0x709   :  { %7275 = vmatpush.bf16.msra.mxu2 %v9555_v34 }
 0x70a   :  { %7304 = vmatpush.bf16.msra.mxu0 %v9570_v43 }
 0x70d   :  { %7276 = vmatpush.bf16.msra.mxu2 %v9554_v8 }
 0x711   :  { %v6501_v16 = vpop.f32.mrf.mxu1  ;;  %7277 = vmatpush.bf16.msra.mxu2 %v9553_v46 }
 0x712   :  { %v6502_v47 = vadd.f32 %v6501_v16, %v6488_v9  ;;  %v9579_v16 = vld [vmem:[%s13685_s9 + $0x1d0] sm:$0xff] }
 0x713   :  { %7317 = vmatpush.bf16.msrb.mxu1 %v9579_v16  ;;  %v9688_v16 = vmov 0  }
 0x714   :  { %v6675_v30 = vmax.f32 %v6502_v47, 0.0  ;;  %v6602_v47 = vadd.f32 %v6601_v2, %v5799_v45  ;;  %9591 = vset.pattern.permute.xlu2 %v9688_v16  ;;  %9592 = vset.pattern.permute.xlu0 %v9688_v16 }
 0x717   :  { %v6473_v11 = vpop.f32.mrf.mxu2  ;;  %7318 = vmatpush.bf16.msrb.mxu1 %v9578_v53 }
 0x718   :  { %v6474_v62 = vadd.f32 %v6473_v11, %v6460_v27  ;;  %v6529_v58 = vpop.f32.mrf.mxu3  ;;  %v6600_v11 = vadd.f32 %v6599_v44, %v5799_v45 }
 0x719   :  { %v6503_v39 = vpop.f32.mrf.mxu1 }
 0x71a   :  { %v6504_v13 = vadd.f32 %v6503_v39, %v6490_v55  ;;  %v6674_v41 = vmax.f32 %v6474_v62, 0.0  ;;  %v5798_v55 = vperm.slane %v13565_v0, 4 }
 0x71b   :  { %7319 = vmatpush.bf16.msrb.mxu1 %v9577_v18 }
 0x71c   :  { %v6683_v57 = vmax.f32 %v6504_v13, 0.0 }
 0x71e   :  { %v6691_v24 = vpack.c.bf16 %v6683_v57, %v6675_v30 }
 0x71f   :  { %v6475_v32 = vpop.f32.mrf.mxu2 }
 0x720   :  { %v6476_v36 = vadd.f32 %v6475_v32, %v6462_v1  ;;  %7236 = vmatmul.bf16.vlgmr.msrb.gmra.mxu3 %v6691_v24  ;;  %v6531_v4 = vpop.f32.mrf.mxu3 }
 0x721   :  { %v6557_v20 = vpop.f32.mrf.mxu1 }
 0x722   :  { %v6682_v52 = vmax.f32 %v6476_v36, 0.0  ;;  %v6558_v21 = vadd.f32 %v6557_v20, %v6544_v3  ;;  %v9569_v36 = vld [vmem:[%s13685_s9 + $0x180] sm:$0xff] }
 0x723   :  { %7305 = vmatpush.bf16.msra.mxu0 %v9569_v36 }
 0x724   :  { %v6690_v40 = vpack.c.bf16 %v6682_v52, %v6674_v41  ;;  %v6677_v29 = vmax.f32 %v6558_v21, 0.0  ;;  %v5801_v52 = vperm.slane %v13565_v0, 7 }
 0x726   :  { %7222 = vmatmul.bf16.vlgmr.msrb.gmra.mxu2 %v6690_v40  ;;  %v6656_v40 = vadd.f32 %v6655_v37, %v5801_v52 }
 0x727   :  { %v6515_v28 = vpop.f32.mrf.mxu2 }
 0x728   :  { %v6516_v23 = vadd.f32 %v6515_v28, %v5796_v56  ;;  %v6585_v19 = vpop.f32.mrf.mxu3 }
 0x729   :  { %v6559_v14 = vpop.f32.mrf.mxu1 }
 0x72a   :  { %v6560_v42 = vadd.f32 %v6559_v14, %v6546_v7  ;;  %v6530_v12 = vadd.f32 %v6529_v58, %v6516_v23  ;;  %v6657_v58 = vpop.f32.mrf.mxu0 }
 0x72b   :  { %v6658_v3 = vadd.f32 %v6657_v58, %v5801_v52 }
 0x72c   :  { %v6685_v54 = vmax.f32 %v6560_v42, 0.0  ;;  %v6676_v26 = vmax.f32 %v6530_v12, 0.0 }
 0x72e   :  { %v6693_v17 = vpack.c.bf16 %v6685_v54, %v6677_v29 }
 0x72f   :  { %v6517_v10 = vpop.f32.mrf.mxu2 }
 0x730   :  { %v6518_v22 = vadd.f32 %v6517_v10, %v5796_v56  ;;  %7264 = vmatmul.bf16.vlgmr.msra.gmra.mxu1 %v6693_v17  ;;  %v6587_v32 = vpop.f32.mrf.mxu3  ;;  %v9596_v10 = vld [vmem:[%s13687_s10] ss:$0 sm:$0xff]  ;;  %s9689_s10 = smov 127  }
 0x732   :  { %v6532_v51 = vadd.f32 %v6531_v4, %v6518_v22  ;;  %v6613_v48 = vpop.f32.mrf.mxu1 }
 0x733   :  { %v6614_v39 = vadd.f32 %v6613_v48, %v6600_v11 }
 0x734   :  { %v6684_v35 = vmax.f32 %v6532_v51, 0.0 }
 0x735   :  { %v6679_v57 = vmax.f32 %v6614_v39, 0.0 }
 0x736   :  { %v6692_v9 = vpack.c.bf16 %v6684_v35, %v6676_v26 }
 0x737   :  { %v6571_v61 = vpop.f32.mrf.mxu2 }
 0x738   :  { %7250 = vmatmul.bf16.vlgmr.msrb.gmra.mxu0 %v6692_v9  ;;  %v6572_v30 = vadd.f32 %v6571_v61, %v5798_v55 }
 0x739   :  { %v6641_v46 = vpop.f32.mrf.mxu3 }
 0x73a   :  { %v6615_v13 = vpop.f32.mrf.mxu1  ;;  %v6586_v62 = vadd.f32 %v6585_v19, %v6572_v30 }
 0x73b   :  { %v6616_v27 = vadd.f32 %v6615_v13, %v6602_v47 }
 0x73c   :  { %v6678_v8 = vmax.f32 %v6586_v62, 0.0 }
 0x73d   :  { %v6687_v34 = vmax.f32 %v6616_v27, 0.0 }
 0x73f   :  { %v6695_v50 = vpack.c.bf16 %v6687_v34, %v6679_v57  ;;  %v6573_v1 = vpop.f32.mrf.mxu2 }
 0x740   :  { %v6574_v24 = vadd.f32 %v6573_v1, %v5798_v55 }
 0x741   :  { %7292 = vmatmul.bf16.vlgmr.msra.gmra.mxu3 %v6695_v50  ;;  %v6643_v23 = vpop.f32.mrf.mxu3 }
 0x742   :  { %v6588_v20 = vadd.f32 %v6587_v32, %v6574_v24 }
 0x744   :  { %v6686_v38 = vmax.f32 %v6588_v20, 0.0 }
 0x746   :  { %v6694_v63 = vpack.c.bf16 %v6686_v38, %v6678_v8  ;;  %v9690_v38 = vmov 6.0  }
 0x747   :  { %9597 = vrcp.f32 %v9690_v38 }
 0x748   :  { %7278 = vmatmul.bf16.vlgmr.msra.gmra.mxu2 %v6694_v63 }
 0x74d   :  { %v9598_v63 = vpop.eup %9597 }
 0x74e   :  { %v7352_v37 = vmul.f32 6.0, %v9598_v63  ;;  %vm7356_vm4 = vweird.f32 %v9598_v63 }
 0x752   :  { %v6669_v41 = vpop.f32.mrf.mxu1 }
 0x753   :  { %v6670_v28 = vadd.f32 %v6669_v41, %v6656_v40  ;;  %v7353_v41 = vsub.f32 1.0, %v7352_v37 }
 0x755   :  { %v6681_v33 = vmax.f32 %v6670_v28, 0.0  ;;  %v7354_v52 = vmul.f32 %v9598_v63, %v7353_v41 }
 0x757   :  { %v6627_v25 = vpop.f32.mrf.mxu2  ;;  %v7355_v40 = vadd.f32 %v9598_v63, %v7354_v52 }
 0x758   :  { %v6628_v56 = vadd.f32 %v6627_v25, %v5800_v31 }
 0x75a   :  { %v6671_v7 = vpop.f32.mrf.mxu1  ;;  %v6642_v44 = vadd.f32 %v6641_v46, %v6628_v56  ;;  %v7357_v46 = vsel %vm7356_vm4, %v9598_v63, %v7355_v40 }
 0x75b   :  { %v6672_v21 = vadd.f32 %v6671_v7, %v6658_v3 }
 0x75c   :  { %v6680_v4 = vmax.f32 %v6642_v44, 0.0 }
 0x75d   :  { %v6689_v60 = vmax.f32 %v6672_v21, 0.0 }
 0x75f   :  { %v6697_v14 = vpack.c.bf16 %v6689_v60, %v6681_v33  ;;  %v6629_v42 = vpop.f32.mrf.mxu2 }
 0x760   :  { %v6630_v29 = vadd.f32 %v6629_v42, %v5800_v31 }
 0x761   :  { %7320 = vmatmul.bf16.vlgmr.msrb.gmra.mxu1 %v6697_v14 }
 0x762   :  { %v6644_v54 = vadd.f32 %v6643_v23, %v6630_v29 }
 0x764   :  { %v6688_v49 = vmax.f32 %v6644_v54, 0.0 }
 0x766   :  { %v6696_v15 = vpack.c.bf16 %v6688_v49, %v6680_v4 }
 0x768   :  { %7306 = vmatmul.bf16.vlgmr.msra.gmra.mxu0 %v6696_v15 }
 0x7a3   :  { %v7237_v0 = vpop.f32.mrf.mxu3 }
 0x7a9   :  { %v7223_v17 = vpop.f32.mrf.mxu2 }
 0x7aa   :  { %v7224_v51 = vadd.f32 %v9596_v10, %v7223_v17 }
 0x7ab   :  { %v7239_v45 = vpop.f32.mrf.mxu3 }
 0x7ac   :  { %v7238_v48 = vadd.f32 %v7237_v0, %v7224_v51 }
 0x7ad   :  { %v7265_v22 = vpop.f32.mrf.mxu1 }
 0x7b1   :  { %v7225_v12 = vpop.f32.mrf.mxu2 }
 0x7b2   :  { %v7226_v59 = vadd.f32 %v9596_v10, %v7225_v12 }
 0x7b4   :  { %v7240_v11 = vadd.f32 %v7239_v45, %v7226_v59 }
 0x7b5   :  { %v7251_v5 = vpop.f32.mrf.mxu0  ;;  %v7267_v53 = vpop.f32.mrf.mxu1 }
 0x7b6   :  { %v7252_v26 = vadd.f32 %v7251_v5, %v7238_v48 }
 0x7b8   :  { %v7266_v9 = vadd.f32 %v7265_v22, %v7252_v26 }
 0x7bd   :  { %v7253_v2 = vpop.f32.mrf.mxu0 }
 0x7be   :  { %v7254_v55 = vadd.f32 %v7253_v2, %v7240_v11 }
 0x7c0   :  { %v7268_v13 = vadd.f32 %v7267_v53, %v7254_v55 }
 0x7c4   :  { %v7293_v61 = vpop.f32.mrf.mxu3 }
 0x7cb   :  { %v7279_v35 = vpop.f32.mrf.mxu2 }
 0x7cc   :  { %v7280_v19 = vadd.f32 %v7279_v35, %v7266_v9  ;;  %v7295_v34 = vpop.f32.mrf.mxu3 }
 0x7ce   :  { %v7294_v39 = vadd.f32 %v7293_v61, %v7280_v19 }
 0x7d3   :  { %v7281_v47 = vpop.f32.mrf.mxu2 }
 0x7d4   :  { %v7282_v30 = vadd.f32 %v7281_v47, %v7268_v13 }
 0x7d6   :  { %v7296_v43 = vadd.f32 %v7295_v34, %v7282_v30 }
 0x7de   :  { %v7321_v6 = vpop.f32.mrf.mxu1 }
 0x7e5   :  { %v7307_v18 = vpop.f32.mrf.mxu0 }
 0x7e6   :  { %v7308_v27 = vadd.f32 %v7307_v18, %v7294_v39  ;;  %v7323_v62 = vpop.f32.mrf.mxu1 }
 0x7e8   :  { %v7322_v57 = vadd.f32 %v7321_v6, %v7308_v27 }
 0x7ea   :  { %7338 = vrot.lane.b32.xlu1 %v7322_v57, %s9689_s10 }
 0x7ed   :  { %v7309_v50 = vpop.f32.mrf.mxu0 }
 0x7ee   :  { %v7310_v1 = vadd.f32 %v7309_v50, %v7296_v43 }
 0x7f0   :  { %v7324_v24 = vadd.f32 %v7323_v62, %v7310_v1 }
 0x7f2   :  { %7340 = vrot.lane.b32.xlu2 %v7324_v24, %s9689_s10 }
 0x7fa   :  { %7328 = vperm.xlu2 %9591, %v7322_v57  }
 0x802   :  { %7333 = vperm.xlu2 %9591, %v7324_v24  }
 0x84c   :  { %v7341_v32 = vpop.permute.xlu2 %7340 }
 0x84d   :  { %v7348_v36 = vsel %vm7344_vm3, %v7341_v32, 0.0 }
 0x84e   :  { %7349 = vadd.xlane.f32.xlu1 %v7348_v36 }
 0x854   :  { %v7329_v58 = vpop.permute.xlu2 %7328 }
 0x855   :  { %v7336_v31 = vadd.f32 %v7329_v58, %v7322_v57 }
 0x85c   :  { %v7339_v20 = vpop.permute.xlu1 %7338  ;;  %v7334_v21 = vpop.permute.xlu2 %7333 }
 0x85d   :  { %v7345_v8 = vsel %vm7344_vm3, %v7339_v20, 0.0  ;;  %v7337_v33 = vadd.f32 %v7334_v21, %v7324_v24 }
 0x85e   :  { %7346 = vadd.xlane.f32.xlu0 %v7345_v8 }
 0x8c1   :  { %v7350_v7 = vpop.xlane.xlu1 %7349 }
 0x8c2   :  { %v7359_v56 = vmul.f32 %v7357_v46, %v7350_v7 }
 0x8c4   :  { %v7361_v60 = vsub.f32 %v7337_v33, %v7359_v56 }
 0x8d1   :  { %v7347_v25 = vpop.xlane.xlu0 %7346 }
 0x8d2   :  { %v7358_v3 = vmul.f32 %v7357_v46, %v7347_v25 }
 0x8d4   :  { %v7360_v28 = vsub.f32 %v7336_v31, %v7358_v3 }
 0x8d6   :  { %7364 = vrot.lane.b32.xlu2 %v7360_v28, %s9689_s10 }
 0x8de   :  { %7366 = vrot.lane.b32.xlu2 %v7361_v60, %s9689_s10 }
 0x930   :  { %v7365_v14 = vpop.permute.xlu2 %7364 }
 0x931   :  { %7370 = vst.msk [vmem:[%s13688_s11] sm:$0xff] %vm7344_vm3, %v7365_v14 }
 0x938   :  { %v7367_v42 = vpop.permute.xlu2 %7366 }
 0x939   :  { %7371 = vst.msk [vmem:[%s13688_s11 + $0x8] sm:$0xff] %vm7344_vm3, %v7367_v42 }

</bundles_post_ra>
